<compile_context>
chip_gen: v7x
topology: tpu7x:2x2x1
jax: 0.10.0
libtpu: 0.0.40
codegen_flags: <defaults>
</compile_context>

<pallas_src>
import jax
import jax.numpy as jnp
from jax.experimental import pallas as pl
from jax.experimental.pallas import tpu as pltpu


# ------------------------- flat-spatial geometry ----------------------------
# stage 0: input  (3, 1024)  strides (32, 1), valid 32x32
# conv1 :          (6, L1)   strides (32, 1), valid 28x28   (reads off<=132)
# pool1 :          (6, L1P)  strides (64, 2), valid 14x14   (reads off<=33)
# conv2 :          (16, L2)  strides (64, 2), valid 10x10   (reads off<=264)
# pool2 :          (16, L2P) strides (128,4), valid 5x5     (reads off<=66)
L0 = 1024
L1 = 892     # max valid anchor 27*32+27 = 891 ; 132 + 892 = 1024
L1P = 859    # max valid anchor 13*64+13*2 = 858 ; 33 + 859 = 892
L2 = 595     # max valid anchor 9*64+9*2 = 594 ; 264 + 595 = 859
L2P = 529    # max valid anchor 4*128+4*4 = 528 ; 66 + 529 = 595


# ------------------------------ fused kernel --------------------------------

def _net_kernel(x_ref, w1_ref, b1_ref, w2_ref, b2_ref,
                fw1_ref, fb1_ref, fw2_ref, fb2_ref, fw3_ref, fb3_ref,
                out_ref, c1_ref, p1_ref, c2_ref, p2_ref):
    f32 = jnp.float32

    # ---- conv1 (3->6, 5x5) + ReLU : 25 shifted slices, strides (32, 1) ----
    acc1 = jnp.zeros((6, L1), f32)
    for di in range(5):
        for dj in range(5):
            tap = di * 5 + dj
            off = di * 32 + dj
            acc1 = acc1 + jnp.dot(w1_ref[tap],                      # (6, 3)
                                  x_ref[0, :, pl.ds(off, L1)],      # (3, L1)
                                  preferred_element_type=f32)
    c1_ref[...] = jnp.maximum(acc1 + b1_ref[...], 0.0)

    # ---- maxpool 2x2/2 (fused epilogue): strides (32,1) -> (64,2) ----
    p1_ref[...] = jnp.maximum(
        jnp.maximum(c1_ref[:, pl.ds(0, L1P)], c1_ref[:, pl.ds(1, L1P)]),
        jnp.maximum(c1_ref[:, pl.ds(32, L1P)], c1_ref[:, pl.ds(33, L1P)]))

    # ---- conv2 (6->16, 5x5) + ReLU on strides (64, 2) ----
    acc2 = jnp.zeros((16, L2), f32)
    for di in range(5):
        for dj in range(5):
            tap = di * 5 + dj
            off = di * 64 + dj * 2
            acc2 = acc2 + jnp.dot(w2_ref[tap],                      # (16, 6)
                                  p1_ref[:, pl.ds(off, L2)],        # (6, L2)
                                  preferred_element_type=f32)
    c2_ref[...] = jnp.maximum(acc2 + b2_ref[...], 0.0)

    # ---- maxpool 2x2/2: strides (64,2) -> (128,4) ----
    p2_ref[...] = jnp.maximum(
        jnp.maximum(c2_ref[:, pl.ds(0, L2P)], c2_ref[:, pl.ds(2, L2P)]),
        jnp.maximum(c2_ref[:, pl.ds(64, L2P)], c2_ref[:, pl.ds(66, L2P)]))

    # ---- fc1 (400 -> 120): gather the 25 valid spatial columns ----
    h = fb1_ref[...]                                                # (120, 1)
    for yy in range(5):
        for xx in range(5):
            tap = yy * 5 + xx
            pos = yy * 128 + xx * 4
            h = h + jnp.dot(fw1_ref[tap],                           # (120, 16)
                            p2_ref[:, pl.ds(pos, 1)],               # (16, 1)
                            preferred_element_type=f32)
    h = jnp.maximum(h, 0.0)

    # ---- fc2 (120 -> 84) + ReLU ----
    h = jnp.maximum(
        jnp.dot(fw2_ref[...], h, preferred_element_type=f32) + fb2_ref[...],
        0.0)

    # ---- fc3 (84 -> 10) ----
    logits = jnp.dot(fw3_ref[...], h, preferred_element_type=f32) + fb3_ref[...]
    out_ref[0] = logits                                             # (10, 1)


# ------------------------------- forward ------------------------------------

def net_forward(kp, x):
    n, c, hh, ww = x.shape
    assert (c, hh, ww) == (3, 32, 32)
    x_flat = x.reshape(n, 3, L0)          # contiguous, free at the boundary

    out = pl.pallas_call(
        _net_kernel,
        out_shape=jax.ShapeDtypeStruct((n, 10, 1), jnp.float32),
        grid=(n,),
        in_specs=[
            pl.BlockSpec((1, 3, L0), lambda b: (b, 0, 0)),      # image
            pl.BlockSpec((25, 6, 3), lambda b: (0, 0, 0)),      # conv1 w
            pl.BlockSpec((6, 1), lambda b: (0, 0)),             # conv1 b
            pl.BlockSpec((25, 16, 6), lambda b: (0, 0, 0)),     # conv2 w
            pl.BlockSpec((16, 1), lambda b: (0, 0)),            # conv2 b
            pl.BlockSpec((25, 120, 16), lambda b: (0, 0, 0)),   # fc1 w
            pl.BlockSpec((120, 1), lambda b: (0, 0)),           # fc1 b
            pl.BlockSpec((84, 120), lambda b: (0, 0)),          # fc2 w
            pl.BlockSpec((84, 1), lambda b: (0, 0)),            # fc2 b
            pl.BlockSpec((10, 84), lambda b: (0, 0)),           # fc3 w
            pl.BlockSpec((10, 1), lambda b: (0, 0)),            # fc3 b
        ],
        out_specs=pl.BlockSpec((1, 10, 1), lambda b: (b, 0, 0)),
        scratch_shapes=[
            pltpu.VMEM((6, L1), jnp.float32),    # conv1 output
            pltpu.VMEM((6, L1P), jnp.float32),   # pool1 output
            pltpu.VMEM((16, L2), jnp.float32),   # conv2 output
            pltpu.VMEM((16, L2P), jnp.float32),  # pool2 output
        ],
        compiler_params=pltpu.CompilerParams(
            dimension_semantics=("parallel",)),
    )(x_flat, kp["w1"], kp["b1"], kp["w2"], kp["b2"],
      kp["fw1"], kp["fb1"], kp["fw2"], kp["fb2"], kp["fw3"], kp["fb3"])

    return out[:, :, 0]                   # (N, 10)


# ------------------------------- parameters ---------------------------------

def _uniform(key, shape, fan_in):
    bound = 1.0 / (fan_in ** 0.5)
    return jax.random.uniform(key, shape, jnp.float32, -bound, bound)


def init_params(key):
    """Parameters in the PyTorch nn.Module layout."""
    ks = jax.random.split(key, 10)
    return {
        "conv1_w": _uniform(ks[0], (6, 3, 5, 5), 3 * 5 * 5),
        "conv1_b": _uniform(ks[1], (6,), 3 * 5 * 5),
        "conv2_w": _uniform(ks[2], (16, 6, 5, 5), 6 * 5 * 5),
        "conv2_b": _uniform(ks[3], (16,), 6 * 5 * 5),
        "fc1_w": _uniform(ks[4], (120, 400), 400),
        "fc1_b": _uniform(ks[5], (120,), 400),
        "fc2_w": _uniform(ks[6], (84, 120), 120),
        "fc2_b": _uniform(ks[7], (84,), 120),
        "fc3_w": _uniform(ks[8], (10, 84), 84),
        "fc3_b": _uniform(ks[9], (10,), 84),
    }


def prepare_params(p):
    """One-time re-layout of PyTorch-layout params into the kernel layout
    (done once at init, NOT per forward)."""
    return {
        # (OC, IC, 5, 5) -> (25, OC, IC), tap index t = 5*di + dj
        "w1": jnp.transpose(p["conv1_w"].reshape(6, 3, 25), (2, 0, 1)),
        "b1": p["conv1_b"].reshape(6, 1),
        "w2": jnp.transpose(p["conv2_w"].reshape(16, 6, 25), (2, 0, 1)),
        "b2": p["conv2_b"].reshape(16, 1),
        # (120, 400) with column index c*25 + (y*5 + x)  ->  (25, 120, 16)
        "fw1": jnp.transpose(p["fc1_w"].reshape(120, 16, 25), (2, 0, 1)),
        "fb1": p["fc1_b"].reshape(120, 1),
        "fw2": p["fc2_w"],                       # (84, 120) used as-is
        "fb2": p["fc2_b"].reshape(84, 1),
        "fw3": p["fc3_w"],                       # (10, 84) used as-is
        "fb3": p["fc3_b"].reshape(10, 1),
    }


# --------------------------------- main --------------------------------------

if __name__ == "__main__":
    key = jax.random.PRNGKey(0)
    k_param, k_x = jax.random.split(key)
    params = init_params(k_param)        # PyTorch layout
    kparams = prepare_params(params)     # kernel layout (one-time)
    x = jax.random.normal(k_x, (2, 3, 32, 32), dtype=jnp.float32)

    fwd = jax.jit(net_forward)
    out = jax.block_until_ready(fwd(kparams, x))
    assert out.shape == (2, 10) and out.dtype == jnp.float32
    assert bool(jnp.all(jnp.isfinite(out)))
    print("KERNEL_OK")
</pallas_src>

<mosaic_0001>
module attributes {stable_mosaic.version = 11 : i64} {
  func.func @_net_kernel(%arg0: i32, %arg1: memref<1x3x1024xf32, #tpu.memory_space<vmem>>, %arg2: memref<25x6x3xf32, #tpu.memory_space<vmem>>, %arg3: memref<6x1xf32, #tpu.memory_space<vmem>>, %arg4: memref<25x16x6xf32, #tpu.memory_space<vmem>>, %arg5: memref<16x1xf32, #tpu.memory_space<vmem>>, %arg6: memref<25x120x16xf32, #tpu.memory_space<vmem>>, %arg7: memref<120x1xf32, #tpu.memory_space<vmem>>, %arg8: memref<84x120xf32, #tpu.memory_space<vmem>>, %arg9: memref<84x1xf32, #tpu.memory_space<vmem>>, %arg10: memref<10x84xf32, #tpu.memory_space<vmem>>, %arg11: memref<10x1xf32, #tpu.memory_space<vmem>>, %arg12: memref<1x10x1xf32, #tpu.memory_space<vmem>>, %arg13: memref<6x892xf32, #tpu.memory_space<vmem>>, %arg14: memref<6x859xf32, #tpu.memory_space<vmem>>, %arg15: memref<16x595xf32, #tpu.memory_space<vmem>>, %arg16: memref<16x529xf32, #tpu.memory_space<vmem>>) attributes {dimension_semantics = [#tpu.dimension_semantics<parallel>], iteration_bounds = array<i64: 2>, scalar_prefetch = 0 : i64, scratch_operands = 4 : i64, tpu.core_type = #tpu.core_type<tc>, window_params = [{transform_indices = @transform_0, window_bounds = array<i64: 1, 3, 1024>}, {pipeline_mode = #tpu.pipeline_mode<synchronous>, transform_indices = @transform_1, window_bounds = array<i64: 25, 6, 3>}, {pipeline_mode = #tpu.pipeline_mode<synchronous>, transform_indices = @transform_2, window_bounds = array<i64: 6, 1>}, {pipeline_mode = #tpu.pipeline_mode<synchronous>, transform_indices = @transform_3, window_bounds = array<i64: 25, 16, 6>}, {pipeline_mode = #tpu.pipeline_mode<synchronous>, transform_indices = @transform_4, window_bounds = array<i64: 16, 1>}, {pipeline_mode = #tpu.pipeline_mode<synchronous>, transform_indices = @transform_5, window_bounds = array<i64: 25, 120, 16>}, {pipeline_mode = #tpu.pipeline_mode<synchronous>, transform_indices = @transform_6, window_bounds = array<i64: 120, 1>}, {pipeline_mode = #tpu.pipeline_mode<synchronous>, transform_indices = @transform_7, window_bounds = array<i64: 84, 120>}, {pipeline_mode = #tpu.pipeline_mode<synchronous>, transform_indices = @transform_8, window_bounds = array<i64: 84, 1>}, {pipeline_mode = #tpu.pipeline_mode<synchronous>, transform_indices = @transform_9, window_bounds = array<i64: 10, 84>}, {pipeline_mode = #tpu.pipeline_mode<synchronous>, transform_indices = @transform_10, window_bounds = array<i64: 10, 1>}, {transform_indices = @transform_11, window_bounds = array<i64: 1, 10, 1>}]} {
    %cst = arith.constant 0.000000e+00 : f32
    %0 = vector.broadcast %cst : f32 to vector<6x892xf32>
    %c0 = arith.constant 0 : index
    %c0_0 = arith.constant 0 : index
    %c0_1 = arith.constant 0 : index
    %1 = vector.load %arg2[%c0, %c0_0, %c0_1] : memref<25x6x3xf32, #tpu.memory_space<vmem>>, vector<1x6x3xf32>
    %2 = vector.shape_cast %1 : vector<1x6x3xf32> to vector<6x3xf32>
    %c0_2 = arith.constant 0 : index
    %c0_3 = arith.constant 0 : index
    %c0_4 = arith.constant 0 : index
    %3 = vector.load %arg1[%c0_2, %c0_3, %c0_4] : memref<1x3x1024xf32, #tpu.memory_space<vmem>>, vector<1x3x892xf32>
    %4 = vector.shape_cast %3 : vector<1x3x892xf32> to vector<3x892xf32>
    %cst_5 = arith.constant dense<0.000000e+00> : vector<6x892xf32>
    %5 = tpu.matmul %2, %4, %cst_5 {dimension_numbers = #tpu.dot_dimension_numbers<[1], [0], [0], [1], [0, 0, 1, 1], [], []>} : vector<6x3xf32>, vector<3x892xf32>, vector<6x892xf32> -> vector<6x892xf32>
    %6 = arith.addf %0, %5 : vector<6x892xf32>
    %c1 = arith.constant 1 : index
    %c0_6 = arith.constant 0 : index
    %c0_7 = arith.constant 0 : index
    %7 = vector.load %arg2[%c1, %c0_6, %c0_7] : memref<25x6x3xf32, #tpu.memory_space<vmem>>, vector<1x6x3xf32>
    %8 = vector.shape_cast %7 : vector<1x6x3xf32> to vector<6x3xf32>
    %c0_8 = arith.constant 0 : index
    %c0_9 = arith.constant 0 : index
    %c1_10 = arith.constant 1 : index
    %9 = vector.load %arg1[%c0_8, %c0_9, %c1_10] : memref<1x3x1024xf32, #tpu.memory_space<vmem>>, vector<1x3x892xf32>
    %10 = vector.shape_cast %9 : vector<1x3x892xf32> to vector<3x892xf32>
    %cst_11 = arith.constant dense<0.000000e+00> : vector<6x892xf32>
    %11 = tpu.matmul %8, %10, %cst_11 {dimension_numbers = #tpu.dot_dimension_numbers<[1], [0], [0], [1], [0, 0, 1, 1], [], []>} : vector<6x3xf32>, vector<3x892xf32>, vector<6x892xf32> -> vector<6x892xf32>
    %12 = arith.addf %6, %11 : vector<6x892xf32>
    %c2 = arith.constant 2 : index
    %c0_12 = arith.constant 0 : index
    %c0_13 = arith.constant 0 : index
    %13 = vector.load %arg2[%c2, %c0_12, %c0_13] : memref<25x6x3xf32, #tpu.memory_space<vmem>>, vector<1x6x3xf32>
    %14 = vector.shape_cast %13 : vector<1x6x3xf32> to vector<6x3xf32>
    %c0_14 = arith.constant 0 : index
    %c0_15 = arith.constant 0 : index
    %c2_16 = arith.constant 2 : index
    %15 = vector.load %arg1[%c0_14, %c0_15, %c2_16] : memref<1x3x1024xf32, #tpu.memory_space<vmem>>, vector<1x3x892xf32>
    %16 = vector.shape_cast %15 : vector<1x3x892xf32> to vector<3x892xf32>
    %cst_17 = arith.constant dense<0.000000e+00> : vector<6x892xf32>
    %17 = tpu.matmul %14, %16, %cst_17 {dimension_numbers = #tpu.dot_dimension_numbers<[1], [0], [0], [1], [0, 0, 1, 1], [], []>} : vector<6x3xf32>, vector<3x892xf32>, vector<6x892xf32> -> vector<6x892xf32>
    %18 = arith.addf %12, %17 : vector<6x892xf32>
    %c3 = arith.constant 3 : index
    %c0_18 = arith.constant 0 : index
    %c0_19 = arith.constant 0 : index
    %19 = vector.load %arg2[%c3, %c0_18, %c0_19] : memref<25x6x3xf32, #tpu.memory_space<vmem>>, vector<1x6x3xf32>
    %20 = vector.shape_cast %19 : vector<1x6x3xf32> to vector<6x3xf32>
    %c0_20 = arith.constant 0 : index
    %c0_21 = arith.constant 0 : index
    %c3_22 = arith.constant 3 : index
    %21 = vector.load %arg1[%c0_20, %c0_21, %c3_22] : memref<1x3x1024xf32, #tpu.memory_space<vmem>>, vector<1x3x892xf32>
    %22 = vector.shape_cast %21 : vector<1x3x892xf32> to vector<3x892xf32>
    %cst_23 = arith.constant dense<0.000000e+00> : vector<6x892xf32>
    %23 = tpu.matmul %20, %22, %cst_23 {dimension_numbers = #tpu.dot_dimension_numbers<[1], [0], [0], [1], [0, 0, 1, 1], [], []>} : vector<6x3xf32>, vector<3x892xf32>, vector<6x892xf32> -> vector<6x892xf32>
    %24 = arith.addf %18, %23 : vector<6x892xf32>
    %c4 = arith.constant 4 : index
    %c0_24 = arith.constant 0 : index
    %c0_25 = arith.constant 0 : index
    %25 = vector.load %arg2[%c4, %c0_24, %c0_25] : memref<25x6x3xf32, #tpu.memory_space<vmem>>, vector<1x6x3xf32>
    %26 = vector.shape_cast %25 : vector<1x6x3xf32> to vector<6x3xf32>
    %c0_26 = arith.constant 0 : index
    %c0_27 = arith.constant 0 : index
    %c4_28 = arith.constant 4 : index
    %27 = vector.load %arg1[%c0_26, %c0_27, %c4_28] : memref<1x3x1024xf32, #tpu.memory_space<vmem>>, vector<1x3x892xf32>
    %28 = vector.shape_cast %27 : vector<1x3x892xf32> to vector<3x892xf32>
    %cst_29 = arith.constant dense<0.000000e+00> : vector<6x892xf32>
    %29 = tpu.matmul %26, %28, %cst_29 {dimension_numbers = #tpu.dot_dimension_numbers<[1], [0], [0], [1], [0, 0, 1, 1], [], []>} : vector<6x3xf32>, vector<3x892xf32>, vector<6x892xf32> -> vector<6x892xf32>
    %30 = arith.addf %24, %29 : vector<6x892xf32>
    %c5 = arith.constant 5 : index
    %c0_30 = arith.constant 0 : index
    %c0_31 = arith.constant 0 : index
    %31 = vector.load %arg2[%c5, %c0_30, %c0_31] : memref<25x6x3xf32, #tpu.memory_space<vmem>>, vector<1x6x3xf32>
    %32 = vector.shape_cast %31 : vector<1x6x3xf32> to vector<6x3xf32>
    %c0_32 = arith.constant 0 : index
    %c0_33 = arith.constant 0 : index
    %c32 = arith.constant 32 : index
    %33 = vector.load %arg1[%c0_32, %c0_33, %c32] : memref<1x3x1024xf32, #tpu.memory_space<vmem>>, vector<1x3x892xf32>
    %34 = vector.shape_cast %33 : vector<1x3x892xf32> to vector<3x892xf32>
    %cst_34 = arith.constant dense<0.000000e+00> : vector<6x892xf32>
    %35 = tpu.matmul %32, %34, %cst_34 {dimension_numbers = #tpu.dot_dimension_numbers<[1], [0], [0], [1], [0, 0, 1, 1], [], []>} : vector<6x3xf32>, vector<3x892xf32>, vector<6x892xf32> -> vector<6x892xf32>
    %36 = arith.addf %30, %35 : vector<6x892xf32>
    %c6 = arith.constant 6 : index
    %c0_35 = arith.constant 0 : index
    %c0_36 = arith.constant 0 : index
    %37 = vector.load %arg2[%c6, %c0_35, %c0_36] : memref<25x6x3xf32, #tpu.memory_space<vmem>>, vector<1x6x3xf32>
    %38 = vector.shape_cast %37 : vector<1x6x3xf32> to vector<6x3xf32>
    %c0_37 = arith.constant 0 : index
    %c0_38 = arith.constant 0 : index
    %c33 = arith.constant 33 : index
    %39 = vector.load %arg1[%c0_37, %c0_38, %c33] : memref<1x3x1024xf32, #tpu.memory_space<vmem>>, vector<1x3x892xf32>
    %40 = vector.shape_cast %39 : vector<1x3x892xf32> to vector<3x892xf32>
    %cst_39 = arith.constant dense<0.000000e+00> : vector<6x892xf32>
    %41 = tpu.matmul %38, %40, %cst_39 {dimension_numbers = #tpu.dot_dimension_numbers<[1], [0], [0], [1], [0, 0, 1, 1], [], []>} : vector<6x3xf32>, vector<3x892xf32>, vector<6x892xf32> -> vector<6x892xf32>
    %42 = arith.addf %36, %41 : vector<6x892xf32>
    %c7 = arith.constant 7 : index
    %c0_40 = arith.constant 0 : index
    %c0_41 = arith.constant 0 : index
    %43 = vector.load %arg2[%c7, %c0_40, %c0_41] : memref<25x6x3xf32, #tpu.memory_space<vmem>>, vector<1x6x3xf32>
    %44 = vector.shape_cast %43 : vector<1x6x3xf32> to vector<6x3xf32>
    %c0_42 = arith.constant 0 : index
    %c0_43 = arith.constant 0 : index
    %c34 = arith.constant 34 : index
    %45 = vector.load %arg1[%c0_42, %c0_43, %c34] : memref<1x3x1024xf32, #tpu.memory_space<vmem>>, vector<1x3x892xf32>
    %46 = vector.shape_cast %45 : vector<1x3x892xf32> to vector<3x892xf32>
    %cst_44 = arith.constant dense<0.000000e+00> : vector<6x892xf32>
    %47 = tpu.matmul %44, %46, %cst_44 {dimension_numbers = #tpu.dot_dimension_numbers<[1], [0], [0], [1], [0, 0, 1, 1], [], []>} : vector<6x3xf32>, vector<3x892xf32>, vector<6x892xf32> -> vector<6x892xf32>
    %48 = arith.addf %42, %47 : vector<6x892xf32>
    %c8 = arith.constant 8 : index
    %c0_45 = arith.constant 0 : index
    %c0_46 = arith.constant 0 : index
    %49 = vector.load %arg2[%c8, %c0_45, %c0_46] : memref<25x6x3xf32, #tpu.memory_space<vmem>>, vector<1x6x3xf32>
    %50 = vector.shape_cast %49 : vector<1x6x3xf32> to vector<6x3xf32>
    %c0_47 = arith.constant 0 : index
    %c0_48 = arith.constant 0 : index
    %c35 = arith.constant 35 : index
    %51 = vector.load %arg1[%c0_47, %c0_48, %c35] : memref<1x3x1024xf32, #tpu.memory_space<vmem>>, vector<1x3x892xf32>
    %52 = vector.shape_cast %51 : vector<1x3x892xf32> to vector<3x892xf32>
    %cst_49 = arith.constant dense<0.000000e+00> : vector<6x892xf32>
    %53 = tpu.matmul %50, %52, %cst_49 {dimension_numbers = #tpu.dot_dimension_numbers<[1], [0], [0], [1], [0, 0, 1, 1], [], []>} : vector<6x3xf32>, vector<3x892xf32>, vector<6x892xf32> -> vector<6x892xf32>
    %54 = arith.addf %48, %53 : vector<6x892xf32>
    %c9 = arith.constant 9 : index
    %c0_50 = arith.constant 0 : index
    %c0_51 = arith.constant 0 : index
    %55 = vector.load %arg2[%c9, %c0_50, %c0_51] : memref<25x6x3xf32, #tpu.memory_space<vmem>>, vector<1x6x3xf32>
    %56 = vector.shape_cast %55 : vector<1x6x3xf32> to vector<6x3xf32>
    %c0_52 = arith.constant 0 : index
    %c0_53 = arith.constant 0 : index
    %c36 = arith.constant 36 : index
    %57 = vector.load %arg1[%c0_52, %c0_53, %c36] : memref<1x3x1024xf32, #tpu.memory_space<vmem>>, vector<1x3x892xf32>
    %58 = vector.shape_cast %57 : vector<1x3x892xf32> to vector<3x892xf32>
    %cst_54 = arith.constant dense<0.000000e+00> : vector<6x892xf32>
    %59 = tpu.matmul %56, %58, %cst_54 {dimension_numbers = #tpu.dot_dimension_numbers<[1], [0], [0], [1], [0, 0, 1, 1], [], []>} : vector<6x3xf32>, vector<3x892xf32>, vector<6x892xf32> -> vector<6x892xf32>
    %60 = arith.addf %54, %59 : vector<6x892xf32>
    %c10 = arith.constant 10 : index
    %c0_55 = arith.constant 0 : index
    %c0_56 = arith.constant 0 : index
    %61 = vector.load %arg2[%c10, %c0_55, %c0_56] : memref<25x6x3xf32, #tpu.memory_space<vmem>>, vector<1x6x3xf32>
    %62 = vector.shape_cast %61 : vector<1x6x3xf32> to vector<6x3xf32>
    %c0_57 = arith.constant 0 : index
    %c0_58 = arith.constant 0 : index
    %c64 = arith.constant 64 : index
    %63 = vector.load %arg1[%c0_57, %c0_58, %c64] : memref<1x3x1024xf32, #tpu.memory_space<vmem>>, vector<1x3x892xf32>
    %64 = vector.shape_cast %63 : vector<1x3x892xf32> to vector<3x892xf32>
    %cst_59 = arith.constant dense<0.000000e+00> : vector<6x892xf32>
    %65 = tpu.matmul %62, %64, %cst_59 {dimension_numbers = #tpu.dot_dimension_numbers<[1], [0], [0], [1], [0, 0, 1, 1], [], []>} : vector<6x3xf32>, vector<3x892xf32>, vector<6x892xf32> -> vector<6x892xf32>
    %66 = arith.addf %60, %65 : vector<6x892xf32>
    %c11 = arith.constant 11 : index
    %c0_60 = arith.constant 0 : index
    %c0_61 = arith.constant 0 : index
    %67 = vector.load %arg2[%c11, %c0_60, %c0_61] : memref<25x6x3xf32, #tpu.memory_space<vmem>>, vector<1x6x3xf32>
    %68 = vector.shape_cast %67 : vector<1x6x3xf32> to vector<6x3xf32>
    %c0_62 = arith.constant 0 : index
    %c0_63 = arith.constant 0 : index
    %c65 = arith.constant 65 : index
    %69 = vector.load %arg1[%c0_62, %c0_63, %c65] : memref<1x3x1024xf32, #tpu.memory_space<vmem>>, vector<1x3x892xf32>
    %70 = vector.shape_cast %69 : vector<1x3x892xf32> to vector<3x892xf32>
    %cst_64 = arith.constant dense<0.000000e+00> : vector<6x892xf32>
    %71 = tpu.matmul %68, %70, %cst_64 {dimension_numbers = #tpu.dot_dimension_numbers<[1], [0], [0], [1], [0, 0, 1, 1], [], []>} : vector<6x3xf32>, vector<3x892xf32>, vector<6x892xf32> -> vector<6x892xf32>
    %72 = arith.addf %66, %71 : vector<6x892xf32>
    %c12 = arith.constant 12 : index
    %c0_65 = arith.constant 0 : index
    %c0_66 = arith.constant 0 : index
    %73 = vector.load %arg2[%c12, %c0_65, %c0_66] : memref<25x6x3xf32, #tpu.memory_space<vmem>>, vector<1x6x3xf32>
    %74 = vector.shape_cast %73 : vector<1x6x3xf32> to vector<6x3xf32>
    %c0_67 = arith.constant 0 : index
    %c0_68 = arith.constant 0 : index
    %c66 = arith.constant 66 : index
    %75 = vector.load %arg1[%c0_67, %c0_68, %c66] : memref<1x3x1024xf32, #tpu.memory_space<vmem>>, vector<1x3x892xf32>
    %76 = vector.shape_cast %75 : vector<1x3x892xf32> to vector<3x892xf32>
    %cst_69 = arith.constant dense<0.000000e+00> : vector<6x892xf32>
    %77 = tpu.matmul %74, %76, %cst_69 {dimension_numbers = #tpu.dot_dimension_numbers<[1], [0], [0], [1], [0, 0, 1, 1], [], []>} : vector<6x3xf32>, vector<3x892xf32>, vector<6x892xf32> -> vector<6x892xf32>
    %78 = arith.addf %72, %77 : vector<6x892xf32>
    %c13 = arith.constant 13 : index
    %c0_70 = arith.constant 0 : index
    %c0_71 = arith.constant 0 : index
    %79 = vector.load %arg2[%c13, %c0_70, %c0_71] : memref<25x6x3xf32, #tpu.memory_space<vmem>>, vector<1x6x3xf32>
    %80 = vector.shape_cast %79 : vector<1x6x3xf32> to vector<6x3xf32>
    %c0_72 = arith.constant 0 : index
    %c0_73 = arith.constant 0 : index
    %c67 = arith.constant 67 : index
    %81 = vector.load %arg1[%c0_72, %c0_73, %c67] : memref<1x3x1024xf32, #tpu.memory_space<vmem>>, vector<1x3x892xf32>
    %82 = vector.shape_cast %81 : vector<1x3x892xf32> to vector<3x892xf32>
    %cst_74 = arith.constant dense<0.000000e+00> : vector<6x892xf32>
    %83 = tpu.matmul %80, %82, %cst_74 {dimension_numbers = #tpu.dot_dimension_numbers<[1], [0], [0], [1], [0, 0, 1, 1], [], []>} : vector<6x3xf32>, vector<3x892xf32>, vector<6x892xf32> -> vector<6x892xf32>
    %84 = arith.addf %78, %83 : vector<6x892xf32>
    %c14 = arith.constant 14 : index
    %c0_75 = arith.constant 0 : index
    %c0_76 = arith.constant 0 : index
    %85 = vector.load %arg2[%c14, %c0_75, %c0_76] : memref<25x6x3xf32, #tpu.memory_space<vmem>>, vector<1x6x3xf32>
    %86 = vector.shape_cast %85 : vector<1x6x3xf32> to vector<6x3xf32>
    %c0_77 = arith.constant 0 : index
    %c0_78 = arith.constant 0 : index
    %c68 = arith.constant 68 : index
    %87 = vector.load %arg1[%c0_77, %c0_78, %c68] : memref<1x3x1024xf32, #tpu.memory_space<vmem>>, vector<1x3x892xf32>
    %88 = vector.shape_cast %87 : vector<1x3x892xf32> to vector<3x892xf32>
    %cst_79 = arith.constant dense<0.000000e+00> : vector<6x892xf32>
    %89 = tpu.matmul %86, %88, %cst_79 {dimension_numbers = #tpu.dot_dimension_numbers<[1], [0], [0], [1], [0, 0, 1, 1], [], []>} : vector<6x3xf32>, vector<3x892xf32>, vector<6x892xf32> -> vector<6x892xf32>
    %90 = arith.addf %84, %89 : vector<6x892xf32>
    %c15 = arith.constant 15 : index
    %c0_80 = arith.constant 0 : index
    %c0_81 = arith.constant 0 : index
    %91 = vector.load %arg2[%c15, %c0_80, %c0_81] : memref<25x6x3xf32, #tpu.memory_space<vmem>>, vector<1x6x3xf32>
    %92 = vector.shape_cast %91 : vector<1x6x3xf32> to vector<6x3xf32>
    %c0_82 = arith.constant 0 : index
    %c0_83 = arith.constant 0 : index
    %c96 = arith.constant 96 : index
    %93 = vector.load %arg1[%c0_82, %c0_83, %c96] : memref<1x3x1024xf32, #tpu.memory_space<vmem>>, vector<1x3x892xf32>
    %94 = vector.shape_cast %93 : vector<1x3x892xf32> to vector<3x892xf32>
    %cst_84 = arith.constant dense<0.000000e+00> : vector<6x892xf32>
    %95 = tpu.matmul %92, %94, %cst_84 {dimension_numbers = #tpu.dot_dimension_numbers<[1], [0], [0], [1], [0, 0, 1, 1], [], []>} : vector<6x3xf32>, vector<3x892xf32>, vector<6x892xf32> -> vector<6x892xf32>
    %96 = arith.addf %90, %95 : vector<6x892xf32>
    %c16 = arith.constant 16 : index
    %c0_85 = arith.constant 0 : index
    %c0_86 = arith.constant 0 : index
    %97 = vector.load %arg2[%c16, %c0_85, %c0_86] : memref<25x6x3xf32, #tpu.memory_space<vmem>>, vector<1x6x3xf32>
    %98 = vector.shape_cast %97 : vector<1x6x3xf32> to vector<6x3xf32>
    %c0_87 = arith.constant 0 : index
    %c0_88 = arith.constant 0 : index
    %c97 = arith.constant 97 : index
    %99 = vector.load %arg1[%c0_87, %c0_88, %c97] : memref<1x3x1024xf32, #tpu.memory_space<vmem>>, vector<1x3x892xf32>
    %100 = vector.shape_cast %99 : vector<1x3x892xf32> to vector<3x892xf32>
    %cst_89 = arith.constant dense<0.000000e+00> : vector<6x892xf32>
    %101 = tpu.matmul %98, %100, %cst_89 {dimension_numbers = #tpu.dot_dimension_numbers<[1], [0], [0], [1], [0, 0, 1, 1], [], []>} : vector<6x3xf32>, vector<3x892xf32>, vector<6x892xf32> -> vector<6x892xf32>
    %102 = arith.addf %96, %101 : vector<6x892xf32>
    %c17 = arith.constant 17 : index
    %c0_90 = arith.constant 0 : index
    %c0_91 = arith.constant 0 : index
    %103 = vector.load %arg2[%c17, %c0_90, %c0_91] : memref<25x6x3xf32, #tpu.memory_space<vmem>>, vector<1x6x3xf32>
    %104 = vector.shape_cast %103 : vector<1x6x3xf32> to vector<6x3xf32>
    %c0_92 = arith.constant 0 : index
    %c0_93 = arith.constant 0 : index
    %c98 = arith.constant 98 : index
    %105 = vector.load %arg1[%c0_92, %c0_93, %c98] : memref<1x3x1024xf32, #tpu.memory_space<vmem>>, vector<1x3x892xf32>
    %106 = vector.shape_cast %105 : vector<1x3x892xf32> to vector<3x892xf32>
    %cst_94 = arith.constant dense<0.000000e+00> : vector<6x892xf32>
    %107 = tpu.matmul %104, %106, %cst_94 {dimension_numbers = #tpu.dot_dimension_numbers<[1], [0], [0], [1], [0, 0, 1, 1], [], []>} : vector<6x3xf32>, vector<3x892xf32>, vector<6x892xf32> -> vector<6x892xf32>
    %108 = arith.addf %102, %107 : vector<6x892xf32>
    %c18 = arith.constant 18 : index
    %c0_95 = arith.constant 0 : index
    %c0_96 = arith.constant 0 : index
    %109 = vector.load %arg2[%c18, %c0_95, %c0_96] : memref<25x6x3xf32, #tpu.memory_space<vmem>>, vector<1x6x3xf32>
    %110 = vector.shape_cast %109 : vector<1x6x3xf32> to vector<6x3xf32>
    %c0_97 = arith.constant 0 : index
    %c0_98 = arith.constant 0 : index
    %c99 = arith.constant 99 : index
    %111 = vector.load %arg1[%c0_97, %c0_98, %c99] : memref<1x3x1024xf32, #tpu.memory_space<vmem>>, vector<1x3x892xf32>
    %112 = vector.shape_cast %111 : vector<1x3x892xf32> to vector<3x892xf32>
    %cst_99 = arith.constant dense<0.000000e+00> : vector<6x892xf32>
    %113 = tpu.matmul %110, %112, %cst_99 {dimension_numbers = #tpu.dot_dimension_numbers<[1], [0], [0], [1], [0, 0, 1, 1], [], []>} : vector<6x3xf32>, vector<3x892xf32>, vector<6x892xf32> -> vector<6x892xf32>
    %114 = arith.addf %108, %113 : vector<6x892xf32>
    %c19 = arith.constant 19 : index
    %c0_100 = arith.constant 0 : index
    %c0_101 = arith.constant 0 : index
    %115 = vector.load %arg2[%c19, %c0_100, %c0_101] : memref<25x6x3xf32, #tpu.memory_space<vmem>>, vector<1x6x3xf32>
    %116 = vector.shape_cast %115 : vector<1x6x3xf32> to vector<6x3xf32>
    %c0_102 = arith.constant 0 : index
    %c0_103 = arith.constant 0 : index
    %c100 = arith.constant 100 : index
    %117 = vector.load %arg1[%c0_102, %c0_103, %c100] : memref<1x3x1024xf32, #tpu.memory_space<vmem>>, vector<1x3x892xf32>
    %118 = vector.shape_cast %117 : vector<1x3x892xf32> to vector<3x892xf32>
    %cst_104 = arith.constant dense<0.000000e+00> : vector<6x892xf32>
    %119 = tpu.matmul %116, %118, %cst_104 {dimension_numbers = #tpu.dot_dimension_numbers<[1], [0], [0], [1], [0, 0, 1, 1], [], []>} : vector<6x3xf32>, vector<3x892xf32>, vector<6x892xf32> -> vector<6x892xf32>
    %120 = arith.addf %114, %119 : vector<6x892xf32>
    %c20 = arith.constant 20 : index
    %c0_105 = arith.constant 0 : index
    %c0_106 = arith.constant 0 : index
    %121 = vector.load %arg2[%c20, %c0_105, %c0_106] : memref<25x6x3xf32, #tpu.memory_space<vmem>>, vector<1x6x3xf32>
    %122 = vector.shape_cast %121 : vector<1x6x3xf32> to vector<6x3xf32>
    %c0_107 = arith.constant 0 : index
    %c0_108 = arith.constant 0 : index
    %c128 = arith.constant 128 : index
    %123 = vector.load %arg1[%c0_107, %c0_108, %c128] : memref<1x3x1024xf32, #tpu.memory_space<vmem>>, vector<1x3x892xf32>
    %124 = vector.shape_cast %123 : vector<1x3x892xf32> to vector<3x892xf32>
    %cst_109 = arith.constant dense<0.000000e+00> : vector<6x892xf32>
    %125 = tpu.matmul %122, %124, %cst_109 {dimension_numbers = #tpu.dot_dimension_numbers<[1], [0], [0], [1], [0, 0, 1, 1], [], []>} : vector<6x3xf32>, vector<3x892xf32>, vector<6x892xf32> -> vector<6x892xf32>
    %126 = arith.addf %120, %125 : vector<6x892xf32>
    %c21 = arith.constant 21 : index
    %c0_110 = arith.constant 0 : index
    %c0_111 = arith.constant 0 : index
    %127 = vector.load %arg2[%c21, %c0_110, %c0_111] : memref<25x6x3xf32, #tpu.memory_space<vmem>>, vector<1x6x3xf32>
    %128 = vector.shape_cast %127 : vector<1x6x3xf32> to vector<6x3xf32>
    %c0_112 = arith.constant 0 : index
    %c0_113 = arith.constant 0 : index
    %c129 = arith.constant 129 : index
    %129 = vector.load %arg1[%c0_112, %c0_113, %c129] : memref<1x3x1024xf32, #tpu.memory_space<vmem>>, vector<1x3x892xf32>
    %130 = vector.shape_cast %129 : vector<1x3x892xf32> to vector<3x892xf32>
    %cst_114 = arith.constant dense<0.000000e+00> : vector<6x892xf32>
    %131 = tpu.matmul %128, %130, %cst_114 {dimension_numbers = #tpu.dot_dimension_numbers<[1], [0], [0], [1], [0, 0, 1, 1], [], []>} : vector<6x3xf32>, vector<3x892xf32>, vector<6x892xf32> -> vector<6x892xf32>
    %132 = arith.addf %126, %131 : vector<6x892xf32>
    %c22 = arith.constant 22 : index
    %c0_115 = arith.constant 0 : index
    %c0_116 = arith.constant 0 : index
    %133 = vector.load %arg2[%c22, %c0_115, %c0_116] : memref<25x6x3xf32, #tpu.memory_space<vmem>>, vector<1x6x3xf32>
    %134 = vector.shape_cast %133 : vector<1x6x3xf32> to vector<6x3xf32>
    %c0_117 = arith.constant 0 : index
    %c0_118 = arith.constant 0 : index
    %c130 = arith.constant 130 : index
    %135 = vector.load %arg1[%c0_117, %c0_118, %c130] : memref<1x3x1024xf32, #tpu.memory_space<vmem>>, vector<1x3x892xf32>
    %136 = vector.shape_cast %135 : vector<1x3x892xf32> to vector<3x892xf32>
    %cst_119 = arith.constant dense<0.000000e+00> : vector<6x892xf32>
    %137 = tpu.matmul %134, %136, %cst_119 {dimension_numbers = #tpu.dot_dimension_numbers<[1], [0], [0], [1], [0, 0, 1, 1], [], []>} : vector<6x3xf32>, vector<3x892xf32>, vector<6x892xf32> -> vector<6x892xf32>
    %138 = arith.addf %132, %137 : vector<6x892xf32>
    %c23 = arith.constant 23 : index
    %c0_120 = arith.constant 0 : index
    %c0_121 = arith.constant 0 : index
    %139 = vector.load %arg2[%c23, %c0_120, %c0_121] : memref<25x6x3xf32, #tpu.memory_space<vmem>>, vector<1x6x3xf32>
    %140 = vector.shape_cast %139 : vector<1x6x3xf32> to vector<6x3xf32>
    %c0_122 = arith.constant 0 : index
    %c0_123 = arith.constant 0 : index
    %c131 = arith.constant 131 : index
    %141 = vector.load %arg1[%c0_122, %c0_123, %c131] : memref<1x3x1024xf32, #tpu.memory_space<vmem>>, vector<1x3x892xf32>
    %142 = vector.shape_cast %141 : vector<1x3x892xf32> to vector<3x892xf32>
    %cst_124 = arith.constant dense<0.000000e+00> : vector<6x892xf32>
    %143 = tpu.matmul %140, %142, %cst_124 {dimension_numbers = #tpu.dot_dimension_numbers<[1], [0], [0], [1], [0, 0, 1, 1], [], []>} : vector<6x3xf32>, vector<3x892xf32>, vector<6x892xf32> -> vector<6x892xf32>
    %144 = arith.addf %138, %143 : vector<6x892xf32>
    %c24 = arith.constant 24 : index
    %c0_125 = arith.constant 0 : index
    %c0_126 = arith.constant 0 : index
    %145 = vector.load %arg2[%c24, %c0_125, %c0_126] : memref<25x6x3xf32, #tpu.memory_space<vmem>>, vector<1x6x3xf32>
    %146 = vector.shape_cast %145 : vector<1x6x3xf32> to vector<6x3xf32>
    %c0_127 = arith.constant 0 : index
    %c0_128 = arith.constant 0 : index
    %c132 = arith.constant 132 : index
    %147 = vector.load %arg1[%c0_127, %c0_128, %c132] : memref<1x3x1024xf32, #tpu.memory_space<vmem>>, vector<1x3x892xf32>
    %148 = vector.shape_cast %147 : vector<1x3x892xf32> to vector<3x892xf32>
    %cst_129 = arith.constant dense<0.000000e+00> : vector<6x892xf32>
    %149 = tpu.matmul %146, %148, %cst_129 {dimension_numbers = #tpu.dot_dimension_numbers<[1], [0], [0], [1], [0, 0, 1, 1], [], []>} : vector<6x3xf32>, vector<3x892xf32>, vector<6x892xf32> -> vector<6x892xf32>
    %150 = arith.addf %144, %149 : vector<6x892xf32>
    %c0_130 = arith.constant 0 : index
    %c0_131 = arith.constant 0 : index
    %151 = vector.load %arg3[%c0_130, %c0_131] : memref<6x1xf32, #tpu.memory_space<vmem>>, vector<6x1xf32>
    %152 = vector.broadcast %151 : vector<6x1xf32> to vector<6x892xf32>
    %153 = arith.addf %150, %152 : vector<6x892xf32>
    %cst_132 = arith.constant 0.000000e+00 : f32
    %154 = vector.broadcast %cst_132 : f32 to vector<6x892xf32>
    %155 = arith.maximumf %153, %154 : vector<6x892xf32>
    %c0_133 = arith.constant 0 : index
    %c0_134 = arith.constant 0 : index
    %156 = vector.load %arg13[%c0_133, %c0_134] : memref<6x892xf32, #tpu.memory_space<vmem>>, vector<6x892xf32>
    tpu.vector_store %arg13[%c0_133, %c0_134], %155 {strides = array<i32>} : memref<6x892xf32, #tpu.memory_space<vmem>>, vector<6x892xf32>,
    %c0_135 = arith.constant 0 : index
    %c0_136 = arith.constant 0 : index
    %157 = vector.load %arg13[%c0_135, %c0_136] : memref<6x892xf32, #tpu.memory_space<vmem>>, vector<6x859xf32>
    %c0_137 = arith.constant 0 : index
    %c1_138 = arith.constant 1 : index
    %158 = vector.load %arg13[%c0_137, %c1_138] : memref<6x892xf32, #tpu.memory_space<vmem>>, vector<6x859xf32>
    %159 = arith.maximumf %157, %158 : vector<6x859xf32>
    %c0_139 = arith.constant 0 : index
    %c32_140 = arith.constant 32 : index
    %160 = vector.load %arg13[%c0_139, %c32_140] : memref<6x892xf32, #tpu.memory_space<vmem>>, vector<6x859xf32>
    %c0_141 = arith.constant 0 : index
    %c33_142 = arith.constant 33 : index
    %161 = vector.load %arg13[%c0_141, %c33_142] : memref<6x892xf32, #tpu.memory_space<vmem>>, vector<6x859xf32>
    %162 = arith.maximumf %160, %161 : vector<6x859xf32>
    %163 = arith.maximumf %159, %162 : vector<6x859xf32>
    %c0_143 = arith.constant 0 : index
    %c0_144 = arith.constant 0 : index
    %164 = vector.load %arg14[%c0_143, %c0_144] : memref<6x859xf32, #tpu.memory_space<vmem>>, vector<6x859xf32>
    tpu.vector_store %arg14[%c0_143, %c0_144], %163 {strides = array<i32>} : memref<6x859xf32, #tpu.memory_space<vmem>>, vector<6x859xf32>,
    %cst_145 = arith.constant 0.000000e+00 : f32
    %165 = vector.broadcast %cst_145 : f32 to vector<16x595xf32>
    %c0_146 = arith.constant 0 : index
    %c0_147 = arith.constant 0 : index
    %c0_148 = arith.constant 0 : index
    %166 = vector.load %arg4[%c0_146, %c0_147, %c0_148] : memref<25x16x6xf32, #tpu.memory_space<vmem>>, vector<1x16x6xf32>
    %167 = vector.shape_cast %166 : vector<1x16x6xf32> to vector<16x6xf32>
    %c0_149 = arith.constant 0 : index
    %c0_150 = arith.constant 0 : index
    %168 = vector.load %arg14[%c0_149, %c0_150] : memref<6x859xf32, #tpu.memory_space<vmem>>, vector<6x595xf32>
    %cst_151 = arith.constant dense<0.000000e+00> : vector<16x595xf32>
    %169 = tpu.matmul %167, %168, %cst_151 {dimension_numbers = #tpu.dot_dimension_numbers<[1], [0], [0], [1], [0, 0, 1, 1], [], []>} : vector<16x6xf32>, vector<6x595xf32>, vector<16x595xf32> -> vector<16x595xf32>
    %170 = arith.addf %165, %169 : vector<16x595xf32>
    %c1_152 = arith.constant 1 : index
    %c0_153 = arith.constant 0 : index
    %c0_154 = arith.constant 0 : index
    %171 = vector.load %arg4[%c1_152, %c0_153, %c0_154] : memref<25x16x6xf32, #tpu.memory_space<vmem>>, vector<1x16x6xf32>
    %172 = vector.shape_cast %171 : vector<1x16x6xf32> to vector<16x6xf32>
    %c0_155 = arith.constant 0 : index
    %c2_156 = arith.constant 2 : index
    %173 = vector.load %arg14[%c0_155, %c2_156] : memref<6x859xf32, #tpu.memory_space<vmem>>, vector<6x595xf32>
    %cst_157 = arith.constant dense<0.000000e+00> : vector<16x595xf32>
    %174 = tpu.matmul %172, %173, %cst_157 {dimension_numbers = #tpu.dot_dimension_numbers<[1], [0], [0], [1], [0, 0, 1, 1], [], []>} : vector<16x6xf32>, vector<6x595xf32>, vector<16x595xf32> -> vector<16x595xf32>
    %175 = arith.addf %170, %174 : vector<16x595xf32>
    %c2_158 = arith.constant 2 : index
    %c0_159 = arith.constant 0 : index
    %c0_160 = arith.constant 0 : index
    %176 = vector.load %arg4[%c2_158, %c0_159, %c0_160] : memref<25x16x6xf32, #tpu.memory_space<vmem>>, vector<1x16x6xf32>
    %177 = vector.shape_cast %176 : vector<1x16x6xf32> to vector<16x6xf32>
    %c0_161 = arith.constant 0 : index
    %c4_162 = arith.constant 4 : index
    %178 = vector.load %arg14[%c0_161, %c4_162] : memref<6x859xf32, #tpu.memory_space<vmem>>, vector<6x595xf32>
    %cst_163 = arith.constant dense<0.000000e+00> : vector<16x595xf32>
    %179 = tpu.matmul %177, %178, %cst_163 {dimension_numbers = #tpu.dot_dimension_numbers<[1], [0], [0], [1], [0, 0, 1, 1], [], []>} : vector<16x6xf32>, vector<6x595xf32>, vector<16x595xf32> -> vector<16x595xf32>
    %180 = arith.addf %175, %179 : vector<16x595xf32>
    %c3_164 = arith.constant 3 : index
    %c0_165 = arith.constant 0 : index
    %c0_166 = arith.constant 0 : index
    %181 = vector.load %arg4[%c3_164, %c0_165, %c0_166] : memref<25x16x6xf32, #tpu.memory_space<vmem>>, vector<1x16x6xf32>
    %182 = vector.shape_cast %181 : vector<1x16x6xf32> to vector<16x6xf32>
    %c0_167 = arith.constant 0 : index
    %c6_168 = arith.constant 6 : index
    %183 = vector.load %arg14[%c0_167, %c6_168] : memref<6x859xf32, #tpu.memory_space<vmem>>, vector<6x595xf32>
    %cst_169 = arith.constant dense<0.000000e+00> : vector<16x595xf32>
    %184 = tpu.matmul %182, %183, %cst_169 {dimension_numbers = #tpu.dot_dimension_numbers<[1], [0], [0], [1], [0, 0, 1, 1], [], []>} : vector<16x6xf32>, vector<6x595xf32>, vector<16x595xf32> -> vector<16x595xf32>
    %185 = arith.addf %180, %184 : vector<16x595xf32>
    %c4_170 = arith.constant 4 : index
    %c0_171 = arith.constant 0 : index
    %c0_172 = arith.constant 0 : index
    %186 = vector.load %arg4[%c4_170, %c0_171, %c0_172] : memref<25x16x6xf32, #tpu.memory_space<vmem>>, vector<1x16x6xf32>
    %187 = vector.shape_cast %186 : vector<1x16x6xf32> to vector<16x6xf32>
    %c0_173 = arith.constant 0 : index
    %c8_174 = arith.constant 8 : index
    %188 = vector.load %arg14[%c0_173, %c8_174] : memref<6x859xf32, #tpu.memory_space<vmem>>, vector<6x595xf32>
    %cst_175 = arith.constant dense<0.000000e+00> : vector<16x595xf32>
    %189 = tpu.matmul %187, %188, %cst_175 {dimension_numbers = #tpu.dot_dimension_numbers<[1], [0], [0], [1], [0, 0, 1, 1], [], []>} : vector<16x6xf32>, vector<6x595xf32>, vector<16x595xf32> -> vector<16x595xf32>
    %190 = arith.addf %185, %189 : vector<16x595xf32>
    %c5_176 = arith.constant 5 : index
    %c0_177 = arith.constant 0 : index
    %c0_178 = arith.constant 0 : index
    %191 = vector.load %arg4[%c5_176, %c0_177, %c0_178] : memref<25x16x6xf32, #tpu.memory_space<vmem>>, vector<1x16x6xf32>
    %192 = vector.shape_cast %191 : vector<1x16x6xf32> to vector<16x6xf32>
    %c0_179 = arith.constant 0 : index
    %c64_180 = arith.constant 64 : index
    %193 = vector.load %arg14[%c0_179, %c64_180] : memref<6x859xf32, #tpu.memory_space<vmem>>, vector<6x595xf32>
    %cst_181 = arith.constant dense<0.000000e+00> : vector<16x595xf32>
    %194 = tpu.matmul %192, %193, %cst_181 {dimension_numbers = #tpu.dot_dimension_numbers<[1], [0], [0], [1], [0, 0, 1, 1], [], []>} : vector<16x6xf32>, vector<6x595xf32>, vector<16x595xf32> -> vector<16x595xf32>
    %195 = arith.addf %190, %194 : vector<16x595xf32>
    %c6_182 = arith.constant 6 : index
    %c0_183 = arith.constant 0 : index
    %c0_184 = arith.constant 0 : index
    %196 = vector.load %arg4[%c6_182, %c0_183, %c0_184] : memref<25x16x6xf32, #tpu.memory_space<vmem>>, vector<1x16x6xf32>
    %197 = vector.shape_cast %196 : vector<1x16x6xf32> to vector<16x6xf32>
    %c0_185 = arith.constant 0 : index
    %c66_186 = arith.constant 66 : index
    %198 = vector.load %arg14[%c0_185, %c66_186] : memref<6x859xf32, #tpu.memory_space<vmem>>, vector<6x595xf32>
    %cst_187 = arith.constant dense<0.000000e+00> : vector<16x595xf32>
    %199 = tpu.matmul %197, %198, %cst_187 {dimension_numbers = #tpu.dot_dimension_numbers<[1], [0], [0], [1], [0, 0, 1, 1], [], []>} : vector<16x6xf32>, vector<6x595xf32>, vector<16x595xf32> -> vector<16x595xf32>
    %200 = arith.addf %195, %199 : vector<16x595xf32>
    %c7_188 = arith.constant 7 : index
    %c0_189 = arith.constant 0 : index
    %c0_190 = arith.constant 0 : index
    %201 = vector.load %arg4[%c7_188, %c0_189, %c0_190] : memref<25x16x6xf32, #tpu.memory_space<vmem>>, vector<1x16x6xf32>
    %202 = vector.shape_cast %201 : vector<1x16x6xf32> to vector<16x6xf32>
    %c0_191 = arith.constant 0 : index
    %c68_192 = arith.constant 68 : index
    %203 = vector.load %arg14[%c0_191, %c68_192] : memref<6x859xf32, #tpu.memory_space<vmem>>, vector<6x595xf32>
    %cst_193 = arith.constant dense<0.000000e+00> : vector<16x595xf32>
    %204 = tpu.matmul %202, %203, %cst_193 {dimension_numbers = #tpu.dot_dimension_numbers<[1], [0], [0], [1], [0, 0, 1, 1], [], []>} : vector<16x6xf32>, vector<6x595xf32>, vector<16x595xf32> -> vector<16x595xf32>
    %205 = arith.addf %200, %204 : vector<16x595xf32>
    %c8_194 = arith.constant 8 : index
    %c0_195 = arith.constant 0 : index
    %c0_196 = arith.constant 0 : index
    %206 = vector.load %arg4[%c8_194, %c0_195, %c0_196] : memref<25x16x6xf32, #tpu.memory_space<vmem>>, vector<1x16x6xf32>
    %207 = vector.shape_cast %206 : vector<1x16x6xf32> to vector<16x6xf32>
    %c0_197 = arith.constant 0 : index
    %c70 = arith.constant 70 : index
    %208 = vector.load %arg14[%c0_197, %c70] : memref<6x859xf32, #tpu.memory_space<vmem>>, vector<6x595xf32>
    %cst_198 = arith.constant dense<0.000000e+00> : vector<16x595xf32>
    %209 = tpu.matmul %207, %208, %cst_198 {dimension_numbers = #tpu.dot_dimension_numbers<[1], [0], [0], [1], [0, 0, 1, 1], [], []>} : vector<16x6xf32>, vector<6x595xf32>, vector<16x595xf32> -> vector<16x595xf32>
    %210 = arith.addf %205, %209 : vector<16x595xf32>
    %c9_199 = arith.constant 9 : index
    %c0_200 = arith.constant 0 : index
    %c0_201 = arith.constant 0 : index
    %211 = vector.load %arg4[%c9_199, %c0_200, %c0_201] : memref<25x16x6xf32, #tpu.memory_space<vmem>>, vector<1x16x6xf32>
    %212 = vector.shape_cast %211 : vector<1x16x6xf32> to vector<16x6xf32>
    %c0_202 = arith.constant 0 : index
    %c72 = arith.constant 72 : index
    %213 = vector.load %arg14[%c0_202, %c72] : memref<6x859xf32, #tpu.memory_space<vmem>>, vector<6x595xf32>
    %cst_203 = arith.constant dense<0.000000e+00> : vector<16x595xf32>
    %214 = tpu.matmul %212, %213, %cst_203 {dimension_numbers = #tpu.dot_dimension_numbers<[1], [0], [0], [1], [0, 0, 1, 1], [], []>} : vector<16x6xf32>, vector<6x595xf32>, vector<16x595xf32> -> vector<16x595xf32>
    %215 = arith.addf %210, %214 : vector<16x595xf32>
    %c10_204 = arith.constant 10 : index
    %c0_205 = arith.constant 0 : index
    %c0_206 = arith.constant 0 : index
    %216 = vector.load %arg4[%c10_204, %c0_205, %c0_206] : memref<25x16x6xf32, #tpu.memory_space<vmem>>, vector<1x16x6xf32>
    %217 = vector.shape_cast %216 : vector<1x16x6xf32> to vector<16x6xf32>
    %c0_207 = arith.constant 0 : index
    %c128_208 = arith.constant 128 : index
    %218 = vector.load %arg14[%c0_207, %c128_208] : memref<6x859xf32, #tpu.memory_space<vmem>>, vector<6x595xf32>
    %cst_209 = arith.constant dense<0.000000e+00> : vector<16x595xf32>
    %219 = tpu.matmul %217, %218, %cst_209 {dimension_numbers = #tpu.dot_dimension_numbers<[1], [0], [0], [1], [0, 0, 1, 1], [], []>} : vector<16x6xf32>, vector<6x595xf32>, vector<16x595xf32> -> vector<16x595xf32>
    %220 = arith.addf %215, %219 : vector<16x595xf32>
    %c11_210 = arith.constant 11 : index
    %c0_211 = arith.constant 0 : index
    %c0_212 = arith.constant 0 : index
    %221 = vector.load %arg4[%c11_210, %c0_211, %c0_212] : memref<25x16x6xf32, #tpu.memory_space<vmem>>, vector<1x16x6xf32>
    %222 = vector.shape_cast %221 : vector<1x16x6xf32> to vector<16x6xf32>
    %c0_213 = arith.constant 0 : index
    %c130_214 = arith.constant 130 : index
    %223 = vector.load %arg14[%c0_213, %c130_214] : memref<6x859xf32, #tpu.memory_space<vmem>>, vector<6x595xf32>
    %cst_215 = arith.constant dense<0.000000e+00> : vector<16x595xf32>
    %224 = tpu.matmul %222, %223, %cst_215 {dimension_numbers = #tpu.dot_dimension_numbers<[1], [0], [0], [1], [0, 0, 1, 1], [], []>} : vector<16x6xf32>, vector<6x595xf32>, vector<16x595xf32> -> vector<16x595xf32>
    %225 = arith.addf %220, %224 : vector<16x595xf32>
    %c12_216 = arith.constant 12 : index
    %c0_217 = arith.constant 0 : index
    %c0_218 = arith.constant 0 : index
    %226 = vector.load %arg4[%c12_216, %c0_217, %c0_218] : memref<25x16x6xf32, #tpu.memory_space<vmem>>, vector<1x16x6xf32>
    %227 = vector.shape_cast %226 : vector<1x16x6xf32> to vector<16x6xf32>
    %c0_219 = arith.constant 0 : index
    %c132_220 = arith.constant 132 : index
    %228 = vector.load %arg14[%c0_219, %c132_220] : memref<6x859xf32, #tpu.memory_space<vmem>>, vector<6x595xf32>
    %cst_221 = arith.constant dense<0.000000e+00> : vector<16x595xf32>
    %229 = tpu.matmul %227, %228, %cst_221 {dimension_numbers = #tpu.dot_dimension_numbers<[1], [0], [0], [1], [0, 0, 1, 1], [], []>} : vector<16x6xf32>, vector<6x595xf32>, vector<16x595xf32> -> vector<16x595xf32>
    %230 = arith.addf %225, %229 : vector<16x595xf32>
    %c13_222 = arith.constant 13 : index
    %c0_223 = arith.constant 0 : index
    %c0_224 = arith.constant 0 : index
    %231 = vector.load %arg4[%c13_222, %c0_223, %c0_224] : memref<25x16x6xf32, #tpu.memory_space<vmem>>, vector<1x16x6xf32>
    %232 = vector.shape_cast %231 : vector<1x16x6xf32> to vector<16x6xf32>
    %c0_225 = arith.constant 0 : index
    %c134 = arith.constant 134 : index
    %233 = vector.load %arg14[%c0_225, %c134] : memref<6x859xf32, #tpu.memory_space<vmem>>, vector<6x595xf32>
    %cst_226 = arith.constant dense<0.000000e+00> : vector<16x595xf32>
    %234 = tpu.matmul %232, %233, %cst_226 {dimension_numbers = #tpu.dot_dimension_numbers<[1], [0], [0], [1], [0, 0, 1, 1], [], []>} : vector<16x6xf32>, vector<6x595xf32>, vector<16x595xf32> -> vector<16x595xf32>
    %235 = arith.addf %230, %234 : vector<16x595xf32>
    %c14_227 = arith.constant 14 : index
    %c0_228 = arith.constant 0 : index
    %c0_229 = arith.constant 0 : index
    %236 = vector.load %arg4[%c14_227, %c0_228, %c0_229] : memref<25x16x6xf32, #tpu.memory_space<vmem>>, vector<1x16x6xf32>
    %237 = vector.shape_cast %236 : vector<1x16x6xf32> to vector<16x6xf32>
    %c0_230 = arith.constant 0 : index
    %c136 = arith.constant 136 : index
    %238 = vector.load %arg14[%c0_230, %c136] : memref<6x859xf32, #tpu.memory_space<vmem>>, vector<6x595xf32>
    %cst_231 = arith.constant dense<0.000000e+00> : vector<16x595xf32>
    %239 = tpu.matmul %237, %238, %cst_231 {dimension_numbers = #tpu.dot_dimension_numbers<[1], [0], [0], [1], [0, 0, 1, 1], [], []>} : vector<16x6xf32>, vector<6x595xf32>, vector<16x595xf32> -> vector<16x595xf32>
    %240 = arith.addf %235, %239 : vector<16x595xf32>
    %c15_232 = arith.constant 15 : index
    %c0_233 = arith.constant 0 : index
    %c0_234 = arith.constant 0 : index
    %241 = vector.load %arg4[%c15_232, %c0_233, %c0_234] : memref<25x16x6xf32, #tpu.memory_space<vmem>>, vector<1x16x6xf32>
    %242 = vector.shape_cast %241 : vector<1x16x6xf32> to vector<16x6xf32>
    %c0_235 = arith.constant 0 : index
    %c192 = arith.constant 192 : index
    %243 = vector.load %arg14[%c0_235, %c192] : memref<6x859xf32, #tpu.memory_space<vmem>>, vector<6x595xf32>
    %cst_236 = arith.constant dense<0.000000e+00> : vector<16x595xf32>
    %244 = tpu.matmul %242, %243, %cst_236 {dimension_numbers = #tpu.dot_dimension_numbers<[1], [0], [0], [1], [0, 0, 1, 1], [], []>} : vector<16x6xf32>, vector<6x595xf32>, vector<16x595xf32> -> vector<16x595xf32>
    %245 = arith.addf %240, %244 : vector<16x595xf32>
    %c16_237 = arith.constant 16 : index
    %c0_238 = arith.constant 0 : index
    %c0_239 = arith.constant 0 : index
    %246 = vector.load %arg4[%c16_237, %c0_238, %c0_239] : memref<25x16x6xf32, #tpu.memory_space<vmem>>, vector<1x16x6xf32>
    %247 = vector.shape_cast %246 : vector<1x16x6xf32> to vector<16x6xf32>
    %c0_240 = arith.constant 0 : index
    %c194 = arith.constant 194 : index
    %248 = vector.load %arg14[%c0_240, %c194] : memref<6x859xf32, #tpu.memory_space<vmem>>, vector<6x595xf32>
    %cst_241 = arith.constant dense<0.000000e+00> : vector<16x595xf32>
    %249 = tpu.matmul %247, %248, %cst_241 {dimension_numbers = #tpu.dot_dimension_numbers<[1], [0], [0], [1], [0, 0, 1, 1], [], []>} : vector<16x6xf32>, vector<6x595xf32>, vector<16x595xf32> -> vector<16x595xf32>
    %250 = arith.addf %245, %249 : vector<16x595xf32>
    %c17_242 = arith.constant 17 : index
    %c0_243 = arith.constant 0 : index
    %c0_244 = arith.constant 0 : index
    %251 = vector.load %arg4[%c17_242, %c0_243, %c0_244] : memref<25x16x6xf32, #tpu.memory_space<vmem>>, vector<1x16x6xf32>
    %252 = vector.shape_cast %251 : vector<1x16x6xf32> to vector<16x6xf32>
    %c0_245 = arith.constant 0 : index
    %c196 = arith.constant 196 : index
    %253 = vector.load %arg14[%c0_245, %c196] : memref<6x859xf32, #tpu.memory_space<vmem>>, vector<6x595xf32>
    %cst_246 = arith.constant dense<0.000000e+00> : vector<16x595xf32>
    %254 = tpu.matmul %252, %253, %cst_246 {dimension_numbers = #tpu.dot_dimension_numbers<[1], [0], [0], [1], [0, 0, 1, 1], [], []>} : vector<16x6xf32>, vector<6x595xf32>, vector<16x595xf32> -> vector<16x595xf32>
    %255 = arith.addf %250, %254 : vector<16x595xf32>
    %c18_247 = arith.constant 18 : index
    %c0_248 = arith.constant 0 : index
    %c0_249 = arith.constant 0 : index
    %256 = vector.load %arg4[%c18_247, %c0_248, %c0_249] : memref<25x16x6xf32, #tpu.memory_space<vmem>>, vector<1x16x6xf32>
    %257 = vector.shape_cast %256 : vector<1x16x6xf32> to vector<16x6xf32>
    %c0_250 = arith.constant 0 : index
    %c198 = arith.constant 198 : index
    %258 = vector.load %arg14[%c0_250, %c198] : memref<6x859xf32, #tpu.memory_space<vmem>>, vector<6x595xf32>
    %cst_251 = arith.constant dense<0.000000e+00> : vector<16x595xf32>
    %259 = tpu.matmul %257, %258, %cst_251 {dimension_numbers = #tpu.dot_dimension_numbers<[1], [0], [0], [1], [0, 0, 1, 1], [], []>} : vector<16x6xf32>, vector<6x595xf32>, vector<16x595xf32> -> vector<16x595xf32>
    %260 = arith.addf %255, %259 : vector<16x595xf32>
    %c19_252 = arith.constant 19 : index
    %c0_253 = arith.constant 0 : index
    %c0_254 = arith.constant 0 : index
    %261 = vector.load %arg4[%c19_252, %c0_253, %c0_254] : memref<25x16x6xf32, #tpu.memory_space<vmem>>, vector<1x16x6xf32>
    %262 = vector.shape_cast %261 : vector<1x16x6xf32> to vector<16x6xf32>
    %c0_255 = arith.constant 0 : index
    %c200 = arith.constant 200 : index
    %263 = vector.load %arg14[%c0_255, %c200] : memref<6x859xf32, #tpu.memory_space<vmem>>, vector<6x595xf32>
    %cst_256 = arith.constant dense<0.000000e+00> : vector<16x595xf32>
    %264 = tpu.matmul %262, %263, %cst_256 {dimension_numbers = #tpu.dot_dimension_numbers<[1], [0], [0], [1], [0, 0, 1, 1], [], []>} : vector<16x6xf32>, vector<6x595xf32>, vector<16x595xf32> -> vector<16x595xf32>
    %265 = arith.addf %260, %264 : vector<16x595xf32>
    %c20_257 = arith.constant 20 : index
    %c0_258 = arith.constant 0 : index
    %c0_259 = arith.constant 0 : index
    %266 = vector.load %arg4[%c20_257, %c0_258, %c0_259] : memref<25x16x6xf32, #tpu.memory_space<vmem>>, vector<1x16x6xf32>
    %267 = vector.shape_cast %266 : vector<1x16x6xf32> to vector<16x6xf32>
    %c0_260 = arith.constant 0 : index
    %c256 = arith.constant 256 : index
    %268 = vector.load %arg14[%c0_260, %c256] : memref<6x859xf32, #tpu.memory_space<vmem>>, vector<6x595xf32>
    %cst_261 = arith.constant dense<0.000000e+00> : vector<16x595xf32>
    %269 = tpu.matmul %267, %268, %cst_261 {dimension_numbers = #tpu.dot_dimension_numbers<[1], [0], [0], [1], [0, 0, 1, 1], [], []>} : vector<16x6xf32>, vector<6x595xf32>, vector<16x595xf32> -> vector<16x595xf32>
    %270 = arith.addf %265, %269 : vector<16x595xf32>
    %c21_262 = arith.constant 21 : index
    %c0_263 = arith.constant 0 : index
    %c0_264 = arith.constant 0 : index
    %271 = vector.load %arg4[%c21_262, %c0_263, %c0_264] : memref<25x16x6xf32, #tpu.memory_space<vmem>>, vector<1x16x6xf32>
    %272 = vector.shape_cast %271 : vector<1x16x6xf32> to vector<16x6xf32>
    %c0_265 = arith.constant 0 : index
    %c258 = arith.constant 258 : index
    %273 = vector.load %arg14[%c0_265, %c258] : memref<6x859xf32, #tpu.memory_space<vmem>>, vector<6x595xf32>
    %cst_266 = arith.constant dense<0.000000e+00> : vector<16x595xf32>
    %274 = tpu.matmul %272, %273, %cst_266 {dimension_numbers = #tpu.dot_dimension_numbers<[1], [0], [0], [1], [0, 0, 1, 1], [], []>} : vector<16x6xf32>, vector<6x595xf32>, vector<16x595xf32> -> vector<16x595xf32>
    %275 = arith.addf %270, %274 : vector<16x595xf32>
    %c22_267 = arith.constant 22 : index
    %c0_268 = arith.constant 0 : index
    %c0_269 = arith.constant 0 : index
    %276 = vector.load %arg4[%c22_267, %c0_268, %c0_269] : memref<25x16x6xf32, #tpu.memory_space<vmem>>, vector<1x16x6xf32>
    %277 = vector.shape_cast %276 : vector<1x16x6xf32> to vector<16x6xf32>
    %c0_270 = arith.constant 0 : index
    %c260 = arith.constant 260 : index
    %278 = vector.load %arg14[%c0_270, %c260] : memref<6x859xf32, #tpu.memory_space<vmem>>, vector<6x595xf32>
    %cst_271 = arith.constant dense<0.000000e+00> : vector<16x595xf32>
    %279 = tpu.matmul %277, %278, %cst_271 {dimension_numbers = #tpu.dot_dimension_numbers<[1], [0], [0], [1], [0, 0, 1, 1], [], []>} : vector<16x6xf32>, vector<6x595xf32>, vector<16x595xf32> -> vector<16x595xf32>
    %280 = arith.addf %275, %279 : vector<16x595xf32>
    %c23_272 = arith.constant 23 : index
    %c0_273 = arith.constant 0 : index
    %c0_274 = arith.constant 0 : index
    %281 = vector.load %arg4[%c23_272, %c0_273, %c0_274] : memref<25x16x6xf32, #tpu.memory_space<vmem>>, vector<1x16x6xf32>
    %282 = vector.shape_cast %281 : vector<1x16x6xf32> to vector<16x6xf32>
    %c0_275 = arith.constant 0 : index
    %c262 = arith.constant 262 : index
    %283 = vector.load %arg14[%c0_275, %c262] : memref<6x859xf32, #tpu.memory_space<vmem>>, vector<6x595xf32>
    %cst_276 = arith.constant dense<0.000000e+00> : vector<16x595xf32>
    %284 = tpu.matmul %282, %283, %cst_276 {dimension_numbers = #tpu.dot_dimension_numbers<[1], [0], [0], [1], [0, 0, 1, 1], [], []>} : vector<16x6xf32>, vector<6x595xf32>, vector<16x595xf32> -> vector<16x595xf32>
    %285 = arith.addf %280, %284 : vector<16x595xf32>
    %c24_277 = arith.constant 24 : index
    %c0_278 = arith.constant 0 : index
    %c0_279 = arith.constant 0 : index
    %286 = vector.load %arg4[%c24_277, %c0_278, %c0_279] : memref<25x16x6xf32, #tpu.memory_space<vmem>>, vector<1x16x6xf32>
    %287 = vector.shape_cast %286 : vector<1x16x6xf32> to vector<16x6xf32>
    %c0_280 = arith.constant 0 : index
    %c264 = arith.constant 264 : index
    %288 = vector.load %arg14[%c0_280, %c264] : memref<6x859xf32, #tpu.memory_space<vmem>>, vector<6x595xf32>
    %cst_281 = arith.constant dense<0.000000e+00> : vector<16x595xf32>
    %289 = tpu.matmul %287, %288, %cst_281 {dimension_numbers = #tpu.dot_dimension_numbers<[1], [0], [0], [1], [0, 0, 1, 1], [], []>} : vector<16x6xf32>, vector<6x595xf32>, vector<16x595xf32> -> vector<16x595xf32>
    %290 = arith.addf %285, %289 : vector<16x595xf32>
    %c0_282 = arith.constant 0 : index
    %c0_283 = arith.constant 0 : index
    %291 = vector.load %arg5[%c0_282, %c0_283] : memref<16x1xf32, #tpu.memory_space<vmem>>, vector<16x1xf32>
    %292 = vector.broadcast %291 : vector<16x1xf32> to vector<16x595xf32>
    %293 = arith.addf %290, %292 : vector<16x595xf32>
    %cst_284 = arith.constant 0.000000e+00 : f32
    %294 = vector.broadcast %cst_284 : f32 to vector<16x595xf32>
    %295 = arith.maximumf %293, %294 : vector<16x595xf32>
    %c0_285 = arith.constant 0 : index
    %c0_286 = arith.constant 0 : index
    %296 = vector.load %arg15[%c0_285, %c0_286] : memref<16x595xf32, #tpu.memory_space<vmem>>, vector<16x595xf32>
    tpu.vector_store %arg15[%c0_285, %c0_286], %295 {strides = array<i32>} : memref<16x595xf32, #tpu.memory_space<vmem>>, vector<16x595xf32>,
    %c0_287 = arith.constant 0 : index
    %c0_288 = arith.constant 0 : index
    %297 = vector.load %arg15[%c0_287, %c0_288] : memref<16x595xf32, #tpu.memory_space<vmem>>, vector<16x529xf32>
    %c0_289 = arith.constant 0 : index
    %c2_290 = arith.constant 2 : index
    %298 = vector.load %arg15[%c0_289, %c2_290] : memref<16x595xf32, #tpu.memory_space<vmem>>, vector<16x529xf32>
    %299 = arith.maximumf %297, %298 : vector<16x529xf32>
    %c0_291 = arith.constant 0 : index
    %c64_292 = arith.constant 64 : index
    %300 = vector.load %arg15[%c0_291, %c64_292] : memref<16x595xf32, #tpu.memory_space<vmem>>, vector<16x529xf32>
    %c0_293 = arith.constant 0 : index
    %c66_294 = arith.constant 66 : index
    %301 = vector.load %arg15[%c0_293, %c66_294] : memref<16x595xf32, #tpu.memory_space<vmem>>, vector<16x529xf32>
    %302 = arith.maximumf %300, %301 : vector<16x529xf32>
    %303 = arith.maximumf %299, %302 : vector<16x529xf32>
    %c0_295 = arith.constant 0 : index
    %c0_296 = arith.constant 0 : index
    %304 = vector.load %arg16[%c0_295, %c0_296] : memref<16x529xf32, #tpu.memory_space<vmem>>, vector<16x529xf32>
    tpu.vector_store %arg16[%c0_295, %c0_296], %303 {strides = array<i32>} : memref<16x529xf32, #tpu.memory_space<vmem>>, vector<16x529xf32>,
    %c0_297 = arith.constant 0 : index
    %c0_298 = arith.constant 0 : index
    %305 = vector.load %arg7[%c0_297, %c0_298] : memref<120x1xf32, #tpu.memory_space<vmem>>, vector<120x1xf32>
    %c0_299 = arith.constant 0 : index
    %c0_300 = arith.constant 0 : index
    %c0_301 = arith.constant 0 : index
    %306 = vector.load %arg6[%c0_299, %c0_300, %c0_301] : memref<25x120x16xf32, #tpu.memory_space<vmem>>, vector<1x120x16xf32>
    %307 = vector.shape_cast %306 : vector<1x120x16xf32> to vector<120x16xf32>
    %c0_302 = arith.constant 0 : index
    %c0_303 = arith.constant 0 : index
    %308 = vector.load %arg16[%c0_302, %c0_303] : memref<16x529xf32, #tpu.memory_space<vmem>>, vector<16x1xf32>
    %cst_304 = arith.constant dense<0.000000e+00> : vector<120x1xf32>
    %309 = tpu.matmul %307, %308, %cst_304 {dimension_numbers = #tpu.dot_dimension_numbers<[1], [0], [0], [1], [0, 0, 1, 1], [], []>} : vector<120x16xf32>, vector<16x1xf32>, vector<120x1xf32> -> vector<120x1xf32>
    %310 = arith.addf %305, %309 : vector<120x1xf32>
    %c1_305 = arith.constant 1 : index
    %c0_306 = arith.constant 0 : index
    %c0_307 = arith.constant 0 : index
    %311 = vector.load %arg6[%c1_305, %c0_306, %c0_307] : memref<25x120x16xf32, #tpu.memory_space<vmem>>, vector<1x120x16xf32>
    %312 = vector.shape_cast %311 : vector<1x120x16xf32> to vector<120x16xf32>
    %c0_308 = arith.constant 0 : index
    %c4_309 = arith.constant 4 : index
    %313 = vector.load %arg16[%c0_308, %c4_309] : memref<16x529xf32, #tpu.memory_space<vmem>>, vector<16x1xf32>
    %cst_310 = arith.constant dense<0.000000e+00> : vector<120x1xf32>
    %314 = tpu.matmul %312, %313, %cst_310 {dimension_numbers = #tpu.dot_dimension_numbers<[1], [0], [0], [1], [0, 0, 1, 1], [], []>} : vector<120x16xf32>, vector<16x1xf32>, vector<120x1xf32> -> vector<120x1xf32>
    %315 = arith.addf %310, %314 : vector<120x1xf32>
    %c2_311 = arith.constant 2 : index
    %c0_312 = arith.constant 0 : index
    %c0_313 = arith.constant 0 : index
    %316 = vector.load %arg6[%c2_311, %c0_312, %c0_313] : memref<25x120x16xf32, #tpu.memory_space<vmem>>, vector<1x120x16xf32>
    %317 = vector.shape_cast %316 : vector<1x120x16xf32> to vector<120x16xf32>
    %c0_314 = arith.constant 0 : index
    %c8_315 = arith.constant 8 : index
    %318 = vector.load %arg16[%c0_314, %c8_315] : memref<16x529xf32, #tpu.memory_space<vmem>>, vector<16x1xf32>
    %cst_316 = arith.constant dense<0.000000e+00> : vector<120x1xf32>
    %319 = tpu.matmul %317, %318, %cst_316 {dimension_numbers = #tpu.dot_dimension_numbers<[1], [0], [0], [1], [0, 0, 1, 1], [], []>} : vector<120x16xf32>, vector<16x1xf32>, vector<120x1xf32> -> vector<120x1xf32>
    %320 = arith.addf %315, %319 : vector<120x1xf32>
    %c3_317 = arith.constant 3 : index
    %c0_318 = arith.constant 0 : index
    %c0_319 = arith.constant 0 : index
    %321 = vector.load %arg6[%c3_317, %c0_318, %c0_319] : memref<25x120x16xf32, #tpu.memory_space<vmem>>, vector<1x120x16xf32>
    %322 = vector.shape_cast %321 : vector<1x120x16xf32> to vector<120x16xf32>
    %c0_320 = arith.constant 0 : index
    %c12_321 = arith.constant 12 : index
    %323 = vector.load %arg16[%c0_320, %c12_321] : memref<16x529xf32, #tpu.memory_space<vmem>>, vector<16x1xf32>
    %cst_322 = arith.constant dense<0.000000e+00> : vector<120x1xf32>
    %324 = tpu.matmul %322, %323, %cst_322 {dimension_numbers = #tpu.dot_dimension_numbers<[1], [0], [0], [1], [0, 0, 1, 1], [], []>} : vector<120x16xf32>, vector<16x1xf32>, vector<120x1xf32> -> vector<120x1xf32>
    %325 = arith.addf %320, %324 : vector<120x1xf32>
    %c4_323 = arith.constant 4 : index
    %c0_324 = arith.constant 0 : index
    %c0_325 = arith.constant 0 : index
    %326 = vector.load %arg6[%c4_323, %c0_324, %c0_325] : memref<25x120x16xf32, #tpu.memory_space<vmem>>, vector<1x120x16xf32>
    %327 = vector.shape_cast %326 : vector<1x120x16xf32> to vector<120x16xf32>
    %c0_326 = arith.constant 0 : index
    %c16_327 = arith.constant 16 : index
    %328 = vector.load %arg16[%c0_326, %c16_327] : memref<16x529xf32, #tpu.memory_space<vmem>>, vector<16x1xf32>
    %cst_328 = arith.constant dense<0.000000e+00> : vector<120x1xf32>
    %329 = tpu.matmul %327, %328, %cst_328 {dimension_numbers = #tpu.dot_dimension_numbers<[1], [0], [0], [1], [0, 0, 1, 1], [], []>} : vector<120x16xf32>, vector<16x1xf32>, vector<120x1xf32> -> vector<120x1xf32>
    %330 = arith.addf %325, %329 : vector<120x1xf32>
    %c5_329 = arith.constant 5 : index
    %c0_330 = arith.constant 0 : index
    %c0_331 = arith.constant 0 : index
    %331 = vector.load %arg6[%c5_329, %c0_330, %c0_331] : memref<25x120x16xf32, #tpu.memory_space<vmem>>, vector<1x120x16xf32>
    %332 = vector.shape_cast %331 : vector<1x120x16xf32> to vector<120x16xf32>
    %c0_332 = arith.constant 0 : index
    %c128_333 = arith.constant 128 : index
    %333 = vector.load %arg16[%c0_332, %c128_333] : memref<16x529xf32, #tpu.memory_space<vmem>>, vector<16x1xf32>
    %cst_334 = arith.constant dense<0.000000e+00> : vector<120x1xf32>
    %334 = tpu.matmul %332, %333, %cst_334 {dimension_numbers = #tpu.dot_dimension_numbers<[1], [0], [0], [1], [0, 0, 1, 1], [], []>} : vector<120x16xf32>, vector<16x1xf32>, vector<120x1xf32> -> vector<120x1xf32>
    %335 = arith.addf %330, %334 : vector<120x1xf32>
    %c6_335 = arith.constant 6 : index
    %c0_336 = arith.constant 0 : index
    %c0_337 = arith.constant 0 : index
    %336 = vector.load %arg6[%c6_335, %c0_336, %c0_337] : memref<25x120x16xf32, #tpu.memory_space<vmem>>, vector<1x120x16xf32>
    %337 = vector.shape_cast %336 : vector<1x120x16xf32> to vector<120x16xf32>
    %c0_338 = arith.constant 0 : index
    %c132_339 = arith.constant 132 : index
    %338 = vector.load %arg16[%c0_338, %c132_339] : memref<16x529xf32, #tpu.memory_space<vmem>>, vector<16x1xf32>
    %cst_340 = arith.constant dense<0.000000e+00> : vector<120x1xf32>
    %339 = tpu.matmul %337, %338, %cst_340 {dimension_numbers = #tpu.dot_dimension_numbers<[1], [0], [0], [1], [0, 0, 1, 1], [], []>} : vector<120x16xf32>, vector<16x1xf32>, vector<120x1xf32> -> vector<120x1xf32>
    %340 = arith.addf %335, %339 : vector<120x1xf32>
    %c7_341 = arith.constant 7 : index
    %c0_342 = arith.constant 0 : index
    %c0_343 = arith.constant 0 : index
    %341 = vector.load %arg6[%c7_341, %c0_342, %c0_343] : memref<25x120x16xf32, #tpu.memory_space<vmem>>, vector<1x120x16xf32>
    %342 = vector.shape_cast %341 : vector<1x120x16xf32> to vector<120x16xf32>
    %c0_344 = arith.constant 0 : index
    %c136_345 = arith.constant 136 : index
    %343 = vector.load %arg16[%c0_344, %c136_345] : memref<16x529xf32, #tpu.memory_space<vmem>>, vector<16x1xf32>
    %cst_346 = arith.constant dense<0.000000e+00> : vector<120x1xf32>
    %344 = tpu.matmul %342, %343, %cst_346 {dimension_numbers = #tpu.dot_dimension_numbers<[1], [0], [0], [1], [0, 0, 1, 1], [], []>} : vector<120x16xf32>, vector<16x1xf32>, vector<120x1xf32> -> vector<120x1xf32>
    %345 = arith.addf %340, %344 : vector<120x1xf32>
    %c8_347 = arith.constant 8 : index
    %c0_348 = arith.constant 0 : index
    %c0_349 = arith.constant 0 : index
    %346 = vector.load %arg6[%c8_347, %c0_348, %c0_349] : memref<25x120x16xf32, #tpu.memory_space<vmem>>, vector<1x120x16xf32>
    %347 = vector.shape_cast %346 : vector<1x120x16xf32> to vector<120x16xf32>
    %c0_350 = arith.constant 0 : index
    %c140 = arith.constant 140 : index
    %348 = vector.load %arg16[%c0_350, %c140] : memref<16x529xf32, #tpu.memory_space<vmem>>, vector<16x1xf32>
    %cst_351 = arith.constant dense<0.000000e+00> : vector<120x1xf32>
    %349 = tpu.matmul %347, %348, %cst_351 {dimension_numbers = #tpu.dot_dimension_numbers<[1], [0], [0], [1], [0, 0, 1, 1], [], []>} : vector<120x16xf32>, vector<16x1xf32>, vector<120x1xf32> -> vector<120x1xf32>
    %350 = arith.addf %345, %349 : vector<120x1xf32>
    %c9_352 = arith.constant 9 : index
    %c0_353 = arith.constant 0 : index
    %c0_354 = arith.constant 0 : index
    %351 = vector.load %arg6[%c9_352, %c0_353, %c0_354] : memref<25x120x16xf32, #tpu.memory_space<vmem>>, vector<1x120x16xf32>
    %352 = vector.shape_cast %351 : vector<1x120x16xf32> to vector<120x16xf32>
    %c0_355 = arith.constant 0 : index
    %c144 = arith.constant 144 : index
    %353 = vector.load %arg16[%c0_355, %c144] : memref<16x529xf32, #tpu.memory_space<vmem>>, vector<16x1xf32>
    %cst_356 = arith.constant dense<0.000000e+00> : vector<120x1xf32>
    %354 = tpu.matmul %352, %353, %cst_356 {dimension_numbers = #tpu.dot_dimension_numbers<[1], [0], [0], [1], [0, 0, 1, 1], [], []>} : vector<120x16xf32>, vector<16x1xf32>, vector<120x1xf32> -> vector<120x1xf32>
    %355 = arith.addf %350, %354 : vector<120x1xf32>
    %c10_357 = arith.constant 10 : index
    %c0_358 = arith.constant 0 : index
    %c0_359 = arith.constant 0 : index
    %356 = vector.load %arg6[%c10_357, %c0_358, %c0_359] : memref<25x120x16xf32, #tpu.memory_space<vmem>>, vector<1x120x16xf32>
    %357 = vector.shape_cast %356 : vector<1x120x16xf32> to vector<120x16xf32>
    %c0_360 = arith.constant 0 : index
    %c256_361 = arith.constant 256 : index
    %358 = vector.load %arg16[%c0_360, %c256_361] : memref<16x529xf32, #tpu.memory_space<vmem>>, vector<16x1xf32>
    %cst_362 = arith.constant dense<0.000000e+00> : vector<120x1xf32>
    %359 = tpu.matmul %357, %358, %cst_362 {dimension_numbers = #tpu.dot_dimension_numbers<[1], [0], [0], [1], [0, 0, 1, 1], [], []>} : vector<120x16xf32>, vector<16x1xf32>, vector<120x1xf32> -> vector<120x1xf32>
    %360 = arith.addf %355, %359 : vector<120x1xf32>
    %c11_363 = arith.constant 11 : index
    %c0_364 = arith.constant 0 : index
    %c0_365 = arith.constant 0 : index
    %361 = vector.load %arg6[%c11_363, %c0_364, %c0_365] : memref<25x120x16xf32, #tpu.memory_space<vmem>>, vector<1x120x16xf32>
    %362 = vector.shape_cast %361 : vector<1x120x16xf32> to vector<120x16xf32>
    %c0_366 = arith.constant 0 : index
    %c260_367 = arith.constant 260 : index
    %363 = vector.load %arg16[%c0_366, %c260_367] : memref<16x529xf32, #tpu.memory_space<vmem>>, vector<16x1xf32>
    %cst_368 = arith.constant dense<0.000000e+00> : vector<120x1xf32>
    %364 = tpu.matmul %362, %363, %cst_368 {dimension_numbers = #tpu.dot_dimension_numbers<[1], [0], [0], [1], [0, 0, 1, 1], [], []>} : vector<120x16xf32>, vector<16x1xf32>, vector<120x1xf32> -> vector<120x1xf32>
    %365 = arith.addf %360, %364 : vector<120x1xf32>
    %c12_369 = arith.constant 12 : index
    %c0_370 = arith.constant 0 : index
    %c0_371 = arith.constant 0 : index
    %366 = vector.load %arg6[%c12_369, %c0_370, %c0_371] : memref<25x120x16xf32, #tpu.memory_space<vmem>>, vector<1x120x16xf32>
    %367 = vector.shape_cast %366 : vector<1x120x16xf32> to vector<120x16xf32>
    %c0_372 = arith.constant 0 : index
    %c264_373 = arith.constant 264 : index
    %368 = vector.load %arg16[%c0_372, %c264_373] : memref<16x529xf32, #tpu.memory_space<vmem>>, vector<16x1xf32>
    %cst_374 = arith.constant dense<0.000000e+00> : vector<120x1xf32>
    %369 = tpu.matmul %367, %368, %cst_374 {dimension_numbers = #tpu.dot_dimension_numbers<[1], [0], [0], [1], [0, 0, 1, 1], [], []>} : vector<120x16xf32>, vector<16x1xf32>, vector<120x1xf32> -> vector<120x1xf32>
    %370 = arith.addf %365, %369 : vector<120x1xf32>
    %c13_375 = arith.constant 13 : index
    %c0_376 = arith.constant 0 : index
    %c0_377 = arith.constant 0 : index
    %371 = vector.load %arg6[%c13_375, %c0_376, %c0_377] : memref<25x120x16xf32, #tpu.memory_space<vmem>>, vector<1x120x16xf32>
    %372 = vector.shape_cast %371 : vector<1x120x16xf32> to vector<120x16xf32>
    %c0_378 = arith.constant 0 : index
    %c268 = arith.constant 268 : index
    %373 = vector.load %arg16[%c0_378, %c268] : memref<16x529xf32, #tpu.memory_space<vmem>>, vector<16x1xf32>
    %cst_379 = arith.constant dense<0.000000e+00> : vector<120x1xf32>
    %374 = tpu.matmul %372, %373, %cst_379 {dimension_numbers = #tpu.dot_dimension_numbers<[1], [0], [0], [1], [0, 0, 1, 1], [], []>} : vector<120x16xf32>, vector<16x1xf32>, vector<120x1xf32> -> vector<120x1xf32>
    %375 = arith.addf %370, %374 : vector<120x1xf32>
    %c14_380 = arith.constant 14 : index
    %c0_381 = arith.constant 0 : index
    %c0_382 = arith.constant 0 : index
    %376 = vector.load %arg6[%c14_380, %c0_381, %c0_382] : memref<25x120x16xf32, #tpu.memory_space<vmem>>, vector<1x120x16xf32>
    %377 = vector.shape_cast %376 : vector<1x120x16xf32> to vector<120x16xf32>
    %c0_383 = arith.constant 0 : index
    %c272 = arith.constant 272 : index
    %378 = vector.load %arg16[%c0_383, %c272] : memref<16x529xf32, #tpu.memory_space<vmem>>, vector<16x1xf32>
    %cst_384 = arith.constant dense<0.000000e+00> : vector<120x1xf32>
    %379 = tpu.matmul %377, %378, %cst_384 {dimension_numbers = #tpu.dot_dimension_numbers<[1], [0], [0], [1], [0, 0, 1, 1], [], []>} : vector<120x16xf32>, vector<16x1xf32>, vector<120x1xf32> -> vector<120x1xf32>
    %380 = arith.addf %375, %379 : vector<120x1xf32>
    %c15_385 = arith.constant 15 : index
    %c0_386 = arith.constant 0 : index
    %c0_387 = arith.constant 0 : index
    %381 = vector.load %arg6[%c15_385, %c0_386, %c0_387] : memref<25x120x16xf32, #tpu.memory_space<vmem>>, vector<1x120x16xf32>
    %382 = vector.shape_cast %381 : vector<1x120x16xf32> to vector<120x16xf32>
    %c0_388 = arith.constant 0 : index
    %c384 = arith.constant 384 : index
    %383 = vector.load %arg16[%c0_388, %c384] : memref<16x529xf32, #tpu.memory_space<vmem>>, vector<16x1xf32>
    %cst_389 = arith.constant dense<0.000000e+00> : vector<120x1xf32>
    %384 = tpu.matmul %382, %383, %cst_389 {dimension_numbers = #tpu.dot_dimension_numbers<[1], [0], [0], [1], [0, 0, 1, 1], [], []>} : vector<120x16xf32>, vector<16x1xf32>, vector<120x1xf32> -> vector<120x1xf32>
    %385 = arith.addf %380, %384 : vector<120x1xf32>
    %c16_390 = arith.constant 16 : index
    %c0_391 = arith.constant 0 : index
    %c0_392 = arith.constant 0 : index
    %386 = vector.load %arg6[%c16_390, %c0_391, %c0_392] : memref<25x120x16xf32, #tpu.memory_space<vmem>>, vector<1x120x16xf32>
    %387 = vector.shape_cast %386 : vector<1x120x16xf32> to vector<120x16xf32>
    %c0_393 = arith.constant 0 : index
    %c388 = arith.constant 388 : index
    %388 = vector.load %arg16[%c0_393, %c388] : memref<16x529xf32, #tpu.memory_space<vmem>>, vector<16x1xf32>
    %cst_394 = arith.constant dense<0.000000e+00> : vector<120x1xf32>
    %389 = tpu.matmul %387, %388, %cst_394 {dimension_numbers = #tpu.dot_dimension_numbers<[1], [0], [0], [1], [0, 0, 1, 1], [], []>} : vector<120x16xf32>, vector<16x1xf32>, vector<120x1xf32> -> vector<120x1xf32>
    %390 = arith.addf %385, %389 : vector<120x1xf32>
    %c17_395 = arith.constant 17 : index
    %c0_396 = arith.constant 0 : index
    %c0_397 = arith.constant 0 : index
    %391 = vector.load %arg6[%c17_395, %c0_396, %c0_397] : memref<25x120x16xf32, #tpu.memory_space<vmem>>, vector<1x120x16xf32>
    %392 = vector.shape_cast %391 : vector<1x120x16xf32> to vector<120x16xf32>
    %c0_398 = arith.constant 0 : index
    %c392 = arith.constant 392 : index
    %393 = vector.load %arg16[%c0_398, %c392] : memref<16x529xf32, #tpu.memory_space<vmem>>, vector<16x1xf32>
    %cst_399 = arith.constant dense<0.000000e+00> : vector<120x1xf32>
    %394 = tpu.matmul %392, %393, %cst_399 {dimension_numbers = #tpu.dot_dimension_numbers<[1], [0], [0], [1], [0, 0, 1, 1], [], []>} : vector<120x16xf32>, vector<16x1xf32>, vector<120x1xf32> -> vector<120x1xf32>
    %395 = arith.addf %390, %394 : vector<120x1xf32>
    %c18_400 = arith.constant 18 : index
    %c0_401 = arith.constant 0 : index
    %c0_402 = arith.constant 0 : index
    %396 = vector.load %arg6[%c18_400, %c0_401, %c0_402] : memref<25x120x16xf32, #tpu.memory_space<vmem>>, vector<1x120x16xf32>
    %397 = vector.shape_cast %396 : vector<1x120x16xf32> to vector<120x16xf32>
    %c0_403 = arith.constant 0 : index
    %c396 = arith.constant 396 : index
    %398 = vector.load %arg16[%c0_403, %c396] : memref<16x529xf32, #tpu.memory_space<vmem>>, vector<16x1xf32>
    %cst_404 = arith.constant dense<0.000000e+00> : vector<120x1xf32>
    %399 = tpu.matmul %397, %398, %cst_404 {dimension_numbers = #tpu.dot_dimension_numbers<[1], [0], [0], [1], [0, 0, 1, 1], [], []>} : vector<120x16xf32>, vector<16x1xf32>, vector<120x1xf32> -> vector<120x1xf32>
    %400 = arith.addf %395, %399 : vector<120x1xf32>
    %c19_405 = arith.constant 19 : index
    %c0_406 = arith.constant 0 : index
    %c0_407 = arith.constant 0 : index
    %401 = vector.load %arg6[%c19_405, %c0_406, %c0_407] : memref<25x120x16xf32, #tpu.memory_space<vmem>>, vector<1x120x16xf32>
    %402 = vector.shape_cast %401 : vector<1x120x16xf32> to vector<120x16xf32>
    %c0_408 = arith.constant 0 : index
    %c400 = arith.constant 400 : index
    %403 = vector.load %arg16[%c0_408, %c400] : memref<16x529xf32, #tpu.memory_space<vmem>>, vector<16x1xf32>
    %cst_409 = arith.constant dense<0.000000e+00> : vector<120x1xf32>
    %404 = tpu.matmul %402, %403, %cst_409 {dimension_numbers = #tpu.dot_dimension_numbers<[1], [0], [0], [1], [0, 0, 1, 1], [], []>} : vector<120x16xf32>, vector<16x1xf32>, vector<120x1xf32> -> vector<120x1xf32>
    %405 = arith.addf %400, %404 : vector<120x1xf32>
    %c20_410 = arith.constant 20 : index
    %c0_411 = arith.constant 0 : index
    %c0_412 = arith.constant 0 : index
    %406 = vector.load %arg6[%c20_410, %c0_411, %c0_412] : memref<25x120x16xf32, #tpu.memory_space<vmem>>, vector<1x120x16xf32>
    %407 = vector.shape_cast %406 : vector<1x120x16xf32> to vector<120x16xf32>
    %c0_413 = arith.constant 0 : index
    %c512 = arith.constant 512 : index
    %408 = vector.load %arg16[%c0_413, %c512] : memref<16x529xf32, #tpu.memory_space<vmem>>, vector<16x1xf32>
    %cst_414 = arith.constant dense<0.000000e+00> : vector<120x1xf32>
    %409 = tpu.matmul %407, %408, %cst_414 {dimension_numbers = #tpu.dot_dimension_numbers<[1], [0], [0], [1], [0, 0, 1, 1], [], []>} : vector<120x16xf32>, vector<16x1xf32>, vector<120x1xf32> -> vector<120x1xf32>
    %410 = arith.addf %405, %409 : vector<120x1xf32>
    %c21_415 = arith.constant 21 : index
    %c0_416 = arith.constant 0 : index
    %c0_417 = arith.constant 0 : index
    %411 = vector.load %arg6[%c21_415, %c0_416, %c0_417] : memref<25x120x16xf32, #tpu.memory_space<vmem>>, vector<1x120x16xf32>
    %412 = vector.shape_cast %411 : vector<1x120x16xf32> to vector<120x16xf32>
    %c0_418 = arith.constant 0 : index
    %c516 = arith.constant 516 : index
    %413 = vector.load %arg16[%c0_418, %c516] : memref<16x529xf32, #tpu.memory_space<vmem>>, vector<16x1xf32>
    %cst_419 = arith.constant dense<0.000000e+00> : vector<120x1xf32>
    %414 = tpu.matmul %412, %413, %cst_419 {dimension_numbers = #tpu.dot_dimension_numbers<[1], [0], [0], [1], [0, 0, 1, 1], [], []>} : vector<120x16xf32>, vector<16x1xf32>, vector<120x1xf32> -> vector<120x1xf32>
    %415 = arith.addf %410, %414 : vector<120x1xf32>
    %c22_420 = arith.constant 22 : index
    %c0_421 = arith.constant 0 : index
    %c0_422 = arith.constant 0 : index
    %416 = vector.load %arg6[%c22_420, %c0_421, %c0_422] : memref<25x120x16xf32, #tpu.memory_space<vmem>>, vector<1x120x16xf32>
    %417 = vector.shape_cast %416 : vector<1x120x16xf32> to vector<120x16xf32>
    %c0_423 = arith.constant 0 : index
    %c520 = arith.constant 520 : index
    %418 = vector.load %arg16[%c0_423, %c520] : memref<16x529xf32, #tpu.memory_space<vmem>>, vector<16x1xf32>
    %cst_424 = arith.constant dense<0.000000e+00> : vector<120x1xf32>
    %419 = tpu.matmul %417, %418, %cst_424 {dimension_numbers = #tpu.dot_dimension_numbers<[1], [0], [0], [1], [0, 0, 1, 1], [], []>} : vector<120x16xf32>, vector<16x1xf32>, vector<120x1xf32> -> vector<120x1xf32>
    %420 = arith.addf %415, %419 : vector<120x1xf32>
    %c23_425 = arith.constant 23 : index
    %c0_426 = arith.constant 0 : index
    %c0_427 = arith.constant 0 : index
    %421 = vector.load %arg6[%c23_425, %c0_426, %c0_427] : memref<25x120x16xf32, #tpu.memory_space<vmem>>, vector<1x120x16xf32>
    %422 = vector.shape_cast %421 : vector<1x120x16xf32> to vector<120x16xf32>
    %c0_428 = arith.constant 0 : index
    %c524 = arith.constant 524 : index
    %423 = vector.load %arg16[%c0_428, %c524] : memref<16x529xf32, #tpu.memory_space<vmem>>, vector<16x1xf32>
    %cst_429 = arith.constant dense<0.000000e+00> : vector<120x1xf32>
    %424 = tpu.matmul %422, %423, %cst_429 {dimension_numbers = #tpu.dot_dimension_numbers<[1], [0], [0], [1], [0, 0, 1, 1], [], []>} : vector<120x16xf32>, vector<16x1xf32>, vector<120x1xf32> -> vector<120x1xf32>
    %425 = arith.addf %420, %424 : vector<120x1xf32>
    %c24_430 = arith.constant 24 : index
    %c0_431 = arith.constant 0 : index
    %c0_432 = arith.constant 0 : index
    %426 = vector.load %arg6[%c24_430, %c0_431, %c0_432] : memref<25x120x16xf32, #tpu.memory_space<vmem>>, vector<1x120x16xf32>
    %427 = vector.shape_cast %426 : vector<1x120x16xf32> to vector<120x16xf32>
    %c0_433 = arith.constant 0 : index
    %c528 = arith.constant 528 : index
    %428 = vector.load %arg16[%c0_433, %c528] : memref<16x529xf32, #tpu.memory_space<vmem>>, vector<16x1xf32>
    %cst_434 = arith.constant dense<0.000000e+00> : vector<120x1xf32>
    %429 = tpu.matmul %427, %428, %cst_434 {dimension_numbers = #tpu.dot_dimension_numbers<[1], [0], [0], [1], [0, 0, 1, 1], [], []>} : vector<120x16xf32>, vector<16x1xf32>, vector<120x1xf32> -> vector<120x1xf32>
    %430 = arith.addf %425, %429 : vector<120x1xf32>
    %cst_435 = arith.constant 0.000000e+00 : f32
    %431 = vector.broadcast %cst_435 : f32 to vector<120x1xf32>
    %432 = arith.maximumf %430, %431 : vector<120x1xf32>
    %c0_436 = arith.constant 0 : index
    %c0_437 = arith.constant 0 : index
    %433 = vector.load %arg8[%c0_436, %c0_437] : memref<84x120xf32, #tpu.memory_space<vmem>>, vector<84x120xf32>
    %cst_438 = arith.constant dense<0.000000e+00> : vector<84x1xf32>
    %434 = tpu.matmul %433, %432, %cst_438 {dimension_numbers = #tpu.dot_dimension_numbers<[1], [0], [0], [1], [0, 0, 1, 1], [], []>} : vector<84x120xf32>, vector<120x1xf32>, vector<84x1xf32> -> vector<84x1xf32>
    %c0_439 = arith.constant 0 : index
    %c0_440 = arith.constant 0 : index
    %435 = vector.load %arg9[%c0_439, %c0_440] : memref<84x1xf32, #tpu.memory_space<vmem>>, vector<84x1xf32>
    %436 = arith.addf %434, %435 : vector<84x1xf32>
    %cst_441 = arith.constant 0.000000e+00 : f32
    %437 = vector.broadcast %cst_441 : f32 to vector<84x1xf32>
    %438 = arith.maximumf %436, %437 : vector<84x1xf32>
    %c0_442 = arith.constant 0 : index
    %c0_443 = arith.constant 0 : index
    %439 = vector.load %arg10[%c0_442, %c0_443] : memref<10x84xf32, #tpu.memory_space<vmem>>, vector<10x84xf32>
    %cst_444 = arith.constant dense<0.000000e+00> : vector<10x1xf32>
    %440 = tpu.matmul %439, %438, %cst_444 {dimension_numbers = #tpu.dot_dimension_numbers<[1], [0], [0], [1], [0, 0, 1, 1], [], []>} : vector<10x84xf32>, vector<84x1xf32>, vector<10x1xf32> -> vector<10x1xf32>
    %c0_445 = arith.constant 0 : index
    %c0_446 = arith.constant 0 : index
    %441 = vector.load %arg11[%c0_445, %c0_446] : memref<10x1xf32, #tpu.memory_space<vmem>>, vector<10x1xf32>
    %442 = arith.addf %440, %441 : vector<10x1xf32>
    %c0_447 = arith.constant 0 : index
    %c0_448 = arith.constant 0 : index
    %c0_449 = arith.constant 0 : index
    %443 = vector.load %arg12[%c0_447, %c0_448, %c0_449] : memref<1x10x1xf32, #tpu.memory_space<vmem>>, vector<1x10x1xf32>
    %444 = vector.shape_cast %443 : vector<1x10x1xf32> to vector<10x1xf32>
    %445 = vector.shape_cast %442 : vector<10x1xf32> to vector<1x10x1xf32>
    tpu.vector_store %arg12[%c0_447, %c0_448, %c0_449], %445 {strides = array<i32>} : memref<1x10x1xf32, #tpu.memory_space<vmem>>, vector<1x10x1xf32>,
    return
  }
  func.func @transform_0(%arg0: i32) -> (i32, i32, i32) {
    %c0_i32 = arith.constant 0 : i32
    %c0_i32_0 = arith.constant 0 : i32
    %c0_i32_1 = arith.constant 0 : i32
    return %arg0, %c0_i32, %c0_i32_0 : i32, i32, i32
  }
  func.func @transform_1(%arg0: i32) -> (i32, i32, i32) {
    %c0_i32 = arith.constant 0 : i32
    %c0_i32_0 = arith.constant 0 : i32
    %c0_i32_1 = arith.constant 0 : i32
    %c0_i32_2 = arith.constant 0 : i32
    return %c0_i32, %c0_i32_0, %c0_i32_1 : i32, i32, i32
  }
  func.func @transform_2(%arg0: i32) -> (i32, i32) {
    %c0_i32 = arith.constant 0 : i32
    %c0_i32_0 = arith.constant 0 : i32
    %c0_i32_1 = arith.constant 0 : i32
    return %c0_i32, %c0_i32_0 : i32, i32
  }
  func.func @transform_3(%arg0: i32) -> (i32, i32, i32) {
    %c0_i32 = arith.constant 0 : i32
    %c0_i32_0 = arith.constant 0 : i32
    %c0_i32_1 = arith.constant 0 : i32
    %c0_i32_2 = arith.constant 0 : i32
    return %c0_i32, %c0_i32_0, %c0_i32_1 : i32, i32, i32
  }
  func.func @transform_4(%arg0: i32) -> (i32, i32) {
    %c0_i32 = arith.constant 0 : i32
    %c0_i32_0 = arith.constant 0 : i32
    %c0_i32_1 = arith.constant 0 : i32
    return %c0_i32, %c0_i32_0 : i32, i32
  }
  func.func @transform_5(%arg0: i32) -> (i32, i32, i32) {
    %c0_i32 = arith.constant 0 : i32
    %c0_i32_0 = arith.constant 0 : i32
    %c0_i32_1 = arith.constant 0 : i32
    %c0_i32_2 = arith.constant 0 : i32
    return %c0_i32, %c0_i32_0, %c0_i32_1 : i32, i32, i32
  }
  func.func @transform_6(%arg0: i32) -> (i32, i32) {
    %c0_i32 = arith.constant 0 : i32
    %c0_i32_0 = arith.constant 0 : i32
    %c0_i32_1 = arith.constant 0 : i32
    return %c0_i32, %c0_i32_0 : i32, i32
  }
  func.func @transform_7(%arg0: i32) -> (i32, i32) {
    %c0_i32 = arith.constant 0 : i32
    %c0_i32_0 = arith.constant 0 : i32
    %c0_i32_1 = arith.constant 0 : i32
    return %c0_i32, %c0_i32_0 : i32, i32
  }
  func.func @transform_8(%arg0: i32) -> (i32, i32) {
    %c0_i32 = arith.constant 0 : i32
    %c0_i32_0 = arith.constant 0 : i32
    %c0_i32_1 = arith.constant 0 : i32
    return %c0_i32, %c0_i32_0 : i32, i32
  }
  func.func @transform_9(%arg0: i32) -> (i32, i32) {
    %c0_i32 = arith.constant 0 : i32
    %c0_i32_0 = arith.constant 0 : i32
    %c0_i32_1 = arith.constant 0 : i32
    return %c0_i32, %c0_i32_0 : i32, i32
  }
  func.func @transform_10(%arg0: i32) -> (i32, i32) {
    %c0_i32 = arith.constant 0 : i32
    %c0_i32_0 = arith.constant 0 : i32
    %c0_i32_1 = arith.constant 0 : i32
    return %c0_i32, %c0_i32_0 : i32, i32
  }
  func.func @transform_11(%arg0: i32) -> (i32, i32, i32) {
    %c0_i32 = arith.constant 0 : i32
    %c0_i32_0 = arith.constant 0 : i32
    %c0_i32_1 = arith.constant 0 : i32
    return %arg0, %c0_i32, %c0_i32_0 : i32, i32, i32
  }
}

</mosaic_0001>

<bundles_post_ra>
// kernel: net_forward.1
= control target key start
LH: loop header
LB: loop body
LE: loop exit
PB: predicated region body
PF: predicated region fallthrough
CT: control target
= control target key end

     0   :  { %s26998_s17 = smov 0   ;;  %s31949_s0 = inlined_call_operand.vmem [shape: f32[2,3,1024], index: 0, kind: input, shape index: {}]   ;;  %s31950_s1 = inlined_call_operand.vmem [shape: f32[25,6,3], index: 1, kind: input, shape index: {}]   ;;  %s31951_s2 = inlined_call_operand.vmem [shape: f32[6,1], index: 2, kind: input, shape index: {}]   ;;  %s31952_s3 = inlined_call_operand.vmem [shape: f32[25,16,6], index: 3, kind: input, shape index: {}]   ;;  %s31953_s4 = inlined_call_operand.vmem [shape: f32[16,1], index: 4, kind: input, shape index: {}]   ;;  %s31954_s5 = inlined_call_operand.vmem [shape: f32[25,120,16], index: 5, kind: input, shape index: {}]   ;;  %s31955_s6 = inlined_call_operand.vmem [shape: f32[120,1], index: 6, kind: input, shape index: {}]   ;;  %s31956_s7 = inlined_call_operand.vmem [shape: f32[84,120], index: 7, kind: input, shape index: {}]   ;;  %s31957_s8 = inlined_call_operand.vmem [shape: f32[84,1], index: 8, kind: input, shape index: {}]   ;;  %s31958_s9 = inlined_call_operand.vmem [shape: f32[10,84], index: 9, kind: input, shape index: {}]   ;;  %s31959_s10 = inlined_call_operand.vmem [shape: f32[10,1], index: 10, kind: input, shape index: {}]   ;;  %s31960_s11 = inlined_call_operand.vmem [shape: f32[2,10,1], index: 11, kind: output, shape index: {}]  }
   0x1 LB: > { %s21919_s18 = sadd.s32 4294967295, %s26907_s17   ;;  %p21923_p0 = scmp.ge.s32.totalorder %s26907_s17, 1  ;;  %s26907_s17 = sphi %s26998_s17, %s21_s17  }
   0x2   : > { %p337_p1 = scmp.lt.s32.totalorder %s26907_s17, 3 }
   0x4   : > { %p338_p2 = pnand %p21923_p0, %p337_p1 }
   0x5   : > { %p377_p3 = scmp.lt.s32.totalorder (!%p338_p2), %s21919_s18, 1  ;;  %v26909_v0 = vmov (!%p338_p2), 0.0   ;;  %s26910_s23 = smov (!%p338_p2), 127   ;;  %vm415_vm0 = vcmask (!%p338_p2), 1039360   ;;  %vm426_vm1 = vcmask (!%p338_p2), 1042432   ;;  %vm422_vm2 = vcmask (!%p338_p2), 23552  }
   0x6   : > { %341 = sbr.rel (%p338_p2) target bundleno = 3575 (0xdf7), region = 64  ;;  %576 = vmatprep.mubr.f32.mxu1 (!%p338_p2), %v26909_v0  ;;  %505 = vmatprep.mubr.f32.mxu0 (!%p338_p2), %v26909_v0  ;;  %s26911_s24 = smov (!%p338_p2), 126   ;;  %vm26919_vm3 = vmmov (!%p338_p2), 0   ;;  %vm1051_vm4 = vcmask (!%p338_p2), 1031168   ;;  %vm1392_vm5 = vcmask (!%p338_p2), 1022976   ;;  %vm1733_vm6 = vcmask (!%p338_p2), 1014784  }
   0x7   : > { %s26912_s25 = smov (!%p338_p2), 125   ;;  %s26913_s26 = smov (!%p338_p2), 124   ;;  %vm2077_vm7 = vcmask (!%p338_p2), 785408   ;;  %vm2422_vm8 = vcmask (!%p338_p2), 777216   ;;  %vm2767_vm9 = vcmask (!%p338_p2), 769024   ;;  %vm3112_vm10 = vcmask (!%p338_p2), 760832  }
   0x8   : > { %s26914_s27 = smov (!%p338_p2), 96   ;;  %s26915_s28 = smov (!%p338_p2), 95   ;;  %vm3457_vm11 = vcmask (!%p338_p2), 752640   ;;  %vm3802_vm12 = vcmask (!%p338_p2), 523264   ;;  %vm4147_vm13 = vcmask (!%p338_p2), 515072   ;;  %vm4492_vm14 = vcmask (!%p338_p2), 506880  }
   0x9   : > { %s26916_s29 = smov (!%p338_p2), 94   ;;  %s26917_s30 = smov (!%p338_p2), 93   ;;  %vm4837_vm15 = vcmask (!%p338_p2), 498688  }
   0xa   : > { %s26918_s14 = smov (!%p338_p2), 92   ;;  %s26923_s20 = smov (!%p338_p2), 61  }
   0xb   : > { %s26925_s13 = smov (!%p338_p2), 32   ;;  %s26928_s15 = smov (!%p338_p2), 29  }
   0xc   : > { %s26929_s21 = smov (!%p338_p2), 28   ;;  %s26936_s12 = smov (!%p338_p2), 116  }
   0xd   : > { %s31962_s18 = smov (!%p377_p3, %s21919_s18), 1 }
   0xe   : > { %s23301_s19 = sshll.u32 %s31962_s18, 5 }
   0xf   : > { %s27014_s22 = scalar_lea.vmem %s31949_s0, %s23301_s19  ;;  %s26920_s19 = smov 64  }
  0x10   : > { %v27017_v1 = vld [vmem:[%s27014_s22 + $0x8] sm:$0x77]  ;;  %v27020_v2 = vld [vmem:[%s27014_s22] sm:$0x77]  ;;  %v27031_v4 = vld [vmem:[%s27014_s22 + $0x10] sm:$0x77] }
  0x11   : > { %405 = vrot.lane.b32.xlu0 %v27017_v1, %s26910_s23  ;;  %401 = vrot.lane.b32.xlu1 %v27020_v2, %s26910_s23  ;;  %v27028_v3 = vcombine.high %v27017_v1, %v27017_v1  ;;  %v27039_v5 = vcombine.high %v27031_v4, %v27031_v4  ;;  %v27043_v6 = vcombine.high %v27020_v2, %v27020_v2  ;;  %v1026_v7 = vld [vmem:[%s27014_s22] sm:$0x77]  ;;  %v27051_v9 = vld [vmem:[%s27014_s22 + $0x18] sm:$0x7] }
  0x12   : > { %v1034_v8 = vcombine.high %v1026_v7, %v1026_v7  ;;  %v1027_v10 = vld [vmem:[%s27014_s22 + $0x8] sm:$0x77]  ;;  %v1028_v12 = vld [vmem:[%s27014_s22 + $0x10] sm:$0x77]  ;;  %v1029_v14 = vld [vmem:[%s27014_s22 + $0x18] sm:$0x7] }
  0x13   : > { %v1035_v11 = vcombine.high %v1027_v10, %v1027_v10  ;;  %v1036_v13 = vcombine.high %v1028_v12, %v1028_v12  ;;  %v1367_v15 = vld [vmem:[%s27014_s22] sm:$0x77]  ;;  %v1368_v17 = vld [vmem:[%s27014_s22 + $0x8] sm:$0x77]  ;;  %v1369_v19 = vld [vmem:[%s27014_s22 + $0x10] sm:$0x77] }
  0x14   : > { %v1375_v16 = vcombine.high %v1367_v15, %v1367_v15  ;;  %v1376_v18 = vcombine.high %v1368_v17, %v1368_v17  ;;  %v1377_v20 = vcombine.high %v1369_v19, %v1369_v19  ;;  %v1708_v21 = vld [vmem:[%s27014_s22] sm:$0x77]  ;;  %v1370_v23 = vld [vmem:[%s27014_s22 + $0x18] sm:$0x7]  ;;  %v1709_v24 = vld [vmem:[%s27014_s22 + $0x8] sm:$0x77] }
  0x15   : > { %409 = vrot.lane.b32.xlu0 %v27031_v4, %s26910_s23  ;;  %407 = vrot.lane.b32.xlu1 %v27028_v3, %s26910_s23  ;;  %v1716_v22 = vcombine.high %v1708_v21, %v1708_v21  ;;  %v1717_v25 = vcombine.high %v1709_v24, %v1709_v24  ;;  %v1710_v26 = vld [vmem:[%s27014_s22 + $0x10] sm:$0x77]  ;;  %v1711_v28 = vld [vmem:[%s27014_s22 + $0x18] sm:$0x7] }
  0x16   : > { %v1718_v27 = vcombine.high %v1710_v26, %v1710_v26  ;;  %v2049_v29 = vld [vmem:[%s27014_s22] sm:$0x77]  ;;  %v2050_v31 = vld [vmem:[%s27014_s22 + $0x8] sm:$0x77]  ;;  %v2051_v33 = vld [vmem:[%s27014_s22 + $0x10] sm:$0x77] }
  0x17   : > { %v2057_v30 = vcombine.high %v2049_v29, %v2049_v29  ;;  %v2058_v32 = vcombine.high %v2050_v31, %v2050_v31  ;;  %v2059_v34 = vcombine.high %v2051_v33, %v2051_v33  ;;  %v2052_v35 = vld [vmem:[%s27014_s22 + $0x18] sm:$0x77]  ;;  %v2394_v37 = vld [vmem:[%s27014_s22] sm:$0x77]  ;;  %v2395_v39 = vld [vmem:[%s27014_s22 + $0x8] sm:$0x77] }
  0x18   : > { %v2060_v36 = vcombine.high %v2052_v35, %v2052_v35  ;;  %v2402_v38 = vcombine.high %v2394_v37, %v2394_v37  ;;  %v2403_v40 = vcombine.high %v2395_v39, %v2395_v39  ;;  %v2396_v41 = vld [vmem:[%s27014_s22 + $0x10] sm:$0x77]  ;;  %v2397_v43 = vld [vmem:[%s27014_s22 + $0x18] sm:$0x77]  ;;  %v2739_v45 = vld [vmem:[%s27014_s22] sm:$0x77] }
  0x19   : > { %411 = vrot.lane.b32.xlu1 %v27039_v5, %s26910_s23  ;;  %403 = vrot.lane.b32.xlu0 %v27043_v6, %s26910_s23  ;;  %v2404_v42 = vcombine.high %v2396_v41, %v2396_v41  ;;  %v2405_v44 = vcombine.high %v2397_v43, %v2397_v43  ;;  %v2747_v46 = vcombine.high %v2739_v45, %v2739_v45  ;;  %v2740_v47 = vld [vmem:[%s27014_s22 + $0x8] sm:$0x77]  ;;  %v2741_v49 = vld [vmem:[%s27014_s22 + $0x10] sm:$0x77] }
  0x1a   : > { %v2748_v48 = vcombine.high %v2740_v47, %v2740_v47  ;;  %v2749_v50 = vcombine.high %v2741_v49, %v2741_v49  ;;  %v2742_v51 = vld [vmem:[%s27014_s22 + $0x18] sm:$0x77]  ;;  %v3084_v53 = vld [vmem:[%s27014_s22] sm:$0x77]  ;;  %v3085_v55 = vld [vmem:[%s27014_s22 + $0x8] sm:$0x77] }
  0x1b   : > { %v2750_v52 = vcombine.high %v2742_v51, %v2742_v51  ;;  %v3092_v54 = vcombine.high %v3084_v53, %v3084_v53  ;;  %v3093_v56 = vcombine.high %v3085_v55, %v3085_v55  ;;  %v3086_v57 = vld [vmem:[%s27014_s22 + $0x10] sm:$0x77]  ;;  %v3087_v59 = vld [vmem:[%s27014_s22 + $0x18] sm:$0x77]  ;;  %v3429_v63 = vld [vmem:[%s27014_s22] sm:$0x77] }
  0x1c   : > { %v3094_v58 = vcombine.high %v3086_v57, %v3086_v57  ;;  %v3095_v60 = vcombine.high %v3087_v59, %v3087_v59 }
  0x1d   : > { %1039 = vrot.lane.b32.xlu1 %v1034_v8, %s26911_s24  ;;  %413 = vrot.lane.b32.xlu0 %v27051_v9, %s26910_s23  ;;  %v3437_v8 = vcombine.high %v3429_v63, %v3429_v63 }
  0x21   : > { %1037 = vrot.lane.b32.xlu1 %v1026_v7, %s26911_s24  ;;  %1041 = vrot.lane.b32.xlu0 %v1027_v10, %s26911_s24  ;;  %v3430_v7 = vld [vmem:[%s27014_s22 + $0x8] sm:$0x77] }
  0x25   : > { %1045 = vrot.lane.b32.xlu1 %v1028_v12, %s26911_s24  ;;  %1043 = vrot.lane.b32.xlu0 %v1035_v11, %s26911_s24 }
  0x29   : > { %1049 = vrot.lane.b32.xlu1 %v1029_v14, %s26911_s24  ;;  %1047 = vrot.lane.b32.xlu0 %v1036_v13, %s26911_s24  ;;  %v21928_v14 = vld [vmem:[%s31950_s1 + $0x8] sm:$0x3f] }
  0x2d   : > { %1382 = vrot.lane.b32.xlu1 %v1368_v17, %s26912_s25  ;;  %1380 = vrot.lane.b32.xlu0 %v1375_v16, %s26912_s25  ;;  %v3431_v16 = vld [vmem:[%s27014_s22 + $0x10] sm:$0x77] }
  0x31   : > { %1384 = vrot.lane.b32.xlu1 %v1376_v18, %s26912_s25  ;;  %1378 = vrot.lane.b32.xlu0 %v1367_v15, %s26912_s25  ;;  %v3438_v15 = vcombine.high %v3430_v7, %v3430_v7 }
  0x35   : > { %1388 = vrot.lane.b32.xlu1 %v1377_v20, %s26912_s25  ;;  %1386 = vrot.lane.b32.xlu0 %v1369_v19, %s26912_s25 }
  0x39   : > { %1721 = vrot.lane.b32.xlu1 %v1716_v22, %s26913_s26  ;;  %1390 = vrot.lane.b32.xlu0 %v1370_v23, %s26912_s25 }
  0x3d   : > { %1719 = vrot.lane.b32.xlu1 %v1708_v21, %s26913_s26  ;;  %1723 = vrot.lane.b32.xlu0 %v1709_v24, %s26913_s26  ;;  %v3439_v21 = vcombine.high %v3431_v16, %v3431_v16  ;;  %v3432_v24 = vld [vmem:[%s27014_s22 + $0x18] sm:$0x77] }
  0x41   : > { %1727 = vrot.lane.b32.xlu1 %v1710_v26, %s26913_s26  ;;  %1725 = vrot.lane.b32.xlu0 %v1717_v25, %s26913_s26 }
  0x45   : > { %1731 = vrot.lane.b32.xlu1 %v1711_v28, %s26913_s26  ;;  %1729 = vrot.lane.b32.xlu0 %v1718_v27, %s26913_s26  ;;  %v3440_v27 = vcombine.high %v3432_v24, %v3432_v24 }
  0x49   : > { %2065 = vrot.lane.b32.xlu1 %v2050_v31, %s26914_s27  ;;  %2063 = vrot.lane.b32.xlu0 %v2057_v30, %s26914_s27  ;;  %v387_v30 = vld [vmem:[%s31950_s1] sm:$0x3f] }
  0x4a   : > { %v3774_v31 = vld [vmem:[%s27014_s22] sm:$0x77] }
  0x4d   : > { %2067 = vrot.lane.b32.xlu1 %v2058_v32, %s26914_s27  ;;  %2061 = vrot.lane.b32.xlu0 %v2049_v29, %s26914_s27  ;;  %v3775_v32 = vld [vmem:[%s27014_s22 + $0x8] sm:$0x77] }
  0x51   : > { %2071 = vrot.lane.b32.xlu1 %v2059_v34, %s26914_s27  ;;  %2069 = vrot.lane.b32.xlu0 %v2051_v33, %s26914_s27 }
  0x55   : > { %2075 = vrot.lane.b32.xlu1 %v2060_v36, %s26914_s27  ;;  %2073 = vrot.lane.b32.xlu0 %v2052_v35, %s26914_s27 }
  0x59   : > { %2410 = vrot.lane.b32.xlu1 %v2395_v39, %s26915_s28  ;;  %2408 = vrot.lane.b32.xlu0 %v2402_v38, %s26915_s28 }
  0x5d   : > { %2412 = vrot.lane.b32.xlu1 %v2403_v40, %s26915_s28  ;;  %2406 = vrot.lane.b32.xlu0 %v2394_v37, %s26915_s28  ;;  %v21951_v37 = vld [vmem:[%s31950_s1 + $0x10] sm:$0x3f] }
  0x61   : > { %2416 = vrot.lane.b32.xlu1 %v2404_v42, %s26915_s28  ;;  %2414 = vrot.lane.b32.xlu0 %v2396_v41, %s26915_s28  ;;  %v3777_v42 = vld [vmem:[%s27014_s22 + $0x18] sm:$0x77] }
  0x65   : > { %2420 = vrot.lane.b32.xlu1 %v2405_v44, %s26915_s28  ;;  %2418 = vrot.lane.b32.xlu0 %v2397_v43, %s26915_s28  ;;  %s26934_s28 = smov 56  }
  0x69   : > { %2755 = vrot.lane.b32.xlu1 %v2740_v47, %s26916_s29  ;;  %2753 = vrot.lane.b32.xlu0 %v2747_v46, %s26916_s29  ;;  %v3785_v47 = vcombine.high %v3777_v42, %v3777_v42 }
  0x6d   : > { %2757 = vrot.lane.b32.xlu1 %v2748_v48, %s26916_s29  ;;  %2751 = vrot.lane.b32.xlu0 %v2739_v45, %s26916_s29 }
  0x71   : > { %2761 = vrot.lane.b32.xlu1 %v2749_v50, %s26916_s29  ;;  %2759 = vrot.lane.b32.xlu0 %v2741_v49, %s26916_s29 }
  0x75   : > { %2765 = vrot.lane.b32.xlu1 %v2750_v52, %s26916_s29  ;;  %2763 = vrot.lane.b32.xlu0 %v2742_v51, %s26916_s29  ;;  %v4119_v51 = vld [vmem:[%s27014_s22] sm:$0x77]  ;;  %s26924_s29 = smov 60  }
  0x79   : > { %3100 = vrot.lane.b32.xlu1 %v3085_v55, %s26917_s30  ;;  %3098 = vrot.lane.b32.xlu0 %v3092_v54, %s26917_s30  ;;  %v4120_v55 = vld [vmem:[%s27014_s22 + $0x8] sm:$0x77] }
  0x7d   : > { %3102 = vrot.lane.b32.xlu1 %v3093_v56, %s26917_s30  ;;  %3096 = vrot.lane.b32.xlu0 %v3084_v53, %s26917_s30  ;;  %v21963_v53 = vld [vmem:[%s31950_s1 + $0x18] sm:$0x3f]  ;;  %v4127_v56 = vcombine.high %v4119_v51, %v4119_v51 }
  0x81   : > { %3106 = vrot.lane.b32.xlu1 %v3094_v58, %s26917_s30  ;;  %3104 = vrot.lane.b32.xlu0 %v3086_v57, %s26917_s30 }
  0x83   : > { %v406_v61 = vpop.permute.xlu0 %405  ;;  %v402_v62 = vpop.permute.xlu1 %401 }
  0x85   : > { %3110 = vrot.lane.b32.xlu1 %v3095_v60, %s26917_s30  ;;  %3108 = vrot.lane.b32.xlu0 %v3087_v59, %s26917_s30  ;;  %v4128_v60 = vcombine.high %v4120_v55, %v4120_v55  ;;  %s26921_s30 = smov 63  }
  0x87   : > { %v410_v10 = vpop.permute.xlu0 %409  ;;  %v408_v11 = vpop.permute.xlu1 %407 }
  0x88   : > { %v419_v12 = vsel %vm415_vm0, %v408_v11, %v410_v10  ;;  %v418_v13 = vsel %vm415_vm0, %v406_v61, %v408_v11 }
  0x89   : > { %3445 = vrot.lane.b32.xlu1 %v3430_v7, %s26918_s14  ;;  %21932 = vmatprep.subr.msk.mxu1 %vm426_vm1, %v419_v12  ;;  %v4122_v12 = vld [vmem:[%s27014_s22 + $0x18] sm:$0x77] }
  0x8a   : > { %3443 = vrot.lane.b32.xlu0 %v3437_v8, %s26918_s14  ;;  %21933 = vmatpush1.msk.msra.mxu1 %vm426_vm1, %v418_v13 }
  0x8b   : > { %v412_v17 = vpop.permute.xlu1 %411  ;;  %v404_v18 = vpop.permute.xlu0 %403  ;;  %21934 = vmatmul.mubr.msk.f32.vlgmr.msra.gmra.mrb[0].mxu1 %vm422_vm2, %v21928_v14  ;;  %23892 = vmatprep.subr.mxu1 %v26909_v0 }
  0x8c   : > { %v417_v19 = vsel %vm415_vm0, %v404_v18, %v406_v61  ;;  %v416_v20 = vsel %vm415_vm0, %v402_v62, %v404_v18  ;;  %23894 = vmatprep.mubr.msk.f32.mxu1 %vm26919_vm3, %v26909_v0  ;;  %v420_v26 = vsel %vm415_vm0, %v410_v10, %v412_v17  ;;  %v4121_v61 = vld [vmem:[%s27014_s22 + $0x10] sm:$0x77]  ;;  %v4130_v18 = vcombine.high %v4122_v12, %v4122_v12 }
  0x8d   : > { %3447 = vrot.lane.b32.xlu1 %v3438_v15, %s26918_s14  ;;  %21929 = vmatprep.subr.msk.mxu0 %vm426_vm1, %v417_v19  ;;  %v4129_v11 = vcombine.high %v4121_v61, %v4121_v61 }
  0x8e   : > { %3441 = vrot.lane.b32.xlu0 %v3429_v63, %s26918_s14  ;;  %21930 = vmatpush1.msk.msra.mxu0 %vm426_vm1, %v416_v20 }
  0x8f   : > { %v1040_v22 = vpop.permute.xlu1 %1039  ;;  %21931 = vmatmul.mubr.msk.f32.vlgmr.msra.gmra.mrb[0].mxu0 %vm422_vm2, %v21928_v14  ;;  %v414_v23 = vpop.permute.xlu0 %413 }
  0x90   : > { %23893 = vmatpush3.msk.msra.mxu1 %vm426_vm1, %v414_v23  ;;  %v421_v25 = vsel %vm415_vm0, %v412_v17, %v414_v23  ;;  %647 = vmatprep.mubr.f32.mxu0 %v26909_v0  ;;  %v21975_v17 = vld [vmem:[%s31950_s1 + $0x20] sm:$0x3f] }
  0x91   : > { %3451 = vrot.lane.b32.xlu1 %v3439_v21, %s26918_s14  ;;  %21935 = vmatprep.subr.msk.mxu0 %vm426_vm1, %v421_v25  ;;  %v4464_v21 = vld [vmem:[%s27014_s22] sm:$0x77] }
  0x92   : > { %3449 = vrot.lane.b32.xlu0 %v3431_v16, %s26918_s14  ;;  %23895 = vmatmul.mubr.msk.f32.vlgmr.msra.gmra.mrb[2].mxu1 %vm422_vm2, %v21928_v14  ;;  %v4472_v25 = vcombine.high %v4464_v21, %v4464_v21 }
  0x93   : > { %21936 = vmatpush1.msk.msra.mxu0 %vm426_vm1, %v420_v26  ;;  %v1038_v28 = vpop.permute.xlu1 %1037  ;;  %21943 = vmatprep.subr.msk.mxu1 %vm426_vm1, %v27028_v3  ;;  %v1042_v29 = vpop.permute.xlu0 %1041 }
  0x94   : > { %21937 = vmatmul.mubr.msk.f32.vlgmr.msra.gmra.mrb[2].mxu0 %vm422_vm2, %v21928_v14  ;;  %21940 = vmatprep.subr.msk.mxu0 %vm426_vm1, %v27043_v6  ;;  %v1052_v36 = vsel %vm1051_vm4, %v1038_v28, %v1040_v22 }
  0x95   : > { %21944 = vmatpush1.msk.msra.mxu1 %vm426_vm1, %v27017_v1  ;;  %876 = vmatprep.mubr.f32.mxu1 %v26909_v0  ;;  %v3782_v1 = vcombine.high %v3774_v31, %v3774_v31 }
  0x96   : > { %3455 = vrot.lane.b32.xlu1 %v3440_v27, %s26918_s14  ;;  %3453 = vrot.lane.b32.xlu0 %v3432_v24, %s26918_s14  ;;  %v4465_v24 = vld [vmem:[%s27014_s22 + $0x8] sm:$0x77]  ;;  %s26922_s14 = smov 62  }
  0x97   : > { %21941 = vmatpush1.msk.msra.mxu0 %vm426_vm1, %v27020_v2  ;;  %21945 = vmatmul.mubr.msk.f32.vlgmr.msra.gmra.mrb[0].mxu1 %vm422_vm2, %v387_v30  ;;  %v1046_v3 = vpop.permute.xlu1 %1045  ;;  %v1044_v6 = vpop.permute.xlu0 %1043  ;;  %v1053_v2 = vsel %vm1051_vm4, %v1040_v22, %v1042_v29 }
  0x98   : > { %805 = vmatprep.mubr.f32.mxu0 %v26909_v0  ;;  %21946 = vmatprep.subr.msk.mxu0 %vm426_vm1, %v27039_v5  ;;  %v1055_v33 = vsel %vm1051_vm4, %v1044_v6, %v1046_v3  ;;  %v1054_v34 = vsel %vm1051_vm4, %v1042_v29, %v1044_v6  ;;  %v4473_v29 = vcombine.high %v4465_v24, %v4465_v24  ;;  %v21987_v6 = vld [vmem:[%s31950_s1 + $0x28] sm:$0x3f] }
  0x99   : > { %21942 = vmatmul.mubr.msk.f32.vlgmr.msra.gmra.mrb[0].mxu0 %vm422_vm2, %v387_v30  ;;  %23897 = vmatprep.subr.mxu1 %v26909_v0 }
  0x9a   : > { %21947 = vmatpush1.msk.msra.mxu0 %vm426_vm1, %v27031_v4  ;;  %23898 = vmatpush3.msk.msra.mxu1 %vm426_vm1, %v27051_v9  ;;  %v3783_v4 = vcombine.high %v3775_v32, %v3775_v32  ;;  %v3776_v9 = vld [vmem:[%s27014_s22 + $0x10] sm:$0x77] }
  0x9b   : > { %23899 = vmatprep.mubr.msk.f32.mxu1 %vm26919_vm3, %v26909_v0  ;;  %21952 = vmatprep.subr.msk.mxu0 %vm426_vm1, %v1053_v2  ;;  %v1050_v5 = vpop.permute.xlu1 %1049  ;;  %v1048_v35 = vpop.permute.xlu0 %1047  ;;  %v3784_v41 = vcombine.high %v3776_v9, %v3776_v9  ;;  %v4467_v2 = vld [vmem:[%s27014_s22 + $0x18] sm:$0x77] }
  0x9c   : > { %3790 = vrot.lane.b32.xlu1 %v3775_v32, %s26920_s19  ;;  %3788 = vrot.lane.b32.xlu0 %v3782_v1, %s26920_s19  ;;  %v1057_v38 = vsel %vm1051_vm4, %v1048_v35, %v1050_v5  ;;  %v1056_v46 = vsel %vm1051_vm4, %v1046_v3, %v1048_v35 }
  0x9d   : > { %23900 = vmatmul.mubr.msk.f32.vlgmr.msra.gmra.mrb[4].mxu1 %vm422_vm2, %v387_v30  ;;  %21955 = vmatprep.subr.msk.mxu1 %vm426_vm1, %v1055_v33 }
  0x9e   : > { %947 = vmatprep.mubr.f32.mxu0 %v26909_v0  ;;  %21956 = vmatpush1.msk.msra.mxu1 %vm426_vm1, %v1054_v34 }
  0x9f   : > { %21948 = vmatmul.mubr.msk.f32.vlgmr.msra.gmra.mrb[2].mxu0 %vm422_vm2, %v387_v30  ;;  %1210 = vmatprep.mubr.f32.mxu1 %v26909_v0  ;;  %v1383_v39 = vpop.permute.xlu1 %1382  ;;  %v1381_v40 = vpop.permute.xlu0 %1380  ;;  %v4466_v30 = vld [vmem:[%s27014_s22 + $0x10] sm:$0x77] }
  0xa0   : > { %21953 = vmatpush1.msk.msra.mxu0 %vm426_vm1, %v1052_v36  ;;  %23902 = vmatprep.subr.mxu1 %v26909_v0  ;;  %v1394_v43 = vsel %vm1392_vm5, %v1381_v40, %v1383_v39  ;;  %v4474_v32 = vcombine.high %v4466_v30, %v4466_v30 }
  0xa1   : > { %3792 = vrot.lane.b32.xlu1 %v3783_v4, %s26920_s19  ;;  %3786 = vrot.lane.b32.xlu0 %v3774_v31, %s26920_s19  ;;  %v4475_v4 = vcombine.high %v4467_v2, %v4467_v2 }
  0xa2   : > { %21957 = vmatmul.mubr.msk.f32.vlgmr.msra.gmra.mrb[0].mxu1 %vm422_vm2, %v21951_v37  ;;  %21958 = vmatprep.subr.msk.mxu0 %vm426_vm1, %v1057_v38 }
  0xa3   : > { %23903 = vmatpush3.msk.msra.mxu1 %vm426_vm1, %v1050_v5  ;;  %1139 = vmatprep.mubr.f32.mxu0 %v26909_v0  ;;  %v1385_v44 = vpop.permute.xlu1 %1384  ;;  %v1379_v45 = vpop.permute.xlu0 %1378 }
  0xa4   : > { %21954 = vmatmul.mubr.msk.f32.vlgmr.msra.gmra.mrb[0].mxu0 %vm422_vm2, %v21951_v37  ;;  %23904 = vmatprep.mubr.msk.f32.mxu1 %vm26919_vm3, %v26909_v0  ;;  %v1393_v48 = vsel %vm1392_vm5, %v1379_v45, %v1381_v40  ;;  %v1395_v54 = vsel %vm1392_vm5, %v1383_v39, %v1385_v44 }
  0xa5   : > { %21959 = vmatpush1.msk.msra.mxu0 %vm426_vm1, %v1056_v46  ;;  %3796 = vrot.lane.b32.xlu1 %v3784_v41, %s26920_s19  ;;  %v4810_v41 = vld [vmem:[%s27014_s22 + $0x8] sm:$0x77] }
  0xa6   : > { %3794 = vrot.lane.b32.xlu0 %v3776_v9, %s26920_s19  ;;  %21964 = vmatprep.subr.msk.mxu0 %vm426_vm1, %v1394_v43  ;;  %v4818_v46 = vcombine.high %v4810_v41, %v4810_v41 }
  0xa7   : > { %1281 = vmatprep.mubr.f32.mxu0 %v26909_v0  ;;  %v1389_v49 = vpop.permute.xlu1 %1388  ;;  %v1387_v50 = vpop.permute.xlu0 %1386  ;;  %23905 = vmatmul.mubr.msk.f32.vlgmr.msra.gmra.mrb[6].mxu1 %vm422_vm2, %v21951_v37 }
  0xa8   : > { %21960 = vmatmul.mubr.msk.f32.vlgmr.msra.gmra.mrb[2].mxu0 %vm422_vm2, %v21951_v37  ;;  %v1396_v52 = vsel %vm1392_vm5, %v1385_v44, %v1387_v50  ;;  %1551 = vmatprep.mubr.f32.mxu1 %v26909_v0  ;;  %v1397_v62 = vsel %vm1392_vm5, %v1387_v50, %v1389_v49  ;;  %v4809_v37 = vld [vmem:[%s27014_s22] sm:$0x77]  ;;  %v21999_v50 = vld [vmem:[%s31950_s1 + $0x30] sm:$0x3f] }
  0xa9   : > { %3800 = vrot.lane.b32.xlu1 %v3785_v47, %s26920_s19  ;;  %21965 = vmatpush1.msk.msra.mxu0 %vm426_vm1, %v1393_v48  ;;  %v4811_v47 = vld [vmem:[%s27014_s22 + $0x10] sm:$0x77] }
  0xaa   : > { %3798 = vrot.lane.b32.xlu0 %v3777_v42, %s26920_s19  ;;  %21967 = vmatprep.subr.msk.mxu1 %vm426_vm1, %v1396_v52  ;;  %v4817_v42 = vcombine.high %v4809_v37, %v4809_v37  ;;  %v4819_v52 = vcombine.high %v4811_v47, %v4811_v47 }
  0xab   : > { %21968 = vmatpush1.msk.msra.mxu1 %vm426_vm1, %v1395_v54  ;;  %v1722_v57 = vpop.permute.xlu1 %1721  ;;  %v1391_v58 = vpop.permute.xlu0 %1390  ;;  %1480 = vmatprep.mubr.f32.mxu0 %v26909_v0 }
  0xac   : > { %23907 = vmatprep.subr.mxu1 %v26909_v0  ;;  %21969 = vmatmul.mubr.msk.f32.vlgmr.msra.gmra.mrb[0].mxu1 %vm422_vm2, %v21963_v53  ;;  %v1398_v59 = vsel %vm1392_vm5, %v1389_v49, %v1391_v58 }
  0xad   : > { %4135 = vrot.lane.b32.xlu1 %v4120_v55, %s26921_s30  ;;  %23908 = vmatpush3.msk.msra.mxu1 %vm426_vm1, %v1391_v58 }
  0xae   : > { %4133 = vrot.lane.b32.xlu0 %v4127_v56, %s26921_s30  ;;  %21970 = vmatprep.subr.msk.mxu0 %vm426_vm1, %v1398_v59 }
  0xaf   : > { %21966 = vmatmul.mubr.msk.f32.vlgmr.msra.gmra.mrb[0].mxu0 %vm422_vm2, %v21963_v53  ;;  %v1720_v63 = vpop.permute.xlu1 %1719  ;;  %v1724_v7 = vpop.permute.xlu0 %1723  ;;  %23909 = vmatprep.mubr.msk.f32.mxu1 %vm26919_vm3, %v26909_v0 }
  0xb0   : > { %21971 = vmatpush1.msk.msra.mxu0 %vm426_vm1, %v1397_v62  ;;  %1622 = vmatprep.mubr.f32.mxu0 %v26909_v0  ;;  %v1735_v8 = vsel %vm1733_vm6, %v1722_v57, %v1724_v7  ;;  %v1734_v10 = vsel %vm1733_vm6, %v1720_v63, %v1722_v57 }
  0xb1   : > { %4137 = vrot.lane.b32.xlu1 %v4128_v60, %s26921_s30  ;;  %21976 = vmatprep.subr.msk.mxu0 %vm426_vm1, %v1735_v8  ;;  %v5155_v8 = vld [vmem:[%s27014_s22 + $0x8] sm:$0x77] }
  0xb2   : > { %4131 = vrot.lane.b32.xlu0 %v4119_v51, %s26921_s30  ;;  %23910 = vmatmul.mubr.msk.f32.vlgmr.msra.gmra.mrb[8].mxu1 %vm422_vm2, %v21963_v53 }
  0xb3   : > { %21972 = vmatmul.mubr.msk.f32.vlgmr.msra.gmra.mrb[2].mxu0 %vm422_vm2, %v21963_v53  ;;  %v1728_v13 = vpop.permute.xlu1 %1727  ;;  %v1726_v14 = vpop.permute.xlu0 %1725  ;;  %1892 = vmatprep.mubr.f32.mxu1 %v26909_v0  ;;  %v4812_v53 = vld [vmem:[%s27014_s22 + $0x18] sm:$0x77] }
  0xb4   : > { %21977 = vmatpush1.msk.msra.mxu0 %vm426_vm1, %v1734_v10  ;;  %v1736_v15 = vsel %vm1733_vm6, %v1724_v7, %v1726_v14  ;;  %v1737_v16 = vsel %vm1733_vm6, %v1726_v14, %v1728_v13  ;;  %1821 = vmatprep.mubr.f32.mxu0 %v26909_v0  ;;  %v4820_v58 = vcombine.high %v4812_v53, %v4812_v53 }
  0xb5   : > { %4141 = vrot.lane.b32.xlu1 %v4129_v11, %s26921_s30  ;;  %21979 = vmatprep.subr.msk.mxu1 %vm426_vm1, %v1737_v16  ;;  %v5163_v14 = vcombine.high %v5155_v8, %v5155_v8 }
  0xb6   : > { %4139 = vrot.lane.b32.xlu0 %v4121_v61, %s26921_s30  ;;  %21980 = vmatpush1.msk.msra.mxu1 %vm426_vm1, %v1736_v15  ;;  %v5154_v61 = vld [vmem:[%s27014_s22] sm:$0x77]  ;;  %v5156_v15 = vld [vmem:[%s27014_s22 + $0x10] sm:$0x77] }
  0xb7   : > { %v1732_v19 = vpop.permute.xlu1 %1731  ;;  %23912 = vmatprep.subr.mxu1 %v26909_v0  ;;  %v1730_v20 = vpop.permute.xlu0 %1729  ;;  %21981 = vmatmul.mubr.msk.f32.vlgmr.msra.gmra.mrb[0].mxu1 %vm422_vm2, %v21975_v17  ;;  %v5162_v10 = vcombine.high %v5154_v61, %v5154_v61 }
  0xb8   : > { %v1738_v22 = vsel %vm1733_vm6, %v1728_v13, %v1730_v20  ;;  %23913 = vmatpush3.msk.msra.mxu1 %vm426_vm1, %v1732_v19  ;;  %v1739_v23 = vsel %vm1733_vm6, %v1730_v20, %v1732_v19  ;;  %21978 = vmatmul.mubr.msk.f32.vlgmr.msra.gmra.mrb[0].mxu0 %vm422_vm2, %v21975_v17  ;;  %v5164_v20 = vcombine.high %v5156_v15, %v5156_v15 }
  0xb9   : > { %4145 = vrot.lane.b32.xlu1 %v4130_v18, %s26921_s30  ;;  %21982 = vmatprep.subr.msk.mxu0 %vm426_vm1, %v1739_v23  ;;  %v22011_v18 = vld [vmem:[%s31950_s1 + $0x38] sm:$0x3f] }
  0xba   : > { %4143 = vrot.lane.b32.xlu0 %v4122_v12, %s26921_s30  ;;  %21983 = vmatpush1.msk.msra.mxu0 %vm426_vm1, %v1738_v22  ;;  %s26927_s30 = smov 30  }
  0xbb   : > { %v2066_v26 = vpop.permute.xlu1 %2065  ;;  %v2064_v27 = vpop.permute.xlu0 %2063  ;;  %1963 = vmatprep.mubr.f32.mxu0 %v26909_v0  ;;  %23914 = vmatprep.mubr.msk.f32.mxu1 %vm26919_vm3, %v26909_v0 }
  0xbc   : > { %v2079_v28 = vsel %vm2077_vm7, %v2064_v27, %v2066_v26  ;;  %21984 = vmatmul.mubr.msk.f32.vlgmr.msra.gmra.mrb[2].mxu0 %vm422_vm2, %v21975_v17  ;;  %23915 = vmatmul.mubr.msk.f32.vlgmr.msra.gmra.mrb[10].mxu1 %vm422_vm2, %v21975_v17 }
  0xbd   : > { %4480 = vrot.lane.b32.xlu1 %v4465_v24, %s26922_s14  ;;  %21988 = vmatprep.subr.msk.mxu0 %vm426_vm1, %v2079_v28 }
  0xbe   : > { %4478 = vrot.lane.b32.xlu0 %v4472_v25, %s26922_s14  ;;  %2237 = vmatprep.mubr.f32.mxu1 %v26909_v0 }
  0xbf   : > { %v2068_v31 = vpop.permute.xlu1 %2067  ;;  %v2062_v3 = vpop.permute.xlu0 %2061  ;;  %2166 = vmatprep.mubr.f32.mxu0 %v26909_v0 }
  0xc0   : > { %v2078_v1 = vsel %vm2077_vm7, %v2062_v3, %v2064_v27  ;;  %v2080_v35 = vsel %vm2077_vm7, %v2066_v26, %v2068_v31 }
  0xc1   : > { %4482 = vrot.lane.b32.xlu1 %v4473_v29, %s26922_s14  ;;  %21989 = vmatpush1.msk.msra.mxu0 %vm426_vm1, %v2078_v1  ;;  %v5499_v29 = vld [vmem:[%s27014_s22] sm:$0x77] }
  0xc2   : > { %4476 = vrot.lane.b32.xlu0 %v4464_v21, %s26922_s14  ;;  %21990 = vmatmul.mubr.msk.f32.vlgmr.msra.gmra.mrb[0].mxu0 %vm422_vm2, %v21987_v6  ;;  %v5157_v21 = vld [vmem:[%s27014_s22 + $0x18] sm:$0x77]  ;;  %v5507_v1 = vcombine.high %v5499_v29, %v5499_v29 }
  0xc3   : > { %v2072_v33 = vpop.permute.xlu1 %2071  ;;  %v2070_v34 = vpop.permute.xlu0 %2069  ;;  %2308 = vmatprep.mubr.f32.mxu0 %v26909_v0  ;;  %v5165_v26 = vcombine.high %v5157_v21, %v5157_v21 }
  0xc4   : > { %v2081_v5 = vsel %vm2077_vm7, %v2068_v31, %v2070_v34  ;;  %v2082_v40 = vsel %vm2077_vm7, %v2070_v34, %v2072_v33 }
  0xc5   : > { %4486 = vrot.lane.b32.xlu1 %v4474_v32, %s26922_s14  ;;  %21991 = vmatprep.subr.msk.mxu1 %vm426_vm1, %v2081_v5  ;;  %v5501_v5 = vld [vmem:[%s27014_s22 + $0x10] sm:$0x77] }
  0xc6   : > { %4484 = vrot.lane.b32.xlu0 %v4466_v30, %s26922_s14  ;;  %21992 = vmatpush1.msk.msra.mxu1 %vm426_vm1, %v2080_v35 }
  0xc7   : > { %v2076_v9 = vpop.permute.xlu1 %2075  ;;  %v2074_v36 = vpop.permute.xlu0 %2073  ;;  %23917 = vmatprep.subr.mxu1 %v26909_v0  ;;  %21993 = vmatmul.mubr.msk.f32.vlgmr.msra.gmra.mrb[0].mxu1 %vm422_vm2, %v21987_v6 }
  0xc8   : > { %v2084_v38 = vsel %vm2077_vm7, %v2074_v36, %v2076_v9  ;;  %v2083_v39 = vsel %vm2077_vm7, %v2072_v33, %v2074_v36  ;;  %23919 = vmatprep.mubr.msk.f32.mxu1 %vm26919_vm3, %v26909_v0  ;;  %v22023_v9 = vld [vmem:[%s31950_s1 + $0x40] sm:$0x3f] }
  0xc9   : > { %4490 = vrot.lane.b32.xlu1 %v4475_v4, %s26922_s14  ;;  %21994 = vmatprep.subr.msk.mxu0 %vm426_vm1, %v2083_v39 }
  0xca   : > { %4488 = vrot.lane.b32.xlu0 %v4467_v2, %s26922_s14  ;;  %23918 = vmatpush3.msk.msra.mxu1 %vm426_vm1, %v2084_v38  ;;  %v5502_v38 = vld [vmem:[%s27014_s22 + $0x18] sm:$0x77] }
  0xcb   : > { %21995 = vmatpush1.msk.msra.mxu0 %vm426_vm1, %v2082_v40  ;;  %v2411_v43 = vpop.permute.xlu1 %2410  ;;  %v2409_v44 = vpop.permute.xlu0 %2408  ;;  %23920 = vmatmul.mubr.msk.f32.vlgmr.msra.gmra.mrb[12].mxu1 %vm422_vm2, %v21987_v6 }
  0xcc   : > { %v2424_v45 = vsel %vm2422_vm8, %v2409_v44, %v2411_v43  ;;  %21996 = vmatmul.mubr.msk.f32.vlgmr.msra.gmra.mrb[2].mxu0 %vm422_vm2, %v21987_v6  ;;  %2582 = vmatprep.mubr.f32.mxu1 %v26909_v0  ;;  %v5500_v6 = vld [vmem:[%s27014_s22 + $0x8] sm:$0x77] }
  0xcd   : > { %4825 = vrot.lane.b32.xlu1 %v4810_v41, %s26923_s20  ;;  %22000 = vmatprep.subr.msk.mxu0 %vm426_vm1, %v2424_v45  ;;  %v5508_v34 = vcombine.high %v5500_v6, %v5500_v6 }
  0xce   : > { %4823 = vrot.lane.b32.xlu0 %v4817_v42, %s26923_s20  ;;  %2511 = vmatprep.mubr.f32.mxu0 %v26909_v0 }
  0xcf   : > { %v2413_v48 = vpop.permute.xlu1 %2412  ;;  %v2407_v49 = vpop.permute.xlu0 %2406 }
  0xd0   : > { %v2423_v51 = vsel %vm2422_vm8, %v2407_v49, %v2409_v44  ;;  %v2425_v57 = vsel %vm2422_vm8, %v2411_v43, %v2413_v48  ;;  %v5510_v43 = vcombine.high %v5502_v38, %v5502_v38 }
  0xd1   : > { %4827 = vrot.lane.b32.xlu1 %v4818_v46, %s26923_s20  ;;  %22001 = vmatpush1.msk.msra.mxu0 %vm426_vm1, %v2423_v51  ;;  %v5844_v46 = vld [vmem:[%s27014_s22] sm:$0x77] }
  0xd2   : > { %4821 = vrot.lane.b32.xlu0 %v4809_v37, %s26923_s20  ;;  %22002 = vmatmul.mubr.msk.f32.vlgmr.msra.gmra.mrb[0].mxu0 %vm422_vm2, %v21999_v50  ;;  %v5509_v37 = vcombine.high %v5501_v5, %v5501_v5  ;;  %v5852_v51 = vcombine.high %v5844_v46, %v5844_v46 }
  0xd3   : > { %v2417_v54 = vpop.permute.xlu1 %2416  ;;  %v2415_v55 = vpop.permute.xlu0 %2414  ;;  %2653 = vmatprep.mubr.f32.mxu0 %v26909_v0 }
  0xd4   : > { %v2426_v56 = vsel %vm2422_vm8, %v2413_v48, %v2415_v55  ;;  %v2427_v7 = vsel %vm2422_vm8, %v2415_v55, %v2417_v54 }
  0xd5   : > { %4831 = vrot.lane.b32.xlu1 %v4819_v52, %s26923_s20  ;;  %22003 = vmatprep.subr.msk.mxu1 %vm426_vm1, %v2426_v56  ;;  %v5846_v56 = vld [vmem:[%s27014_s22 + $0x10] sm:$0x77] }
  0xd6   : > { %4829 = vrot.lane.b32.xlu0 %v4811_v47, %s26923_s20  ;;  %22004 = vmatpush1.msk.msra.mxu1 %vm426_vm1, %v2425_v57 }
  0xd7   : > { %v2421_v59 = vpop.permute.xlu1 %2420  ;;  %v2419_v60 = vpop.permute.xlu0 %2418  ;;  %23922 = vmatprep.subr.mxu1 %v26909_v0  ;;  %22005 = vmatmul.mubr.msk.f32.vlgmr.msra.gmra.mrb[0].mxu1 %vm422_vm2, %v21999_v50 }
  0xd8   : > { %v2429_v62 = vsel %vm2422_vm8, %v2419_v60, %v2421_v59  ;;  %v2428_v63 = vsel %vm2422_vm8, %v2417_v54, %v2419_v60  ;;  %23924 = vmatprep.mubr.msk.f32.mxu1 %vm26919_vm3, %v26909_v0  ;;  %v22035_v59 = vld [vmem:[%s31950_s1 + $0x48] sm:$0x3f]  ;;  %vm5182_vm8 = vcmask 490496  }
  0xd9   : > { %4835 = vrot.lane.b32.xlu1 %v4820_v58, %s26923_s20  ;;  %22006 = vmatprep.subr.msk.mxu0 %vm426_vm1, %v2428_v63 }
  0xda   : > { %4833 = vrot.lane.b32.xlu0 %v4812_v53, %s26923_s20  ;;  %23923 = vmatpush3.msk.msra.mxu1 %vm426_vm1, %v2429_v62  ;;  %s26926_s20 = smov 31   ;;  %v5847_v62 = vld [vmem:[%s27014_s22 + $0x18] sm:$0x77] }
  0xdb   : > { %22007 = vmatpush1.msk.msra.mxu0 %vm426_vm1, %v2427_v7  ;;  %v2756_v11 = vpop.permute.xlu1 %2755  ;;  %v2754_v12 = vpop.permute.xlu0 %2753  ;;  %23925 = vmatmul.mubr.msk.f32.vlgmr.msra.gmra.mrb[14].mxu1 %vm422_vm2, %v21999_v50 }
  0xdc   : > { %v2769_v13 = vsel %vm2767_vm9, %v2754_v12, %v2756_v11  ;;  %22008 = vmatmul.mubr.msk.f32.vlgmr.msra.gmra.mrb[2].mxu0 %vm422_vm2, %v21999_v50  ;;  %2927 = vmatprep.mubr.f32.mxu1 %v26909_v0  ;;  %v5845_v50 = vld [vmem:[%s27014_s22 + $0x8] sm:$0x77] }
  0xdd   : > { %5170 = vrot.lane.b32.xlu1 %v5155_v8, %s26924_s29  ;;  %22012 = vmatprep.subr.msk.mxu0 %vm426_vm1, %v2769_v13  ;;  %v5853_v54 = vcombine.high %v5845_v50, %v5845_v50  ;;  %v5855_v8 = vcombine.high %v5847_v62, %v5847_v62 }
  0xde   : > { %5168 = vrot.lane.b32.xlu0 %v5162_v10, %s26924_s29  ;;  %2856 = vmatprep.mubr.f32.mxu0 %v26909_v0 }
  0xdf   : > { %v2758_v16 = vpop.permute.xlu1 %2757  ;;  %v2752_v17 = vpop.permute.xlu0 %2751 }
  0xe0   : > { %v2768_v19 = vsel %vm2767_vm9, %v2752_v17, %v2754_v12  ;;  %v2770_v25 = vsel %vm2767_vm9, %v2756_v11, %v2758_v16  ;;  %v6189_v12 = vld [vmem:[%s27014_s22] sm:$0x77] }
  0xe1   : > { %5172 = vrot.lane.b32.xlu1 %v5163_v14, %s26924_s29  ;;  %22013 = vmatpush1.msk.msra.mxu0 %vm426_vm1, %v2768_v19  ;;  %v6197_v19 = vcombine.high %v6189_v12, %v6189_v12 }
  0xe2   : > { %5166 = vrot.lane.b32.xlu0 %v5154_v61, %s26924_s29  ;;  %22014 = vmatmul.mubr.msk.f32.vlgmr.msra.gmra.mrb[0].mxu0 %vm422_vm2, %v22011_v18  ;;  %v5854_v61 = vcombine.high %v5846_v56, %v5846_v56 }
  0xe3   : > { %v2762_v22 = vpop.permute.xlu1 %2761  ;;  %v2760_v23 = vpop.permute.xlu0 %2759  ;;  %2998 = vmatprep.mubr.f32.mxu0 %v26909_v0 }
  0xe4   : > { %v2771_v24 = vsel %vm2767_vm9, %v2758_v16, %v2760_v23  ;;  %v2772_v3 = vsel %vm2767_vm9, %v2760_v23, %v2762_v22  ;;  %v6191_v23 = vld [vmem:[%s27014_s22 + $0x10] sm:$0x77] }
  0xe5   : > { %5176 = vrot.lane.b32.xlu1 %v5164_v20, %s26924_s29  ;;  %22015 = vmatprep.subr.msk.mxu1 %vm426_vm1, %v2771_v24 }
  0xe6   : > { %5174 = vrot.lane.b32.xlu0 %v5156_v15, %s26924_s29  ;;  %22016 = vmatpush1.msk.msra.mxu1 %vm426_vm1, %v2770_v25  ;;  %v6199_v25 = vcombine.high %v6191_v23, %v6191_v23 }
  0xe7   : > { %v2766_v27 = vpop.permute.xlu1 %2765  ;;  %v2764_v28 = vpop.permute.xlu0 %2763  ;;  %23927 = vmatprep.subr.mxu1 %v26909_v0  ;;  %22017 = vmatmul.mubr.msk.f32.vlgmr.msra.gmra.mrb[0].mxu1 %vm422_vm2, %v22011_v18 }
  0xe8   : > { %v2774_v30 = vsel %vm2767_vm9, %v2764_v28, %v2766_v27  ;;  %v2773_v31 = vsel %vm2767_vm9, %v2762_v22, %v2764_v28  ;;  %23929 = vmatprep.mubr.msk.f32.mxu1 %vm26919_vm3, %v26909_v0  ;;  %vm5527_vm9 = vcmask 261120  }
  0xe9   : > { %5180 = vrot.lane.b32.xlu1 %v5165_v26, %s26924_s29  ;;  %22018 = vmatprep.subr.msk.mxu0 %vm426_vm1, %v2773_v31  ;;  %v6192_v26 = vld [vmem:[%s27014_s22 + $0x18] sm:$0x77] }
  0xea   : > { %5178 = vrot.lane.b32.xlu0 %v5157_v21, %s26924_s29  ;;  %23928 = vmatpush3.msk.msra.mxu1 %vm426_vm1, %v2774_v30  ;;  %v6200_v31 = vcombine.high %v6192_v26, %v6192_v26 }
  0xeb   : > { %22019 = vmatpush1.msk.msra.mxu0 %vm426_vm1, %v2772_v3  ;;  %v3101_v32 = vpop.permute.xlu1 %3100  ;;  %v3099_v2 = vpop.permute.xlu0 %3098  ;;  %23930 = vmatmul.mubr.msk.f32.vlgmr.msra.gmra.mrb[16].mxu1 %vm422_vm2, %v22011_v18 }
  0xec   : > { %v3114_v33 = vsel %vm3112_vm10, %v3099_v2, %v3101_v32  ;;  %22020 = vmatmul.mubr.msk.f32.vlgmr.msra.gmra.mrb[2].mxu0 %vm422_vm2, %v22011_v18  ;;  %3272 = vmatprep.mubr.f32.mxu1 %v26909_v0  ;;  %v6190_v18 = vld [vmem:[%s27014_s22 + $0x8] sm:$0x77] }
  0xed   : > { %5515 = vrot.lane.b32.xlu1 %v5500_v6, %s26925_s13  ;;  %22024 = vmatprep.subr.msk.mxu0 %vm426_vm1, %v3114_v33  ;;  %v6198_v20 = vcombine.high %v6190_v18, %v6190_v18  ;;  %v6534_v6 = vld [vmem:[%s27014_s22] sm:$0x77]  ;;  %v6535_v33 = vld [vmem:[%s27014_s22 + $0x8] sm:$0x77] }
  0xee   : > { %5513 = vrot.lane.b32.xlu0 %v5507_v1, %s26925_s13  ;;  %3201 = vmatprep.mubr.f32.mxu0 %v26909_v0 }
  0xef   : > { %v3103_v35 = vpop.permute.xlu1 %3102  ;;  %v3097_v4 = vpop.permute.xlu0 %3096 }
  0xf0   : > { %v3113_v36 = vsel %vm3112_vm10, %v3097_v4, %v3099_v2  ;;  %v3115_v42 = vsel %vm3112_vm10, %v3101_v32, %v3103_v35 }
  0xf1   : > { %5517 = vrot.lane.b32.xlu1 %v5508_v34, %s26925_s13  ;;  %22025 = vmatpush1.msk.msra.mxu0 %vm426_vm1, %v3113_v36  ;;  %v6542_v34 = vcombine.high %v6534_v6, %v6534_v6 }
  0xf2   : > { %5511 = vrot.lane.b32.xlu0 %v5499_v29, %s26925_s13  ;;  %22026 = vmatmul.mubr.msk.f32.vlgmr.msra.gmra.mrb[0].mxu0 %vm422_vm2, %v22023_v9  ;;  %v22047_v29 = vld [vmem:[%s31950_s1 + $0x50] sm:$0x3f] }
  0xf3   : > { %v3107_v39 = vpop.permute.xlu1 %3106  ;;  %v3105_v40 = vpop.permute.xlu0 %3104  ;;  %3343 = vmatprep.mubr.f32.mxu0 %v26909_v0 }
  0xf4   : > { %v3116_v41 = vsel %vm3112_vm10, %v3103_v35, %v3105_v40  ;;  %v3117_v49 = vsel %vm3112_vm10, %v3105_v40, %v3107_v39 }
  0xf5   : > { %5521 = vrot.lane.b32.xlu1 %v5509_v37, %s26925_s13  ;;  %22027 = vmatprep.subr.msk.mxu1 %vm426_vm1, %v3116_v41 }
  0xf6   : > { %5519 = vrot.lane.b32.xlu0 %v5501_v5, %s26925_s13  ;;  %22028 = vmatpush1.msk.msra.mxu1 %vm426_vm1, %v3115_v42 }
  0xf7   : > { %v3111_v44 = vpop.permute.xlu1 %3110  ;;  %v3109_v45 = vpop.permute.xlu0 %3108  ;;  %23932 = vmatprep.subr.mxu1 %v26909_v0  ;;  %22029 = vmatmul.mubr.msk.f32.vlgmr.msra.gmra.mrb[0].mxu1 %vm422_vm2, %v22023_v9 }
  0xf8   : > { %v3119_v47 = vsel %vm3112_vm10, %v3109_v45, %v3111_v44  ;;  %v3118_v48 = vsel %vm3112_vm10, %v3107_v39, %v3109_v45  ;;  %23934 = vmatprep.mubr.msk.f32.mxu1 %vm26919_vm3, %v26909_v0  ;;  %vm5872_vm10 = vcmask 252928  }
  0xf9   : > { %5525 = vrot.lane.b32.xlu1 %v5510_v43, %s26925_s13  ;;  %22030 = vmatprep.subr.msk.mxu0 %vm426_vm1, %v3118_v48  ;;  %v6537_v43 = vld [vmem:[%s27014_s22 + $0x18] sm:$0x77] }
  0xfa   : > { %5523 = vrot.lane.b32.xlu0 %v5502_v38, %s26925_s13  ;;  %23933 = vmatpush3.msk.msra.mxu1 %vm426_vm1, %v3119_v47  ;;  %v6536_v38 = vld [vmem:[%s27014_s22 + $0x10] sm:$0x77]  ;;  %v6545_v48 = vcombine.high %v6537_v43, %v6537_v43 }
  0xfb   : > { %22031 = vmatpush1.msk.msra.mxu0 %vm426_vm1, %v3117_v49  ;;  %v3446_v52 = vpop.permute.xlu1 %3445  ;;  %23935 = vmatmul.mubr.msk.f32.vlgmr.msra.gmra.mrb[18].mxu1 %vm422_vm2, %v22023_v9  ;;  %v6544_v42 = vcombine.high %v6536_v38, %v6536_v38 }
  0xfc   : > { %v3444_v53 = vpop.permute.xlu0 %3443  ;;  %22032 = vmatmul.mubr.msk.f32.vlgmr.msra.gmra.mrb[2].mxu0 %vm422_vm2, %v22023_v9  ;;  %3617 = vmatprep.mubr.f32.mxu1 %v26909_v0  ;;  %v6543_v9 = vcombine.high %v6535_v33, %v6535_v33 }
  0xfd   : > { %5860 = vrot.lane.b32.xlu1 %v5845_v50, %s26926_s20  ;;  %v3459_v55 = vsel %vm3457_vm11, %v3444_v53, %v3446_v52  ;;  %3546 = vmatprep.mubr.f32.mxu0 %v26909_v0  ;;  %v6879_v50 = vld [vmem:[%s27014_s22] sm:$0x77] }
  0xfe   : > { %5858 = vrot.lane.b32.xlu0 %v5852_v51, %s26926_s20  ;;  %22036 = vmatprep.subr.msk.mxu0 %vm426_vm1, %v3459_v55  ;;  %v6887_v55 = vcombine.high %v6879_v50, %v6879_v50 }
  0xff   : > { %v3448_v57 = vpop.permute.xlu1 %3447 }
 0x100   : > { %v3442_v58 = vpop.permute.xlu0 %3441  ;;  %v3460_v11 = vsel %vm3457_vm11, %v3446_v52, %v3448_v57 }
 0x101   : > { %5862 = vrot.lane.b32.xlu1 %v5853_v54, %s26926_s20  ;;  %v3458_v60 = vsel %vm3457_vm11, %v3442_v58, %v3444_v53  ;;  %v6880_v54 = vld [vmem:[%s27014_s22 + $0x8] sm:$0x77] }
 0x102   : > { %5856 = vrot.lane.b32.xlu0 %v5844_v46, %s26926_s20  ;;  %22037 = vmatpush1.msk.msra.mxu0 %vm426_vm1, %v3458_v60  ;;  %v22059_v46 = vld [vmem:[%s31950_s1 + $0x58] sm:$0x3f] }
 0x103   : > { %v3452_v63 = vpop.permute.xlu1 %3451  ;;  %22038 = vmatmul.mubr.msk.f32.vlgmr.msra.gmra.mrb[0].mxu0 %vm422_vm2, %v22035_v59 }
 0x104   : > { %v3450_v7 = vpop.permute.xlu0 %3449  ;;  %3688 = vmatprep.mubr.f32.mxu0 %v26909_v0 }
 0x105   : > { %5866 = vrot.lane.b32.xlu1 %v5854_v61, %s26926_s20  ;;  %v3461_v10 = vsel %vm3457_vm11, %v3448_v57, %v3450_v7  ;;  %v3462_v17 = vsel %vm3457_vm11, %v3450_v7, %v3452_v63 }
 0x106   : > { %5864 = vrot.lane.b32.xlu0 %v5846_v56, %s26926_s20  ;;  %22039 = vmatprep.subr.msk.mxu1 %vm426_vm1, %v3461_v10 }
 0x107   : > { %22040 = vmatpush1.msk.msra.mxu1 %vm426_vm1, %v3460_v11  ;;  %v6882_v11 = vld [vmem:[%s27014_s22 + $0x18] sm:$0x77] }
 0x108   : > { %v3456_v13 = vpop.permute.xlu1 %3455  ;;  %v3454_v14 = vpop.permute.xlu0 %3453  ;;  %23937 = vmatprep.subr.mxu1 %v26909_v0  ;;  %22041 = vmatmul.mubr.msk.f32.vlgmr.msra.gmra.mrb[0].mxu1 %vm422_vm2, %v22035_v59 }
 0x109   : > { %5870 = vrot.lane.b32.xlu1 %v5855_v8, %s26926_s20  ;;  %v3464_v15 = vsel %vm3457_vm11, %v3454_v14, %v3456_v13  ;;  %v3463_v16 = vsel %vm3457_vm11, %v3452_v63, %v3454_v14  ;;  %23939 = vmatprep.mubr.msk.f32.mxu1 %vm26919_vm3, %v26909_v0  ;;  %vm6217_vm11 = vcmask 244736  }
 0x10a   : > { %5868 = vrot.lane.b32.xlu0 %v5847_v62, %s26926_s20  ;;  %22042 = vmatprep.subr.msk.mxu0 %vm426_vm1, %v3463_v16  ;;  %v6881_v62 = vld [vmem:[%s27014_s22 + $0x10] sm:$0x77]  ;;  %v22071_v16 = vld [vmem:[%s31950_s1 + $0x60] sm:$0x3f]  ;;  %s23302_s20 = sshll.u32 %s31962_s18, 4 }
 0x10b   : > { %23938 = vmatpush3.msk.msra.mxu1 %vm426_vm1, %v3464_v15  ;;  %22043 = vmatpush1.msk.msra.mxu0 %vm426_vm1, %v3462_v17  ;;  %v6889_v10 = vcombine.high %v6881_v62, %v6881_v62  ;;  %v6890_v15 = vcombine.high %v6882_v11, %v6882_v11 }
 0x10c   : > { %22044 = vmatmul.mubr.msk.f32.vlgmr.msra.gmra.mrb[2].mxu0 %vm422_vm2, %v22035_v59  ;;  %23940 = vmatmul.mubr.msk.f32.vlgmr.msra.gmra.mrb[20].mxu1 %vm422_vm2, %v22035_v59  ;;  %v6888_v59 = vcombine.high %v6880_v54, %v6880_v54 }
 0x10d   : > { %6205 = vrot.lane.b32.xlu1 %v6190_v18, %s26927_s30  ;;  %3962 = vmatprep.mubr.f32.mxu1 %v26909_v0  ;;  %v7544_v18 = vld [vmem:[%s27014_s22 + $0x4] sm:$0x77] }
 0x10e   : > { %6203 = vrot.lane.b32.xlu0 %v6197_v19, %s26927_s30  ;;  %v3791_v21 = vpop.permute.xlu1 %3790  ;;  %v3789_v22 = vpop.permute.xlu0 %3788  ;;  %3891 = vmatprep.mubr.f32.mxu0 %v26909_v0 }
 0x10f   : > { %v3804_v24 = vsel %vm3802_vm12, %v3789_v22, %v3791_v21 }
 0x110   : > { %22048 = vmatprep.subr.msk.mxu0 %vm426_vm1, %v3804_v24 }
 0x111   : > { %6207 = vrot.lane.b32.xlu1 %v6198_v20, %s26927_s30 }
 0x112   : > { %6201 = vrot.lane.b32.xlu0 %v6189_v12, %s26927_s30 }
 0x113   : > { %v3793_v27 = vpop.permute.xlu1 %3792  ;;  %v3787_v28 = vpop.permute.xlu0 %3786 }
 0x114   : > { %v3803_v30 = vsel %vm3802_vm12, %v3787_v28, %v3789_v22  ;;  %v3805_v2 = vsel %vm3802_vm12, %v3791_v21, %v3793_v27  ;;  %v7545_v22 = vld [vmem:[%s27014_s22 + $0xc] sm:$0x77] }
 0x115   : > { %6211 = vrot.lane.b32.xlu1 %v6199_v25, %s26927_s30  ;;  %22049 = vmatpush1.msk.msra.mxu0 %vm426_vm1, %v3803_v30  ;;  %v7546_v30 = vld [vmem:[%s27014_s22 + $0x14] sm:$0x77] }
 0x116   : > { %6209 = vrot.lane.b32.xlu0 %v6191_v23, %s26927_s30  ;;  %22050 = vmatmul.mubr.msk.f32.vlgmr.msra.gmra.mrb[0].mxu0 %vm422_vm2, %v22047_v29  ;;  %v7552_v23 = vcombine.high %v7544_v18, %v7544_v18 }
 0x117   : > { %v3797_v3 = vpop.permute.xlu1 %3796  ;;  %4033 = vmatprep.mubr.f32.mxu0 %v26909_v0 }
 0x118   : > { %v3795_v1 = vpop.permute.xlu0 %3794 }
 0x119   : > { %6215 = vrot.lane.b32.xlu1 %v6200_v31, %s26927_s30  ;;  %v3806_v32 = vsel %vm3802_vm12, %v3793_v27, %v3795_v1  ;;  %v3807_v37 = vsel %vm3802_vm12, %v3795_v1, %v3797_v3  ;;  %v7553_v27 = vcombine.high %v7545_v22, %v7545_v22  ;;  %v7554_v1 = vcombine.high %v7546_v30, %v7546_v30 }
 0x11a   : > { %6213 = vrot.lane.b32.xlu0 %v6192_v26, %s26927_s30  ;;  %22051 = vmatprep.subr.msk.mxu1 %vm426_vm1, %v3806_v32  ;;  %v7884_v32 = vld [vmem:[%s27014_s22 + $0x4] sm:$0x77]  ;;  %s386_s30 = scalar_lea.vmem %s31960_s11, %s23302_s20 }
 0x11b   : > { %22052 = vmatpush1.msk.msra.mxu1 %vm426_vm1, %v3805_v2  ;;  %v3801_v5 = vpop.permute.xlu1 %3800 }
 0x11c   : > { %v3799_v35 = vpop.permute.xlu0 %3798  ;;  %23942 = vmatprep.subr.mxu1 %v26909_v0  ;;  %22053 = vmatmul.mubr.msk.f32.vlgmr.msra.gmra.mrb[0].mxu1 %vm422_vm2, %v22047_v29 }
 0x11d   : > { %v3809_v4 = vsel %vm3802_vm12, %v3799_v35, %v3801_v5  ;;  %6550 = vrot.lane.b32.xlu1 %v6535_v33, %s26928_s15  ;;  %v3808_v36 = vsel %vm3802_vm12, %v3797_v3, %v3799_v35  ;;  %23944 = vmatprep.mubr.msk.f32.mxu1 %vm26919_vm3, %v26909_v0  ;;  %v7892_v5 = vcombine.high %v7884_v32, %v7884_v32  ;;  %v22083_v35 = vld [vmem:[%s31950_s1 + $0x68] sm:$0x3f] }
 0x11e   : > { %6548 = vrot.lane.b32.xlu0 %v6542_v34, %s26928_s15  ;;  %22054 = vmatprep.subr.msk.mxu0 %vm426_vm1, %v3808_v36 }
 0x11f   : > { %23943 = vmatpush3.msk.msra.mxu1 %vm426_vm1, %v3809_v4  ;;  %22055 = vmatpush1.msk.msra.mxu0 %vm426_vm1, %v3807_v37  ;;  %v4136_v39 = vpop.permute.xlu1 %4135 }
 0x120   : > { %v4134_v40 = vpop.permute.xlu0 %4133  ;;  %22056 = vmatmul.mubr.msk.f32.vlgmr.msra.gmra.mrb[2].mxu0 %vm422_vm2, %v22047_v29  ;;  %23945 = vmatmul.mubr.msk.f32.vlgmr.msra.gmra.mrb[22].mxu1 %vm422_vm2, %v22047_v29 }
 0x121   : > { %6552 = vrot.lane.b32.xlu1 %v6543_v9, %s26928_s15  ;;  %v4149_v41 = vsel %vm4147_vm13, %v4134_v40, %v4136_v39  ;;  %4307 = vmatprep.mubr.f32.mxu1 %v26909_v0  ;;  %v7547_v9 = vld [vmem:[%s27014_s22 + $0x1c] sm:$0x7] }
 0x122   : > { %6546 = vrot.lane.b32.xlu0 %v6534_v6, %s26928_s15  ;;  %22060 = vmatprep.subr.msk.mxu0 %vm426_vm1, %v4149_v41 }
 0x123   : > { %v4138_v44 = vpop.permute.xlu1 %4137  ;;  %4236 = vmatprep.mubr.f32.mxu0 %v26909_v0 }
 0x124   : > { %v4132_v45 = vpop.permute.xlu0 %4131  ;;  %v4150_v53 = vsel %vm4147_vm13, %v4136_v39, %v4138_v44 }
 0x125   : > { %v4148_v47 = vsel %vm4147_vm13, %v4132_v45, %v4134_v40  ;;  %6556 = vrot.lane.b32.xlu1 %v6544_v42, %s26928_s15  ;;  %v7885_v40 = vld [vmem:[%s27014_s22 + $0xc] sm:$0x77] }
 0x126   : > { %6554 = vrot.lane.b32.xlu0 %v6536_v38, %s26928_s15  ;;  %22061 = vmatpush1.msk.msra.mxu0 %vm426_vm1, %v4148_v47  ;;  %v7893_v45 = vcombine.high %v7885_v40, %v7885_v40 }
 0x127   : > { %v4142_v49 = vpop.permute.xlu1 %4141  ;;  %22062 = vmatmul.mubr.msk.f32.vlgmr.msra.gmra.mrb[0].mxu0 %vm422_vm2, %v22059_v46 }
 0x128   : > { %v4140_v51 = vpop.permute.xlu0 %4139  ;;  %4378 = vmatprep.mubr.f32.mxu0 %v26909_v0 }
 0x129   : > { %6560 = vrot.lane.b32.xlu1 %v6545_v48, %s26928_s15  ;;  %v4151_v52 = vsel %vm4147_vm13, %v4138_v44, %v4140_v51  ;;  %v4152_v61 = vsel %vm4147_vm13, %v4140_v51, %v4142_v49  ;;  %v7887_v51 = vld [vmem:[%s27014_s22 + $0x1c] sm:$0x7] }
 0x12a   : > { %6558 = vrot.lane.b32.xlu0 %v6537_v43, %s26928_s15  ;;  %22063 = vmatprep.subr.msk.mxu1 %vm426_vm1, %v4151_v52 }
 0x12b   : > { %22064 = vmatpush1.msk.msra.mxu1 %vm426_vm1, %v4150_v53  ;;  %v4146_v56 = vpop.permute.xlu1 %4145  ;;  %v8224_v53 = vld [vmem:[%s27014_s22 + $0x4] sm:$0x77] }
 0x12c   : > { %v4144_v57 = vpop.permute.xlu0 %4143  ;;  %23947 = vmatprep.subr.mxu1 %v26909_v0  ;;  %22065 = vmatmul.mubr.msk.f32.vlgmr.msra.gmra.mrb[0].mxu1 %vm422_vm2, %v22059_v46 }
 0x12d   : > { %v4154_v58 = vsel %vm4147_vm13, %v4144_v57, %v4146_v56  ;;  %6895 = vrot.lane.b32.xlu1 %v6880_v54, %s26929_s21  ;;  %v4153_v60 = vsel %vm4147_vm13, %v4142_v49, %v4144_v57  ;;  %23949 = vmatprep.mubr.msk.f32.mxu1 %vm26919_vm3, %v26909_v0  ;;  %v8225_v56 = vld [vmem:[%s27014_s22 + $0xc] sm:$0x77]  ;;  %v8232_v57 = vcombine.high %v8224_v53, %v8224_v53  ;;  %vm6562_vm13 = vcmask 236544  }
 0x12e   : > { %6893 = vrot.lane.b32.xlu0 %v6887_v55, %s26929_s21  ;;  %22066 = vmatprep.subr.msk.mxu0 %vm426_vm1, %v4153_v60 }
 0x12f   : > { %23948 = vmatpush3.msk.msra.mxu1 %vm426_vm1, %v4154_v58  ;;  %22067 = vmatpush1.msk.msra.mxu0 %vm426_vm1, %v4152_v61  ;;  %v4481_v63 = vpop.permute.xlu1 %4480  ;;  %v22095_v58 = vld [vmem:[%s31950_s1 + $0x70] sm:$0x3f]  ;;  %v8233_v61 = vcombine.high %v8225_v56, %v8225_v56 }
 0x130   : > { %v4479_v7 = vpop.permute.xlu0 %4478  ;;  %22068 = vmatmul.mubr.msk.f32.vlgmr.msra.gmra.mrb[2].mxu0 %vm422_vm2, %v22059_v46  ;;  %23950 = vmatmul.mubr.msk.f32.vlgmr.msra.gmra.mrb[24].mxu1 %vm422_vm2, %v22059_v46  ;;  %v7886_v46 = vld [vmem:[%s27014_s22 + $0x14] sm:$0x77] }
 0x131   : > { %6897 = vrot.lane.b32.xlu1 %v6888_v59, %s26929_s21  ;;  %v4494_v8 = vsel %vm4492_vm14, %v4479_v7, %v4481_v63  ;;  %4652 = vmatprep.mubr.f32.mxu1 %v26909_v0 }
 0x132   : > { %6891 = vrot.lane.b32.xlu0 %v6879_v50, %s26929_s21  ;;  %22072 = vmatprep.subr.msk.mxu0 %vm426_vm1, %v4494_v8  ;;  %v7894_v50 = vcombine.high %v7886_v46, %v7886_v46 }
 0x133   : > { %v4483_v12 = vpop.permute.xlu1 %4482  ;;  %4581 = vmatprep.mubr.f32.mxu0 %v26909_v0 }
 0x134   : > { %v4477_v13 = vpop.permute.xlu0 %4476  ;;  %v4495_v21 = vsel %vm4492_vm14, %v4481_v63, %v4483_v12 }
 0x135   : > { %v4493_v14 = vsel %vm4492_vm14, %v4477_v13, %v4479_v7  ;;  %6901 = vrot.lane.b32.xlu1 %v6889_v10, %s26929_s21  ;;  %v8226_v7 = vld [vmem:[%s27014_s22 + $0x14] sm:$0x77] }
 0x136   : > { %6899 = vrot.lane.b32.xlu0 %v6881_v62, %s26929_s21  ;;  %22073 = vmatpush1.msk.msra.mxu0 %vm426_vm1, %v4493_v14  ;;  %v8234_v13 = vcombine.high %v8226_v7, %v8226_v7 }
 0x137   : > { %v4487_v17 = vpop.permute.xlu1 %4486  ;;  %22074 = vmatmul.mubr.msk.f32.vlgmr.msra.gmra.mrb[0].mxu0 %vm422_vm2, %v22071_v16 }
 0x138   : > { %v4485_v19 = vpop.permute.xlu0 %4484  ;;  %4723 = vmatprep.mubr.f32.mxu0 %v26909_v0 }
 0x139   : > { %6905 = vrot.lane.b32.xlu1 %v6890_v15, %s26929_s21  ;;  %v4496_v20 = vsel %vm4492_vm14, %v4483_v12, %v4485_v19  ;;  %v4497_v29 = vsel %vm4492_vm14, %v4485_v19, %v4487_v17  ;;  %v8564_v15 = vld [vmem:[%s27014_s22 + $0x4] sm:$0x77] }
 0x13a   : > { %6903 = vrot.lane.b32.xlu0 %v6882_v11, %s26929_s21  ;;  %22075 = vmatprep.subr.msk.mxu1 %vm426_vm1, %v4496_v20  ;;  %v8572_v19 = vcombine.high %v8564_v15, %v8564_v15  ;;  %s26933_s21 = smov 58  }
 0x13b   : > { %22076 = vmatpush1.msk.msra.mxu1 %vm426_vm1, %v4495_v21  ;;  %v4491_v24 = vpop.permute.xlu1 %4490  ;;  %v8227_v21 = vld [vmem:[%s27014_s22 + $0x1c] sm:$0x7] }
 0x13c   : > { %22077 = vmatmul.mubr.msk.f32.vlgmr.msra.gmra.mrb[0].mxu1 %vm422_vm2, %v22071_v16  ;;  %v4489_v25 = vpop.permute.xlu0 %4488  ;;  %23952 = vmatprep.subr.mxu1 %v26909_v0 }
 0x13d   : > { %v4499_v26 = vsel %vm4492_vm14, %v4489_v25, %v4491_v24  ;;  %7559 = vrot.lane.b32.xlu1 %v7545_v22, %s26910_s23  ;;  %v4498_v28 = vsel %vm4492_vm14, %v4487_v17, %v4489_v25  ;;  %23954 = vmatprep.mubr.msk.f32.mxu1 %vm26919_vm3, %v26909_v0  ;;  %v22107_v24 = vld [vmem:[%s31950_s1 + $0x78] sm:$0x3f] }
 0x13e   : > { %7557 = vrot.lane.b32.xlu0 %v7552_v23, %s26910_s23  ;;  %22078 = vmatprep.subr.msk.mxu0 %vm426_vm1, %v4498_v28 }
 0x13f   : > { %23953 = vmatpush3.msk.msra.mxu1 %vm426_vm1, %v4499_v26  ;;  %22079 = vmatpush1.msk.msra.mxu0 %vm426_vm1, %v4497_v29  ;;  %v4826_v31 = vpop.permute.xlu1 %4825  ;;  %v8565_v26 = vld [vmem:[%s27014_s22 + $0xc] sm:$0x77] }
 0x140   : > { %23955 = vmatmul.mubr.msk.f32.vlgmr.msra.gmra.mrb[26].mxu1 %vm422_vm2, %v22071_v16  ;;  %v4824_v3 = vpop.permute.xlu0 %4823  ;;  %22080 = vmatmul.mubr.msk.f32.vlgmr.msra.gmra.mrb[2].mxu0 %vm422_vm2, %v22071_v16 }
 0x141   : > { %7561 = vrot.lane.b32.xlu1 %v7553_v27, %s26910_s23  ;;  %v4839_v6 = vsel %vm4837_vm15, %v4824_v3, %v4826_v31  ;;  %4997 = vmatprep.mubr.f32.mxu1 %v26909_v0 }
 0x142   : > { %7555 = vrot.lane.b32.xlu0 %v7544_v18, %s26910_s23  ;;  %22084 = vmatprep.subr.msk.mxu0 %vm426_vm1, %v4839_v6  ;;  %v8566_v6 = vld [vmem:[%s27014_s22 + $0x14] sm:$0x77] }
 0x143   : > { %v4828_v2 = vpop.permute.xlu1 %4827  ;;  %4926 = vmatprep.mubr.f32.mxu0 %v26909_v0 }
 0x144   : > { %v4822_v33 = vpop.permute.xlu0 %4821  ;;  %v4840_v38 = vsel %vm4837_vm15, %v4826_v31, %v4828_v2 }
 0x145   : > { %v4838_v34 = vsel %vm4837_vm15, %v4822_v33, %v4824_v3  ;;  %7565 = vrot.lane.b32.xlu1 %v7554_v1, %s26910_s23  ;;  %v8573_v3 = vcombine.high %v8565_v26, %v8565_v26 }
 0x146   : > { %7563 = vrot.lane.b32.xlu0 %v7546_v30, %s26910_s23  ;;  %22085 = vmatpush1.msk.msra.mxu0 %vm426_vm1, %v4838_v34 }
 0x147   : > { %v4832_v4 = vpop.permute.xlu1 %4831  ;;  %22086 = vmatmul.mubr.msk.f32.vlgmr.msra.gmra.mrb[0].mxu0 %vm422_vm2, %v22083_v35 }
 0x148   : > { %v4830_v36 = vpop.permute.xlu0 %4829  ;;  %5068 = vmatprep.mubr.f32.mxu0 %v26909_v0 }
 0x149   : > { %7897 = vrot.lane.b32.xlu1 %v7892_v5, %s26911_s24  ;;  %v4841_v37 = vsel %vm4837_vm15, %v4828_v2, %v4830_v36  ;;  %v4842_v44 = vsel %vm4837_vm15, %v4830_v36, %v4832_v4  ;;  %v8574_v5 = vcombine.high %v8566_v6, %v8566_v6 }
 0x14a   : > { %7567 = vrot.lane.b32.xlu0 %v7547_v9, %s26910_s23  ;;  %22087 = vmatprep.subr.msk.mxu1 %vm426_vm1, %v4841_v37 }
 0x14b   : > { %22088 = vmatpush1.msk.msra.mxu1 %vm426_vm1, %v4840_v38  ;;  %v4836_v39 = vpop.permute.xlu1 %4835 }
 0x14c   : > { %22089 = vmatmul.mubr.msk.f32.vlgmr.msra.gmra.mrb[0].mxu1 %vm422_vm2, %v22083_v35  ;;  %v4834_v41 = vpop.permute.xlu0 %4833  ;;  %23957 = vmatprep.subr.mxu1 %v26909_v0 }
 0x14d   : > { %v4844_v42 = vsel %vm4837_vm15, %v4834_v41, %v4836_v39  ;;  %7895 = vrot.lane.b32.xlu1 %v7884_v32, %s26911_s24  ;;  %v4843_v43 = vsel %vm4837_vm15, %v4832_v4, %v4834_v41  ;;  %23959 = vmatprep.mubr.msk.f32.mxu1 %vm26919_vm3, %v26909_v0  ;;  %vm6907_vm15 = vcmask 228352  }
 0x14e   : > { %7899 = vrot.lane.b32.xlu0 %v7885_v40, %s26911_s24  ;;  %22090 = vmatprep.subr.msk.mxu0 %vm426_vm1, %v4843_v43  ;;  %v22119_v43 = vld [vmem:[%s31950_s1 + $0x80] sm:$0x3f] }
 0x14f   : > { %23958 = vmatpush3.msk.msra.mxu1 %vm426_vm1, %v4844_v42  ;;  %22091 = vmatpush1.msk.msra.mxu0 %vm426_vm1, %v4842_v44  ;;  %v5171_v47 = vpop.permute.xlu1 %5170 }
 0x150   : > { %23960 = vmatmul.mubr.msk.f32.vlgmr.msra.gmra.mrb[28].mxu1 %vm422_vm2, %v22083_v35  ;;  %v5169_v48 = vpop.permute.xlu0 %5168  ;;  %22092 = vmatmul.mubr.msk.f32.vlgmr.msra.gmra.mrb[2].mxu0 %vm422_vm2, %v22083_v35  ;;  %v8567_v35 = vld [vmem:[%s27014_s22 + $0x1c] sm:$0x7] }
 0x151   : > { %7903 = vrot.lane.b32.xlu1 %v7886_v46, %s26911_s24  ;;  %v5184_v49 = vsel %vm5182_vm8, %v5169_v48, %v5171_v47  ;;  %5342 = vmatprep.mubr.f32.mxu1 %v26909_v0 }
 0x152   : > { %7901 = vrot.lane.b32.xlu0 %v7893_v45, %s26911_s24  ;;  %22096 = vmatprep.subr.msk.mxu0 %vm426_vm1, %v5184_v49 }
 0x153   : > { %v5173_v52 = vpop.permute.xlu1 %5172  ;;  %5271 = vmatprep.mubr.f32.mxu0 %v26909_v0 }
 0x154   : > { %v5167_v54 = vpop.permute.xlu0 %5166  ;;  %v5185_v63 = vsel %vm5182_vm8, %v5171_v47, %v5173_v52 }
 0x155   : > { %v5183_v55 = vsel %vm5182_vm8, %v5167_v54, %v5169_v48  ;;  %7907 = vrot.lane.b32.xlu1 %v7887_v51, %s26911_s24 }
 0x156   : > { %7905 = vrot.lane.b32.xlu0 %v7894_v50, %s26911_s24  ;;  %22097 = vmatpush1.msk.msra.mxu0 %vm426_vm1, %v5183_v55 }
 0x157   : > { %v5177_v59 = vpop.permute.xlu1 %5176  ;;  %22098 = vmatmul.mubr.msk.f32.vlgmr.msra.gmra.mrb[0].mxu0 %vm422_vm2, %v22095_v58 }
 0x158   : > { %v5175_v60 = vpop.permute.xlu0 %5174  ;;  %5413 = vmatprep.mubr.f32.mxu0 %v26909_v0 }
 0x159   : > { %8239 = vrot.lane.b32.xlu1 %v8225_v56, %s26912_s25  ;;  %v5186_v62 = vsel %vm5182_vm8, %v5173_v52, %v5175_v60  ;;  %v5187_v14 = vsel %vm5182_vm8, %v5175_v60, %v5177_v59 }
 0x15a   : > { %8237 = vrot.lane.b32.xlu0 %v8232_v57, %s26912_s25  ;;  %22099 = vmatprep.subr.msk.mxu1 %vm426_vm1, %v5186_v62 }
 0x15b   : > { %22100 = vmatpush1.msk.msra.mxu1 %vm426_vm1, %v5185_v63  ;;  %v5181_v8 = vpop.permute.xlu1 %5180  ;;  %v22131_v63 = vld [vmem:[%s31950_s1 + $0x88] sm:$0x3f] }
 0x15c   : > { %22101 = vmatmul.mubr.msk.f32.vlgmr.msra.gmra.mrb[0].mxu1 %vm422_vm2, %v22095_v58  ;;  %v5179_v10 = vpop.permute.xlu0 %5178  ;;  %23962 = vmatprep.subr.mxu1 %v26909_v0 }
 0x15d   : > { %v5189_v11 = vsel %vm5182_vm8, %v5179_v10, %v5181_v8  ;;  %8241 = vrot.lane.b32.xlu1 %v8233_v61, %s26912_s25  ;;  %v5188_v12 = vsel %vm5182_vm8, %v5177_v59, %v5179_v10  ;;  %23964 = vmatprep.mubr.msk.f32.mxu1 %vm26919_vm3, %v26909_v0 }
 0x15e   : > { %8235 = vrot.lane.b32.xlu0 %v8224_v53, %s26912_s25  ;;  %22102 = vmatprep.subr.msk.mxu0 %vm426_vm1, %v5188_v12 }
 0x15f   : > { %23963 = vmatpush3.msk.msra.mxu1 %vm426_vm1, %v5189_v11  ;;  %22103 = vmatpush1.msk.msra.mxu0 %vm426_vm1, %v5187_v14  ;;  %v5516_v16 = vpop.permute.xlu1 %5515 }
 0x160   : > { %23965 = vmatmul.mubr.msk.f32.vlgmr.msra.gmra.mrb[30].mxu1 %vm422_vm2, %v22095_v58  ;;  %v5514_v17 = vpop.permute.xlu0 %5513  ;;  %22104 = vmatmul.mubr.msk.f32.vlgmr.msra.gmra.mrb[2].mxu0 %vm422_vm2, %v22095_v58 }
 0x161   : > { %8245 = vrot.lane.b32.xlu1 %v8234_v13, %s26912_s25  ;;  %v5529_v18 = vsel %vm5527_vm9, %v5514_v17, %v5516_v16  ;;  %5687 = vmatprep.mubr.f32.mxu1 %v26909_v0 }
 0x162   : > { %8243 = vrot.lane.b32.xlu0 %v8226_v7, %s26912_s25  ;;  %22108 = vmatprep.subr.msk.mxu0 %vm426_vm1, %v5529_v18 }
 0x163   : > { %v5518_v20 = vpop.permute.xlu1 %5517  ;;  %5616 = vmatprep.mubr.f32.mxu0 %v26909_v0 }
 0x164   : > { %v5512_v22 = vpop.permute.xlu0 %5511  ;;  %v5530_v31 = vsel %vm5527_vm9, %v5516_v16, %v5518_v20 }
 0x165   : > { %v5528_v23 = vsel %vm5527_vm9, %v5512_v22, %v5514_v17  ;;  %8577 = vrot.lane.b32.xlu1 %v8572_v19, %s26913_s26  ;;  %v720_v28 = vpop.f32.mrb[2].mxu1 }
 0x166   : > { %8247 = vrot.lane.b32.xlu0 %v8227_v21, %s26912_s25  ;;  %22109 = vmatpush1.msk.msra.mxu0 %vm426_vm1, %v5528_v23  ;;  %v23896_v30 = vpop.f32.mrb[3].mxu1  ;;  %s26937_s25 = smov 112  }
 0x167   : > { %v5522_v25 = vpop.permute.xlu1 %5521  ;;  %22110 = vmatmul.mubr.msk.f32.vlgmr.msra.gmra.mrb[0].mxu0 %vm422_vm2, %v22107_v24 }
 0x168   : > { %v5520_v27 = vpop.permute.xlu0 %5519  ;;  %5758 = vmatprep.mubr.f32.mxu0 %v26909_v0 }
 0x169   : > { %8575 = vrot.lane.b32.xlu1 %v8564_v15, %s26913_s26  ;;  %v5531_v29 = vsel %vm5527_vm9, %v5518_v20, %v5520_v27  ;;  %v5532_v34 = vsel %vm5527_vm9, %v5520_v27, %v5522_v25 }
 0x16a   : > { %8579 = vrot.lane.b32.xlu0 %v8565_v26, %s26913_s26  ;;  %22111 = vmatprep.subr.msk.mxu1 %vm426_vm1, %v5531_v29 }
 0x16b   : > { %22112 = vmatpush1.msk.msra.mxu1 %vm426_vm1, %v5530_v31  ;;  %v5526_v1 = vpop.permute.xlu1 %5525 }
 0x16c   : > { %22113 = vmatmul.mubr.msk.f32.vlgmr.msra.gmra.mrb[0].mxu1 %vm422_vm2, %v22107_v24  ;;  %v5524_v32 = vpop.permute.xlu0 %5523  ;;  %23967 = vmatprep.subr.mxu1 %v26909_v0 }
 0x16d   : > { %v5534_v2 = vsel %vm5527_vm9, %v5524_v32, %v5526_v1  ;;  %8583 = vrot.lane.b32.xlu1 %v8566_v6, %s26913_s26  ;;  %v5533_v33 = vsel %vm5527_vm9, %v5522_v25, %v5524_v32  ;;  %23969 = vmatprep.mubr.msk.f32.mxu1 %vm26919_vm3, %v26909_v0  ;;  %vm10106_vm9 = vcmask 982016  }
 0x16e   : > { %8581 = vrot.lane.b32.xlu0 %v8573_v3, %s26913_s26  ;;  %22114 = vmatprep.subr.msk.mxu0 %vm426_vm1, %v5533_v33 }
 0x16f   : > { %23968 = vmatpush3.msk.msra.mxu1 %vm426_vm1, %v5534_v2  ;;  %22115 = vmatpush1.msk.msra.mxu0 %vm426_vm1, %v5532_v34  ;;  %v5861_v4 = vpop.permute.xlu1 %5860 }
 0x170   : > { %23970 = vmatmul.mubr.msk.f32.vlgmr.msra.gmra.mrb[32].mxu1 %vm422_vm2, %v22107_v24  ;;  %v5859_v9 = vpop.permute.xlu0 %5858  ;;  %22116 = vmatmul.mubr.msk.f32.vlgmr.msra.gmra.mrb[2].mxu0 %vm422_vm2, %v22107_v24  ;;  %v1020_v36 = vpop.f32.mrb[4].mxu1 }
 0x171   : > { %8587 = vrot.lane.b32.xlu1 %v8567_v35, %s26913_s26  ;;  %v5874_v37 = vsel %vm5872_vm10, %v5859_v9, %v5861_v4  ;;  %6032 = vmatprep.mubr.f32.mxu1 %v26909_v0  ;;  %v1021_v38 = vadd.f32 %v1020_v36, %v720_v28  ;;  %v23901_v39 = vpop.f32.mrb[5].mxu1  ;;  %v22143_v28 = vld [vmem:[%s31950_s1 + $0x90] sm:$0x3f] }
 0x172   : > { %8585 = vrot.lane.b32.xlu0 %v8574_v5, %s26913_s26  ;;  %22120 = vmatprep.subr.msk.mxu0 %vm426_vm1, %v5874_v37  ;;  %v22155_v39 = vld [vmem:[%s31950_s1 + $0x98] sm:$0x3f] }
 0x173   : > { %v5863_v40 = vpop.permute.xlu1 %5862  ;;  %5961 = vmatprep.mubr.f32.mxu0 %v26909_v0 }
 0x174   : > { %v5857_v41 = vpop.permute.xlu0 %5856  ;;  %v5875_v47 = vsel %vm5872_vm10, %v5861_v4, %v5863_v40 }
 0x175   : > { %v5873_v42 = vsel %vm5872_vm10, %v5857_v41, %v5859_v9  ;;  %v26930_v41 = vmov 0  }
 0x176   : > { %22121 = vmatpush1.msk.msra.mxu0 %vm426_vm1, %v5873_v42  ;;  %26712 = vset.pattern.permute.xlu0 %v26930_v41 }
 0x177   : > { %v5867_v44 = vpop.permute.xlu1 %5866  ;;  %22122 = vmatmul.mubr.msk.f32.vlgmr.msra.gmra.mrb[0].mxu0 %vm422_vm2, %v22119_v43  ;;  %26713 = vset.pattern.permute.xlu1 %v26930_v41 }
 0x178   : > { %v5865_v45 = vpop.permute.xlu0 %5864  ;;  %6103 = vmatprep.mubr.f32.mxu0 %v26909_v0 }
 0x179   : > { %v5876_v46 = vsel %vm5872_vm10, %v5863_v40, %v5865_v45  ;;  %v5877_v55 = vsel %vm5872_vm10, %v5865_v45, %v5867_v44 }
 0x17a   : > { %22123 = vmatprep.subr.msk.mxu1 %vm426_vm1, %v5876_v46  ;;  %v1354_v48 = vpop.f32.mrb[6].mxu1 }
 0x17b   : > { %22124 = vmatpush1.msk.msra.mxu1 %vm426_vm1, %v5875_v47  ;;  %v5871_v49 = vpop.permute.xlu1 %5870  ;;  %v1364_v50 = vadd.f32 %v1354_v48, %v1021_v38  ;;  %v23906_v51 = vpop.f32.mrb[7].mxu1  ;;  %v7224_v47 = vld [vmem:[%s27014_s22 + $0x4] sm:$0x77] }
 0x17c   : > { %22125 = vmatmul.mubr.msk.f32.vlgmr.msra.gmra.mrb[0].mxu1 %vm422_vm2, %v22119_v43  ;;  %v5869_v52 = vpop.permute.xlu0 %5868  ;;  %23972 = vmatprep.subr.mxu1 %v26909_v0  ;;  %v7226_v51 = vld [vmem:[%s27014_s22 + $0x14] sm:$0x77] }
 0x17d   : > { %v5879_v53 = vsel %vm5872_vm10, %v5869_v52, %v5871_v49  ;;  %v5878_v54 = vsel %vm5872_vm10, %v5867_v44, %v5869_v52  ;;  %23974 = vmatprep.mubr.msk.f32.mxu1 %vm26919_vm3, %v26909_v0  ;;  %v7225_v44 = vld [vmem:[%s27014_s22 + $0xc] sm:$0x77]  ;;  %vm11218_vm10 = vcmask 474112  }
 0x17e   : > { %22126 = vmatprep.subr.msk.mxu0 %vm426_vm1, %v5878_v54  ;;  %23973 = vmatpush3.msk.msra.mxu1 %vm426_vm1, %v5879_v53  ;;  %v7233_v49 = vcombine.high %v7225_v44, %v7225_v44  ;;  %v7232_v54 = vcombine.high %v7224_v47, %v7224_v47 }
 0x17f   : > { %22127 = vmatpush1.msk.msra.mxu0 %vm426_vm1, %v5877_v55  ;;  %v6206_v56 = vpop.permute.xlu1 %6205 }
 0x180   : > { %23975 = vmatmul.mubr.msk.f32.vlgmr.msra.gmra.mrb[34].mxu1 %vm422_vm2, %v22119_v43  ;;  %v6204_v57 = vpop.permute.xlu0 %6203  ;;  %22128 = vmatmul.mubr.msk.f32.vlgmr.msra.gmra.mrb[2].mxu0 %vm422_vm2, %v22119_v43 }
 0x181   : > { %v6219_v58 = vsel %vm6217_vm11, %v6204_v57, %v6206_v56  ;;  %6377 = vmatprep.mubr.f32.mxu1 %v26909_v0  ;;  %6306 = vmatprep.mubr.f32.mxu0 %v26909_v0 }
 0x182   : > { %22132 = vmatprep.subr.msk.mxu0 %vm426_vm1, %v6219_v58  ;;  %v7234_v58 = vcombine.high %v7226_v51, %v7226_v51 }
 0x183   : > { %v6208_v59 = vpop.permute.xlu1 %6207 }
 0x184   : > { %v6202_v60 = vpop.permute.xlu0 %6201  ;;  %v6220_v13 = vsel %vm6217_vm11, %v6206_v56, %v6208_v59 }
 0x185   : > { %v6218_v61 = vsel %vm6217_vm11, %v6202_v60, %v6204_v57  ;;  %v1695_v62 = vpop.f32.mrb[8].mxu1 }
 0x186   : > { %22133 = vmatpush1.msk.msra.mxu0 %vm426_vm1, %v6218_v61  ;;  %v1705_v7 = vadd.f32 %v1695_v62, %v1364_v50  ;;  %v23911_v8 = vpop.f32.mrb[9].mxu1  ;;  %v22167_v62 = vld [vmem:[%s31950_s1 + $0xa0] sm:$0x3f] }
 0x187   : > { %v6212_v10 = vpop.permute.xlu1 %6211  ;;  %22134 = vmatmul.mubr.msk.f32.vlgmr.msra.gmra.mrb[0].mxu0 %vm422_vm2, %v22131_v63  ;;  %v7227_v8 = vld [vmem:[%s27014_s22 + $0x1c] sm:$0x7] }
 0x188   : > { %v6210_v11 = vpop.permute.xlu0 %6209  ;;  %6448 = vmatprep.mubr.f32.mxu0 %v26909_v0 }
 0x189   : > { %v6221_v12 = vsel %vm6217_vm11, %v6208_v59, %v6210_v11  ;;  %v6222_v18 = vsel %vm6217_vm11, %v6210_v11, %v6212_v10 }
 0x18a   : > { %22135 = vmatprep.subr.msk.mxu1 %vm426_vm1, %v6221_v12 }
 0x18b   : > { %22136 = vmatpush1.msk.msra.mxu1 %vm426_vm1, %v6220_v13  ;;  %v6216_v14 = vpop.permute.xlu1 %6215 }
 0x18c   : > { %22137 = vmatmul.mubr.msk.f32.vlgmr.msra.gmra.mrb[0].mxu1 %vm422_vm2, %v22131_v63  ;;  %v6214_v15 = vpop.permute.xlu0 %6213  ;;  %23977 = vmatprep.subr.mxu1 %v26909_v0 }
 0x18d   : > { %v6224_v16 = vsel %vm6217_vm11, %v6214_v15, %v6216_v14  ;;  %v6223_v17 = vsel %vm6217_vm11, %v6212_v10, %v6214_v15  ;;  %23979 = vmatprep.mubr.msk.f32.mxu1 %vm26919_vm3, %v26909_v0  ;;  %v8902_v14 = vld [vmem:[%s31951_s2] sm:$0x3f]  ;;  %vm11494_vm11 = vcmask 457728  }
 0x18e   : > { %22138 = vmatprep.subr.msk.mxu0 %vm426_vm1, %v6223_v17  ;;  %23978 = vmatpush3.msk.msra.mxu1 %vm426_vm1, %v6224_v16  ;;  %v22179_v16 = vld [vmem:[%s31950_s1 + $0xa8] sm:$0x3f] }
 0x18f   : > { %22139 = vmatpush1.msk.msra.mxu0 %vm426_vm1, %v6222_v18  ;;  %v6551_v19 = vpop.permute.xlu1 %6550  ;;  %v2036_v20 = vpop.f32.mrb[10].mxu1  ;;  %8905 = vperm.xlu0 %26712, %v8902_v14  }
 0x190   : > { %23980 = vmatmul.mubr.msk.f32.vlgmr.msra.gmra.mrb[36].mxu1 %vm422_vm2, %v22131_v63  ;;  %v6549_v21 = vpop.permute.xlu0 %6548  ;;  %22140 = vmatmul.mubr.msk.f32.vlgmr.msra.gmra.mrb[2].mxu0 %vm422_vm2, %v22131_v63  ;;  %v2046_v22 = vadd.f32 %v2036_v20, %v1705_v7  ;;  %v23916_v23 = vpop.f32.mrb[11].mxu1 }
 0x191   : > { %v6564_v24 = vsel %vm6562_vm13, %v6549_v21, %v6551_v19  ;;  %6722 = vmatprep.mubr.f32.mxu1 %v26909_v0  ;;  %6651 = vmatprep.mubr.f32.mxu0 %v26909_v0 }
 0x192   : > { %22144 = vmatprep.subr.msk.mxu0 %vm426_vm1, %v6564_v24 }
 0x193   : > { %v6553_v25 = vpop.permute.xlu1 %6552 }
 0x194   : > { %v6547_v26 = vpop.permute.xlu0 %6546  ;;  %v6565_v3 = vsel %vm6562_vm13, %v6551_v19, %v6553_v25 }
 0x195   : > { %v6563_v27 = vsel %vm6562_vm13, %v6547_v26, %v6549_v21 }
 0x196   : > { %22145 = vmatpush1.msk.msra.mxu0 %vm426_vm1, %v6563_v27 }
 0x197   : > { %v6557_v29 = vpop.permute.xlu1 %6556  ;;  %22146 = vmatmul.mubr.msk.f32.vlgmr.msra.gmra.mrb[0].mxu0 %vm422_vm2, %v22143_v28 }
 0x198   : > { %v6555_v30 = vpop.permute.xlu0 %6554  ;;  %6793 = vmatprep.mubr.f32.mxu0 %v26909_v0 }
 0x199   : > { %v6566_v31 = vsel %vm6562_vm13, %v6553_v25, %v6555_v30  ;;  %v6567_v33 = vsel %vm6562_vm13, %v6555_v30, %v6557_v29 }
 0x19a   : > { %22147 = vmatprep.subr.msk.mxu1 %vm426_vm1, %v6566_v31  ;;  %v22191_v31 = vld [vmem:[%s31950_s1 + $0xb0] sm:$0x3f] }
 0x19b   : > { %22148 = vmatpush1.msk.msra.mxu1 %vm426_vm1, %v6565_v3  ;;  %v6561_v6 = vpop.permute.xlu1 %6560 }
 0x19c   : > { %22149 = vmatmul.mubr.msk.f32.vlgmr.msra.gmra.mrb[0].mxu1 %vm422_vm2, %v22143_v28  ;;  %v6559_v1 = vpop.permute.xlu0 %6558  ;;  %23982 = vmatprep.subr.mxu1 %v26909_v0 }
 0x19d   : > { %v6569_v32 = vsel %vm6562_vm13, %v6559_v1, %v6561_v6  ;;  %v6568_v2 = vsel %vm6562_vm13, %v6557_v29, %v6559_v1  ;;  %23984 = vmatprep.mubr.msk.f32.mxu1 %vm26919_vm3, %v26909_v0  ;;  %vm21860_vm13 = vcmask 7168  }
 0x19e   : > { %22150 = vmatprep.subr.msk.mxu0 %vm426_vm1, %v6568_v2  ;;  %23983 = vmatpush3.msk.msra.mxu1 %vm426_vm1, %v6569_v32  ;;  %v2381_v34 = vpop.f32.mrb[12].mxu1 }
 0x19f   : > { %22151 = vmatpush1.msk.msra.mxu0 %vm426_vm1, %v6567_v33  ;;  %v6896_v5 = vpop.permute.xlu1 %6895  ;;  %v2391_v35 = vadd.f32 %v2381_v34, %v2046_v22  ;;  %v23921_v4 = vpop.f32.mrb[13].mxu1 }
 0x1a0   : > { %23985 = vmatmul.mubr.msk.f32.vlgmr.msra.gmra.mrb[38].mxu1 %vm422_vm2, %v22143_v28  ;;  %v6894_v9 = vpop.permute.xlu0 %6893  ;;  %22152 = vmatmul.mubr.msk.f32.vlgmr.msra.gmra.mrb[2].mxu0 %vm422_vm2, %v22143_v28 }
 0x1a1   : > { %v6909_v36 = vsel %vm6907_vm15, %v6894_v9, %v6896_v5  ;;  %6996 = vmatprep.mubr.f32.mxu0 %v26909_v0  ;;  %7067 = vmatprep.mubr.f32.mxu1 %v26909_v0 }
 0x1a2   : > { %22156 = vmatprep.subr.msk.mxu0 %vm426_vm1, %v6909_v36 }
 0x1a3   : > { %v6898_v37 = vpop.permute.xlu1 %6897 }
 0x1a4   : > { %v6892_v38 = vpop.permute.xlu0 %6891  ;;  %v6910_v46 = vsel %vm6907_vm15, %v6896_v5, %v6898_v37 }
 0x1a5   : > { %v6908_v40 = vsel %vm6907_vm15, %v6892_v38, %v6894_v9 }
 0x1a6   : > { %22157 = vmatpush1.msk.msra.mxu0 %vm426_vm1, %v6908_v40 }
 0x1a7   : > { %v6902_v42 = vpop.permute.xlu1 %6901  ;;  %22158 = vmatmul.mubr.msk.f32.vlgmr.msra.gmra.mrb[0].mxu0 %vm422_vm2, %v22155_v39 }
 0x1a8   : > { %v6900_v43 = vpop.permute.xlu0 %6899  ;;  %7138 = vmatprep.mubr.f32.mxu0 %v26909_v0 }
 0x1a9   : > { %v6911_v45 = vsel %vm6907_vm15, %v6898_v37, %v6900_v43  ;;  %v6912_v55 = vsel %vm6907_vm15, %v6900_v43, %v6902_v42 }
 0x1aa   : > { %22159 = vmatprep.subr.msk.mxu1 %vm426_vm1, %v6911_v45 }
 0x1ab   : > { %22160 = vmatpush1.msk.msra.mxu1 %vm426_vm1, %v6910_v46  ;;  %v6906_v48 = vpop.permute.xlu1 %6905 }
 0x1ac   : > { %22161 = vmatmul.mubr.msk.f32.vlgmr.msra.gmra.mrb[0].mxu1 %vm422_vm2, %v22155_v39  ;;  %v6904_v50 = vpop.permute.xlu0 %6903  ;;  %23987 = vmatprep.subr.mxu1 %v26909_v0 }
 0x1ad   : > { %v6914_v52 = vsel %vm6907_vm15, %v6904_v50, %v6906_v48  ;;  %v6913_v53 = vsel %vm6907_vm15, %v6902_v42, %v6904_v50  ;;  %23989 = vmatprep.mubr.msk.f32.mxu1 %vm26919_vm3, %v26909_v0 }
 0x1ae   : > { %22162 = vmatprep.subr.msk.mxu0 %vm426_vm1, %v6913_v53  ;;  %23988 = vmatpush3.msk.msra.mxu1 %vm426_vm1, %v6914_v52  ;;  %v2726_v56 = vpop.f32.mrb[14].mxu1  ;;  %v22215_v53 = vld [vmem:[%s31950_s1 + $0xc0] sm:$0x3f] }
 0x1af   : > { %22163 = vmatpush1.msk.msra.mxu0 %vm426_vm1, %v6912_v55  ;;  %v7560_v57 = vpop.permute.xlu1 %7559  ;;  %22171 = vmatprep.subr.msk.mxu1 %vm426_vm1, %v7233_v49  ;;  %v2736_v59 = vadd.f32 %v2726_v56, %v2391_v35  ;;  %v23926_v60 = vpop.f32.mrb[15].mxu1 }
 0x1b0   : > { %22164 = vmatmul.mubr.msk.f32.vlgmr.msra.gmra.mrb[2].mxu0 %vm422_vm2, %v22155_v39  ;;  %23990 = vmatmul.mubr.msk.f32.vlgmr.msra.gmra.mrb[40].mxu1 %vm422_vm2, %v22155_v39  ;;  %v7558_v61 = vpop.permute.xlu0 %7557  ;;  %v22203_v39 = vld [vmem:[%s31950_s1 + $0xb8] sm:$0x3f] }
 0x1b1   : > { %22168 = vmatprep.subr.msk.mxu0 %vm426_vm1, %v7232_v54  ;;  %7316 = vmatprep.mubr.f32.mxu0 %v26909_v0  ;;  %v7570_v10 = vsel %vm415_vm0, %v7558_v61, %v7560_v57 }
 0x1b2   : > { %22169 = vmatpush1.msk.msra.mxu0 %vm426_vm1, %v7224_v47  ;;  %22172 = vmatpush1.msk.msra.mxu1 %vm426_vm1, %v7225_v44 }
 0x1b3   : > { %7387 = vmatprep.mubr.f32.mxu1 %v26909_v0  ;;  %22174 = vmatprep.subr.msk.mxu0 %vm426_vm1, %v7234_v58  ;;  %v7562_v63 = vpop.permute.xlu1 %7561 }
 0x1b4   : > { %22170 = vmatmul.mubr.msk.f32.vlgmr.msra.gmra.mrb[0].mxu0 %vm422_vm2, %v22167_v62  ;;  %22173 = vmatmul.mubr.msk.f32.vlgmr.msra.gmra.mrb[0].mxu1 %vm422_vm2, %v22167_v62  ;;  %v7556_v7 = vpop.permute.xlu0 %7555  ;;  %v7571_v17 = vsel %vm415_vm0, %v7560_v57, %v7562_v63 }
 0x1b5   : > { %22175 = vmatpush1.msk.msra.mxu0 %vm426_vm1, %v7226_v51  ;;  %23992 = vmatprep.subr.mxu1 %v26909_v0  ;;  %v7569_v12 = vsel %vm415_vm0, %v7556_v7, %v7558_v61 }
 0x1b6   : > { %22180 = vmatprep.subr.msk.mxu0 %vm426_vm1, %v7570_v10  ;;  %7458 = vmatprep.mubr.f32.mxu0 %v26909_v0 }
 0x1b7   : > { %23993 = vmatpush3.msk.msra.mxu1 %vm426_vm1, %v7227_v8  ;;  %23994 = vmatprep.mubr.msk.f32.mxu1 %vm26919_vm3, %v26909_v0  ;;  %v7566_v11 = vpop.permute.xlu1 %7565 }
 0x1b8   : > { %22176 = vmatmul.mubr.msk.f32.vlgmr.msra.gmra.mrb[2].mxu0 %vm422_vm2, %v22167_v62  ;;  %23995 = vmatmul.mubr.msk.f32.vlgmr.msra.gmra.mrb[42].mxu1 %vm422_vm2, %v22167_v62  ;;  %v7564_v13 = vpop.permute.xlu0 %7563 }
 0x1b9   : > { %22181 = vmatpush1.msk.msra.mxu0 %vm426_vm1, %v7569_v12  ;;  %v7572_v15 = vsel %vm415_vm0, %v7562_v63, %v7564_v13  ;;  %7727 = vmatprep.mubr.f32.mxu1 %v26909_v0  ;;  %v7573_v21 = vsel %vm415_vm0, %v7564_v13, %v7566_v11 }
 0x1ba   : > { %22183 = vmatprep.subr.msk.mxu1 %vm426_vm1, %v7572_v15  ;;  %7656 = vmatprep.mubr.f32.mxu0 %v26909_v0 }
 0x1bb   : > { %22184 = vmatpush1.msk.msra.mxu1 %vm426_vm1, %v7571_v17  ;;  %v7898_v18 = vpop.permute.xlu1 %7897 }
 0x1bc   : > { %22185 = vmatmul.mubr.msk.f32.vlgmr.msra.gmra.mrb[0].mxu1 %vm422_vm2, %v22179_v16  ;;  %23997 = vmatprep.subr.mxu1 %v26909_v0  ;;  %v7568_v19 = vpop.permute.xlu0 %7567 }
 0x1bd   : > { %23998 = vmatpush3.msk.msra.mxu1 %vm426_vm1, %v7568_v19  ;;  %v7574_v20 = vsel %vm415_vm0, %v7566_v11, %v7568_v19  ;;  %22182 = vmatmul.mubr.msk.f32.vlgmr.msra.gmra.mrb[0].mxu0 %vm422_vm2, %v22179_v16 }
 0x1be   : > { %22186 = vmatprep.subr.msk.mxu0 %vm426_vm1, %v7574_v20  ;;  %23999 = vmatprep.mubr.msk.f32.mxu1 %vm26919_vm3, %v26909_v0  ;;  %v3071_v22 = vpop.f32.mrb[16].mxu1 }
 0x1bf   : > { %22187 = vmatpush1.msk.msra.mxu0 %vm426_vm1, %v7573_v21  ;;  %v7896_v23 = vpop.permute.xlu1 %7895  ;;  %7798 = vmatprep.mubr.f32.mxu0 %v26909_v0  ;;  %v3081_v24 = vadd.f32 %v3071_v22, %v2736_v59  ;;  %v23931_v25 = vpop.f32.mrb[17].mxu1 }
 0x1c0   : > { %v7909_v26 = vsel %vm1051_vm4, %v7896_v23, %v7898_v18  ;;  %24000 = vmatmul.mubr.msk.f32.vlgmr.msra.gmra.mrb[44].mxu1 %vm422_vm2, %v22179_v16  ;;  %v7900_v27 = vpop.permute.xlu0 %7899 }
 0x1c1   : > { %v7910_v28 = vsel %vm1051_vm4, %v7898_v18, %v7900_v27  ;;  %22188 = vmatmul.mubr.msk.f32.vlgmr.msra.gmra.mrb[2].mxu0 %vm422_vm2, %v22179_v16  ;;  %8067 = vmatprep.mubr.f32.mxu1 %v26909_v0 }
 0x1c2   : > { %22192 = vmatprep.subr.msk.mxu0 %vm426_vm1, %v7910_v28  ;;  %7996 = vmatprep.mubr.f32.mxu0 %v26909_v0 }
 0x1c3   : > { %22193 = vmatpush1.msk.msra.mxu0 %vm426_vm1, %v7909_v26  ;;  %v7904_v29 = vpop.permute.xlu1 %7903 }
 0x1c4   : > { %v7902_v30 = vpop.permute.xlu0 %7901 }
 0x1c5   : > { %v7911_v3 = vsel %vm1051_vm4, %v7900_v27, %v7902_v30  ;;  %v7912_v6 = vsel %vm1051_vm4, %v7902_v30, %v7904_v29  ;;  %22194 = vmatmul.mubr.msk.f32.vlgmr.msra.gmra.mrb[0].mxu0 %vm422_vm2, %v22191_v31 }
 0x1c6   : > { %22195 = vmatprep.subr.msk.mxu1 %vm426_vm1, %v7912_v6  ;;  %8138 = vmatprep.mubr.f32.mxu0 %v26909_v0 }
 0x1c7   : > { %22196 = vmatpush1.msk.msra.mxu1 %vm426_vm1, %v7911_v3  ;;  %v7908_v1 = vpop.permute.xlu1 %7907 }
 0x1c8   : > { %22197 = vmatmul.mubr.msk.f32.vlgmr.msra.gmra.mrb[0].mxu1 %vm422_vm2, %v22191_v31  ;;  %24002 = vmatprep.subr.mxu1 %v26909_v0  ;;  %v7906_v32 = vpop.permute.xlu0 %7905 }
 0x1c9   : > { %v7913_v2 = vsel %vm1051_vm4, %v7904_v29, %v7906_v32  ;;  %24003 = vmatpush3.msk.msra.mxu1 %vm426_vm1, %v7908_v1  ;;  %v7914_v33 = vsel %vm1051_vm4, %v7906_v32, %v7908_v1  ;;  %24004 = vmatprep.mubr.msk.f32.mxu1 %vm26919_vm3, %v26909_v0 }
 0x1ca   : > { %22198 = vmatprep.subr.msk.mxu0 %vm426_vm1, %v7914_v33 }
 0x1cb   : > { %22199 = vmatpush1.msk.msra.mxu0 %vm426_vm1, %v7913_v2  ;;  %v8240_v34 = vpop.permute.xlu1 %8239 }
 0x1cc   : > { %24005 = vmatmul.mubr.msk.f32.vlgmr.msra.gmra.mrb[46].mxu1 %vm422_vm2, %v22191_v31  ;;  %v8238_v5 = vpop.permute.xlu0 %8237  ;;  %22200 = vmatmul.mubr.msk.f32.vlgmr.msra.gmra.mrb[2].mxu0 %vm422_vm2, %v22191_v31 }
 0x1cd   : > { %v8250_v35 = vsel %vm1392_vm5, %v8238_v5, %v8240_v34  ;;  %8336 = vmatprep.mubr.f32.mxu0 %v26909_v0  ;;  %8407 = vmatprep.mubr.f32.mxu1 %v26909_v0 }
 0x1ce   : > { %22204 = vmatprep.subr.msk.mxu0 %vm426_vm1, %v8250_v35  ;;  %v3416_v4 = vpop.f32.mrb[18].mxu1 }
 0x1cf   : > { %v8242_v9 = vpop.permute.xlu1 %8241  ;;  %v3426_v36 = vadd.f32 %v3416_v4, %v3081_v24  ;;  %v23936_v37 = vpop.f32.mrb[19].mxu1 }
 0x1d0   : > { %v8236_v38 = vpop.permute.xlu0 %8235  ;;  %v8251_v44 = vsel %vm1392_vm5, %v8240_v34, %v8242_v9 }
 0x1d1   : > { %v8249_v40 = vsel %vm1392_vm5, %v8236_v38, %v8238_v5 }
 0x1d2   : > { %22205 = vmatpush1.msk.msra.mxu0 %vm426_vm1, %v8249_v40 }
 0x1d3   : > { %v8246_v41 = vpop.permute.xlu1 %8245  ;;  %22206 = vmatmul.mubr.msk.f32.vlgmr.msra.gmra.mrb[0].mxu0 %vm422_vm2, %v22203_v39 }
 0x1d4   : > { %v8244_v42 = vpop.permute.xlu0 %8243  ;;  %8478 = vmatprep.mubr.f32.mxu0 %v26909_v0 }
 0x1d5   : > { %v8252_v43 = vsel %vm1392_vm5, %v8242_v9, %v8244_v42  ;;  %v8253_v48 = vsel %vm1392_vm5, %v8244_v42, %v8246_v41 }
 0x1d6   : > { %22207 = vmatprep.subr.msk.mxu1 %vm426_vm1, %v8252_v43 }
 0x1d7   : > { %22208 = vmatpush1.msk.msra.mxu1 %vm426_vm1, %v8251_v44  ;;  %v8578_v45 = vpop.permute.xlu1 %8577 }
 0x1d8   : > { %22209 = vmatmul.mubr.msk.f32.vlgmr.msra.gmra.mrb[0].mxu1 %vm422_vm2, %v22203_v39  ;;  %24007 = vmatprep.subr.mxu1 %v26909_v0  ;;  %v8248_v46 = vpop.permute.xlu0 %8247 }
 0x1d9   : > { %24008 = vmatpush3.msk.msra.mxu1 %vm426_vm1, %v8248_v46  ;;  %v8254_v47 = vsel %vm1392_vm5, %v8246_v41, %v8248_v46  ;;  %24009 = vmatprep.mubr.msk.f32.mxu1 %vm26919_vm3, %v26909_v0  ;;  %vm9025_vm5 = vcmask 742400  }
 0x1da   : > { %22210 = vmatprep.subr.msk.mxu0 %vm426_vm1, %v8254_v47 }
 0x1db   : > { %22211 = vmatpush1.msk.msra.mxu0 %vm426_vm1, %v8253_v48  ;;  %v8576_v49 = vpop.permute.xlu1 %8575 }
 0x1dc   : > { %v8589_v50 = vsel %vm1733_vm6, %v8576_v49, %v8578_v45  ;;  %22212 = vmatmul.mubr.msk.f32.vlgmr.msra.gmra.mrb[2].mxu0 %vm422_vm2, %v22203_v39  ;;  %24010 = vmatmul.mubr.msk.f32.vlgmr.msra.gmra.mrb[48].mxu1 %vm422_vm2, %v22203_v39  ;;  %v8580_v51 = vpop.permute.xlu0 %8579 }
 0x1dd   : > { %v8590_v52 = vsel %vm1733_vm6, %v8578_v45, %v8580_v51  ;;  %8676 = vmatprep.mubr.f32.mxu0 %v26909_v0  ;;  %8747 = vmatprep.mubr.f32.mxu1 %v26909_v0 }
 0x1de   : > { %22216 = vmatprep.subr.msk.mxu0 %vm426_vm1, %v8590_v52 }
 0x1df   : > { %22217 = vmatpush1.msk.msra.mxu0 %vm426_vm1, %v8589_v50  ;;  %v8584_v54 = vpop.permute.xlu1 %8583  ;;  %v3761_v55 = vpop.f32.mrb[20].mxu1 }
 0x1e0   : > { %22218 = vmatmul.mubr.msk.f32.vlgmr.msra.gmra.mrb[0].mxu0 %vm422_vm2, %v22215_v53  ;;  %v8582_v56 = vpop.permute.xlu0 %8581  ;;  %v3771_v57 = vadd.f32 %v3761_v55, %v3426_v36  ;;  %v23941_v58 = vpop.f32.mrb[21].mxu1 }
 0x1e1   : > { %v8591_v59 = vsel %vm1733_vm6, %v8580_v51, %v8582_v56  ;;  %v8592_v60 = vsel %vm1733_vm6, %v8582_v56, %v8584_v54  ;;  %8818 = vmatprep.mubr.f32.mxu0 %v26909_v0 }
 0x1e2   : > { %22219 = vmatprep.subr.msk.mxu1 %vm426_vm1, %v8592_v60 }
 0x1e3   : > { %22220 = vmatpush1.msk.msra.mxu1 %vm426_vm1, %v8591_v59  ;;  %v8588_v61 = vpop.permute.xlu1 %8587 }
 0x1e4   : > { %22221 = vmatmul.mubr.msk.f32.vlgmr.msra.gmra.mrb[0].mxu1 %vm422_vm2, %v22215_v53  ;;  %v8586_v62 = vpop.permute.xlu0 %8585  ;;  %24012 = vmatprep.subr.mxu1 %v26909_v0 }
 0x1e5   : > { %v8593_v63 = vsel %vm1733_vm6, %v8584_v54, %v8586_v62  ;;  %v8594_v7 = vsel %vm1733_vm6, %v8586_v62, %v8588_v61  ;;  %24013 = vmatpush3.msk.msra.mxu1 %vm426_vm1, %v8588_v61  ;;  %24014 = vmatprep.mubr.msk.f32.mxu1 %vm26919_vm3, %v26909_v0 }
 0x1e6   : > { %22222 = vmatprep.subr.msk.mxu0 %vm426_vm1, %v8594_v7 }
 0x1e7   : > { %22223 = vmatpush1.msk.msra.mxu0 %vm426_vm1, %v8593_v63  ;;  %vm8928_vm1 = vcmask 1012736  }
 0x1e8   : > { %22224 = vmatmul.mubr.msk.f32.vlgmr.msra.gmra.mrb[2].mxu0 %vm422_vm2, %v22215_v53  ;;  %24015 = vmatmul.mubr.msk.f32.vlgmr.msra.gmra.mrb[50].mxu1 %vm422_vm2, %v22215_v53  ;;  %vm9056_vm2 = vcmask 48128  }
 0x1e9   : > { %9138 = vmatprep.mubr.f32.mxu0 %v26909_v0  ;;  %9722 = vmatprep.mubr.f32.mxu1 %v26909_v0 }
 0x1f3   : > { %v4106_v8 = vpop.f32.mrb[22].mxu1 }
 0x1f4   : > { %v4116_v10 = vadd.f32 %v4106_v8, %v3771_v57  ;;  %v23946_v11 = vpop.f32.mrb[23].mxu1 }
 0x203   : > { %v4451_v12 = vpop.f32.mrb[24].mxu1 }
 0x204   : > { %v4461_v13 = vadd.f32 %v4451_v12, %v4116_v10  ;;  %v23951_v14 = vpop.f32.mrb[25].mxu1 }
 0x20e   : > { %v8906_v44 = vpop.permute.xlu0 %8905 }
 0x213   : > { %v4796_v15 = vpop.f32.mrb[26].mxu1 }
 0x214   : > { %v4806_v16 = vadd.f32 %v4796_v15, %v4461_v13  ;;  %v23956_v17 = vpop.f32.mrb[27].mxu1 }
 0x223   : > { %v5141_v18 = vpop.f32.mrb[28].mxu1 }
 0x224   : > { %v5151_v19 = vadd.f32 %v5141_v18, %v4806_v16  ;;  %v23961_v20 = vpop.f32.mrb[29].mxu1 }
 0x233   : > { %v5486_v21 = vpop.f32.mrb[30].mxu1 }
 0x234   : > { %v5496_v22 = vadd.f32 %v5486_v21, %v5151_v19  ;;  %v23966_v23 = vpop.f32.mrb[31].mxu1 }
 0x243   : > { %v5831_v24 = vpop.f32.mrb[32].mxu1 }
 0x244   : > { %v5841_v25 = vadd.f32 %v5831_v24, %v5496_v22  ;;  %v23971_v26 = vpop.f32.mrb[33].mxu1 }
 0x253   : > { %v6176_v27 = vpop.f32.mrb[34].mxu1 }
 0x254   : > { %v6186_v28 = vadd.f32 %v6176_v27, %v5841_v25  ;;  %v23976_v29 = vpop.f32.mrb[35].mxu1 }
 0x263   : > { %v6521_v30 = vpop.f32.mrb[36].mxu1 }
 0x264   : > { %v6531_v31 = vadd.f32 %v6521_v30, %v6186_v28  ;;  %v23981_v3 = vpop.f32.mrb[37].mxu1 }
 0x273   : > { %v6866_v6 = vpop.f32.mrb[38].mxu1 }
 0x274   : > { %v6876_v1 = vadd.f32 %v6866_v6, %v6531_v31  ;;  %v23986_v32 = vpop.f32.mrb[39].mxu1 }
 0x283   : > { %v7211_v2 = vpop.f32.mrb[40].mxu1 }
 0x284   : > { %v7221_v33 = vadd.f32 %v7211_v2, %v6876_v1  ;;  %v23991_v34 = vpop.f32.mrb[41].mxu1 }
 0x28b   : > { %v7531_v5 = vpop.f32.mrb[42].mxu1 }
 0x28c   : > { %v7541_v35 = vadd.f32 %v7531_v5, %v7221_v33  ;;  %v23996_v4 = vpop.f32.mrb[43].mxu1 }
 0x293   : > { %v7871_v9 = vpop.f32.mrb[44].mxu1 }
 0x294   : > { %v7881_v36 = vadd.f32 %v7871_v9, %v7541_v35  ;;  %v24001_v37 = vpop.f32.mrb[45].mxu1 }
 0x29f   : > { %v8211_v38 = vpop.f32.mrb[46].mxu1 }
 0x2a0   : > { %v8221_v39 = vadd.f32 %v8211_v38, %v7881_v36  ;;  %v24006_v40 = vpop.f32.mrb[47].mxu1 }
 0x2af   : > { %v8551_v41 = vpop.f32.mrb[48].mxu1 }
 0x2b0   : > { %v8561_v42 = vadd.f32 %v8551_v41, %v8221_v39  ;;  %v24011_v43 = vpop.f32.mrb[49].mxu1 }
 0x2b3   : > { %v8678_v45 = vpop.f32.mrb[0].mxu0 }
 0x2b4   : > { %v8908_v46 = vadd.f32 %v8906_v44, %v8678_v45  ;;  %v8680_v47 = vpop.f32.mrb[1].mxu0 }
 0x2b5   : > { %v8909_v48 = vadd.f32 %v8906_v44, %v8680_v47 }
 0x2b6   : > { %v8915_v49 = vmax.f32 %v8908_v46, 0.0 }
 0x2b7   : > { %v8916_v50 = vmax.f32 %v8909_v48, 0.0  ;;  %v8749_v51 = vpop.f32.mrb[0].mxu1 }
 0x2b8   : > { %8922 = vst [vmem:[#allocation2] sm:$0x3f] %v8915_v49  ;;  %v8910_v52 = vadd.f32 %v8906_v44, %v8749_v51  ;;  %v8751_v53 = vpop.f32.mrb[1].mxu1 }
 0x2b9   : > { %8923 = vst [vmem:[#allocation2 + $0x8] sm:$0x3f] %v8916_v50  ;;  %v8911_v54 = vadd.f32 %v8906_v44, %v8751_v53 }
 0x2ba   : > { %v8917_v55 = vmax.f32 %v8910_v52, 0.0 }
 0x2bb   : > { %v8918_v56 = vmax.f32 %v8911_v54, 0.0  ;;  %v8820_v57 = vpop.f32.mrb[2].mxu0  ;;  %v8891_v58 = vpop.f32.mrb[50].mxu1 }
 0x2bc   : > { %8924 = vst [vmem:[#allocation2 + $0x10] sm:$0x3f] %v8917_v55  ;;  %v8912_v59 = vadd.f32 %v8906_v44, %v8820_v57  ;;  %v8901_v60 = vadd.f32 %v8891_v58, %v8561_v42  ;;  %v8822_v61 = vpop.f32.mrb[3].mxu0  ;;  %v24016_v62 = vpop.f32.mrb[51].mxu1 }
 0x2bd   : > { %8925 = vst [vmem:[#allocation2 + $0x18] sm:$0x3f] %v8918_v56  ;;  %v8913_v63 = vadd.f32 %v8906_v44, %v8822_v61  ;;  %v22227_v62 = vld [vmem:[%s31952_s3 + $0x10] sm:$0xff] }
 0x2be   : > { %v8919_v7 = vmax.f32 %v8912_v59, 0.0  ;;  %v8914_v8 = vadd.f32 %v8906_v44, %v8901_v60 }
 0x2bf   : > { %v8920_v10 = vmax.f32 %v8913_v63, 0.0  ;;  %v8930_v15 = vld [vmem:[#allocation2] sm:$0x3f] }
 0x2c0   : > { %8926 = vst [vmem:[#allocation2 + $0x20] sm:$0x3f] %v8919_v7  ;;  %v8921_v11 = vmax.f32 %v8914_v8, 0.0  ;;  %v8931_v14 = vld [vmem:[#allocation2 + $0x8] sm:$0x3f] }
 0x2c1   : > { %8927 = vst [vmem:[#allocation2 + $0x28] sm:$0x3f] %v8920_v10 }
 0x2c2   : > { %8929 = vst.msk [vmem:[#allocation2 + $0x30] sm:$0x3f] %vm8928_vm1, %v8921_v11  ;;  %v22228_v11 = vld [vmem:[%s31952_s3 + $0x18] sm:$0xff] }
 0x2c3   : > { %v8932_v12 = vld [vmem:[#allocation2 + $0x10] sm:$0x3f] }
 0x2c4   : > { %8948 = vrot.lane.b32.xlu1 %v8932_v12, %s26910_s23  ;;  %v8933_v13 = vld [vmem:[#allocation2 + $0x18] sm:$0x3f] }
 0x2c5   : > { %8950 = vrot.lane.b32.xlu0 %v8933_v13, %s26910_s23 }
 0x2c7   : > { %v8934_v16 = vld [vmem:[#allocation2 + $0x20] sm:$0x3f] }
 0x2c8   : > { %8946 = vrot.lane.b32.xlu1 %v8931_v14, %s26910_s23  ;;  %v8935_v18 = vld [vmem:[#allocation2 + $0x28] sm:$0x3f] }
 0x2c9   : > { %8944 = vrot.lane.b32.xlu0 %v8930_v15, %s26910_s23  ;;  %v8936_v17 = vld [vmem:[#allocation2 + $0x30] sm:$0x3f] }
 0x2cc   : > { %8952 = vrot.lane.b32.xlu1 %v8934_v16, %s26910_s23 }
 0x2cd   : > { %8956 = vrot.lane.b32.xlu0 %v8936_v17, %s26910_s23 }
 0x2d0   : > { %8954 = vrot.lane.b32.xlu1 %v8935_v18, %s26910_s23  ;;  %s26931_s23 = smov 122  }
 0x336   : > { %v8949_v19 = vpop.permute.xlu1 %8948 }
 0x337   : > { %v8951_v20 = vpop.permute.xlu0 %8950 }
 0x338   : > { %v8960_v21 = vsel %vm415_vm0, %v8949_v19, %v8951_v20 }
 0x339   : > { %v8973_v22 = vmax.f32 %v8932_v12, %v8960_v21 }
 0x33a   : > { %v8947_v23 = vpop.permute.xlu1 %8946 }
 0x33b   : > { %v8959_v24 = vsel %vm415_vm0, %v8947_v23, %v8949_v19  ;;  %8989 = vrot.lane.b32.xlu0 %v8973_v22, %s26914_s27  ;;  %v8945_v25 = vpop.permute.xlu0 %8944 }
 0x33c   : > { %v8972_v26 = vmax.f32 %v8931_v14, %v8959_v24  ;;  %v8958_v27 = vsel %vm415_vm0, %v8945_v25, %v8947_v23  ;;  %v28135_v25 = vld [vmem:[%s31952_s3 + $0x20] sm:$0xff] }
 0x33d   : > { %v8971_v28 = vmax.f32 %v8930_v15, %v8958_v27 }
 0x33e   : > { %8987 = vrot.lane.b32.xlu1 %v8972_v26, %s26914_s27  ;;  %v8953_v29 = vpop.permute.xlu1 %8952 }
 0x33f   : > { %v8961_v30 = vsel %vm415_vm0, %v8951_v20, %v8953_v29  ;;  %8985 = vrot.lane.b32.xlu0 %v8971_v28, %s26914_s27  ;;  %v8957_v3 = vpop.permute.xlu0 %8956 }
 0x340   : > { %v8974_v31 = vmax.f32 %v8933_v13, %v8961_v30  ;;  %v8977_v52 = vmax.f32 %v8936_v17, %v8957_v3  ;;  %v9027_v17 = vld [vmem:[%s31952_s3] sm:$0xff] }
 0x342   : > { %8991 = vrot.lane.b32.xlu1 %v8974_v31, %s26914_s27  ;;  %v8955_v6 = vpop.permute.xlu1 %8954 }
 0x343   : > { %v8962_v1 = vsel %vm415_vm0, %v8953_v29, %v8955_v6  ;;  %v8963_v32 = vsel %vm415_vm0, %v8955_v6, %v8957_v3  ;;  %vm9063_vm0 = vcmask 1045504   ;;  %v28155_v29 = vld [vmem:[%s31952_s3 + $0x28] sm:$0xff]  ;;  %v28180_v6 = vld [vmem:[%s31952_s3 + $0x30] sm:$0xff] }
 0x344   : > { %v8975_v2 = vmax.f32 %v8934_v16, %v8962_v1  ;;  %v27963_v33 = vmax.f32 %v8935_v18, %v8963_v32  ;;  %v9028_v18 = vld [vmem:[%s31952_s3 + $0x8] sm:$0xff] }
 0x346   : > { %8993 = vrot.lane.b32.xlu1 %v8975_v2, %s26914_s27  ;;  %8995 = vrot.lane.b32.xlu0 %v27963_v33, %s26914_s27 }
 0x3ad   : > { %v8990_v34 = vpop.permute.xlu0 %8989 }
 0x3b0   : > { %v8988_v5 = vpop.permute.xlu1 %8987 }
 0x3b1   : > { %v9000_v35 = vsel %vm2077_vm7, %v8988_v5, %v8990_v34  ;;  %v8986_v4 = vpop.permute.xlu0 %8985 }
 0x3b2   : > { %v9013_v9 = vmax.f32 %v8972_v26, %v9000_v35  ;;  %v8999_v36 = vsel %vm2077_vm7, %v8986_v4, %v8988_v5 }
 0x3b3   : > { %v9012_v37 = vmax.f32 %v8971_v28, %v8999_v36 }
 0x3b4   : > { %9020 = vst [vmem:[#allocation3 + $0x8] sm:$0x3f] %v9013_v9  ;;  %v8992_v38 = vpop.permute.xlu1 %8991  ;;  %v28227_v9 = vld [vmem:[%s31952_s3 + $0x40] sm:$0xff] }
 0x3b5   : > { %9019 = vst [vmem:[#allocation3] sm:$0x3f] %v9012_v37  ;;  %v9001_v39 = vsel %vm2077_vm7, %v8990_v34, %v8992_v38 }
 0x3b6   : > { %v9014_v40 = vmax.f32 %v8973_v22, %v9001_v39  ;;  %v28247_v39 = vld [vmem:[%s31952_s3 + $0x48] sm:$0xff] }
 0x3b8   : > { %9021 = vst [vmem:[#allocation3 + $0x10] sm:$0x3f] %v9014_v40  ;;  %v8994_v41 = vpop.permute.xlu1 %8993  ;;  %v27971_v42 = vpop.permute.xlu0 %8995 }
 0x3b9   : > { %v9002_v43 = vsel %vm2077_vm7, %v8992_v38, %v8994_v41  ;;  %v9003_v44 = vsel %vm2077_vm7, %v8994_v41, %v27971_v42 }
 0x3ba   : > { %v9015_v45 = vmax.f32 %v8974_v31, %v9002_v43  ;;  %v9016_v46 = vmax.f32 %v8975_v2, %v9003_v44  ;;  %v28283_v43 = vld [vmem:[%s31952_s3 + $0x58] sm:$0xff] }
 0x3bb   : > { %v27976_v47 = vld [vmem:[#allocation3 + $0x8] sm:$0x3f] }
 0x3bc   : > { %9022 = vst [vmem:[#allocation3 + $0x18] sm:$0x3f] %v9015_v45  ;;  %9023 = vst [vmem:[#allocation3 + $0x20] sm:$0x3f] %v9016_v46  ;;  %9044 = vrot.lane.b32.xlu1 %v27976_v47, %s26911_s24  ;;  %v27982_v49 = vld [vmem:[#allocation3] sm:$0x3f] }
 0x3bd   : > { %v28019_v53 = vld [vmem:[#allocation3 + $0x8] sm:$0x3f]  ;;  %v28027_v55 = vld [vmem:[#allocation3] sm:$0x3f] }
 0x3be   : > { %v28311_v45 = vld [vmem:[#allocation3 + $0x8] sm:$0x3f] }
 0x3bf   : > { %v27980_v48 = vld [vmem:[#allocation3 + $0x10] sm:$0x3f] }
 0x3c0   : > { %9046 = vrot.lane.b32.xlu0 %v27980_v48, %s26911_s24  ;;  %9042 = vrot.lane.b32.xlu1 %v27982_v49, %s26911_s24  ;;  %v28025_v54 = vld [vmem:[#allocation3 + $0x10] sm:$0x3f] }
 0x3c1   : > { %v28305_v44 = vld [vmem:[#allocation3 + $0x10] sm:$0x3f] }
 0x3c3   : > { %v27988_v50 = vld [vmem:[#allocation3 + $0x18] sm:$0x3f]  ;;  %v27990_v51 = vld [vmem:[#allocation3 + $0x20] sm:$0x3f] }
 0x3c4   : > { %9048 = vrot.lane.b32.xlu0 %v27988_v50, %s26911_s24  ;;  %9050 = vrot.lane.b32.xlu1 %v27990_v51, %s26911_s24  ;;  %v28033_v56 = vld [vmem:[#allocation3 + $0x20] sm:$0x3f]  ;;  %v28204_v34 = vld [vmem:[#allocation3 + $0x18] sm:$0x3f] }
 0x3c5   : > { %v28319_v46 = vld [vmem:[#allocation3 + $0x18] sm:$0x3f] }
 0x3c8   : > { %8997 = vrot.lane.b32.xlu0 %v8977_v52, %s26914_s27  ;;  %9553 = vrot.lane.b32.xlu1 %v27976_v47, %s26913_s26  ;;  %s26932_s27 = smov 120  }
 0x3cc   : > { %9555 = vrot.lane.b32.xlu0 %v27980_v48, %s26913_s26  ;;  %9551 = vrot.lane.b32.xlu1 %v27982_v49, %s26913_s26 }
 0x3d0   : > { %9559 = vrot.lane.b32.xlu0 %v27990_v51, %s26913_s26  ;;  %9825 = vrot.lane.b32.xlu1 %v27976_v47, %s26931_s23 }
 0x3d4   : > { %9827 = vrot.lane.b32.xlu0 %v27980_v48, %s26931_s23  ;;  %9823 = vrot.lane.b32.xlu1 %v27982_v49, %s26931_s23 }
 0x3d8   : > { %9831 = vrot.lane.b32.xlu0 %v27990_v51, %s26931_s23  ;;  %10098 = vrot.lane.b32.xlu1 %v27976_v47, %s26932_s27 }
 0x3dc   : > { %10100 = vrot.lane.b32.xlu0 %v27980_v48, %s26932_s27  ;;  %10096 = vrot.lane.b32.xlu1 %v27982_v49, %s26932_s27 }
 0x3e0   : > { %10104 = vrot.lane.b32.xlu0 %v27990_v51, %s26932_s27  ;;  %10383 = vrot.lane.b32.xlu1 %v28019_v53, %s26920_s19 }
 0x3e4   : > { %10385 = vrot.lane.b32.xlu0 %v28025_v54, %s26920_s19  ;;  %10381 = vrot.lane.b32.xlu1 %v28027_v55, %s26920_s19 }
 0x3e8   : > { %10389 = vrot.lane.b32.xlu0 %v28033_v56, %s26920_s19 }
 0x3ec   : > { %10658 = vrot.lane.b32.xlu0 %v28019_v53, %s26922_s14 }
 0x3f0   : > { %10656 = vrot.lane.b32.xlu0 %v28027_v55, %s26922_s14 }
 0x42e   : > { %v9045_v57 = vpop.permute.xlu1 %9044 }
 0x432   : > { %v9043_v58 = vpop.permute.xlu1 %9042  ;;  %v9047_v59 = vpop.permute.xlu0 %9046 }
 0x433   : > { %v9052_v60 = vsel %vm1051_vm4, %v9043_v58, %v9045_v57  ;;  %v9053_v61 = vsel %vm1051_vm4, %v9045_v57, %v9047_v59 }
 0x434   : > { %22229 = vmatprep.subr.msk.mxu0 %vm9063_vm0, %v9053_v61  ;;  %v28375_v61 = vld [vmem:[%s31952_s3 + $0x60] sm:$0xff] }
 0x435   : > { %22230 = vmatpush1.msk.msra.mxu0 %vm9063_vm0, %v9052_v60 }
 0x436   : > { %v9051_v63 = vpop.permute.xlu1 %9050  ;;  %22231 = vmatmul.mubr.msk.f32.vlgmr.msra.gmra.mrb[4].mxu0 %vm9056_vm2, %v22227_v62  ;;  %v9049_v7 = vpop.permute.xlu0 %9048 }
 0x437   : > { %v9054_v8 = vsel %vm1051_vm4, %v9047_v59, %v9049_v7  ;;  %v9055_v10 = vsel %vm1051_vm4, %v9049_v7, %v9051_v63  ;;  %9144 = vmatprep.mubr.f32.mxu0 %v26909_v0 }
 0x438   : > { %22233 = vmatprep.subr.msk.mxu0 %vm9063_vm0, %v9055_v10 }
 0x439   : > { %22234 = vmatpush1.msk.msra.mxu0 %vm9063_vm0, %v9054_v8  ;;  %v28388_v8 = vld [vmem:[#allocation3 + $0x20] sm:$0x3f] }
 0x43a   : > { %22232 = vmatmul.mubr.msk.f32.gmra.mrb[6].mxu0 %vm9056_vm2, %v22228_v11  ;;  %24017 = vmatprep.subr.msk.mxu0 %vm9063_vm0, %v9051_v63  ;;  %v8998_v12 = vpop.permute.xlu0 %8997  ;;  %v9554_v20 = vpop.permute.xlu1 %9553 }
 0x43b   : > { %v9004_v13 = vsel %vm2077_vm7, %v27971_v42, %v8998_v12  ;;  %v9018_v14 = vmax.f32 %v8977_v52, %v8998_v12  ;;  %9215 = vmatprep.mubr.f32.mxu0 %v26909_v0  ;;  %vm9833_vm7 = vcmask 998400   ;;  %v28270_v42 = vld [vmem:[%s31952_s3 + $0x50] sm:$0xff] }
 0x43c   : > { %v9017_v15 = vmax.f32 %v27963_v33, %v9004_v13  ;;  %v28200_v33 = vld [vmem:[%s31952_s3 + $0x38] sm:$0xff] }
 0x43d   : > { %9026 = vst.msk [vmem:[#allocation3 + $0x30] sm:$0x3f] %vm9025_vm5, %v9018_v14 }
 0x43e   : > { %9024 = vst [vmem:[#allocation3 + $0x28] sm:$0x3f] %v9017_v15  ;;  %22235 = vmatmul.mubr.msk.f32.vlgmr.msra.gmra.mrb[8].mxu0 %vm9056_vm2, %v22227_v62  ;;  %v28104_v19 = vpop.permute.xlu0 %9555  ;;  %v9552_v23 = vpop.permute.xlu1 %9551 }
 0x43f   : > { %24018 = vmatpush3.msk.msra.mxu0 %vm9063_vm0, %v9051_v63  ;;  %9221 = vmatprep.mubr.f32.mxu0 %v26909_v0  ;;  %v9562_v21 = vsel %vm1733_vm6, %v9554_v20, %v28104_v19  ;;  %v9561_v24 = vsel %vm1733_vm6, %v9552_v23, %v9554_v20  ;;  %v28424_v20 = vld [vmem:[%s31952_s3 + $0x70] sm:$0xff] }
 0x440   : > { %22240 = vmatprep.subr.msk.mxu0 %vm9063_vm0, %v27976_v47 }
 0x442   : > { %22236 = vmatmul.mubr.msk.f32.gmra.mrb[10].mxu0 %vm9056_vm2, %v22228_v11  ;;  %v28117_v22 = vpop.permute.xlu0 %9559  ;;  %v9826_v27 = vpop.permute.xlu1 %9825 }
 0x443   : > { %24019 = vmatprep.mubr.msk.f32.mxu0 %vm9056_vm2, %v22227_v62 }
 0x445   : > { %v28070_v16 = vld [vmem:[#allocation3 + $0x28] sm:$0x3f] }
 0x446   : > { %24020 = vmatmul.mubr.msk.f32.vlgmr.msra.gmra.mrb[12].mxu0 %vm9056_vm2, %v22228_v11  ;;  %10666 = vrot.lane.b32.xlu0 %v28070_v16, %s26922_s14  ;;  %v28137_v26 = vpop.permute.xlu0 %9827  ;;  %v9824_v31 = vpop.permute.xlu1 %9823  ;;  %v28323_v47 = vld [vmem:[#allocation3 + $0x28] sm:$0x3f]  ;;  %v28398_v11 = vld [vmem:[%s31952_s3 + $0x68] sm:$0xff] }
 0x447   : > { %22241 = vmatpush1.msk.msra.mxu0 %vm9063_vm0, %v27982_v49  ;;  %10391 = vrot.lane.b32.xlu1 %v28070_v16, %s26920_s19  ;;  %v9835_v28 = vsel %vm9833_vm7, %v9826_v27, %v28137_v26  ;;  %v9834_v3 = vsel %vm9833_vm7, %v9824_v31, %v9826_v27  ;;  %v28439_v27 = vld [vmem:[%s31952_s3 + $0x78] sm:$0xff] }
 0x448   : > { %22244 = vmatprep.subr.msk.mxu0 %vm9063_vm0, %v27988_v50  ;;  %9383 = vmatprep.mubr.f32.mxu0 %v26909_v0 }
 0x44a   : > { %22242 = vmatmul.mubr.msk.f32.vlgmr.msra.gmra.mrb[4].mxu0 %vm9056_vm2, %v9027_v17  ;;  %10935 = vrot.lane.b32.xlu0 %v28025_v54, %s26924_s29  ;;  %v28159_v30 = vpop.permute.xlu0 %9831  ;;  %v10099_v32 = vpop.permute.xlu1 %10098 }
 0x44b   : > { %22245 = vmatpush1.msk.msra.mxu0 %vm9063_vm0, %v27980_v48  ;;  %10660 = vrot.lane.b32.xlu1 %v28025_v54, %s26922_s14  ;;  %v28331_v48 = vld [vmem:[#allocation3 + $0x30] sm:$0x3f] }
 0x44c   : > { %24022 = vmatprep.subr.msk.mxu0 %vm9063_vm0, %v27990_v51  ;;  %9389 = vmatprep.mubr.f32.mxu0 %v26909_v0 }
 0x44e   : > { %22243 = vmatmul.mubr.msk.f32.gmra.mrb[6].mxu0 %vm9056_vm2, %v9028_v18  ;;  %10939 = vrot.lane.b32.xlu0 %v28033_v56, %s26924_s29  ;;  %v28182_v1 = vpop.permute.xlu0 %10100  ;;  %v10097_v35 = vpop.permute.xlu1 %10096 }
 0x44f   : > { %10664 = vrot.lane.b32.xlu1 %v28033_v56, %s26922_s14  ;;  %9460 = vmatprep.mubr.f32.mxu0 %v26909_v0  ;;  %v10108_v2 = vsel %vm10106_vm9, %v10099_v32, %v28182_v1  ;;  %v10107_v4 = vsel %vm10106_vm9, %v10097_v35, %v10099_v32 }
 0x452   : > { %22246 = vmatmul.mubr.msk.f32.vlgmr.msra.gmra.mrb[8].mxu0 %vm9056_vm2, %v9027_v17  ;;  %11208 = vrot.lane.b32.xlu0 %v28019_v53, %s26933_s21  ;;  %v28206_v5 = vpop.permute.xlu0 %10104  ;;  %v10384_v37 = vpop.permute.xlu1 %10383 }
 0x453   : > { %24023 = vmatpush3.msk.msra.mxu0 %vm9063_vm0, %v27990_v51  ;;  %10933 = vrot.lane.b32.xlu1 %v28019_v53, %s26924_s29 }
 0x454   : > { %22253 = vmatprep.subr.msk.mxu0 %vm9063_vm0, %v9562_v21  ;;  %9466 = vmatprep.mubr.f32.mxu0 %v26909_v0 }
 0x456   : > { %22247 = vmatmul.mubr.msk.f32.gmra.mrb[10].mxu0 %vm9056_vm2, %v9028_v18  ;;  %11206 = vrot.lane.b32.xlu0 %v28027_v55, %s26933_s21  ;;  %v28229_v36 = vpop.permute.xlu0 %10385  ;;  %v10382_v40 = vpop.permute.xlu1 %10381 }
 0x457   : > { %10931 = vrot.lane.b32.xlu1 %v28027_v55, %s26924_s29  ;;  %24024 = vmatprep.mubr.msk.f32.mxu0 %vm9056_vm2, %v9027_v17  ;;  %v10394_v38 = vsel %vm3802_vm12, %v10384_v37, %v28229_v36  ;;  %v10393_v41 = vsel %vm3802_vm12, %v10382_v40, %v10384_v37 }
 0x45a   : > { %24025 = vmatmul.mubr.msk.f32.vlgmr.msra.gmra.mrb[12].mxu0 %vm9056_vm2, %v9028_v18  ;;  %11216 = vrot.lane.b32.xlu0 %v28070_v16, %s26933_s21  ;;  %v28335_v49 = vpop.permute.xlu0 %10389 }
 0x45b   : > { %10941 = vrot.lane.b32.xlu1 %v28070_v16, %s26924_s29  ;;  %22254 = vmatpush1.msk.msra.mxu0 %vm9063_vm0, %v9561_v24 }
 0x45c   : > { %24027 = vmatprep.subr.msk.mxu0 %vm9063_vm0, %v28117_v22  ;;  %9645 = vmatprep.mubr.f32.mxu0 %v26909_v0 }
 0x45e   : > { %11486 = vrot.lane.b32.xlu0 %v28025_v54, %s26934_s28  ;;  %22255 = vmatmul.mubr.msk.f32.vlgmr.msra.gmra.mrb[4].mxu0 %vm9056_vm2, %v28135_v25 }
 0x45f   : > { %11210 = vrot.lane.b32.xlu1 %v28025_v54, %s26933_s21  ;;  %24028 = vmatpush3.msk.msra.mxu0 %vm9063_vm0, %v28117_v22 }
 0x460   : > { %22266 = vmatprep.subr.msk.mxu0 %vm9063_vm0, %v9835_v28  ;;  %9651 = vmatprep.mubr.f32.mxu0 %v26909_v0 }
 0x462   : > { %9557 = vrot.lane.b32.xlu0 %v27988_v50, %s26913_s26  ;;  %22256 = vmatmul.mubr.msk.f32.gmra.mrb[6].mxu0 %vm9056_vm2, %v28155_v29 }
 0x463   : > { %11214 = vrot.lane.b32.xlu1 %v28033_v56, %s26933_s21  ;;  %24029 = vmatprep.mubr.msk.f32.mxu0 %vm9056_vm2, %v28135_v25 }
 0x466   : > { %11492 = vrot.lane.b32.xlu0 %v28070_v16, %s26934_s28  ;;  %24030 = vmatmul.mubr.msk.f32.vlgmr.msra.gmra.mrb[12].mxu0 %vm9056_vm2, %v28155_v29 }
 0x467   : > { %11484 = vrot.lane.b32.xlu1 %v28019_v53, %s26934_s28  ;;  %22267 = vmatpush1.msk.msra.mxu0 %vm9063_vm0, %v9834_v3 }
 0x468   : > { %24032 = vmatprep.subr.msk.mxu0 %vm9063_vm0, %v28159_v30  ;;  %9918 = vmatprep.mubr.f32.mxu0 %v26909_v0 }
 0x46a   : > { %10102 = vrot.lane.b32.xlu0 %v27988_v50, %s26932_s27  ;;  %22268 = vmatmul.mubr.msk.f32.vlgmr.msra.gmra.mrb[4].mxu0 %vm9056_vm2, %v28180_v6 }
 0x46b   : > { %11482 = vrot.lane.b32.xlu1 %v28027_v55, %s26934_s28  ;;  %24033 = vmatpush3.msk.msra.mxu0 %vm9063_vm0, %v28159_v30 }
 0x46c   : > { %22279 = vmatprep.subr.msk.mxu0 %vm9063_vm0, %v10108_v2  ;;  %9924 = vmatprep.mubr.f32.mxu0 %v26909_v0 }
 0x46e   : > { %12020 = vrot.lane.b32.xlu0 %v28204_v34, %s26911_s24  ;;  %22269 = vmatmul.mubr.msk.f32.gmra.mrb[6].mxu0 %vm9056_vm2, %v28200_v33 }
 0x46f   : > { %11490 = vrot.lane.b32.xlu1 %v28033_v56, %s26934_s28  ;;  %24034 = vmatprep.mubr.msk.f32.mxu0 %vm9056_vm2, %v28180_v6 }
 0x472   : > { %10387 = vrot.lane.b32.xlu0 %v28204_v34, %s26920_s19  ;;  %24035 = vmatmul.mubr.msk.f32.vlgmr.msra.gmra.mrb[12].mxu0 %vm9056_vm2, %v28200_v33 }
 0x473   : > { %9829 = vrot.lane.b32.xlu1 %v27988_v50, %s26931_s23  ;;  %22280 = vmatpush1.msk.msra.mxu0 %vm9063_vm0, %v10107_v4  ;;  %v10659_v50 = vpop.permute.xlu0 %10658 }
 0x474   : > { %24037 = vmatprep.subr.msk.mxu0 %vm9063_vm0, %v28206_v5  ;;  %10191 = vmatprep.mubr.f32.mxu0 %v26909_v0 }
 0x476   : > { %12290 = vrot.lane.b32.xlu0 %v28025_v54, %s26913_s26  ;;  %22281 = vmatmul.mubr.msk.f32.vlgmr.msra.gmra.mrb[4].mxu0 %vm9056_vm2, %v28227_v9 }
 0x477   : > { %12018 = vrot.lane.b32.xlu1 %v28025_v54, %s26911_s24  ;;  %24038 = vmatpush3.msk.msra.mxu0 %vm9063_vm0, %v28206_v5  ;;  %v10657_v51 = vpop.permute.xlu0 %10656 }
 0x478   : > { %22292 = vmatprep.subr.msk.mxu0 %vm9063_vm0, %v10394_v38  ;;  %10197 = vmatprep.mubr.f32.mxu0 %v26909_v0  ;;  %v10668_v62 = vsel %vm4492_vm14, %v10657_v51, %v10659_v50 }
 0x47a   : > { %12288 = vrot.lane.b32.xlu0 %v28019_v53, %s26913_s26  ;;  %22282 = vmatmul.mubr.msk.f32.gmra.mrb[6].mxu0 %vm9056_vm2, %v28247_v39 }
 0x47b   : > { %12016 = vrot.lane.b32.xlu1 %v28019_v53, %s26911_s24  ;;  %24039 = vmatprep.mubr.msk.f32.mxu0 %vm9056_vm2, %v28227_v9 }
 0x47e   : > { %12562 = vrot.lane.b32.xlu0 %v28025_v54, %s26931_s23  ;;  %24040 = vmatmul.mubr.msk.f32.vlgmr.msra.gmra.mrb[12].mxu0 %vm9056_vm2, %v28247_v39 }
 0x47f   : > { %12024 = vrot.lane.b32.xlu1 %v28070_v16, %s26911_s24  ;;  %22293 = vmatpush1.msk.msra.mxu0 %vm9063_vm0, %v10393_v41 }
 0x480   : > { %10478 = vmatprep.mubr.f32.mxu0 %v26909_v0 }
 0x482   : > { %12296 = vrot.lane.b32.xlu0 %v28070_v16, %s26913_s26  ;;  %22294 = vmatmul.mubr.msk.f32.vlgmr.msra.gmra.mrb[4].mxu0 %vm9056_vm2, %v28270_v42 }
 0x483   : > { %12292 = vrot.lane.b32.xlu1 %v28204_v34, %s26913_s26  ;;  %10484 = vmatprep.mubr.f32.mxu0 %v26909_v0 }
 0x486   : > { %12560 = vrot.lane.b32.xlu0 %v28019_v53, %s26931_s23  ;;  %22295 = vmatmul.mubr.msk.f32.gmra.mrb[6].mxu0 %vm9056_vm2, %v28283_v43 }
 0x487   : > { %10662 = vrot.lane.b32.xlu1 %v28204_v34, %s26922_s14  ;;  %24044 = vmatprep.mubr.msk.f32.mxu0 %vm9056_vm2, %v28270_v42 }
 0x48a   : > { %12836 = vrot.lane.b32.xlu0 %v28204_v34, %s26932_s27 }
 0x48b   : > { %10937 = vrot.lane.b32.xlu1 %v28204_v34, %s26924_s29 }
 0x48e   : > { %12568 = vrot.lane.b32.xlu0 %v28070_v16, %s26931_s23 }
 0x48f   : > { %12564 = vrot.lane.b32.xlu1 %v28204_v34, %s26931_s23 }
 0x492   : > { %11488 = vrot.lane.b32.xlu0 %v28204_v34, %s26934_s28 }
 0x493   : > { %11212 = vrot.lane.b32.xlu1 %v28204_v34, %s26933_s21 }
 0x496   : > { %13118 = vrot.lane.b32.xlu0 %v28305_v44, %s26920_s19 }
 0x497   : > { %12834 = vrot.lane.b32.xlu1 %v28025_v54, %s26932_s27 }
 0x49a   : > { %13116 = vrot.lane.b32.xlu0 %v28311_v45, %s26920_s19 }
 0x49b   : > { %12832 = vrot.lane.b32.xlu1 %v28019_v53, %s26932_s27 }
 0x49e   : > { %13393 = vrot.lane.b32.xlu0 %v28305_v44, %s26922_s14 }
 0x49f   : > { %13120 = vrot.lane.b32.xlu1 %v28319_v46, %s26920_s19 }
 0x4a2   : > { %13124 = vrot.lane.b32.xlu0 %v28323_v47, %s26920_s19 }
 0x4a3   : > { %12840 = vrot.lane.b32.xlu1 %v28070_v16, %s26932_s27 }
 0x4a6   : > { %13391 = vrot.lane.b32.xlu0 %v28311_v45, %s26922_s14 }
 0x4a7   : > { %13126 = vrot.lane.b32.xlu1 %v28331_v48, %s26920_s19 }
 0x4aa   : > { %13670 = vrot.lane.b32.xlu0 %v28319_v46, %s26924_s29 }
 0x4ab   : > { %12022 = vrot.lane.b32.xlu1 %v28033_v56, %s26911_s24 }
 0x4ae   : > { %13399 = vrot.lane.b32.xlu0 %v28323_v47, %s26922_s14 }
 0x4af   : > { %13395 = vrot.lane.b32.xlu1 %v28319_v46, %s26922_s14 }
 0x4b2   : > { %12566 = vrot.lane.b32.xlu0 %v28033_v56, %s26931_s23 }
 0x4b3   : > { %12294 = vrot.lane.b32.xlu1 %v28033_v56, %s26913_s26 }
 0x4b6   : > { %13676 = vrot.lane.b32.xlu0 %v28331_v48, %s26924_s29 }
 0x4b7   : > { %13401 = vrot.lane.b32.xlu1 %v28331_v48, %s26922_s14 }
 0x4b8   : > { %v10667_v52 = vpop.permute.xlu0 %10666 }
 0x4b9   : > { %v10392_v55 = vpop.permute.xlu1 %10391 }
 0x4ba   : > { %v10397_v57 = vsel %vm3802_vm12, %v28335_v49, %v10392_v55  ;;  %12838 = vrot.lane.b32.xlu0 %v28033_v56, %s26932_s27 }
 0x4bb   : > { %13668 = vrot.lane.b32.xlu1 %v28305_v44, %s26924_s29  ;;  %24042 = vmatprep.subr.msk.mxu0 %vm9063_vm0, %v10397_v57 }
 0x4bc   : > { %24043 = vmatpush3.msk.msra.mxu0 %vm9063_vm0, %v10397_v57  ;;  %v28361_v58 = vpop.permute.xlu0 %10935 }
 0x4bd   : > { %v28363_v59 = vpop.permute.xlu1 %10660  ;;  %24045 = vmatmul.mubr.msk.f32.vlgmr.msra.gmra.mrb[12].mxu0 %vm9056_vm2, %v28283_v43 }
 0x4be   : > { %13945 = vrot.lane.b32.xlu0 %v28319_v46, %s26933_s21  ;;  %v10669_v60 = vsel %vm4492_vm14, %v10659_v50, %v28363_v59  ;;  %10753 = vmatprep.mubr.f32.mxu0 %v26909_v0 }
 0x4bf   : > { %13666 = vrot.lane.b32.xlu1 %v28311_v45, %s26924_s29  ;;  %22305 = vmatprep.subr.msk.mxu0 %vm9063_vm0, %v10669_v60 }
 0x4c0   : > { %22306 = vmatpush1.msk.msra.mxu0 %vm9063_vm0, %v10668_v62  ;;  %v28382_v63 = vpop.permute.xlu0 %10939 }
 0x4c1   : > { %v28384_v7 = vpop.permute.xlu1 %10664  ;;  %22307 = vmatmul.mubr.msk.f32.vlgmr.msra.gmra.mrb[4].mxu0 %vm9056_vm2, %v28375_v61 }
 0x4c2   : > { %13122 = vrot.lane.b32.xlu0 %v28388_v8, %s26920_s19  ;;  %v10672_v10 = vsel %vm4492_vm14, %v28384_v7, %v10667_v52  ;;  %10759 = vmatprep.mubr.f32.mxu0 %v26909_v0 }
 0x4c3   : > { %13943 = vrot.lane.b32.xlu1 %v28305_v44, %s26933_s21  ;;  %24047 = vmatprep.subr.msk.mxu0 %vm9063_vm0, %v10672_v10 }
 0x4c4   : > { %24048 = vmatpush3.msk.msra.mxu0 %vm9063_vm0, %v10672_v10  ;;  %v11209_v12 = vpop.permute.xlu0 %11208 }
 0x4c5   : > { %v10934_v13 = vpop.permute.xlu1 %10933  ;;  %22308 = vmatmul.mubr.msk.f32.gmra.mrb[6].mxu0 %vm9056_vm2, %v28398_v11 }
 0x4c6   : > { %13951 = vrot.lane.b32.xlu0 %v28331_v48, %s26933_s21  ;;  %v10944_v14 = vsel %vm5182_vm8, %v10934_v13, %v28361_v58  ;;  %24049 = vmatprep.mubr.msk.f32.mxu0 %vm9056_vm2, %v28375_v61 }
 0x4c7   : > { %13674 = vrot.lane.b32.xlu1 %v28323_v47, %s26924_s29  ;;  %22318 = vmatprep.subr.msk.mxu0 %vm9063_vm0, %v10944_v14 }
 0x4c8   : > { %v11207_v15 = vpop.permute.xlu0 %11206 }
 0x4c9   : > { %v10932_v17 = vpop.permute.xlu1 %10931  ;;  %24050 = vmatmul.mubr.msk.f32.vlgmr.msra.gmra.mrb[12].mxu0 %vm9056_vm2, %v28398_v11  ;;  %v11219_v2 = vsel %vm11218_vm10, %v11207_v15, %v11209_v12 }
 0x4ca   : > { %v10943_v18 = vsel %vm5182_vm8, %v10932_v17, %v10934_v13  ;;  %14218 = vrot.lane.b32.xlu0 %v28305_v44, %s26934_s28  ;;  %11028 = vmatprep.mubr.f32.mxu0 %v26909_v0 }
 0x4cb   : > { %13941 = vrot.lane.b32.xlu1 %v28311_v45, %s26933_s21  ;;  %22319 = vmatpush1.msk.msra.mxu0 %vm9063_vm0, %v10943_v18 }
 0x4cc   : > { %v11217_v21 = vpop.permute.xlu0 %11216 }
 0x4cd   : > { %v10942_v23 = vpop.permute.xlu1 %10941  ;;  %22320 = vmatmul.mubr.msk.f32.vlgmr.msra.gmra.mrb[4].mxu0 %vm9056_vm2, %v28424_v20 }
 0x4ce   : > { %v10947_v24 = vsel %vm5182_vm8, %v28382_v63, %v10942_v23  ;;  %14216 = vrot.lane.b32.xlu0 %v28311_v45, %s26934_s28  ;;  %11034 = vmatprep.mubr.f32.mxu0 %v26909_v0  ;;  %v28499_v45 = vld [vmem:[%s31952_s3 + $0x88] sm:$0xff] }
 0x4cf   : > { %13949 = vrot.lane.b32.xlu1 %v28323_v47, %s26933_s21  ;;  %24052 = vmatprep.subr.msk.mxu0 %vm9063_vm0, %v10947_v24 }
 0x4d0   : > { %24053 = vmatpush3.msk.msra.mxu0 %vm9063_vm0, %v10947_v24  ;;  %v28445_v28 = vpop.permute.xlu0 %11486 }
 0x4d1   : > { %v28447_v31 = vpop.permute.xlu1 %11210  ;;  %22321 = vmatmul.mubr.msk.f32.gmra.mrb[6].mxu0 %vm9056_vm2, %v28439_v27 }
 0x4d2   : > { %14224 = vrot.lane.b32.xlu0 %v28323_v47, %s26934_s28  ;;  %v11220_v3 = vsel %vm11218_vm10, %v11209_v12, %v28447_v31  ;;  %24054 = vmatprep.mubr.msk.f32.mxu0 %vm9056_vm2, %v28424_v20 }
 0x4d3   : > { %13397 = vrot.lane.b32.xlu1 %v28388_v8, %s26922_s14  ;;  %22331 = vmatprep.subr.msk.mxu0 %vm9063_vm0, %v11220_v3 }
 0x4d4   : > { %v9558_v32 = vpop.permute.xlu0 %9557 }
 0x4d5   : > { %v28461_v35 = vpop.permute.xlu1 %11214  ;;  %24055 = vmatmul.mubr.msk.f32.vlgmr.msra.gmra.mrb[12].mxu0 %vm9056_vm2, %v28439_v27  ;;  %v9563_v4 = vsel %vm1733_vm6, %v28104_v19, %v9558_v32  ;;  %v9564_v37 = vsel %vm1733_vm6, %v9558_v32, %v28117_v22  ;;  %v28480_v19 = vld [vmem:[%s31952_s3 + $0x80] sm:$0xff] }
 0x4d6   : > { %22332 = vmatpush1.msk.msra.mxu0 %vm9063_vm0, %v11219_v2  ;;  %13947 = vrot.lane.b32.xlu0 %v28388_v8, %s26933_s21  ;;  %v11223_v38 = vsel %vm11218_vm10, %v28461_v35, %v11217_v21 }
 0x4d7   : > { %14220 = vrot.lane.b32.xlu1 %v28319_v46, %s26934_s28  ;;  %22257 = vmatprep.subr.msk.mxu1 %vm9063_vm0, %v9564_v37 }
 0x4d8   : > { %24057 = vmatprep.subr.msk.mxu0 %vm9063_vm0, %v11223_v38  ;;  %22258 = vmatpush1.msk.msra.mxu1 %vm9063_vm0, %v9563_v4  ;;  %v11493_v22 = vpop.permute.xlu0 %11492 }
 0x4d9   : > { %11304 = vmatprep.mubr.f32.mxu0 %v26909_v0  ;;  %v11485_v40 = vpop.permute.xlu1 %11484  ;;  %22259 = vmatmul.mubr.msk.f32.vlgmr.msra.gmra.mrb[52].mxu1 %vm9056_vm2, %v28135_v25 }
 0x4da   : > { %22333 = vmatmul.mubr.msk.f32.vlgmr.msra.gmra.mrb[4].mxu0 %vm9056_vm2, %v28480_v19  ;;  %14751 = vrot.lane.b32.xlu0 %v28319_v46, %s26911_s24  ;;  %v11496_v41 = vsel %vm11494_vm11, %v11485_v40, %v28445_v28 }
 0x4db   : > { %24058 = vmatpush3.msk.msra.mxu0 %vm9063_vm0, %v11223_v38  ;;  %13672 = vrot.lane.b32.xlu1 %v28388_v8, %s26924_s29 }
 0x4dc   : > { %22344 = vmatprep.subr.msk.mxu0 %vm9063_vm0, %v11496_v41  ;;  %11310 = vmatprep.mubr.f32.mxu0 %v26909_v0  ;;  %v10103_v25 = vpop.permute.xlu0 %10102 }
 0x4dd   : > { %v11483_v50 = vpop.permute.xlu1 %11482  ;;  %9728 = vmatprep.mubr.f32.mxu1 %v26909_v0  ;;  %v10110_v14 = vsel %vm10106_vm9, %v10103_v25, %v28206_v5 }
 0x4de   : > { %22334 = vmatmul.mubr.msk.f32.gmra.mrb[6].mxu0 %vm9056_vm2, %v28499_v45  ;;  %14749 = vrot.lane.b32.xlu0 %v28305_v44, %s26911_s24  ;;  %v11495_v55 = vsel %vm11494_vm11, %v11483_v50, %v11485_v40 }
 0x4df   : > { %14226 = vrot.lane.b32.xlu1 %v28331_v48, %s26934_s28  ;;  %24059 = vmatprep.mubr.msk.f32.mxu0 %vm9056_vm2, %v28480_v19 }
 0x4e0   : > { %v28512_v51 = vpop.permute.xlu0 %12020  ;;  %22260 = vmatmul.mubr.msk.f32.gmra.mrb[54].mxu1 %vm9056_vm2, %v28155_v29  ;;  %v28532_v29 = vld [vmem:[%s31952_s3 + $0x90] sm:$0xff] }
 0x4e1   : > { %v28516_v52 = vpop.permute.xlu1 %11490  ;;  %9995 = vmatprep.mubr.f32.mxu1 %v26909_v0 }
 0x4e2   : > { %24060 = vmatmul.mubr.msk.f32.vlgmr.msra.gmra.mrb[12].mxu0 %vm9056_vm2, %v28499_v45  ;;  %15023 = vrot.lane.b32.xlu0 %v28319_v46, %s26913_s26  ;;  %v11499_v57 = vsel %vm11494_vm11, %v28516_v52, %v11493_v22 }
 0x4e3   : > { %22345 = vmatpush1.msk.msra.mxu0 %vm9063_vm0, %v11495_v55  ;;  %14222 = vrot.lane.b32.xlu1 %v28388_v8, %s26934_s28 }
 0x4e4   : > { %24062 = vmatprep.subr.msk.mxu0 %vm9063_vm0, %v11499_v57  ;;  %11580 = vmatprep.mubr.f32.mxu0 %v26909_v0  ;;  %v10388_v60 = vpop.permute.xlu0 %10387 }
 0x4e5   : > { %v9830_v62 = vpop.permute.xlu1 %9829  ;;  %v10396_v5 = vsel %vm3802_vm12, %v10388_v60, %v28335_v49  ;;  %v28593_v49 = vld [vmem:[%s31952_s3 + $0xa0] sm:$0xff] }
 0x4e6   : > { %v9836_v10 = vsel %vm9833_vm7, %v28137_v26, %v9830_v62  ;;  %22346 = vmatmul.mubr.msk.f32.vlgmr.msra.gmra.mrb[4].mxu0 %vm9056_vm2, %v28532_v29  ;;  %15021 = vrot.lane.b32.xlu0 %v28305_v44, %s26913_s26  ;;  %v9837_v12 = vsel %vm9833_vm7, %v9830_v62, %v28159_v30  ;;  %v28553_v26 = vld [vmem:[%s31952_s3 + $0x98] sm:$0xff] }
 0x4e7   : > { %24063 = vmatpush3.msk.msra.mxu0 %vm9063_vm0, %v11499_v57  ;;  %14753 = vrot.lane.b32.xlu1 %v28388_v8, %s26911_s24 }
 0x4e8   : > { %22357 = vmatprep.subr.msk.mxu0 %vm9063_vm0, %v28025_v54  ;;  %22270 = vmatprep.subr.msk.mxu1 %vm9063_vm0, %v9837_v12  ;;  %v28555_v13 = vpop.permute.xlu0 %12290  ;;  %v10109_v54 = vsel %vm10106_vm9, %v28182_v1, %v10103_v25  ;;  %v28794_v12 = vld [vmem:[%s31952_s3 + $0xd0] sm:$0xff] }
 0x4e9   : > { %22271 = vmatpush1.msk.msra.mxu1 %vm9063_vm0, %v9836_v10  ;;  %11586 = vmatprep.mubr.f32.mxu0 %v26909_v0  ;;  %v12019_v30 = vpop.permute.xlu1 %12018 }
 0x4ea   : > { %22272 = vmatmul.mubr.msk.f32.vlgmr.msra.gmra.mrb[52].mxu1 %vm9056_vm2, %v28180_v6  ;;  %22283 = vmatprep.subr.msk.mxu1 %vm9063_vm0, %v10110_v14  ;;  %v12027_v17 = vsel %vm1051_vm4, %v12019_v30, %v28512_v51 }
 0x4eb   : > { %22347 = vmatmul.mubr.msk.f32.gmra.mrb[6].mxu0 %vm9056_vm2, %v28553_v26  ;;  %22284 = vmatpush1.msk.msra.mxu1 %vm9063_vm0, %v10109_v54 }
 0x4ec   : > { %14757 = vrot.lane.b32.xlu1 %v28331_v48, %s26911_s24  ;;  %15029 = vrot.lane.b32.xlu0 %v28331_v48, %s26913_s26  ;;  %v28575_v1 = vpop.permute.xlu0 %12288 }
 0x4ed   : > { %22296 = vmatprep.subr.msk.mxu1 %vm9063_vm0, %v10396_v5  ;;  %10001 = vmatprep.mubr.f32.mxu1 %v26909_v0  ;;  %v12017_v6 = vpop.permute.xlu1 %12016  ;;  %v28848_v5 = vld [vmem:[%s31952_s3 + $0xe0] sm:$0xff] }
 0x4ee   : > { %24064 = vmatprep.mubr.msk.f32.mxu0 %vm9056_vm2, %v28532_v29  ;;  %22273 = vmatmul.mubr.msk.f32.gmra.mrb[54].mxu1 %vm9056_vm2, %v28200_v33  ;;  %v12026_v23 = vsel %vm1051_vm4, %v12017_v6, %v12019_v30 }
 0x4ef   : > { %24065 = vmatmul.mubr.msk.f32.vlgmr.msra.gmra.mrb[12].mxu0 %vm9056_vm2, %v28553_v26  ;;  %10268 = vmatprep.mubr.f32.mxu1 %v26909_v0 }
 0x4f0   : > { %22358 = vmatpush1.msk.msra.mxu0 %vm9063_vm0, %v28019_v53  ;;  %15025 = vrot.lane.b32.xlu1 %v28388_v8, %s26913_s26  ;;  %v28595_v15 = vpop.permute.xlu0 %12562  ;;  %v10395_v53 = vsel %vm3802_vm12, %v28229_v36, %v10388_v60  ;;  %v28620_v36 = vld [vmem:[%s31952_s3 + $0xa8] sm:$0xff] }
 0x4f1   : > { %24067 = vmatprep.subr.msk.mxu0 %vm9063_vm0, %v28070_v16  ;;  %15295 = vrot.lane.b32.xlu0 %v28319_v46, %s26931_s23  ;;  %v28601_v33 = vpop.permute.xlu1 %12024 }
 0x4f2   : > { %11838 = vmatprep.mubr.f32.mxu0 %v26909_v0  ;;  %22285 = vmatmul.mubr.msk.f32.vlgmr.msra.gmra.mrb[52].mxu1 %vm9056_vm2, %v28227_v9 }
 0x4f3   : > { %22297 = vmatpush1.msk.msra.mxu1 %vm9063_vm0, %v10395_v53  ;;  %22359 = vmatmul.mubr.msk.f32.vlgmr.msra.gmra.mrb[4].mxu0 %vm9056_vm2, %v28593_v49 }
 0x4f4   : > { %24068 = vmatpush3.msk.msra.mxu0 %vm9063_vm0, %v28070_v16  ;;  %14755 = vrot.lane.b32.xlu1 %v28323_v47, %s26911_s24  ;;  %v28622_v9 = vpop.permute.xlu0 %12296 }
 0x4f5   : > { %22370 = vmatprep.subr.msk.mxu0 %vm9063_vm0, %v12027_v17  ;;  %15293 = vrot.lane.b32.xlu0 %v28305_v44, %s26931_s23  ;;  %v28627_v18 = vpop.permute.xlu1 %12292 }
 0x4f6   : > { %10274 = vmatprep.mubr.f32.mxu1 %v26909_v0  ;;  %11844 = vmatprep.mubr.f32.mxu0 %v26909_v0  ;;  %v12299_v2 = vsel %vm1733_vm6, %v28555_v13, %v28627_v18 }
 0x4f7   : > { %22286 = vmatmul.mubr.msk.f32.gmra.mrb[54].mxu1 %vm9056_vm2, %v28247_v39  ;;  %22360 = vmatmul.mubr.msk.f32.gmra.mrb[6].mxu0 %vm9056_vm2, %v28620_v36 }
 0x4f8   : > { %15027 = vrot.lane.b32.xlu1 %v28323_v47, %s26913_s26  ;;  %10555 = vmatprep.mubr.f32.mxu1 %v26909_v0  ;;  %v28638_v16 = vpop.permute.xlu0 %12560 }
 0x4f9   : > { %15301 = vrot.lane.b32.xlu0 %v28331_v48, %s26931_s23  ;;  %24069 = vmatprep.mubr.msk.f32.mxu0 %vm9056_vm2, %v28593_v49  ;;  %v10663_v21 = vpop.permute.xlu1 %10662  ;;  %v12570_v62 = vsel %vm9833_vm7, %v28638_v16, %v28595_v15 }
 0x4fa   : > { %v10671_v39 = vsel %vm4492_vm14, %v10663_v21, %v28384_v7  ;;  %v10670_v24 = vsel %vm4492_vm14, %v28363_v59, %v10663_v21  ;;  %v28665_v7 = vld [vmem:[%s31952_s3 + $0xb0] sm:$0xff] }
 0x4fb   : > { %22298 = vmatmul.mubr.msk.f32.vlgmr.msra.gmra.mrb[52].mxu1 %vm9056_vm2, %v28270_v42  ;;  %24070 = vmatmul.mubr.msk.f32.vlgmr.msra.gmra.mrb[12].mxu0 %vm9056_vm2, %v28620_v36 }
 0x4fc   : > { %22371 = vmatpush1.msk.msra.mxu0 %vm9063_vm0, %v12026_v23  ;;  %15297 = vrot.lane.b32.xlu1 %v28388_v8, %s26931_s23  ;;  %v28656_v3 = vpop.permute.xlu0 %12836 }
 0x4fd   : > { %24072 = vmatprep.subr.msk.mxu0 %vm9063_vm0, %v28601_v33  ;;  %15569 = vrot.lane.b32.xlu0 %v28388_v8, %s26932_s27  ;;  %v10938_v42 = vpop.permute.xlu1 %10937 }
 0x4fe   : > { %22309 = vmatprep.subr.msk.mxu1 %vm9063_vm0, %v10671_v39  ;;  %10561 = vmatprep.mubr.f32.mxu1 %v26909_v0  ;;  %v10946_v59 = vsel %vm5182_vm8, %v10938_v42, %v28382_v63  ;;  %v15834_v63 = vld [vmem:[%s31953_s4] sm:$0xff]  ;;  %v10945_v37 = vsel %vm5182_vm8, %v28361_v58, %v10938_v42 }
 0x4ff   : > { %22310 = vmatpush1.msk.msra.mxu1 %vm9063_vm0, %v10670_v24  ;;  %12110 = vmatprep.mubr.f32.mxu0 %v26909_v0 }
 0x500   : > { %22299 = vmatmul.mubr.msk.f32.gmra.mrb[54].mxu1 %vm9056_vm2, %v28283_v43  ;;  %22372 = vmatmul.mubr.msk.f32.vlgmr.msra.gmra.mrb[4].mxu0 %vm9056_vm2, %v28665_v7  ;;  %v28677_v32 = vpop.permute.xlu0 %12568  ;;  %v28694_v43 = vld [vmem:[%s31952_s3 + $0xb8] sm:$0xff] }
 0x501   : > { %24073 = vmatpush3.msk.msra.mxu0 %vm9063_vm0, %v28601_v33  ;;  %15567 = vrot.lane.b32.xlu1 %v28319_v46, %s26932_s27  ;;  %v28686_v4 = vpop.permute.xlu1 %12564 }
 0x502   : > { %22383 = vmatprep.subr.msk.mxu0 %vm9063_vm0, %v12299_v2  ;;  %15571 = vrot.lane.b32.xlu0 %v28323_v47, %s26932_s27 }
 0x503   : > { %22322 = vmatprep.subr.msk.mxu1 %vm9063_vm0, %v10946_v59  ;;  %10830 = vmatprep.mubr.f32.mxu1 %v26909_v0 }
 0x504   : > { %12116 = vmatprep.mubr.f32.mxu0 %v26909_v0  ;;  %22311 = vmatmul.mubr.msk.f32.vlgmr.msra.gmra.mrb[52].mxu1 %vm9056_vm2, %v28375_v61  ;;  %v11489_v38 = vpop.permute.xlu0 %11488  ;;  %v12298_v61 = vsel %vm1733_vm6, %v28575_v1, %v28555_v13  ;;  %v28816_v13 = vld [vmem:[%s31952_s3 + $0xd8] sm:$0xff] }
 0x505   : > { %22323 = vmatpush1.msk.msra.mxu1 %vm9063_vm0, %v10945_v37  ;;  %22373 = vmatmul.mubr.msk.f32.gmra.mrb[6].mxu0 %vm9056_vm2, %v28694_v43  ;;  %v11213_v22 = vpop.permute.xlu1 %11212  ;;  %v11498_v50 = vsel %vm11494_vm11, %v11489_v38, %v28516_v52  ;;  %v11497_v10 = vsel %vm11494_vm11, %v28445_v28, %v11489_v38  ;;  %v28936_v37 = vld [vmem:[%s31952_s3 + $0xf8] sm:$0xff] }
 0x506   : > { %15299 = vrot.lane.b32.xlu1 %v28323_v47, %s26931_s23  ;;  %15838 = vperm.xlu0 %26712, %v15834_v63   ;;  %v11222_v40 = vsel %vm11218_vm10, %v11213_v22, %v28461_v35  ;;  %v11221_v41 = vsel %vm11218_vm10, %v28447_v31, %v11213_v22  ;;  %v28758_v31 = vld [vmem:[%s31952_s3 + $0xc8] sm:$0xff] }
 0x507   : > { %10836 = vmatprep.mubr.f32.mxu1 %v26909_v0  ;;  %24074 = vmatprep.mubr.msk.f32.mxu0 %vm9056_vm2, %v28665_v7 }
 0x508   : > { %22312 = vmatmul.mubr.msk.f32.gmra.mrb[54].mxu1 %vm9056_vm2, %v28398_v11  ;;  %22335 = vmatprep.subr.msk.mxu1 %vm9063_vm0, %v11222_v40  ;;  %v28719_v58 = vpop.permute.xlu0 %13118  ;;  %v28733_v11 = vld [vmem:[%s31952_s3 + $0xc0] sm:$0xff] }
 0x509   : > { %24075 = vmatmul.mubr.msk.f32.vlgmr.msra.gmra.mrb[12].mxu0 %vm9056_vm2, %v28694_v43  ;;  %11105 = vmatprep.mubr.f32.mxu1 %v26909_v0  ;;  %v12835_v35 = vpop.permute.xlu1 %12834 }
 0x50a   : > { %22384 = vmatpush1.msk.msra.mxu0 %vm9063_vm0, %v12298_v61  ;;  %15565 = vrot.lane.b32.xlu1 %v28305_v44, %s26932_s27 }
 0x50b   : > { %24077 = vmatprep.subr.msk.mxu0 %vm9063_vm0, %v28622_v9  ;;  %12382 = vmatprep.mubr.f32.mxu0 %v26909_v0 }
 0x50c   : > { %22324 = vmatmul.mubr.msk.f32.vlgmr.msra.gmra.mrb[52].mxu1 %vm9056_vm2, %v28424_v20  ;;  %v28742_v25 = vpop.permute.xlu0 %13116  ;;  %v12571_v20 = vsel %vm9833_vm7, %v28595_v15, %v28686_v4 }
 0x50d   : > { %22336 = vmatpush1.msk.msra.mxu1 %vm9063_vm0, %v11221_v41  ;;  %22385 = vmatmul.mubr.msk.f32.vlgmr.msra.gmra.mrb[4].mxu0 %vm9056_vm2, %v28733_v11  ;;  %v12833_v55 = vpop.permute.xlu1 %12832  ;;  %v13128_v24 = vsel %vm3802_vm12, %v28742_v25, %v28719_v58 }
 0x50e   : > { %24078 = vmatpush3.msk.msra.mxu0 %vm9063_vm0, %v28622_v9  ;;  %22348 = vmatprep.subr.msk.mxu1 %vm9063_vm0, %v11498_v50 }
 0x50f   : > { %22396 = vmatprep.subr.msk.mxu0 %vm9063_vm0, %v12571_v20  ;;  %15573 = vrot.lane.b32.xlu1 %v28331_v48, %s26932_s27 }
 0x510   : > { %11111 = vmatprep.mubr.f32.mxu1 %v26909_v0  ;;  %12388 = vmatprep.mubr.f32.mxu0 %v26909_v0  ;;  %v28765_v52 = vpop.permute.xlu0 %13393 }
 0x511   : > { %22325 = vmatmul.mubr.msk.f32.gmra.mrb[54].mxu1 %vm9056_vm2, %v28439_v27  ;;  %22386 = vmatmul.mubr.msk.f32.gmra.mrb[6].mxu0 %vm9056_vm2, %v28758_v31  ;;  %v28771_v57 = vpop.permute.xlu1 %13120 }
 0x512   : > { %11381 = vmatprep.mubr.f32.mxu1 %v26909_v0  ;;  %24079 = vmatprep.mubr.msk.f32.mxu0 %vm9056_vm2, %v28733_v11 }
 0x514   : > { %v28776_v60 = vpop.permute.xlu0 %13124 }
 0x515   : > { %22337 = vmatmul.mubr.msk.f32.vlgmr.msra.gmra.mrb[52].mxu1 %vm9056_vm2, %v28480_v19  ;;  %24080 = vmatmul.mubr.msk.f32.vlgmr.msra.gmra.mrb[12].mxu0 %vm9056_vm2, %v28758_v31  ;;  %v28787_v27 = vpop.permute.xlu1 %12840 }
 0x516   : > { %22349 = vmatpush1.msk.msra.mxu1 %vm9063_vm0, %v11497_v10  ;;  %22397 = vmatpush1.msk.msra.mxu0 %vm9063_vm0, %v12570_v62 }
 0x517   : > { %22361 = vmatprep.subr.msk.mxu1 %vm9063_vm0, %v28033_v56  ;;  %24082 = vmatprep.subr.msk.mxu0 %vm9063_vm0, %v28677_v32  ;;  %v12843_v56 = vsel %vm10106_vm9, %v12835_v35, %v28656_v3 }
 0x518   : > { %11387 = vmatprep.mubr.f32.mxu1 %v26909_v0  ;;  %12654 = vmatprep.mubr.f32.mxu0 %v26909_v0  ;;  %v28802_v28 = vpop.permute.xlu0 %13391 }
 0x519   : > { %22338 = vmatmul.mubr.msk.f32.gmra.mrb[54].mxu1 %vm9056_vm2, %v28499_v45  ;;  %22398 = vmatmul.mubr.msk.f32.vlgmr.msra.gmra.mrb[4].mxu0 %vm9056_vm2, %v28794_v12  ;;  %v13127_v19 = vpop.permute.xlu1 %13126 }
 0x51a   : > { %24083 = vmatpush3.msk.msra.mxu0 %vm9063_vm0, %v28677_v32  ;;  %11657 = vmatprep.mubr.f32.mxu1 %v26909_v0  ;;  %v13132_v59 = vsel %vm3802_vm12, %v28776_v60, %v13127_v19 }
 0x51b   : > { %22409 = vmatprep.subr.msk.mxu0 %vm9063_vm0, %v12843_v56  ;;  %12660 = vmatprep.mubr.f32.mxu0 %v26909_v0 }
 0x51c   : > { %v28820_v45 = vpop.permute.xlu0 %13670 }
 0x51d   : > { %22350 = vmatmul.mubr.msk.f32.vlgmr.msra.gmra.mrb[52].mxu1 %vm9056_vm2, %v28532_v29  ;;  %22399 = vmatmul.mubr.msk.f32.gmra.mrb[6].mxu0 %vm9056_vm2, %v28816_v13  ;;  %v12023_v30 = vpop.permute.xlu1 %12022  ;;  %v12842_v29 = vsel %vm10106_vm9, %v12833_v55, %v12835_v35 }
 0x51e   : > { %22362 = vmatpush1.msk.msra.mxu1 %vm9063_vm0, %v28204_v34  ;;  %11663 = vmatprep.mubr.f32.mxu1 %v26909_v0  ;;  %v12029_v14 = vsel %vm1051_vm4, %v12023_v30, %v28601_v33  ;;  %v12028_v1 = vsel %vm1051_vm4, %v28512_v51, %v12023_v30  ;;  %v13129_v33 = vsel %vm3802_vm12, %v28719_v58, %v28771_v57  ;;  %v22447_v30 = vld [vmem:[%s31952_s3 + $0x118] sm:$0xff] }
 0x51f   : > { %24084 = vmatprep.mubr.msk.f32.mxu0 %vm9056_vm2, %v28794_v12  ;;  %22374 = vmatprep.subr.msk.mxu1 %vm9063_vm0, %v12029_v14  ;;  %v13403_v58 = vsel %vm4492_vm14, %v28802_v28, %v28765_v52 }
 0x520   : > { %v28834_v54 = vpop.permute.xlu0 %13399 }
 0x521   : > { %22351 = vmatmul.mubr.msk.f32.gmra.mrb[54].mxu1 %vm9056_vm2, %v28553_v26  ;;  %24085 = vmatmul.mubr.msk.f32.vlgmr.msra.gmra.mrb[12].mxu0 %vm9056_vm2, %v28816_v13  ;;  %v28841_v34 = vpop.permute.xlu1 %13395 }
 0x522   : > { %22410 = vmatpush1.msk.msra.mxu0 %vm9063_vm0, %v12842_v29  ;;  %11915 = vmatprep.mubr.f32.mxu1 %v26909_v0  ;;  %v13404_v63 = vsel %vm4492_vm14, %v28765_v52, %v28841_v34 }
 0x523   : > { %24087 = vmatprep.subr.msk.mxu0 %vm9063_vm0, %v28787_v27  ;;  %12926 = vmatprep.mubr.f32.mxu0 %v26909_v0 }
 0x524   : > { %v12567_v26 = vpop.permute.xlu0 %12566 }
 0x525   : > { %22363 = vmatmul.mubr.msk.f32.vlgmr.msra.gmra.mrb[52].mxu1 %vm9056_vm2, %v28593_v49  ;;  %22411 = vmatmul.mubr.msk.f32.vlgmr.msra.gmra.mrb[4].mxu0 %vm9056_vm2, %v28848_v5  ;;  %v12295_v6 = vpop.permute.xlu1 %12294  ;;  %v28859_v15 = vpop.f32.mrb[8].mxu0  ;;  %v28872_v49 = vld [vmem:[%s31952_s3 + $0xe8] sm:$0xff]  ;;  %v12573_v2 = vsel %vm9833_vm7, %v12567_v26, %v28677_v32  ;;  %v12572_v38 = vsel %vm9833_vm7, %v28686_v4, %v12567_v26 }
 0x526   : > { %22375 = vmatpush1.msk.msra.mxu1 %vm9063_vm0, %v12028_v1  ;;  %24088 = vmatpush3.msk.msra.mxu0 %vm9063_vm0, %v28787_v27  ;;  %v12301_v51 = vsel %vm1733_vm6, %v12295_v6, %v28622_v9  ;;  %v28874_v53 = vpop.f32.mrb[9].mxu0  ;;  %v15835_v9 = vld [vmem:[%s31953_s4 + $0x8] sm:$0xff] }
 0x527   : > { %22422 = vmatprep.subr.msk.mxu0 %vm9063_vm0, %v13129_v33  ;;  %11921 = vmatprep.mubr.f32.mxu1 %v26909_v0 }
 0x528   : > { %12932 = vmatprep.mubr.f32.mxu0 %v26909_v0  ;;  %22387 = vmatprep.subr.msk.mxu1 %vm9063_vm0, %v12301_v51  ;;  %v28880_v17 = vpop.permute.xlu0 %13676 }
 0x529   : > { %22364 = vmatmul.mubr.msk.f32.gmra.mrb[54].mxu1 %vm9056_vm2, %v28620_v36  ;;  %22412 = vmatmul.mubr.msk.f32.gmra.mrb[6].mxu0 %vm9056_vm2, %v28872_v49  ;;  %v13402_v16 = vpop.permute.xlu1 %13401  ;;  %v28889_v21 = vpop.f32.mrb[10].mxu0  ;;  %v12300_v36 = vsel %vm1733_vm6, %v28627_v18, %v12295_v6  ;;  %v28916_v18 = vld [vmem:[%s31952_s3 + $0xf0] sm:$0xff]  ;;  %v22459_v6 = vld [vmem:[%s31952_s3 + $0x120] sm:$0xff] }
 0x52a   : > { %12187 = vmatprep.mubr.f32.mxu1 %v26909_v0  ;;  %24089 = vmatprep.mubr.msk.f32.mxu0 %vm9056_vm2, %v28848_v5  ;;  %v28894_v23 = vpop.f32.mrb[11].mxu0  ;;  %v13407_v35 = vsel %vm4492_vm14, %v28834_v54, %v13402_v16 }
 0x52b   : > { %15843 = vperm.xlu1 %26713, %v15835_v9  }
 0x52c   : > { %v12839_v39 = vpop.permute.xlu0 %12838 }
 0x52d   : > { %22376 = vmatmul.mubr.msk.f32.vlgmr.msra.gmra.mrb[52].mxu1 %vm9056_vm2, %v28665_v7  ;;  %24090 = vmatmul.mubr.msk.f32.vlgmr.msra.gmra.mrb[12].mxu0 %vm9056_vm2, %v28872_v49  ;;  %v28905_v42 = vpop.permute.xlu1 %13668  ;;  %v12845_v40 = vsel %vm10106_vm9, %v12839_v39, %v28787_v27  ;;  %v12844_v25 = vsel %vm10106_vm9, %v28656_v3, %v12839_v39  ;;  %v28993_v3 = vld [vmem:[%s31952_s3 + $0x108] sm:$0xff] }
 0x52e   : > { %22388 = vmatpush1.msk.msra.mxu1 %vm9063_vm0, %v12300_v36  ;;  %22423 = vmatpush1.msk.msra.mxu0 %vm9063_vm0, %v13128_v24  ;;  %v13679_v55 = vsel %vm5182_vm8, %v28905_v42, %v28820_v45 }
 0x52f   : > { %22400 = vmatprep.subr.msk.mxu1 %vm9063_vm0, %v12573_v2  ;;  %24092 = vmatprep.subr.msk.mxu0 %vm9063_vm0, %v13132_v59 }
 0x530   : > { %12193 = vmatprep.mubr.f32.mxu1 %v26909_v0  ;;  %13213 = vmatprep.mubr.f32.mxu0 %v26909_v0  ;;  %v28922_v7 = vpop.permute.xlu0 %13945 }
 0x531   : > { %22377 = vmatmul.mubr.msk.f32.gmra.mrb[54].mxu1 %vm9056_vm2, %v28694_v43  ;;  %22424 = vmatmul.mubr.msk.f32.vlgmr.msra.gmra.mrb[4].mxu0 %vm9056_vm2, %v28916_v18  ;;  %v13667_v32 = vpop.permute.xlu1 %13666 }
 0x532   : > { %24093 = vmatpush3.msk.msra.mxu0 %vm9063_vm0, %v13132_v59  ;;  %12459 = vmatprep.mubr.f32.mxu1 %v26909_v0  ;;  %v13678_v62 = vsel %vm5182_vm8, %v13667_v32, %v28905_v42 }
 0x533   : > { %22435 = vmatprep.subr.msk.mxu0 %vm9063_vm0, %v13404_v63  ;;  %13219 = vmatprep.mubr.f32.mxu0 %v26909_v0  ;;  %v22473_v63 = vld [vmem:[%s31952_s3 + $0x138] sm:$0xff] }
 0x534   : > { %v13123_v43 = vpop.permute.xlu0 %13122 }
 0x535   : > { %22389 = vmatmul.mubr.msk.f32.vlgmr.msra.gmra.mrb[52].mxu1 %vm9056_vm2, %v28733_v11  ;;  %22425 = vmatmul.mubr.msk.f32.gmra.mrb[6].mxu0 %vm9056_vm2, %v28936_v37  ;;  %v28946_v22 = vpop.permute.xlu1 %13943  ;;  %v28971_v11 = vld [vmem:[%s31952_s3 + $0x100] sm:$0xff]  ;;  %v13131_v20 = vsel %vm3802_vm12, %v13123_v43, %v28776_v60  ;;  %v13130_v10 = vsel %vm3802_vm12, %v28771_v57, %v13123_v43  ;;  %v22446_v57 = vld [vmem:[%s31952_s3 + $0x110] sm:$0xff] }
 0x536   : > { %22401 = vmatpush1.msk.msra.mxu1 %vm9063_vm0, %v12572_v38  ;;  %12465 = vmatprep.mubr.f32.mxu1 %v26909_v0 }
 0x537   : > { %22413 = vmatprep.subr.msk.mxu1 %vm9063_vm0, %v12845_v40  ;;  %24094 = vmatprep.mubr.msk.f32.mxu0 %vm9056_vm2, %v28916_v18 }
 0x538   : > { %v28955_v4 = vpop.permute.xlu0 %13951 }
 0x539   : > { %22390 = vmatmul.mubr.msk.f32.gmra.mrb[54].mxu1 %vm9056_vm2, %v28758_v31  ;;  %24095 = vmatmul.mubr.msk.f32.vlgmr.msra.gmra.mrb[12].mxu0 %vm9056_vm2, %v28936_v37  ;;  %v13675_v61 = vpop.permute.xlu1 %13674 }
 0x53a   : > { %22436 = vmatpush1.msk.msra.mxu0 %vm9063_vm0, %v13403_v58  ;;  %12731 = vmatprep.mubr.f32.mxu1 %v26909_v0  ;;  %v22486_v58 = vld [vmem:[%s31952_s3 + $0x148] sm:$0xff] }
 0x53b   : > { %24097 = vmatprep.subr.msk.mxu0 %vm9063_vm0, %v13407_v35  ;;  %13488 = vmatprep.mubr.f32.mxu0 %v26909_v0 }
 0x53c   : > { %v28975_v41 = vpop.permute.xlu0 %14218 }
 0x53d   : > { %22402 = vmatmul.mubr.msk.f32.vlgmr.msra.gmra.mrb[52].mxu1 %vm9056_vm2, %v28794_v12  ;;  %22437 = vmatmul.mubr.msk.f32.vlgmr.msra.gmra.mrb[4].mxu0 %vm9056_vm2, %v28971_v11  ;;  %v13942_v50 = vpop.permute.xlu1 %13941  ;;  %v13682_v12 = vsel %vm5182_vm8, %v13675_v61, %v28880_v17 }
 0x53e   : > { %22414 = vmatpush1.msk.msra.mxu1 %vm9063_vm0, %v12844_v25  ;;  %24098 = vmatpush3.msk.msra.mxu0 %vm9063_vm0, %v13407_v35 }
 0x53f   : > { %22426 = vmatprep.subr.msk.mxu1 %vm9063_vm0, %v13131_v20  ;;  %22448 = vmatprep.subr.msk.mxu0 %vm9063_vm0, %v13679_v55  ;;  %v22499_v20 = vld [vmem:[%s31952_s3 + $0x158] sm:$0xff] }
 0x540   : > { %12737 = vmatprep.mubr.f32.mxu1 %v26909_v0  ;;  %13494 = vmatprep.mubr.f32.mxu0 %v26909_v0  ;;  %v28999_v31 = vpop.permute.xlu0 %14216 }
 0x541   : > { %22403 = vmatmul.mubr.msk.f32.gmra.mrb[54].mxu1 %vm9056_vm2, %v28816_v13  ;;  %22438 = vmatmul.mubr.msk.f32.gmra.mrb[6].mxu0 %vm9056_vm2, %v28993_v3  ;;  %v13950_v52 = vpop.permute.xlu1 %13949  ;;  %v13954_v13 = vsel %vm11218_vm10, %v28946_v22, %v28922_v7  ;;  %v14228_v24 = vsel %vm11494_vm11, %v28999_v31, %v28975_v41 }
 0x542   : > { %13003 = vmatprep.mubr.f32.mxu1 %v26909_v0  ;;  %24099 = vmatprep.mubr.msk.f32.mxu0 %vm9056_vm2, %v28971_v11  ;;  %v13957_v1 = vsel %vm11218_vm10, %v13950_v52, %v28955_v4 }
 0x544   : > { %v29008_v60 = vpop.permute.xlu0 %14224 }
 0x545   : > { %22415 = vmatmul.mubr.msk.f32.vlgmr.msra.gmra.mrb[52].mxu1 %vm9056_vm2, %v28848_v5  ;;  %24100 = vmatmul.mubr.msk.f32.vlgmr.msra.gmra.mrb[12].mxu0 %vm9056_vm2, %v28993_v3  ;;  %v13398_v27 = vpop.permute.xlu1 %13397 }
 0x546   : > { %22427 = vmatpush1.msk.msra.mxu1 %vm9063_vm0, %v13130_v10  ;;  %22449 = vmatpush1.msk.msra.mxu0 %vm9063_vm0, %v13678_v62  ;;  %v13406_v28 = vsel %vm4492_vm14, %v13398_v27, %v28834_v54  ;;  %v13405_v14 = vsel %vm4492_vm14, %v28841_v34, %v13398_v27  ;;  %v13953_v34 = vsel %vm11218_vm10, %v13942_v50, %v28946_v22  ;;  %v22485_v22 = vld [vmem:[%s31952_s3 + $0x140] sm:$0xff]  ;;  %vm16046_vm14 = vcmask 130048  }
 0x547   : > { %24102 = vmatprep.subr.msk.mxu0 %vm9063_vm0, %v13682_v12  ;;  %13009 = vmatprep.mubr.f32.mxu1 %v26909_v0  ;;  %v22511_v10 = vld [vmem:[%s31952_s3 + $0x160] sm:$0xff] }
 0x548   : > { %13763 = vmatprep.mubr.f32.mxu0 %v26909_v0  ;;  %22439 = vmatprep.subr.msk.mxu1 %vm9063_vm0, %v13406_v28  ;;  %v13948_v56 = vpop.permute.xlu0 %13947 }
 0x549   : > { %22416 = vmatmul.mubr.msk.f32.gmra.mrb[54].mxu1 %vm9056_vm2, %v28872_v49  ;;  %22450 = vmatmul.mubr.msk.f32.vlgmr.msra.gmra.mrb[4].mxu0 %vm9056_vm2, %v22446_v57  ;;  %v29034_v19 = vpop.permute.xlu1 %14220  ;;  %v13956_v9 = vsel %vm11218_vm10, %v13948_v56, %v13950_v52  ;;  %v13955_v36 = vsel %vm11218_vm10, %v28922_v7, %v13948_v56  ;;  %v22512_v56 = vld [vmem:[%s31952_s3 + $0x168] sm:$0xff] }
 0x54a   : > { %24103 = vmatpush3.msk.msra.mxu0 %vm9063_vm0, %v13682_v12  ;;  %13290 = vmatprep.mubr.f32.mxu1 %v26909_v0  ;;  %v14229_v17 = vsel %vm11494_vm11, %v28975_v41, %v29034_v19  ;;  %v22498_v41 = vld [vmem:[%s31952_s3 + $0x150] sm:$0xff] }
 0x54b   : > { %22461 = vmatprep.subr.msk.mxu0 %vm9063_vm0, %v13954_v13  ;;  %13769 = vmatprep.mubr.f32.mxu0 %v26909_v0  ;;  %v22524_v13 = vld [vmem:[%s31952_s3 + $0x170] sm:$0xff] }
 0x54c   : > { %v29055_v5 = vpop.permute.xlu0 %14751 }
 0x54d   : > { %22428 = vmatmul.mubr.msk.f32.vlgmr.msra.gmra.mrb[52].mxu1 %vm9056_vm2, %v28916_v18  ;;  %22451 = vmatmul.mubr.msk.f32.gmra.mrb[6].mxu0 %vm9056_vm2, %v22447_v30  ;;  %v13673_v54 = vpop.permute.xlu1 %13672  ;;  %v22472_v18 = vld [vmem:[%s31952_s3 + $0x130] sm:$0xff] }
 0x54e   : > { %22440 = vmatpush1.msk.msra.mxu1 %vm9063_vm0, %v13405_v14  ;;  %13296 = vmatprep.mubr.f32.mxu1 %v26909_v0  ;;  %v13681_v29 = vsel %vm5182_vm8, %v13673_v54, %v13675_v61  ;;  %v13680_v33 = vsel %vm5182_vm8, %v28820_v45, %v13673_v54  ;;  %v22460_v45 = vld [vmem:[%s31952_s3 + $0x128] sm:$0xff]  ;;  %v22525_v54 = vld [vmem:[%s31952_s3 + $0x178] sm:$0xff]  ;;  %vm21862_vm8 = vcmask 1024  }
 0x54f   : > { %24104 = vmatprep.mubr.msk.f32.mxu0 %vm9056_vm2, %v22446_v57  ;;  %22452 = vmatprep.subr.msk.mxu1 %vm9063_vm0, %v13681_v29 }
 0x550   : > { %v29077_v51 = vpop.permute.xlu0 %14749 }
 0x551   : > { %22429 = vmatmul.mubr.msk.f32.gmra.mrb[54].mxu1 %vm9056_vm2, %v28936_v37  ;;  %24105 = vmatmul.mubr.msk.f32.vlgmr.msra.gmra.mrb[12].mxu0 %vm9056_vm2, %v22447_v30  ;;  %v14227_v26 = vpop.permute.xlu1 %14226  ;;  %v14759_v61 = vsel %vm1051_vm4, %v29077_v51, %v29055_v5 }
 0x552   : > { %22462 = vmatpush1.msk.msra.mxu0 %vm9063_vm0, %v13953_v34  ;;  %13565 = vmatprep.mubr.f32.mxu1 %v26909_v0  ;;  %v14232_v42 = vsel %vm11494_vm11, %v29008_v60, %v14227_v26  ;;  %v22538_v34 = vld [vmem:[%s31952_s3 + $0x188] sm:$0xff] }
 0x553   : > { %24107 = vmatprep.subr.msk.mxu0 %vm9063_vm0, %v13957_v1  ;;  %14038 = vmatprep.mubr.f32.mxu0 %v26909_v0 }
 0x554   : > { %v29099_v39 = vpop.permute.xlu0 %15023 }
 0x555   : > { %22441 = vmatmul.mubr.msk.f32.vlgmr.msra.gmra.mrb[52].mxu1 %vm9056_vm2, %v28971_v11  ;;  %22463 = vmatmul.mubr.msk.f32.vlgmr.msra.gmra.mrb[4].mxu0 %vm9056_vm2, %v22459_v6  ;;  %v14223_v49 = vpop.permute.xlu1 %14222 }
 0x556   : > { %22453 = vmatpush1.msk.msra.mxu1 %vm9063_vm0, %v13680_v33  ;;  %24108 = vmatpush3.msk.msra.mxu0 %vm9063_vm0, %v13957_v1  ;;  %v14231_v59 = vsel %vm11494_vm11, %v14223_v49, %v29008_v60  ;;  %v14230_v37 = vsel %vm11494_vm11, %v29034_v19, %v14223_v49 }
 0x557   : > { %22465 = vmatprep.subr.msk.mxu1 %vm9063_vm0, %v13956_v9  ;;  %22474 = vmatprep.subr.msk.mxu0 %vm9063_vm0, %v14229_v17 }
 0x558   : > { %13571 = vmatprep.mubr.f32.mxu1 %v26909_v0  ;;  %14044 = vmatprep.mubr.f32.mxu0 %v26909_v0  ;;  %v29123_v7 = vpop.permute.xlu0 %15021 }
 0x559   : > { %22442 = vmatmul.mubr.msk.f32.gmra.mrb[54].mxu1 %vm9056_vm2, %v28993_v3  ;;  %22464 = vmatmul.mubr.msk.f32.gmra.mrb[6].mxu0 %vm9056_vm2, %v22460_v45  ;;  %v29095_v16 = vpop.permute.xlu1 %14753  ;;  %v15031_v62 = vsel %vm1733_vm6, %v29123_v7, %v29099_v39 }
 0x55a   : > { %13840 = vmatprep.mubr.f32.mxu1 %v26909_v0  ;;  %24109 = vmatprep.mubr.msk.f32.mxu0 %vm9056_vm2, %v22459_v6 }
 0x55d   : > { %22454 = vmatmul.mubr.msk.f32.vlgmr.msra.gmra.mrb[52].mxu1 %vm9056_vm2, %v22446_v57  ;;  %24110 = vmatmul.mubr.msk.f32.vlgmr.msra.gmra.mrb[12].mxu0 %vm9056_vm2, %v22460_v45 }
 0x55e   : > { %22466 = vmatpush1.msk.msra.mxu1 %vm9063_vm0, %v13955_v36  ;;  %22475 = vmatpush1.msk.msra.mxu0 %vm9063_vm0, %v14228_v24  ;;  %v29114_v2 = vpop.permute.xlu1 %14757  ;;  %v29143_v38 = vpop.permute.xlu0 %15029 }
 0x55f   : > { %22478 = vmatprep.subr.msk.mxu1 %vm9063_vm0, %v14231_v59  ;;  %24112 = vmatprep.subr.msk.mxu0 %vm9063_vm0, %v14232_v42 }
 0x560   : > { %13846 = vmatprep.mubr.f32.mxu1 %v26909_v0  ;;  %14313 = vmatprep.mubr.f32.mxu0 %v26909_v0 }
 0x561   : > { %22455 = vmatmul.mubr.msk.f32.gmra.mrb[54].mxu1 %vm9056_vm2, %v22447_v30  ;;  %22476 = vmatmul.mubr.msk.f32.vlgmr.msra.gmra.mrb[4].mxu0 %vm9056_vm2, %v22472_v18 }
 0x562   : > { %24113 = vmatpush3.msk.msra.mxu0 %vm9063_vm0, %v14232_v42  ;;  %14115 = vmatprep.mubr.f32.mxu1 %v26909_v0  ;;  %v29129_v32 = vpop.permute.xlu1 %15025 }
 0x563   : > { %22487 = vmatprep.subr.msk.mxu0 %vm9063_vm0, %v28319_v46  ;;  %14319 = vmatprep.mubr.f32.mxu0 %v26909_v0  ;;  %v15032_v55 = vsel %vm1733_vm6, %v29099_v39, %v29129_v32 }
 0x565   : > { %22467 = vmatmul.mubr.msk.f32.vlgmr.msra.gmra.mrb[52].mxu1 %vm9056_vm2, %v22459_v6  ;;  %22477 = vmatmul.mubr.msk.f32.gmra.mrb[6].mxu0 %vm9056_vm2, %v22473_v63 }
 0x566   : > { %22479 = vmatpush1.msk.msra.mxu1 %vm9063_vm0, %v14230_v37  ;;  %14121 = vmatprep.mubr.f32.mxu1 %v26909_v0  ;;  %v14756_v43 = vpop.permute.xlu1 %14755 }
 0x567   : > { %22491 = vmatprep.subr.msk.mxu1 %vm9063_vm0, %v28323_v47  ;;  %24114 = vmatprep.mubr.msk.f32.mxu0 %vm9056_vm2, %v22472_v18  ;;  %v29159_v47 = vpop.permute.xlu0 %15295  ;;  %v14762_v40 = vsel %vm1051_vm4, %v14756_v43, %v29114_v2  ;;  %v14761_v35 = vsel %vm1051_vm4, %v29095_v16, %v14756_v43 }
 0x569   : > { %22468 = vmatmul.mubr.msk.f32.gmra.mrb[54].mxu1 %vm9056_vm2, %v22460_v45  ;;  %24115 = vmatmul.mubr.msk.f32.vlgmr.msra.gmra.mrb[12].mxu0 %vm9056_vm2, %v22473_v63 }
 0x56a   : > { %22488 = vmatpush1.msk.msra.mxu0 %vm9063_vm0, %v28305_v44  ;;  %14390 = vmatprep.mubr.f32.mxu1 %v26909_v0  ;;  %v15028_v46 = vpop.permute.xlu1 %15027  ;;  %v14760_v44 = vsel %vm1051_vm4, %v29055_v5, %v29095_v16  ;;  %v22537_v5 = vld [vmem:[%s31952_s3 + $0x180] sm:$0xff] }
 0x56b   : > { %24117 = vmatprep.subr.msk.mxu0 %vm9063_vm0, %v28331_v48  ;;  %14571 = vmatprep.mubr.f32.mxu0 %v26909_v0  ;;  %v15034_v11 = vsel %vm1733_vm6, %v15028_v46, %v29143_v38  ;;  %v15033_v3 = vsel %vm1733_vm6, %v29129_v32, %v15028_v46  ;;  %vm15870_vm6 = vcmask 678912  }
 0x56d   : > { %22480 = vmatmul.mubr.msk.f32.vlgmr.msra.gmra.mrb[52].mxu1 %vm9056_vm2, %v22472_v18  ;;  %22489 = vmatmul.mubr.msk.f32.vlgmr.msra.gmra.mrb[4].mxu0 %vm9056_vm2, %v22485_v22 }
 0x56e   : > { %22492 = vmatpush1.msk.msra.mxu1 %vm9063_vm0, %v28388_v8  ;;  %24118 = vmatpush3.msk.msra.mxu0 %vm9063_vm0, %v28331_v48  ;;  %v15298_v4 = vpop.permute.xlu1 %15297  ;;  %v15294_v48 = vpop.permute.xlu0 %15293 }
 0x56f   : > { %22500 = vmatprep.subr.msk.mxu0 %vm9063_vm0, %v14760_v44  ;;  %22504 = vmatprep.subr.msk.mxu1 %vm9063_vm0, %v14762_v40  ;;  %v15304_v57 = vsel %vm9833_vm7, %v29159_v47, %v15298_v4  ;;  %v15303_v30 = vsel %vm9833_vm7, %v15294_v48, %v29159_v47 }
 0x570   : > { %14396 = vmatprep.mubr.f32.mxu1 %v26909_v0  ;;  %14577 = vmatprep.mubr.f32.mxu0 %v26909_v0 }
 0x571   : > { %22481 = vmatmul.mubr.msk.f32.gmra.mrb[54].mxu1 %vm9056_vm2, %v22473_v63  ;;  %22490 = vmatmul.mubr.msk.f32.gmra.mrb[6].mxu0 %vm9056_vm2, %v22486_v58 }
 0x572   : > { %14648 = vmatprep.mubr.f32.mxu1 %v26909_v0  ;;  %24119 = vmatprep.mubr.msk.f32.mxu0 %vm9056_vm2, %v22485_v22  ;;  %v15302_v50 = vpop.permute.xlu0 %15301 }
 0x573   : > { %v29183_v8 = vpop.permute.xlu1 %15567 }
 0x575   : > { %22493 = vmatmul.mubr.msk.f32.vlgmr.msra.gmra.mrb[52].mxu1 %vm9056_vm2, %v22485_v22  ;;  %24120 = vmatmul.mubr.msk.f32.vlgmr.msra.gmra.mrb[12].mxu0 %vm9056_vm2, %v22486_v58 }
 0x576   : > { %22501 = vmatpush1.msk.msra.mxu0 %vm9063_vm0, %v14759_v61  ;;  %22505 = vmatpush1.msk.msra.mxu1 %vm9063_vm0, %v14761_v35  ;;  %v15570_v60 = vpop.permute.xlu0 %15569 }
 0x577   : > { %24122 = vmatprep.subr.msk.mxu0 %vm9063_vm0, %v29114_v2  ;;  %22517 = vmatprep.subr.msk.mxu1 %vm9063_vm0, %v15034_v11  ;;  %v15576_v29 = vsel %vm10106_vm9, %v29183_v8, %v15570_v60 }
 0x578   : > { %14654 = vmatprep.mubr.f32.mxu1 %v26909_v0  ;;  %14843 = vmatprep.mubr.f32.mxu0 %v26909_v0  ;;  %v15300_v25 = vpop.permute.xlu1 %15299 }
 0x579   : > { %22494 = vmatmul.mubr.msk.f32.gmra.mrb[54].mxu1 %vm9056_vm2, %v22486_v58  ;;  %22502 = vmatmul.mubr.msk.f32.vlgmr.msra.gmra.mrb[4].mxu0 %vm9056_vm2, %v22498_v41  ;;  %v15306_v52 = vsel %vm9833_vm7, %v15300_v25, %v15302_v50  ;;  %v15305_v28 = vsel %vm9833_vm7, %v15298_v4, %v15300_v25 }
 0x57a   : > { %24123 = vmatpush3.msk.msra.mxu0 %vm9063_vm0, %v29114_v2  ;;  %14849 = vmatprep.mubr.f32.mxu0 %v26909_v0  ;;  %v15572_v12 = vpop.permute.xlu0 %15571 }
 0x57b   : > { %22513 = vmatprep.subr.msk.mxu0 %vm9063_vm0, %v15032_v55  ;;  %14920 = vmatprep.mubr.f32.mxu1 %v26909_v0  ;;  %v15577_v14 = vsel %vm10106_vm9, %v15570_v60, %v15572_v12 }
 0x57c   : > { %v15566_v31 = vpop.permute.xlu1 %15565 }
 0x57d   : > { %22503 = vmatmul.mubr.msk.f32.gmra.mrb[6].mxu0 %vm9056_vm2, %v22499_v20  ;;  %22506 = vmatmul.mubr.msk.f32.vlgmr.msra.gmra.mrb[52].mxu1 %vm9056_vm2, %v22498_v41  ;;  %v15575_v26 = vsel %vm10106_vm9, %v15566_v31, %v29183_v8 }
 0x57e   : > { %22518 = vmatpush1.msk.msra.mxu1 %vm9063_vm0, %v15033_v3  ;;  %14926 = vmatprep.mubr.f32.mxu1 %v26909_v0 }
 0x57f   : > { %22530 = vmatprep.subr.msk.mxu1 %vm9063_vm0, %v15306_v52  ;;  %24124 = vmatprep.mubr.msk.f32.mxu0 %vm9056_vm2, %v22498_v41 }
 0x581   : > { %22507 = vmatmul.mubr.msk.f32.gmra.mrb[54].mxu1 %vm9056_vm2, %v22499_v20  ;;  %24125 = vmatmul.mubr.msk.f32.vlgmr.msra.gmra.mrb[12].mxu0 %vm9056_vm2, %v22499_v20  ;;  %v15574_v27 = vpop.permute.xlu1 %15573 }
 0x582   : > { %22514 = vmatpush1.msk.msra.mxu0 %vm9063_vm0, %v15031_v62  ;;  %15115 = vmatprep.mubr.f32.mxu0 %v26909_v0  ;;  %v15578_v19 = vsel %vm10106_vm9, %v15572_v12, %v15574_v27 }
 0x583   : > { %24127 = vmatprep.subr.msk.mxu0 %vm9063_vm0, %v29143_v38  ;;  %15192 = vmatprep.mubr.f32.mxu1 %v26909_v0 }
 0x585   : > { %22515 = vmatmul.mubr.msk.f32.vlgmr.msra.gmra.mrb[4].mxu0 %vm9056_vm2, %v22511_v10  ;;  %22519 = vmatmul.mubr.msk.f32.vlgmr.msra.gmra.mrb[52].mxu1 %vm9056_vm2, %v22511_v10  ;;  %v15839_v51 = vpop.permute.xlu0 %15838 }
 0x586   : > { %24128 = vmatpush3.msk.msra.mxu0 %vm9063_vm0, %v29143_v38  ;;  %22531 = vmatpush1.msk.msra.mxu1 %vm9063_vm0, %v15305_v28 }
 0x587   : > { %22526 = vmatprep.subr.msk.mxu0 %vm9063_vm0, %v15304_v57  ;;  %22543 = vmatprep.subr.msk.mxu1 %vm9063_vm0, %v15578_v19 }
 0x588   : > { %15121 = vmatprep.mubr.f32.mxu0 %v26909_v0  ;;  %15198 = vmatprep.mubr.f32.mxu1 %v26909_v0 }
 0x589   : > { %22516 = vmatmul.mubr.msk.f32.gmra.mrb[6].mxu0 %vm9056_vm2, %v22512_v56  ;;  %22520 = vmatmul.mubr.msk.f32.gmra.mrb[54].mxu1 %vm9056_vm2, %v22512_v56 }
 0x58a   : > { %24129 = vmatprep.mubr.msk.f32.mxu0 %vm9056_vm2, %v22511_v10  ;;  %15464 = vmatprep.mubr.f32.mxu1 %v26909_v0 }
 0x58d   : > { %24130 = vmatmul.mubr.msk.f32.vlgmr.msra.gmra.mrb[12].mxu0 %vm9056_vm2, %v22512_v56  ;;  %22532 = vmatmul.mubr.msk.f32.vlgmr.msra.gmra.mrb[52].mxu1 %vm9056_vm2, %v22524_v13  ;;  %v26935_v56 = vmov 0.0|0.0  }
 0x58e   : > { %22527 = vmatpush1.msk.msra.mxu0 %vm9063_vm0, %v15303_v30  ;;  %22544 = vmatpush1.msk.msra.mxu1 %vm9063_vm0, %v15577_v14 }
 0x58f   : > { %24132 = vmatprep.subr.msk.mxu0 %vm9063_vm0, %v15302_v50  ;;  %15387 = vmatprep.mubr.f32.mxu0 %v26909_v0 }
 0x590   : > { %15470 = vmatprep.mubr.f32.mxu1 %v26909_v0  ;;  %25488 = vmatprep.subr.bf16.mxu1 %v26935_v56 }
 0x591   : > { %22528 = vmatmul.mubr.msk.f32.vlgmr.msra.gmra.mrb[4].mxu0 %vm9056_vm2, %v22524_v13  ;;  %22533 = vmatmul.mubr.msk.f32.gmra.mrb[54].mxu1 %vm9056_vm2, %v22525_v54 }
 0x592   : > { %24133 = vmatpush3.msk.msra.mxu0 %vm9063_vm0, %v15302_v50  ;;  %15393 = vmatprep.mubr.f32.mxu0 %v26909_v0 }
 0x593   : > { %22539 = vmatprep.subr.msk.mxu0 %vm9063_vm0, %v15576_v29  ;;  %15736 = vmatprep.mubr.f32.mxu1 %v26909_v0 }
 0x595   : > { %22529 = vmatmul.mubr.msk.f32.gmra.mrb[6].mxu0 %vm9056_vm2, %v22525_v54  ;;  %22545 = vmatmul.mubr.msk.f32.vlgmr.msra.gmra.mrb[52].mxu1 %vm9056_vm2, %v22537_v5 }
 0x596   : > { %24134 = vmatprep.mubr.msk.f32.mxu0 %vm9056_vm2, %v22524_v13  ;;  %15742 = vmatprep.mubr.f32.mxu1 %v26909_v0 }
 0x599   : > { %24135 = vmatmul.mubr.msk.f32.vlgmr.msra.gmra.mrb[12].mxu0 %vm9056_vm2, %v22525_v54  ;;  %22546 = vmatmul.mubr.msk.f32.gmra.mrb[54].mxu1 %vm9056_vm2, %v22538_v34 }
 0x59a   : > { %22540 = vmatpush1.msk.msra.mxu0 %vm9063_vm0, %v15575_v26  ;;  %15659 = vmatprep.mubr.f32.mxu0 %v26909_v0 }
 0x59b   : > { %24137 = vmatprep.subr.msk.mxu0 %vm9063_vm0, %v15574_v27  ;;  %24685 = vmatprep.mubr.msk.f32.mxu1 %vm26919_vm3, %v26909_v0 }
 0x59d   : > { %22541 = vmatmul.mubr.msk.f32.vlgmr.msra.gmra.mrb[4].mxu0 %vm9056_vm2, %v22537_v5 }
 0x59e   : > { %24138 = vmatpush3.msk.msra.mxu0 %vm9063_vm0, %v15574_v27  ;;  %15665 = vmatprep.mubr.f32.mxu0 %v26909_v0 }
 0x59f   : > { %25455 = vmatprep.subr.bf16.mxu0 %v26935_v56 }
 0x5a1   : > { %22542 = vmatmul.mubr.msk.f32.gmra.mrb[6].mxu0 %vm9056_vm2, %v22538_v34 }
 0x5a2   : > { %24139 = vmatprep.mubr.msk.f32.mxu0 %vm9056_vm2, %v22537_v5 }
 0x5a5   : > { %24140 = vmatmul.mubr.msk.f32.vlgmr.msra.gmra.mrb[12].mxu0 %vm9056_vm2, %v22538_v34 }
 0x5a6   : > { %24146 = vmatprep.mubr.msk.f32.mxu0 %vm26919_vm3, %v26909_v0 }
 0x5aa   : > { %v15844_v16 = vpop.permute.xlu1 %15843 }
 0x668   : > { %v15738_v1 = vpop.f32.mrb[52].mxu1 }
 0x669   : > { %v25571_v6 = vadd.f32 %v15738_v1, %v28859_v15  ;;  %v15740_v33 = vpop.f32.mrb[53].mxu1 }
 0x66a   : > { %v25572_v49 = vadd.f32 %v15740_v33, %v28874_v53 }
 0x66b   : > { %v15848_v17 = vadd.f32 %v25571_v6, %v15839_v51 }
 0x66c   : > { %v15849_v9 = vadd.f32 %v25572_v49, %v15839_v51  ;;  %v15744_v45 = vpop.f32.mrb[54].mxu1 }
 0x66d   : > { %v15858_v39 = vmax.f32 %v15848_v17, 0.0  ;;  %v25573_v24 = vadd.f32 %v15744_v45, %v28889_v21  ;;  %v15746_v36 = vpop.f32.mrb[55].mxu1 }
 0x66e   : > { %v15859_v42 = vmax.f32 %v15849_v9, 0.0  ;;  %v25574_v59 = vadd.f32 %v15746_v36, %v28894_v23  ;;  %v22865_v36 = vld [vmem:[%s31954_s5 + $0x528] sm:$0xff] }
 0x66f   : > { %v15853_v2 = vadd.f32 %v25573_v24, %v15844_v16  ;;  %15901 = vrot.lane.b32.xlu0 %v15858_v39, %s26911_s24 }
 0x670   : > { %v15854_v18 = vadd.f32 %v25574_v59, %v15844_v16  ;;  %v15661_v15 = vpop.f32.mrb[4].mxu0  ;;  %15903 = vrot.lane.b32.xlu1 %v15859_v42, %s26911_s24 }
 0x671   : > { %v15863_v7 = vmax.f32 %v15853_v2, 0.0  ;;  %v29316_v53 = vadd.f32 %v15839_v51, %v15661_v15  ;;  %v15663_v32 = vpop.f32.mrb[5].mxu0 }
 0x672   : > { %v15864_v63 = vmax.f32 %v15854_v18, 0.0  ;;  %v29318_v37 = vadd.f32 %v15839_v51, %v15663_v32 }
 0x673   : > { %v15856_v21 = vmax.f32 %v29316_v53, 0.0  ;;  %v22866_v53 = vld [vmem:[%s31954_s5 + $0x530] sm:$0xff] }
 0x674   : > { %v15857_v43 = vmax.f32 %v29318_v37, 0.0  ;;  %v15667_v38 = vpop.f32.mrb[6].mxu0  ;;  %15911 = vrot.lane.b32.xlu1 %v15863_v7, %s26911_s24 }
 0x675   : > { %v29323_v23 = vadd.f32 %v15844_v16, %v15667_v38  ;;  %v15669_v46 = vpop.f32.mrb[7].mxu0  ;;  %v22868_v38 = vld [vmem:[%s31954_s5 + $0x540] sm:$0xff] }
 0x676   : > { %v29325_v22 = vadd.f32 %v15844_v16, %v15669_v46  ;;  %v22869_v46 = vld [vmem:[%s31954_s5 + $0x548] sm:$0xff] }
 0x677   : > { %v15861_v47 = vmax.f32 %v29323_v23, 0.0 }
 0x678   : > { %v15862_v44 = vmax.f32 %v29325_v22, 0.0  ;;  %v24141_v40 = vpop.f32.mrb[12].mxu0  ;;  %v22870_v22 = vld [vmem:[%s31954_s5 + $0x550] sm:$0xff] }
 0x679   : > { %v15855_v4 = vadd.f32 %v24141_v40, %v15844_v16  ;;  %v15815_v58 = vpop.f32.mrb[13].mxu0  ;;  %v22873_v40 = vld [vmem:[%s31954_s5 + $0x568] sm:$0xff] }
 0x67a   : > { %v15850_v48 = vadd.f32 %v15839_v51, %v15815_v58  ;;  %v22875_v58 = vld [vmem:[%s31954_s5 + $0x578] sm:$0xff] }
 0x67b   : > { %v15865_v8 = vmax.f32 %v15855_v4, 0.0  ;;  %v22874_v4 = vld [vmem:[%s31954_s5 + $0x570] sm:$0xff] }
 0x67c   : > { %v15860_v61 = vmax.f32 %v15850_v48, 0.0  ;;  %v22876_v48 = vld [vmem:[%s31954_s5 + $0x580] sm:$0xff] }
 0x67d   : > { %15876 = vst.msk [vmem:[#allocation4 + $0x48] sm:$0xff] %vm15870_vm6, %v15865_v8  ;;  %v22877_v8 = vld [vmem:[%s31954_s5 + $0x588] sm:$0xff] }
 0x67e   : > { %15871 = vst.msk [vmem:[#allocation4 + $0x20] sm:$0xff] %vm15870_vm6, %v15860_v61  ;;  %v22878_v61 = vld [vmem:[%s31954_s5 + $0x590] sm:$0xff] }
 0x684   : > { %v29329_v35 = vld [vmem:[#allocation4 + $0x48] sm:$0xff] }
 0x685   : > { %15915 = vrot.lane.b32.xlu1 %v29329_v35, %s26911_s24  ;;  %v29333_v11 = vld [vmem:[#allocation4 + $0x20] sm:$0xff] }
 0x686   : > { %15905 = vrot.lane.b32.xlu0 %v29333_v11, %s26911_s24 }
 0x68a   : > { %15913 = vrot.lane.b32.xlu0 %v15864_v63, %s26911_s24 }
 0x6e1   : > { %v15902_v41 = vpop.permute.xlu0 %15901 }
 0x6e2   : > { %v15904_v25 = vpop.permute.xlu1 %15903 }
 0x6e3   : > { %v15919_v50 = vsel %vm1051_vm4, %v15902_v41, %v15904_v25 }
 0x6e4   : > { %v15937_v55 = vmax.f32 %v15858_v39, %v15919_v50  ;;  %v22895_v50 = vld [vmem:[%s31954_s5 + $0x5a0] sm:$0xff] }
 0x6e6   : > { %15959 = vrot.lane.b32.xlu0 %v15937_v55, %s26920_s19  ;;  %v15912_v20 = vpop.permute.xlu1 %15911 }
 0x6f7   : > { %v29346_v60 = vpop.permute.xlu1 %15915 }
 0x6f8   : > { %v29340_v3 = vpop.permute.xlu0 %15905  ;;  %v29457_v23 = vmax.f32 %v29329_v35, %v29346_v60 }
 0x6f9   : > { %v15920_v31 = vsel %vm1051_vm4, %v15904_v25, %v29340_v3 }
 0x6fa   : > { %v29344_v52 = vmax.f32 %v15859_v42, %v15920_v31  ;;  %v22898_v31 = vld [vmem:[%s31954_s5 + $0x5b8] sm:$0xff] }
 0x6fc   : > { %15961 = vrot.lane.b32.xlu1 %v29344_v52, %s26920_s19  ;;  %v15914_v62 = vpop.permute.xlu0 %15913 }
 0x6fd   : > { %v15923_v10 = vsel %vm1051_vm4, %v15912_v20, %v15914_v62  ;;  %v15924_v27 = vsel %vm1051_vm4, %v15914_v62, %v29346_v60  ;;  %v22899_v60 = vld [vmem:[%s31954_s5 + $0x5c0] sm:$0xff]  ;;  %v22900_v62 = vld [vmem:[%s31954_s5 + $0x5c8] sm:$0xff] }
 0x6fe   : > { %v15942_v12 = vmax.f32 %v15863_v7, %v15923_v10  ;;  %v29353_v28 = vmax.f32 %v15864_v63, %v15924_v27  ;;  %v22901_v10 = vld [vmem:[%s31954_s5 + $0x5d0] sm:$0xff]  ;;  %v22902_v27 = vld [vmem:[%s31954_s5 + $0x5d8] sm:$0xff] }
 0x700   : > { %15971 = vrot.lane.b32.xlu1 %v29353_v28, %s26920_s19  ;;  %15969 = vrot.lane.b32.xlu0 %v15942_v12, %s26920_s19 }
 0x758   : > { %v29358_v57 = vpop.permute.xlu0 %15959 }
 0x76e   : > { %v29360_v19 = vpop.permute.xlu1 %15961 }
 0x76f   : > { %v15977_v13 = vsel %vm3802_vm12, %v29358_v57, %v29360_v19 }
 0x770   : > { %v29367_v30 = vmax.f32 %v15937_v55, %v15977_v13  ;;  %v22904_v13 = vld [vmem:[%s31954_s5 + $0x5e8] sm:$0xff] }
 0x772   : > { %v29369_v14 = vpop.permute.xlu1 %15971  ;;  %v29371_v54 = vpop.permute.xlu0 %15969 }
 0x773   : > { %v15981_v29 = vsel %vm3802_vm12, %v29371_v54, %v29369_v14 }
 0x774   : > { %v29376_v5 = vmax.f32 %v15942_v12, %v15981_v29  ;;  %v22903_v12 = vld [vmem:[%s31954_s5 + $0x5e0] sm:$0xff]  ;;  %v22905_v29 = vld [vmem:[%s31954_s5 + $0x5f0] sm:$0xff] }
 0x776   : > { %v26719_v34 = vpack.i.bf16 %v29376_v5, %v29367_v30  ;;  %v25486_v26 = vpack.c.bf16 %v29376_v5, %v29367_v30  ;;  %v22807_v30 = vld [vmem:[%s31954_s5 + $0x448] sm:$0xff] }
 0x777   : > { %v23229_v5 = vld [vmem:[%s31954_s5 + $0xae8] sm:$0xff] }
 0x778   : > { %26720 = vrot.lane.b32.xlu1 %v26719_v34, %s26932_s27  ;;  %26715 = vrot.lane.b32.xlu0 %v26719_v34, %s26913_s26 }
 0x77c   : > { %15899 = vrot.lane.b32.xlu1 %v15857_v43, %s26911_s24  ;;  %15897 = vrot.lane.b32.xlu0 %v15856_v21, %s26911_s24 }
 0x780   : > { %15909 = vrot.lane.b32.xlu1 %v15862_v44, %s26911_s24  ;;  %15907 = vrot.lane.b32.xlu0 %v15861_v47, %s26911_s24 }
 0x784   : > { %26725 = vrot.lane.b32.xlu0 %v26719_v34, %s26936_s12 }
 0x7ea   : > { %v26721_v1 = vpop.permute.xlu1 %26720  ;;  %v26716_v6 = vpop.permute.xlu0 %26715 }
 0x7eb   : > { %v26718_v33 = vunpack.i.h.bf16 %v26716_v6  ;;  %v26717_v51 = vunpack.i.l.bf16 %v26716_v6  ;;  %v26723_v49 = vunpack.i.h.bf16 %v26721_v1  ;;  %v26722_v17 = vunpack.i.l.bf16 %v26721_v1  ;;  %v22907_v1 = vld [vmem:[%s31954_s5 + $0x600] sm:$0xff]  ;;  %v22908_v6 = vld [vmem:[%s31954_s5 + $0x608] sm:$0xff] }
 0x7ed   : > { %v25489_v9 = vpack.c.bf16 %v26718_v33, %v26717_v51  ;;  %v25492_v2 = vpack.c.bf16 %v26723_v49, %v26722_v17  ;;  %v22909_v33 = vld [vmem:[%s31954_s5 + $0x610] sm:$0xff] }
 0x7ee   : > { %v15900_v45 = vpop.permute.xlu1 %15899  ;;  %v15898_v16 = vpop.permute.xlu0 %15897 }
 0x7ef   : > { %v15918_v39 = vsel %vm1051_vm4, %v15900_v45, %v15902_v41  ;;  %v15917_v24 = vsel %vm1051_vm4, %v15898_v16, %v15900_v45  ;;  %25490 = vmatpush3.bf16.msra.mxu1 %v25489_v9 }
 0x7f0   : > { %v29404_v42 = vmax.f32 %v15857_v43, %v15918_v39  ;;  %v29408_v59 = vmax.f32 %v15856_v21, %v15917_v24  ;;  %25491 = vmatprep.subr.bf16.mxu1 %v26935_v56  ;;  %v22867_v21 = vld [vmem:[%s31954_s5 + $0x538] sm:$0xff]  ;;  %v29444_v43 = vmax.f32 %v29333_v11, %v29340_v3  ;;  %v22897_v3 = vld [vmem:[%s31954_s5 + $0x5b0] sm:$0xff] }
 0x7f1   : > { %v22879_v11 = vld [vmem:[%s31954_s5 + $0x598] sm:$0xff] }
 0x7f2   : > { %24686 = vmatmul.mubr.msk.f32.vlgmr.msra.gmra.mrb[56].mxu1 %vm16046_vm14, %v22865_v36  ;;  %v15910_v18 = vpop.permute.xlu1 %15909  ;;  %15957 = vrot.lane.b32.xlu0 %v29404_v42, %s26920_s19  ;;  %v15908_v15 = vpop.permute.xlu0 %15907  ;;  %v22925_v39 = vld [vmem:[%s31954_s5 + $0x618] sm:$0xff] }
 0x7f3   : > { %v15922_v7 = vsel %vm1051_vm4, %v15910_v18, %v15912_v20  ;;  %15955 = vrot.lane.b32.xlu1 %v29408_v59, %s26920_s19  ;;  %v15921_v32 = vsel %vm1051_vm4, %v15908_v15, %v15910_v18  ;;  %25493 = vmatpush3.bf16.msra.mxu1 %v25492_v2  ;;  %v22896_v20 = vld [vmem:[%s31954_s5 + $0x5a8] sm:$0xff]  ;;  %v22926_v18 = vld [vmem:[%s31954_s5 + $0x620] sm:$0xff]  ;;  %vm16007_vm4 = vcmask 138240  }
 0x7f4   : > { %v29423_v63 = vmax.f32 %v15862_v44, %v15922_v7  ;;  %v29427_v37 = vmax.f32 %v15861_v47, %v15921_v32  ;;  %24688 = vmatprep.mubr.msk.f32.mxu1 %vm26919_vm3, %v26909_v0  ;;  %25494 = vmatprep.subr.bf16.mxu1 %v26935_v56  ;;  %v22871_v47 = vld [vmem:[%s31954_s5 + $0x558] sm:$0xff]  ;;  %v22872_v44 = vld [vmem:[%s31954_s5 + $0x560] sm:$0xff] }
 0x7f6   : > { %24689 = vmatmul.mubr.msk.f32.gmra.mrb[58].mxu1 %vm16046_vm14, %v22866_v53  ;;  %15967 = vrot.lane.b32.xlu0 %v29423_v63, %s26920_s19  ;;  %v26726_v35 = vpop.permute.xlu0 %26725 }
 0x7f7   : > { %15965 = vrot.lane.b32.xlu1 %v29427_v37, %s26920_s19  ;;  %24691 = vmatprep.mubr.msk.f32.mxu1 %vm26919_vm3, %v26909_v0  ;;  %v26728_v41 = vunpack.i.h.bf16 %v26726_v35  ;;  %v26727_v25 = vunpack.i.l.bf16 %v26726_v35 }
 0x7f9   : > { %v25495_v55 = vpack.c.bf16 %v26728_v41, %v26727_v25  ;;  %v16032_v41 = vld [vmem:[%s31954_s5 + $0x18] sm:$0xff]  ;;  %v22931_v25 = vld [vmem:[%s31954_s5 + $0x648] sm:$0xff] }
 0x7fa   : > { %24692 = vmatmul.mubr.msk.f32.gmra.mrb[60].mxu1 %vm16046_vm14, %v22867_v21  ;;  %15963 = vrot.lane.b32.xlu0 %v29444_v43, %s26920_s19 }
 0x7fb   : > { %26730 = vrot.lane.b32.xlu1 %v26719_v34, %s26937_s25  ;;  %24694 = vmatprep.mubr.msk.f32.mxu1 %vm26919_vm3, %v26909_v0  ;;  %v22906_v34 = vld [vmem:[%s31954_s5 + $0x5f8] sm:$0xff] }
 0x7fe   : > { %24695 = vmatmul.mubr.msk.f32.gmra.mrb[62].mxu1 %vm16046_vm14, %v22868_v38 }
 0x7ff   : > { %15973 = vrot.lane.b32.xlu1 %v29457_v23, %s26920_s19  ;;  %24697 = vmatprep.mubr.msk.f32.mxu1 %vm26919_vm3, %v26909_v0 }
 0x802   : > { %24698 = vmatmul.mubr.msk.f32.gmra.mrb[64].mxu1 %vm16046_vm14, %v22869_v46 }
 0x803   : > { %24700 = vmatprep.mubr.msk.f32.mxu1 %vm26919_vm3, %v26909_v0 }
 0x806   : > { %24701 = vmatmul.mubr.msk.f32.gmra.mrb[66].mxu1 %vm16046_vm14, %v22870_v22 }
 0x807   : > { %24703 = vmatprep.mubr.msk.f32.mxu1 %vm26919_vm3, %v26909_v0 }
 0x80a   : > { %24704 = vmatmul.mubr.msk.f32.gmra.mrb[68].mxu1 %vm16046_vm14, %v22871_v47 }
 0x80b   : > { %24706 = vmatprep.mubr.msk.f32.mxu1 %vm26919_vm3, %v26909_v0 }
 0x80e   : > { %24707 = vmatmul.mubr.msk.f32.gmra.mrb[70].mxu1 %vm16046_vm14, %v22872_v44  ;;  %v16029_v44 = vld [vmem:[%s31954_s5] sm:$0xff] }
 0x80f   : > { %24709 = vmatprep.mubr.msk.f32.mxu1 %vm26919_vm3, %v26909_v0 }
 0x812   : > { %24710 = vmatmul.mubr.msk.f32.gmra.mrb[72].mxu1 %vm16046_vm14, %v22873_v40 }
 0x813   : > { %24712 = vmatprep.mubr.msk.f32.mxu1 %vm26919_vm3, %v26909_v0 }
 0x816   : > { %24713 = vmatmul.mubr.msk.f32.gmra.mrb[74].mxu1 %vm16046_vm14, %v22874_v4  ;;  %v22929_v4 = vld [vmem:[%s31954_s5 + $0x638] sm:$0xff] }
 0x817   : > { %24715 = vmatprep.mubr.msk.f32.mxu1 %vm26919_vm3, %v26909_v0 }
 0x81a   : > { %24716 = vmatmul.mubr.msk.f32.gmra.mrb[76].mxu1 %vm16046_vm14, %v22875_v58  ;;  %v16031_v58 = vld [vmem:[%s31954_s5 + $0x10] sm:$0xff] }
 0x81b   : > { %24718 = vmatprep.mubr.msk.f32.mxu1 %vm26919_vm3, %v26909_v0 }
 0x81e   : > { %24719 = vmatmul.mubr.msk.f32.gmra.mrb[78].mxu1 %vm16046_vm14, %v22876_v48 }
 0x81f   : > { %24721 = vmatprep.mubr.msk.f32.mxu1 %vm26919_vm3, %v26909_v0 }
 0x822   : > { %24722 = vmatmul.mubr.msk.f32.gmra.mrb[80].mxu1 %vm16046_vm14, %v22877_v8  ;;  %v22930_v8 = vld [vmem:[%s31954_s5 + $0x640] sm:$0xff] }
 0x823   : > { %24724 = vmatprep.mubr.msk.f32.mxu1 %vm26919_vm3, %v26909_v0 }
 0x826   : > { %24725 = vmatmul.mubr.msk.f32.gmra.mrb[82].mxu1 %vm16046_vm14, %v22878_v61 }
 0x827   : > { %24727 = vmatprep.mubr.msk.f32.mxu1 %vm26919_vm3, %v26909_v0 }
 0x82a   : > { %24728 = vmatmul.mubr.msk.f32.gmra.mrb[84].mxu1 %vm16046_vm14, %v22879_v11 }
 0x82b   : > { %24734 = vmatprep.mubr.msk.f32.mxu1 %vm26919_vm3, %v26909_v0 }
 0x82e   : > { %24735 = vmatmul.mubr.msk.f32.vlgmr.msra.gmra.mrb[56].mxu1 %vm16046_vm14, %v22895_v50  ;;  %v16033_v50 = vld [vmem:[%s31954_s5 + $0x20] sm:$0xff] }
 0x82f   : > { %25496 = vmatpush3.bf16.msra.mxu1 %v25495_v55  ;;  %24737 = vmatprep.mubr.msk.f32.mxu1 %vm26919_vm3, %v26909_v0  ;;  %v22932_v55 = vld [vmem:[%s31954_s5 + $0x650] sm:$0xff] }
 0x830   : > { %25497 = vmatprep.subr.bf16.mxu1 %v26935_v56 }
 0x832   : > { %24738 = vmatmul.mubr.msk.f32.gmra.mrb[58].mxu1 %vm16046_vm14, %v22896_v20 }
 0x833   : > { %24740 = vmatprep.mubr.msk.f32.mxu1 %vm26919_vm3, %v26909_v0 }
 0x836   : > { %24741 = vmatmul.mubr.msk.f32.gmra.mrb[60].mxu1 %vm16046_vm14, %v22897_v3  ;;  %v16034_v3 = vld [vmem:[%s31954_s5 + $0x28] sm:$0xff] }
 0x837   : > { %24743 = vmatprep.mubr.msk.f32.mxu1 %vm26919_vm3, %v26909_v0 }
 0x83a   : > { %24744 = vmatmul.mubr.msk.f32.gmra.mrb[62].mxu1 %vm16046_vm14, %v22898_v31  ;;  %v22933_v31 = vld [vmem:[%s31954_s5 + $0x658] sm:$0xff] }
 0x83b   : > { %24746 = vmatprep.mubr.msk.f32.mxu1 %vm26919_vm3, %v26909_v0 }
 0x83e   : > { %24747 = vmatmul.mubr.msk.f32.gmra.mrb[64].mxu1 %vm16046_vm14, %v22899_v60  ;;  %v16035_v60 = vld [vmem:[%s31954_s5 + $0x30] sm:$0xff] }
 0x83f   : > { %24749 = vmatprep.mubr.msk.f32.mxu1 %vm26919_vm3, %v26909_v0 }
 0x842   : > { %24750 = vmatmul.mubr.msk.f32.gmra.mrb[66].mxu1 %vm16046_vm14, %v22900_v62  ;;  %v22934_v62 = vld [vmem:[%s31954_s5 + $0x660] sm:$0xff] }
 0x843   : > { %24752 = vmatprep.mubr.msk.f32.mxu1 %vm26919_vm3, %v26909_v0 }
 0x846   : > { %24753 = vmatmul.mubr.msk.f32.gmra.mrb[68].mxu1 %vm16046_vm14, %v22901_v10  ;;  %v16036_v10 = vld [vmem:[%s31954_s5 + $0x38] sm:$0xff] }
 0x847   : > { %24755 = vmatprep.mubr.msk.f32.mxu1 %vm26919_vm3, %v26909_v0 }
 0x84a   : > { %24756 = vmatmul.mubr.msk.f32.gmra.mrb[70].mxu1 %vm16046_vm14, %v22902_v27  ;;  %v22935_v27 = vld [vmem:[%s31954_s5 + $0x668] sm:$0xff] }
 0x84b   : > { %24758 = vmatprep.mubr.msk.f32.mxu1 %vm26919_vm3, %v26909_v0 }
 0x84e   : > { %24759 = vmatmul.mubr.msk.f32.gmra.mrb[72].mxu1 %vm16046_vm14, %v22903_v12  ;;  %v16037_v12 = vld [vmem:[%s31954_s5 + $0x40] sm:$0xff] }
 0x84f   : > { %24761 = vmatprep.mubr.msk.f32.mxu1 %vm26919_vm3, %v26909_v0 }
 0x852   : > { %24762 = vmatmul.mubr.msk.f32.gmra.mrb[74].mxu1 %vm16046_vm14, %v22904_v13  ;;  %v22936_v13 = vld [vmem:[%s31954_s5 + $0x670] sm:$0xff] }
 0x853   : > { %24764 = vmatprep.mubr.msk.f32.mxu1 %vm26919_vm3, %v26909_v0 }
 0x856   : > { %24765 = vmatmul.mubr.msk.f32.gmra.mrb[76].mxu1 %vm16046_vm14, %v22905_v29  ;;  %v16038_v29 = vld [vmem:[%s31954_s5 + $0x48] sm:$0xff] }
 0x857   : > { %24767 = vmatprep.mubr.msk.f32.mxu1 %vm26919_vm3, %v26909_v0 }
 0x85a   : > { %24768 = vmatmul.mubr.msk.f32.gmra.mrb[78].mxu1 %vm16046_vm14, %v22906_v34  ;;  %v22937_v34 = vld [vmem:[%s31954_s5 + $0x678] sm:$0xff] }
 0x85b   : > { %24770 = vmatprep.mubr.msk.f32.mxu1 %vm26919_vm3, %v26909_v0 }
 0x85e   : > { %24771 = vmatmul.mubr.msk.f32.gmra.mrb[80].mxu1 %vm16046_vm14, %v22907_v1  ;;  %v16039_v1 = vld [vmem:[%s31954_s5 + $0x50] sm:$0xff] }
 0x85f   : > { %24773 = vmatprep.mubr.msk.f32.mxu1 %vm26919_vm3, %v26909_v0 }
 0x862   : > { %24774 = vmatmul.mubr.msk.f32.gmra.mrb[82].mxu1 %vm16046_vm14, %v22908_v6  ;;  %v22938_v6 = vld [vmem:[%s31954_s5 + $0x680] sm:$0xff] }
 0x863   : > { %24776 = vmatprep.mubr.msk.f32.mxu1 %vm26919_vm3, %v26909_v0 }
 0x864   : > { %v15958_v51 = vpop.permute.xlu0 %15957 }
 0x865   : > { %v15956_v49 = vpop.permute.xlu1 %15955  ;;  %v15976_v17 = vsel %vm3802_vm12, %v15958_v51, %v29358_v57 }
 0x866   : > { %v15975_v9 = vsel %vm3802_vm12, %v15956_v49, %v15958_v51  ;;  %v29622_v45 = vmax.f32 %v29404_v42, %v15976_v17  ;;  %24777 = vmatmul.mubr.msk.f32.gmra.mrb[84].mxu1 %vm16046_vm14, %v22909_v33  ;;  %v16040_v33 = vld [vmem:[%s31954_s5 + $0x58] sm:$0xff]  ;;  %v22939_v51 = vld [vmem:[%s31954_s5 + $0x688] sm:$0xff]  ;;  %v16041_v49 = vld [vmem:[%s31954_s5 + $0x60] sm:$0xff] }
 0x867   : > { %v15993_v16 = vmax.f32 %v29408_v59, %v15975_v9  ;;  %24783 = vmatprep.mubr.msk.f32.mxu1 %vm26919_vm3, %v26909_v0  ;;  %v22955_v17 = vld [vmem:[%s31954_s5 + $0x690] sm:$0xff] }
 0x868   : > { %v15968_v24 = vpop.permute.xlu0 %15967 }
 0x869   : > { %v15966_v36 = vpop.permute.xlu1 %15965  ;;  %v15980_v57 = vsel %vm3802_vm12, %v15968_v24, %v29371_v54 }
 0x86a   : > { %v15979_v2 = vsel %vm3802_vm12, %v15966_v36, %v15968_v24  ;;  %v29635_v42 = vmax.f32 %v29423_v63, %v15980_v57  ;;  %24784 = vmatmul.mubr.msk.f32.vlgmr.msra.gmra.mrb[56].mxu1 %vm16046_vm14, %v22925_v39  ;;  %v22956_v39 = vld [vmem:[%s31954_s5 + $0x698] sm:$0xff]  ;;  %v16043_v24 = vld [vmem:[%s31954_s5 + $0x70] sm:$0xff]  ;;  %v22957_v36 = vld [vmem:[%s31954_s5 + $0x6a0] sm:$0xff] }
 0x86b   : > { %v15998_v59 = vmax.f32 %v29427_v37, %v15979_v2  ;;  %24786 = vmatprep.mubr.msk.f32.mxu1 %vm26919_vm3, %v26909_v0  ;;  %v22958_v57 = vld [vmem:[%s31954_s5 + $0x6a8] sm:$0xff]  ;;  %v22959_v2 = vld [vmem:[%s31954_s5 + $0x6b0] sm:$0xff] }
 0x86c   : > { %v15964_v15 = vpop.permute.xlu0 %15963  ;;  %v25471_v54 = vpack.c.bf16 %v29635_v42, %v29622_v45  ;;  %v26779_v35 = vpack.i.bf16 %v29635_v42, %v29622_v45  ;;  %v22657_v45 = vld [vmem:[%s31954_s5 + $0x1f0] sm:$0xff] }
 0x86d   : > { %v26731_v7 = vpop.permute.xlu1 %26730  ;;  %v15978_v32 = vsel %vm3802_vm12, %v29360_v19, %v15964_v15  ;;  %v15997_v53 = vmax.f32 %v29444_v43, %v15964_v15  ;;  %v26739_v63 = vpack.i.bf16 %v15998_v59, %v15993_v16  ;;  %v25456_v37 = vpack.c.bf16 %v15998_v59, %v15993_v16  ;;  %v22927_v19 = vld [vmem:[%s31954_s5 + $0x628] sm:$0xff]  ;;  %v22960_v59 = vld [vmem:[%s31954_s5 + $0x6b8] sm:$0xff]  ;;  %v23079_v42 = vld [vmem:[%s31954_s5 + $0x890] sm:$0xff] }
 0x86e   : > { %v26733_v21 = vunpack.i.h.bf16 %v26731_v7  ;;  %v26732_v38 = vunpack.i.l.bf16 %v26731_v7  ;;  %v29650_v46 = vmax.f32 %v29344_v52, %v15978_v32  ;;  %24787 = vmatmul.mubr.msk.f32.gmra.mrb[58].mxu1 %vm16046_vm14, %v22926_v18  ;;  %v16042_v16 = vld [vmem:[%s31954_s5 + $0x68] sm:$0xff]  ;;  %v22961_v18 = vld [vmem:[%s31954_s5 + $0x6c0] sm:$0xff]  ;;  %v22963_v7 = vld [vmem:[%s31954_s5 + $0x6d0] sm:$0xff] }
 0x86f   : > { %16008 = vst.msk [vmem:[#allocation5 + $0x20] sm:$0xff] %vm16007_vm4, %v15997_v53  ;;  %24789 = vmatprep.mubr.msk.f32.mxu1 %vm26919_vm3, %v26909_v0  ;;  %26740 = vrot.lane.b32.xlu1 %v26739_v63, %s26932_s27  ;;  %v22962_v15 = vld [vmem:[%s31954_s5 + $0x6c8] sm:$0xff]  ;;  %v22964_v32 = vld [vmem:[%s31954_s5 + $0x6d8] sm:$0xff]  ;;  %v22965_v53 = vld [vmem:[%s31954_s5 + $0x6e0] sm:$0xff] }
 0x870   : > { %v25498_v22 = vpack.c.bf16 %v26733_v21, %v26732_v38  ;;  %26735 = vrot.lane.b32.xlu0 %v26739_v63, %s26913_s26  ;;  %25457 = vmatpush3.bf16.msra.mxu0 %v25456_v37  ;;  %v22967_v37 = vld [vmem:[%s31954_s5 + $0x6f0] sm:$0xff]  ;;  %v22968_v21 = vld [vmem:[%s31954_s5 + $0x6f8] sm:$0xff]  ;;  %v22969_v38 = vld [vmem:[%s31954_s5 + $0x700] sm:$0xff] }
 0x871   : > { %v15974_v43 = vpop.permute.xlu1 %15973  ;;  %25458 = vmatprep.subr.bf16.mxu0 %v26935_v56 }
 0x872   : > { %v15982_v52 = vsel %vm3802_vm12, %v29369_v14, %v15974_v43  ;;  %v16002_v47 = vmax.f32 %v29457_v23, %v15974_v43  ;;  %25499 = vmatpush3.bf16.msra.mxu1 %v25498_v22  ;;  %v22928_v14 = vld [vmem:[%s31954_s5 + $0x630] sm:$0xff]  ;;  %vm21774_vm12 = vcmask 687104  }
 0x873   : > { %v29669_v40 = vmax.f32 %v29353_v28, %v15982_v52  ;;  %24790 = vmatmul.mubr.msk.f32.gmra.mrb[60].mxu1 %vm16046_vm14, %v22927_v19  ;;  %26750 = vrot.lane.b32.xlu1 %v26739_v63, %s26936_s12  ;;  %v16030_v28 = vld [vmem:[%s31954_s5 + $0x8] sm:$0xff] }
 0x874   : > { %16013 = vst.msk [vmem:[#allocation5 + $0x48] sm:$0xff] %vm16007_vm4, %v16002_v47  ;;  %24792 = vmatprep.mubr.msk.f32.mxu1 %vm26919_vm3, %v26909_v0  ;;  %25500 = vmatprep.subr.bf16.mxu1 %v26935_v56  ;;  %v22986_v47 = vld [vmem:[%s31954_s5 + $0x710] sm:$0xff] }
 0x875   : > { %v26744_v23 = vpack.i.bf16 %v29669_v40, %v29650_v46  ;;  %24147 = vmatmul.mubr.msk.f32.vlgmr.msra.gmra.mrb[14].mxu0 %vm16046_vm14, %v16029_v44  ;;  %v25501_v9 = vpack.c.bf16 %v29669_v40, %v29650_v46  ;;  %v22985_v46 = vld [vmem:[%s31954_s5 + $0x708] sm:$0xff] }
 0x876   : > { %24149 = vmatprep.mubr.msk.f32.mxu0 %vm26919_vm3, %v26909_v0  ;;  %v29712_v61 = vld [vmem:[#allocation5 + $0x20] sm:$0xff] }
 0x877   : > { %24793 = vmatmul.mubr.msk.f32.gmra.mrb[62].mxu1 %vm16046_vm14, %v22928_v14  ;;  %26760 = vrot.lane.b32.xlu1 %v26739_v63, %s26937_s25  ;;  %v22966_v63 = vld [vmem:[%s31954_s5 + $0x6e8] sm:$0xff] }
 0x878   : > { %24795 = vmatprep.mubr.msk.f32.mxu1 %vm26919_vm3, %v26909_v0  ;;  %26745 = vrot.lane.b32.xlu0 %v26744_v23, %s26913_s26 }
 0x879   : > { %24150 = vmatmul.mubr.msk.f32.gmra.mrb[16].mxu0 %vm16046_vm14, %v16030_v28  ;;  %v22987_v28 = vld [vmem:[%s31954_s5 + $0x718] sm:$0xff] }
 0x87a   : > { %24152 = vmatprep.mubr.msk.f32.mxu0 %vm26919_vm3, %v26909_v0 }
 0x87b   : > { %24796 = vmatmul.mubr.msk.f32.gmra.mrb[64].mxu1 %vm16046_vm14, %v22929_v4  ;;  %26770 = vrot.lane.b32.xlu1 %v26744_v23, %s26937_s25  ;;  %v29704_v48 = vld [vmem:[#allocation5 + $0x48] sm:$0xff] }
 0x87c   : > { %24798 = vmatprep.mubr.msk.f32.mxu1 %vm26919_vm3, %v26909_v0  ;;  %26755 = vrot.lane.b32.xlu0 %v26744_v23, %s26932_s27  ;;  %v25516_v11 = vpack.c.bf16 %v29704_v48, %v29712_v61  ;;  %v26784_v20 = vpack.i.bf16 %v29704_v48, %v29712_v61  ;;  %v22685_v48 = vld [vmem:[%s31954_s5 + $0x258] sm:$0xff] }
 0x87d   : > { %24153 = vmatmul.mubr.msk.f32.gmra.mrb[18].mxu0 %vm16046_vm14, %v16031_v58  ;;  %v23107_v61 = vld [vmem:[%s31954_s5 + $0x8f8] sm:$0xff] }
 0x87e   : > { %24155 = vmatprep.mubr.msk.f32.mxu0 %vm26919_vm3, %v26909_v0 }
 0x87f   : > { %24799 = vmatmul.mubr.msk.f32.gmra.mrb[66].mxu1 %vm16046_vm14, %v22930_v8  ;;  %26780 = vrot.lane.b32.xlu1 %v26779_v35, %s26932_s27 }
 0x880   : > { %24801 = vmatprep.mubr.msk.f32.mxu1 %vm26919_vm3, %v26909_v0  ;;  %26765 = vrot.lane.b32.xlu0 %v26744_v23, %s26936_s12  ;;  %v22565_v23 = vld [vmem:[%s31954_s5 + $0x78] sm:$0xff] }
 0x881   : > { %24156 = vmatmul.mubr.msk.f32.gmra.mrb[20].mxu0 %vm16046_vm14, %v16032_v41  ;;  %v22566_v41 = vld [vmem:[%s31954_s5 + $0x80] sm:$0xff] }
 0x882   : > { %24158 = vmatprep.mubr.msk.f32.mxu0 %vm26919_vm3, %v26909_v0 }
 0x883   : > { %24802 = vmatmul.mubr.msk.f32.gmra.mrb[68].mxu1 %vm16046_vm14, %v22931_v25  ;;  %26790 = vrot.lane.b32.xlu1 %v26779_v35, %s26936_s12  ;;  %v22988_v25 = vld [vmem:[%s31954_s5 + $0x720] sm:$0xff] }
 0x884   : > { %24804 = vmatprep.mubr.msk.f32.mxu1 %vm26919_vm3, %v26909_v0  ;;  %26775 = vrot.lane.b32.xlu0 %v26779_v35, %s26913_s26 }
 0x885   : > { %24159 = vmatmul.mubr.msk.f32.gmra.mrb[22].mxu0 %vm16046_vm14, %v16033_v50 }
 0x886   : > { %24161 = vmatprep.mubr.msk.f32.mxu0 %vm26919_vm3, %v26909_v0 }
 0x887   : > { %24805 = vmatmul.mubr.msk.f32.gmra.mrb[70].mxu1 %vm16046_vm14, %v22932_v55  ;;  %26800 = vrot.lane.b32.xlu1 %v26779_v35, %s26937_s25  ;;  %v22567_v55 = vld [vmem:[%s31954_s5 + $0x88] sm:$0xff] }
 0x888   : > { %24807 = vmatprep.mubr.msk.f32.mxu1 %vm26919_vm3, %v26909_v0  ;;  %26785 = vrot.lane.b32.xlu0 %v26784_v20, %s26913_s26 }
 0x889   : > { %24162 = vmatmul.mubr.msk.f32.gmra.mrb[24].mxu0 %vm16046_vm14, %v16034_v3  ;;  %v22568_v3 = vld [vmem:[%s31954_s5 + $0x90] sm:$0xff] }
 0x88a   : > { %24164 = vmatprep.mubr.msk.f32.mxu0 %vm26919_vm3, %v26909_v0 }
 0x88b   : > { %24808 = vmatmul.mubr.msk.f32.gmra.mrb[72].mxu1 %vm16046_vm14, %v22933_v31  ;;  %26810 = vrot.lane.b32.xlu1 %v26784_v20, %s26937_s25  ;;  %v22990_v31 = vld [vmem:[%s31954_s5 + $0x730] sm:$0xff] }
 0x88c   : > { %24810 = vmatprep.mubr.msk.f32.mxu1 %vm26919_vm3, %v26909_v0  ;;  %26795 = vrot.lane.b32.xlu0 %v26784_v20, %s26932_s27 }
 0x88d   : > { %24165 = vmatmul.mubr.msk.f32.gmra.mrb[26].mxu0 %vm16046_vm14, %v16035_v60  ;;  %v22569_v60 = vld [vmem:[%s31954_s5 + $0x98] sm:$0xff] }
 0x88e   : > { %24167 = vmatprep.mubr.msk.f32.mxu0 %vm26919_vm3, %v26909_v0 }
 0x88f   : > { %24811 = vmatmul.mubr.msk.f32.gmra.mrb[74].mxu1 %vm16046_vm14, %v22934_v62  ;;  %v22991_v62 = vld [vmem:[%s31954_s5 + $0x738] sm:$0xff] }
 0x890   : > { %24813 = vmatprep.mubr.msk.f32.mxu1 %vm26919_vm3, %v26909_v0  ;;  %26805 = vrot.lane.b32.xlu0 %v26784_v20, %s26936_s12  ;;  %v22989_v20 = vld [vmem:[%s31954_s5 + $0x728] sm:$0xff] }
 0x891   : > { %24168 = vmatmul.mubr.msk.f32.gmra.mrb[28].mxu0 %vm16046_vm14, %v16036_v10  ;;  %v22570_v10 = vld [vmem:[%s31954_s5 + $0xa0] sm:$0xff] }
 0x892   : > { %24170 = vmatprep.mubr.msk.f32.mxu0 %vm26919_vm3, %v26909_v0 }
 0x893   : > { %24814 = vmatmul.mubr.msk.f32.gmra.mrb[76].mxu1 %vm16046_vm14, %v22935_v27  ;;  %v22992_v27 = vld [vmem:[%s31954_s5 + $0x740] sm:$0xff] }
 0x894   : > { %24816 = vmatprep.mubr.msk.f32.mxu1 %vm26919_vm3, %v26909_v0 }
 0x895   : > { %24171 = vmatmul.mubr.msk.f32.gmra.mrb[30].mxu0 %vm16046_vm14, %v16037_v12  ;;  %v22571_v12 = vld [vmem:[%s31954_s5 + $0xa8] sm:$0xff] }
 0x896   : > { %24173 = vmatprep.mubr.msk.f32.mxu0 %vm26919_vm3, %v26909_v0 }
 0x897   : > { %24817 = vmatmul.mubr.msk.f32.gmra.mrb[78].mxu1 %vm16046_vm14, %v22936_v13  ;;  %v22993_v13 = vld [vmem:[%s31954_s5 + $0x748] sm:$0xff] }
 0x898   : > { %24819 = vmatprep.mubr.msk.f32.mxu1 %vm26919_vm3, %v26909_v0 }
 0x899   : > { %24174 = vmatmul.mubr.msk.f32.gmra.mrb[32].mxu0 %vm16046_vm14, %v16038_v29  ;;  %v22572_v29 = vld [vmem:[%s31954_s5 + $0xb0] sm:$0xff] }
 0x89a   : > { %24176 = vmatprep.mubr.msk.f32.mxu0 %vm26919_vm3, %v26909_v0 }
 0x89b   : > { %24820 = vmatmul.mubr.msk.f32.gmra.mrb[80].mxu1 %vm16046_vm14, %v22937_v34  ;;  %v22994_v34 = vld [vmem:[%s31954_s5 + $0x750] sm:$0xff] }
 0x89c   : > { %24822 = vmatprep.mubr.msk.f32.mxu1 %vm26919_vm3, %v26909_v0 }
 0x89d   : > { %24177 = vmatmul.mubr.msk.f32.gmra.mrb[34].mxu0 %vm16046_vm14, %v16039_v1  ;;  %v22573_v1 = vld [vmem:[%s31954_s5 + $0xb8] sm:$0xff] }
 0x89e   : > { %24179 = vmatprep.mubr.msk.f32.mxu0 %vm26919_vm3, %v26909_v0 }
 0x89f   : > { %24823 = vmatmul.mubr.msk.f32.gmra.mrb[82].mxu1 %vm16046_vm14, %v22938_v6  ;;  %v22995_v6 = vld [vmem:[%s31954_s5 + $0x758] sm:$0xff] }
 0x8a0   : > { %24825 = vmatprep.mubr.msk.f32.mxu1 %vm26919_vm3, %v26909_v0 }
 0x8a1   : > { %24180 = vmatmul.mubr.msk.f32.gmra.mrb[36].mxu0 %vm16046_vm14, %v16040_v33  ;;  %v22574_v33 = vld [vmem:[%s31954_s5 + $0xc0] sm:$0xff] }
 0x8a2   : > { %24182 = vmatprep.mubr.msk.f32.mxu0 %vm26919_vm3, %v26909_v0 }
 0x8a3   : > { %24826 = vmatmul.mubr.msk.f32.gmra.mrb[84].mxu1 %vm16046_vm14, %v22939_v51  ;;  %v22996_v51 = vld [vmem:[%s31954_s5 + $0x760] sm:$0xff] }
 0x8a4   : > { %24832 = vmatprep.mubr.msk.f32.mxu1 %vm26919_vm3, %v26909_v0 }
 0x8a5   : > { %24183 = vmatmul.mubr.msk.f32.gmra.mrb[38].mxu0 %vm16046_vm14, %v16041_v49  ;;  %v22575_v49 = vld [vmem:[%s31954_s5 + $0xc8] sm:$0xff] }
 0x8a6   : > { %24185 = vmatprep.mubr.msk.f32.mxu0 %vm26919_vm3, %v26909_v0 }
 0x8a7   : > { %24833 = vmatmul.mubr.msk.f32.vlgmr.msra.gmra.mrb[56].mxu1 %vm16046_vm14, %v22955_v17  ;;  %v22997_v17 = vld [vmem:[%s31954_s5 + $0x768] sm:$0xff] }
 0x8a8   : > { %25502 = vmatpush3.bf16.msra.mxu1 %v25501_v9  ;;  %24835 = vmatprep.mubr.msk.f32.mxu1 %vm26919_vm3, %v26909_v0  ;;  %v22576_v9 = vld [vmem:[%s31954_s5 + $0xd0] sm:$0xff] }
 0x8a9   : > { %24186 = vmatmul.mubr.msk.f32.gmra.mrb[40].mxu0 %vm16046_vm14, %v16042_v16  ;;  %25503 = vmatprep.subr.bf16.mxu1 %v26935_v56  ;;  %v22998_v16 = vld [vmem:[%s31954_s5 + $0x770] sm:$0xff] }
 0x8aa   : > { %24188 = vmatprep.mubr.msk.f32.mxu0 %vm26919_vm3, %v26909_v0 }
 0x8ab   : > { %24836 = vmatmul.mubr.msk.f32.gmra.mrb[58].mxu1 %vm16046_vm14, %v22956_v39 }
 0x8ac   : > { %24838 = vmatprep.mubr.msk.f32.mxu1 %vm26919_vm3, %v26909_v0 }
 0x8ad   : > { %24189 = vmatmul.mubr.msk.f32.gmra.mrb[42].mxu0 %vm16046_vm14, %v16043_v24  ;;  %v22577_v24 = vld [vmem:[%s31954_s5 + $0xd8] sm:$0xff] }
 0x8ae   : > { %24195 = vmatprep.mubr.msk.f32.mxu0 %vm26919_vm3, %v26909_v0 }
 0x8af   : > { %24839 = vmatmul.mubr.msk.f32.gmra.mrb[60].mxu1 %vm16046_vm14, %v22957_v36  ;;  %v22999_v36 = vld [vmem:[%s31954_s5 + $0x778] sm:$0xff] }
 0x8b0   : > { %24841 = vmatprep.mubr.msk.f32.mxu1 %vm26919_vm3, %v26909_v0 }
 0x8b3   : > { %24842 = vmatmul.mubr.msk.f32.gmra.mrb[62].mxu1 %vm16046_vm14, %v22958_v57 }
 0x8b4   : > { %24844 = vmatprep.mubr.msk.f32.mxu1 %vm26919_vm3, %v26909_v0 }
 0x8b7   : > { %24845 = vmatmul.mubr.msk.f32.gmra.mrb[64].mxu1 %vm16046_vm14, %v22959_v2 }
 0x8b8   : > { %24847 = vmatprep.mubr.msk.f32.mxu1 %vm26919_vm3, %v26909_v0 }
 0x8bb   : > { %24848 = vmatmul.mubr.msk.f32.gmra.mrb[66].mxu1 %vm16046_vm14, %v22960_v59  ;;  %v22578_v59 = vld [vmem:[%s31954_s5 + $0xe0] sm:$0xff] }
 0x8bc   : > { %24850 = vmatprep.mubr.msk.f32.mxu1 %vm26919_vm3, %v26909_v0 }
 0x8bf   : > { %24851 = vmatmul.mubr.msk.f32.gmra.mrb[68].mxu1 %vm16046_vm14, %v22961_v18  ;;  %v23015_v18 = vld [vmem:[%s31954_s5 + $0x780] sm:$0xff] }
 0x8c0   : > { %24853 = vmatprep.mubr.msk.f32.mxu1 %vm26919_vm3, %v26909_v0 }
 0x8c3   : > { %24854 = vmatmul.mubr.msk.f32.gmra.mrb[70].mxu1 %vm16046_vm14, %v22962_v15 }
 0x8c4   : > { %24856 = vmatprep.mubr.msk.f32.mxu1 %vm26919_vm3, %v26909_v0 }
 0x8c7   : > { %24857 = vmatmul.mubr.msk.f32.gmra.mrb[72].mxu1 %vm16046_vm14, %v22963_v7 }
 0x8c8   : > { %24859 = vmatprep.mubr.msk.f32.mxu1 %vm26919_vm3, %v26909_v0 }
 0x8cb   : > { %24860 = vmatmul.mubr.msk.f32.gmra.mrb[74].mxu1 %vm16046_vm14, %v22964_v32  ;;  %v22579_v32 = vld [vmem:[%s31954_s5 + $0xe8] sm:$0xff] }
 0x8cc   : > { %24862 = vmatprep.mubr.msk.f32.mxu1 %vm26919_vm3, %v26909_v0 }
 0x8cf   : > { %24863 = vmatmul.mubr.msk.f32.gmra.mrb[76].mxu1 %vm16046_vm14, %v22965_v53  ;;  %v23016_v53 = vld [vmem:[%s31954_s5 + $0x788] sm:$0xff] }
 0x8d0   : > { %24865 = vmatprep.mubr.msk.f32.mxu1 %vm26919_vm3, %v26909_v0 }
 0x8d3   : > { %24866 = vmatmul.mubr.msk.f32.gmra.mrb[78].mxu1 %vm16046_vm14, %v22966_v63 }
 0x8d4   : > { %24868 = vmatprep.mubr.msk.f32.mxu1 %vm26919_vm3, %v26909_v0 }
 0x8d7   : > { %24869 = vmatmul.mubr.msk.f32.gmra.mrb[80].mxu1 %vm16046_vm14, %v22967_v37 }
 0x8d8   : > { %24871 = vmatprep.mubr.msk.f32.mxu1 %vm26919_vm3, %v26909_v0 }
 0x8db   : > { %24872 = vmatmul.mubr.msk.f32.gmra.mrb[82].mxu1 %vm16046_vm14, %v22968_v21  ;;  %v22595_v21 = vld [vmem:[%s31954_s5 + $0xf0] sm:$0xff] }
 0x8dc   : > { %24874 = vmatprep.mubr.msk.f32.mxu1 %vm26919_vm3, %v26909_v0 }
 0x8df   : > { %24875 = vmatmul.mubr.msk.f32.gmra.mrb[84].mxu1 %vm16046_vm14, %v22969_v38  ;;  %v23017_v38 = vld [vmem:[%s31954_s5 + $0x790] sm:$0xff] }
 0x8e0   : > { %24881 = vmatprep.mubr.msk.f32.mxu1 %vm26919_vm3, %v26909_v0 }
 0x8e1   : > { %v26741_v22 = vpop.permute.xlu1 %26740 }
 0x8e2   : > { %v26736_v19 = vpop.permute.xlu0 %26735  ;;  %v26743_v44 = vunpack.i.h.bf16 %v26741_v22  ;;  %v26742_v40 = vunpack.i.l.bf16 %v26741_v22  ;;  %v22596_v22 = vld [vmem:[%s31954_s5 + $0xf8] sm:$0xff] }
 0x8e3   : > { %24882 = vmatmul.mubr.msk.f32.vlgmr.msra.gmra.mrb[56].mxu1 %vm16046_vm14, %v22985_v46  ;;  %v26738_v43 = vunpack.i.h.bf16 %v26736_v19  ;;  %v26737_v52 = vunpack.i.l.bf16 %v26736_v19  ;;  %v23018_v19 = vld [vmem:[%s31954_s5 + $0x798] sm:$0xff] }
 0x8e4   : > { %24884 = vmatprep.mubr.msk.f32.mxu1 %vm26919_vm3, %v26909_v0  ;;  %v25462_v4 = vpack.c.bf16 %v26743_v44, %v26742_v40  ;;  %v23020_v44 = vld [vmem:[%s31954_s5 + $0x7a8] sm:$0xff]  ;;  %v22599_v40 = vld [vmem:[%s31954_s5 + $0x110] sm:$0xff] }
 0x8e5   : > { %v25459_v14 = vpack.c.bf16 %v26738_v43, %v26737_v52  ;;  %v26751_v15 = vpop.permute.xlu1 %26750  ;;  %v22597_v43 = vld [vmem:[%s31954_s5 + $0x100] sm:$0xff] }
 0x8e6   : > { %v26753_v63 = vunpack.i.h.bf16 %v26751_v15  ;;  %v26752_v37 = vunpack.i.l.bf16 %v26751_v15  ;;  %v23019_v52 = vld [vmem:[%s31954_s5 + $0x7a0] sm:$0xff]  ;;  %v22629_v15 = vld [vmem:[%s31954_s5 + $0x188] sm:$0xff] }
 0x8e7   : > { %24885 = vmatmul.mubr.msk.f32.gmra.mrb[58].mxu1 %vm16046_vm14, %v22986_v47  ;;  %25460 = vmatpush3.bf16.msra.mxu0 %v25459_v14  ;;  %v22598_v47 = vld [vmem:[%s31954_s5 + $0x108] sm:$0xff]  ;;  %v23021_v14 = vld [vmem:[%s31954_s5 + $0x7b0] sm:$0xff] }
 0x8e8   : > { %24887 = vmatprep.mubr.msk.f32.mxu1 %vm26919_vm3, %v26909_v0  ;;  %25461 = vmatprep.subr.bf16.mxu0 %v26935_v56  ;;  %v25465_v46 = vpack.c.bf16 %v26753_v63, %v26752_v37  ;;  %v22631_v63 = vld [vmem:[%s31954_s5 + $0x198] sm:$0xff] }
 0x8e9   : > { %v23053_v37 = vld [vmem:[%s31954_s5 + $0x838] sm:$0xff] }
 0x8ea   : > { %v26746_v58 = vpop.permute.xlu0 %26745  ;;  %24196 = vmatmul.mubr.msk.f32.vlgmr.msra.gmra.mrb[14].mxu0 %vm16046_vm14, %v22565_v23  ;;  %v22600_v23 = vld [vmem:[%s31954_s5 + $0x118] sm:$0xff] }
 0x8eb   : > { %24888 = vmatmul.mubr.msk.f32.gmra.mrb[60].mxu1 %vm16046_vm14, %v22987_v28  ;;  %v26748_v8 = vunpack.i.h.bf16 %v26746_v58  ;;  %v26747_v35 = vunpack.i.l.bf16 %v26746_v58  ;;  %25463 = vmatpush3.bf16.msra.mxu0 %v25462_v4  ;;  %v23022_v28 = vld [vmem:[%s31954_s5 + $0x7b8] sm:$0xff]  ;;  %v22601_v4 = vld [vmem:[%s31954_s5 + $0x120] sm:$0xff] }
 0x8ec   : > { %24890 = vmatprep.mubr.msk.f32.mxu1 %vm26919_vm3, %v26909_v0  ;;  %24198 = vmatprep.mubr.msk.f32.mxu0 %vm26919_vm3, %v26909_v0  ;;  %v23023_v58 = vld [vmem:[%s31954_s5 + $0x7c0] sm:$0xff] }
 0x8ed   : > { %v25504_v50 = vpack.c.bf16 %v26748_v8, %v26747_v35  ;;  %25464 = vmatprep.subr.bf16.mxu0 %v26935_v56  ;;  %v22602_v8 = vld [vmem:[%s31954_s5 + $0x128] sm:$0xff] }
 0x8ee   : > { %24199 = vmatmul.mubr.msk.f32.gmra.mrb[16].mxu0 %vm16046_vm14, %v22566_v41  ;;  %v26756_v39 = vpop.permute.xlu0 %26755  ;;  %v23024_v35 = vld [vmem:[%s31954_s5 + $0x7c8] sm:$0xff]  ;;  %v22603_v41 = vld [vmem:[%s31954_s5 + $0x130] sm:$0xff] }
 0x8ef   : > { %24891 = vmatmul.mubr.msk.f32.gmra.mrb[62].mxu1 %vm16046_vm14, %v22988_v25  ;;  %24201 = vmatprep.mubr.msk.f32.mxu0 %vm26919_vm3, %v26909_v0  ;;  %v26758_v57 = vunpack.i.h.bf16 %v26756_v39  ;;  %v26757_v2 = vunpack.i.l.bf16 %v26756_v39  ;;  %v23025_v25 = vld [vmem:[%s31954_s5 + $0x7d0] sm:$0xff] }
 0x8f0   : > { %24893 = vmatprep.mubr.msk.f32.mxu1 %vm26919_vm3, %v26909_v0  ;;  %25505 = vmatpush3.bf16.msra.mxu1 %v25504_v50  ;;  %v22604_v50 = vld [vmem:[%s31954_s5 + $0x138] sm:$0xff] }
 0x8f1   : > { %25506 = vmatprep.subr.bf16.mxu1 %v26935_v56  ;;  %v25507_v7 = vpack.c.bf16 %v26758_v57, %v26757_v2  ;;  %v22627_v57 = vld [vmem:[%s31954_s5 + $0x178] sm:$0xff] }
 0x8f2   : > { %24202 = vmatmul.mubr.msk.f32.gmra.mrb[18].mxu0 %vm16046_vm14, %v22567_v55  ;;  %v23026_v55 = vld [vmem:[%s31954_s5 + $0x7d8] sm:$0xff] }
 0x8f3   : > { %24894 = vmatmul.mubr.msk.f32.gmra.mrb[64].mxu1 %vm16046_vm14, %v22989_v20  ;;  %24204 = vmatprep.mubr.msk.f32.mxu0 %vm26919_vm3, %v26909_v0  ;;  %v22605_v20 = vld [vmem:[%s31954_s5 + $0x140] sm:$0xff]  ;;  %v23049_v2 = vld [vmem:[%s31954_s5 + $0x818] sm:$0xff] }
 0x8f4   : > { %24896 = vmatprep.mubr.msk.f32.mxu1 %vm26919_vm3, %v26909_v0 }
 0x8f6   : > { %24205 = vmatmul.mubr.msk.f32.gmra.mrb[20].mxu0 %vm16046_vm14, %v22568_v3  ;;  %v23027_v3 = vld [vmem:[%s31954_s5 + $0x7e0] sm:$0xff] }
 0x8f7   : > { %24897 = vmatmul.mubr.msk.f32.gmra.mrb[66].mxu1 %vm16046_vm14, %v22990_v31  ;;  %24207 = vmatprep.mubr.msk.f32.mxu0 %vm26919_vm3, %v26909_v0  ;;  %v22606_v31 = vld [vmem:[%s31954_s5 + $0x148] sm:$0xff] }
 0x8f8   : > { %24899 = vmatprep.mubr.msk.f32.mxu1 %vm26919_vm3, %v26909_v0 }
 0x8fa   : > { %24208 = vmatmul.mubr.msk.f32.gmra.mrb[22].mxu0 %vm16046_vm14, %v22569_v60  ;;  %v23028_v60 = vld [vmem:[%s31954_s5 + $0x7e8] sm:$0xff] }
 0x8fb   : > { %24900 = vmatmul.mubr.msk.f32.gmra.mrb[68].mxu1 %vm16046_vm14, %v22991_v62  ;;  %24210 = vmatprep.mubr.msk.f32.mxu0 %vm26919_vm3, %v26909_v0  ;;  %v26766_v62 = vpop.permute.xlu0 %26765 }
 0x8fc   : > { %24902 = vmatprep.mubr.msk.f32.mxu1 %vm26919_vm3, %v26909_v0 }
 0x8fe   : > { %24211 = vmatmul.mubr.msk.f32.gmra.mrb[24].mxu0 %vm16046_vm14, %v22570_v10  ;;  %v22607_v10 = vld [vmem:[%s31954_s5 + $0x150] sm:$0xff] }
 0x8ff   : > { %24903 = vmatmul.mubr.msk.f32.gmra.mrb[70].mxu1 %vm16046_vm14, %v22992_v27  ;;  %24213 = vmatprep.mubr.msk.f32.mxu0 %vm26919_vm3, %v26909_v0  ;;  %v23029_v27 = vld [vmem:[%s31954_s5 + $0x7f0] sm:$0xff] }
 0x900   : > { %24905 = vmatprep.mubr.msk.f32.mxu1 %vm26919_vm3, %v26909_v0 }
 0x902   : > { %24214 = vmatmul.mubr.msk.f32.gmra.mrb[26].mxu0 %vm16046_vm14, %v22571_v12  ;;  %v26768_v12 = vunpack.i.h.bf16 %v26766_v62 }
 0x903   : > { %24906 = vmatmul.mubr.msk.f32.gmra.mrb[72].mxu1 %vm16046_vm14, %v22993_v13  ;;  %24216 = vmatprep.mubr.msk.f32.mxu0 %vm26919_vm3, %v26909_v0  ;;  %v26767_v13 = vunpack.i.l.bf16 %v26766_v62  ;;  %v22659_v62 = vld [vmem:[%s31954_s5 + $0x200] sm:$0xff] }
 0x904   : > { %24908 = vmatprep.mubr.msk.f32.mxu1 %vm26919_vm3, %v26909_v0 }
 0x906   : > { %24217 = vmatmul.mubr.msk.f32.gmra.mrb[28].mxu0 %vm16046_vm14, %v22572_v29  ;;  %v22608_v29 = vld [vmem:[%s31954_s5 + $0x158] sm:$0xff] }
 0x907   : > { %24909 = vmatmul.mubr.msk.f32.gmra.mrb[74].mxu1 %vm16046_vm14, %v22994_v34  ;;  %24219 = vmatprep.mubr.msk.f32.mxu0 %vm26919_vm3, %v26909_v0  ;;  %v23045_v34 = vld [vmem:[%s31954_s5 + $0x7f8] sm:$0xff] }
 0x908   : > { %24911 = vmatprep.mubr.msk.f32.mxu1 %vm26919_vm3, %v26909_v0 }
 0x90a   : > { %24220 = vmatmul.mubr.msk.f32.gmra.mrb[30].mxu0 %vm16046_vm14, %v22573_v1  ;;  %v26761_v1 = vpop.permute.xlu1 %26760 }
 0x90b   : > { %24912 = vmatmul.mubr.msk.f32.gmra.mrb[76].mxu1 %vm16046_vm14, %v22995_v6  ;;  %24222 = vmatprep.mubr.msk.f32.mxu0 %vm26919_vm3, %v26909_v0  ;;  %v25510_v6 = vpack.c.bf16 %v26768_v12, %v26767_v13  ;;  %v23082_v12 = vld [vmem:[%s31954_s5 + $0x8a8] sm:$0xff]  ;;  %v22661_v13 = vld [vmem:[%s31954_s5 + $0x210] sm:$0xff] }
 0x90c   : > { %24914 = vmatprep.mubr.msk.f32.mxu1 %vm26919_vm3, %v26909_v0 }
 0x90e   : > { %24223 = vmatmul.mubr.msk.f32.gmra.mrb[32].mxu0 %vm16046_vm14, %v22574_v33  ;;  %v22609_v33 = vld [vmem:[%s31954_s5 + $0x160] sm:$0xff] }
 0x90f   : > { %24915 = vmatmul.mubr.msk.f32.gmra.mrb[78].mxu1 %vm16046_vm14, %v22996_v51  ;;  %24225 = vmatprep.mubr.msk.f32.mxu0 %vm26919_vm3, %v26909_v0  ;;  %v23046_v51 = vld [vmem:[%s31954_s5 + $0x800] sm:$0xff] }
 0x910   : > { %24917 = vmatprep.mubr.msk.f32.mxu1 %vm26919_vm3, %v26909_v0 }
 0x912   : > { %24226 = vmatmul.mubr.msk.f32.gmra.mrb[34].mxu0 %vm16046_vm14, %v22575_v49  ;;  %v26763_v49 = vunpack.i.h.bf16 %v26761_v1 }
 0x913   : > { %24918 = vmatmul.mubr.msk.f32.gmra.mrb[80].mxu1 %vm16046_vm14, %v22997_v17  ;;  %24228 = vmatprep.mubr.msk.f32.mxu0 %vm26919_vm3, %v26909_v0  ;;  %v26762_v17 = vunpack.i.l.bf16 %v26761_v1  ;;  %v23084_v1 = vld [vmem:[%s31954_s5 + $0x8b8] sm:$0xff] }
 0x914   : > { %24920 = vmatprep.mubr.msk.f32.mxu1 %vm26919_vm3, %v26909_v0 }
 0x915   : > { %v25468_v39 = vpack.c.bf16 %v26763_v49, %v26762_v17  ;;  %v23086_v49 = vld [vmem:[%s31954_s5 + $0x8c8] sm:$0xff]  ;;  %v22665_v17 = vld [vmem:[%s31954_s5 + $0x230] sm:$0xff] }
 0x916   : > { %24229 = vmatmul.mubr.msk.f32.gmra.mrb[36].mxu0 %vm16046_vm14, %v22576_v9  ;;  %v22625_v9 = vld [vmem:[%s31954_s5 + $0x168] sm:$0xff] }
 0x917   : > { %24921 = vmatmul.mubr.msk.f32.gmra.mrb[82].mxu1 %vm16046_vm14, %v22998_v16  ;;  %24231 = vmatprep.mubr.msk.f32.mxu0 %vm26919_vm3, %v26909_v0  ;;  %v23047_v16 = vld [vmem:[%s31954_s5 + $0x808] sm:$0xff] }
 0x918   : > { %24923 = vmatprep.mubr.msk.f32.mxu1 %vm26919_vm3, %v26909_v0 }
 0x91a   : > { %24232 = vmatmul.mubr.msk.f32.gmra.mrb[38].mxu0 %vm16046_vm14, %v22577_v24  ;;  %v22626_v24 = vld [vmem:[%s31954_s5 + $0x170] sm:$0xff] }
 0x91b   : > { %24924 = vmatmul.mubr.msk.f32.gmra.mrb[84].mxu1 %vm16046_vm14, %v22999_v36  ;;  %24234 = vmatprep.mubr.msk.f32.mxu0 %vm26919_vm3, %v26909_v0  ;;  %v23048_v36 = vld [vmem:[%s31954_s5 + $0x810] sm:$0xff] }
 0x91c   : > { %24930 = vmatprep.mubr.msk.f32.mxu1 %vm26919_vm3, %v26909_v0 }
 0x91e   : > { %24235 = vmatmul.mubr.msk.f32.gmra.mrb[40].mxu0 %vm16046_vm14, %v22578_v59  ;;  %v22628_v59 = vld [vmem:[%s31954_s5 + $0x180] sm:$0xff] }
 0x91f   : > { %24931 = vmatmul.mubr.msk.f32.vlgmr.msra.gmra.mrb[56].mxu1 %vm16046_vm14, %v23015_v18  ;;  %24237 = vmatprep.mubr.msk.f32.mxu0 %vm26919_vm3, %v26909_v0  ;;  %v23050_v18 = vld [vmem:[%s31954_s5 + $0x820] sm:$0xff] }
 0x920   : > { %25508 = vmatpush3.bf16.msra.mxu1 %v25507_v7  ;;  %24933 = vmatprep.mubr.msk.f32.mxu1 %vm26919_vm3, %v26909_v0  ;;  %v23051_v7 = vld [vmem:[%s31954_s5 + $0x828] sm:$0xff] }
 0x921   : > { %25509 = vmatprep.subr.bf16.mxu1 %v26935_v56 }
 0x922   : > { %24238 = vmatmul.mubr.msk.f32.gmra.mrb[42].mxu0 %vm16046_vm14, %v22579_v32  ;;  %v22630_v32 = vld [vmem:[%s31954_s5 + $0x190] sm:$0xff] }
 0x923   : > { %24934 = vmatmul.mubr.msk.f32.gmra.mrb[58].mxu1 %vm16046_vm14, %v23016_v53  ;;  %24244 = vmatprep.mubr.msk.f32.mxu0 %vm26919_vm3, %v26909_v0  ;;  %v23052_v53 = vld [vmem:[%s31954_s5 + $0x830] sm:$0xff] }
 0x924   : > { %24936 = vmatprep.mubr.msk.f32.mxu1 %vm26919_vm3, %v26909_v0 }
 0x926   : > { %24245 = vmatmul.mubr.msk.f32.vlgmr.msra.gmra.mrb[14].mxu0 %vm16046_vm14, %v22595_v21  ;;  %v22632_v21 = vld [vmem:[%s31954_s5 + $0x1a0] sm:$0xff] }
 0x927   : > { %24937 = vmatmul.mubr.msk.f32.gmra.mrb[60].mxu1 %vm16046_vm14, %v23017_v38  ;;  %25466 = vmatpush3.bf16.msra.mxu0 %v25465_v46  ;;  %v23054_v38 = vld [vmem:[%s31954_s5 + $0x840] sm:$0xff]  ;;  %v22633_v46 = vld [vmem:[%s31954_s5 + $0x1a8] sm:$0xff] }
 0x928   : > { %24939 = vmatprep.mubr.msk.f32.mxu1 %vm26919_vm3, %v26909_v0  ;;  %24247 = vmatprep.mubr.msk.f32.mxu0 %vm26919_vm3, %v26909_v0 }
 0x929   : > { %25467 = vmatprep.subr.bf16.mxu0 %v26935_v56 }
 0x92a   : > { %24248 = vmatmul.mubr.msk.f32.gmra.mrb[16].mxu0 %vm16046_vm14, %v22596_v22  ;;  %v23055_v22 = vld [vmem:[%s31954_s5 + $0x848] sm:$0xff] }
 0x92b   : > { %24940 = vmatmul.mubr.msk.f32.gmra.mrb[62].mxu1 %vm16046_vm14, %v23018_v19  ;;  %24250 = vmatprep.mubr.msk.f32.mxu0 %vm26919_vm3, %v26909_v0  ;;  %v22634_v19 = vld [vmem:[%s31954_s5 + $0x1b0] sm:$0xff] }
 0x92c   : > { %24942 = vmatprep.mubr.msk.f32.mxu1 %vm26919_vm3, %v26909_v0 }
 0x92e   : > { %24251 = vmatmul.mubr.msk.f32.gmra.mrb[18].mxu0 %vm16046_vm14, %v22597_v43  ;;  %v23056_v43 = vld [vmem:[%s31954_s5 + $0x850] sm:$0xff] }
 0x92f   : > { %24943 = vmatmul.mubr.msk.f32.gmra.mrb[64].mxu1 %vm16046_vm14, %v23019_v52  ;;  %24253 = vmatprep.mubr.msk.f32.mxu0 %vm26919_vm3, %v26909_v0  ;;  %v22635_v52 = vld [vmem:[%s31954_s5 + $0x1b8] sm:$0xff] }
 0x930   : > { %24945 = vmatprep.mubr.msk.f32.mxu1 %vm26919_vm3, %v26909_v0 }
 0x932   : > { %24254 = vmatmul.mubr.msk.f32.gmra.mrb[20].mxu0 %vm16046_vm14, %v22598_v47  ;;  %v23057_v47 = vld [vmem:[%s31954_s5 + $0x858] sm:$0xff] }
 0x933   : > { %24946 = vmatmul.mubr.msk.f32.gmra.mrb[66].mxu1 %vm16046_vm14, %v23020_v44  ;;  %24256 = vmatprep.mubr.msk.f32.mxu0 %vm26919_vm3, %v26909_v0  ;;  %v22636_v44 = vld [vmem:[%s31954_s5 + $0x1c0] sm:$0xff] }
 0x934   : > { %24948 = vmatprep.mubr.msk.f32.mxu1 %vm26919_vm3, %v26909_v0 }
 0x936   : > { %24257 = vmatmul.mubr.msk.f32.gmra.mrb[22].mxu0 %vm16046_vm14, %v22599_v40  ;;  %v23058_v40 = vld [vmem:[%s31954_s5 + $0x860] sm:$0xff] }
 0x937   : > { %24949 = vmatmul.mubr.msk.f32.gmra.mrb[68].mxu1 %vm16046_vm14, %v23021_v14  ;;  %24259 = vmatprep.mubr.msk.f32.mxu0 %vm26919_vm3, %v26909_v0  ;;  %v26771_v14 = vpop.permute.xlu1 %26770 }
 0x938   : > { %24951 = vmatprep.mubr.msk.f32.mxu1 %vm26919_vm3, %v26909_v0 }
 0x93a   : > { %24260 = vmatmul.mubr.msk.f32.gmra.mrb[24].mxu0 %vm16046_vm14, %v22600_v23  ;;  %v22637_v23 = vld [vmem:[%s31954_s5 + $0x1c8] sm:$0xff] }
 0x93b   : > { %24952 = vmatmul.mubr.msk.f32.gmra.mrb[70].mxu1 %vm16046_vm14, %v23022_v28  ;;  %24262 = vmatprep.mubr.msk.f32.mxu0 %vm26919_vm3, %v26909_v0  ;;  %v23059_v28 = vld [vmem:[%s31954_s5 + $0x868] sm:$0xff] }
 0x93c   : > { %24954 = vmatprep.mubr.msk.f32.mxu1 %vm26919_vm3, %v26909_v0 }
 0x93e   : > { %24263 = vmatmul.mubr.msk.f32.gmra.mrb[26].mxu0 %vm16046_vm14, %v22601_v4  ;;  %v26773_v4 = vunpack.i.h.bf16 %v26771_v14 }
 0x93f   : > { %24955 = vmatmul.mubr.msk.f32.gmra.mrb[72].mxu1 %vm16046_vm14, %v23023_v58  ;;  %24265 = vmatprep.mubr.msk.f32.mxu0 %vm26919_vm3, %v26909_v0  ;;  %v26772_v58 = vunpack.i.l.bf16 %v26771_v14  ;;  %v23114_v14 = vld [vmem:[%s31954_s5 + $0x930] sm:$0xff] }
 0x940   : > { %24957 = vmatprep.mubr.msk.f32.mxu1 %vm26919_vm3, %v26909_v0 }
 0x942   : > { %24266 = vmatmul.mubr.msk.f32.gmra.mrb[28].mxu0 %vm16046_vm14, %v22602_v8  ;;  %v22638_v8 = vld [vmem:[%s31954_s5 + $0x1d0] sm:$0xff] }
 0x943   : > { %24958 = vmatmul.mubr.msk.f32.gmra.mrb[74].mxu1 %vm16046_vm14, %v23024_v35  ;;  %24268 = vmatprep.mubr.msk.f32.mxu0 %vm26919_vm3, %v26909_v0  ;;  %v23075_v35 = vld [vmem:[%s31954_s5 + $0x870] sm:$0xff] }
 0x944   : > { %24960 = vmatprep.mubr.msk.f32.mxu1 %vm26919_vm3, %v26909_v0 }
 0x946   : > { %24269 = vmatmul.mubr.msk.f32.gmra.mrb[30].mxu0 %vm16046_vm14, %v22603_v41  ;;  %v25513_v41 = vpack.c.bf16 %v26773_v4, %v26772_v58  ;;  %v22694_v4 = vld [vmem:[%s31954_s5 + $0x2a0] sm:$0xff] }
 0x947   : > { %24961 = vmatmul.mubr.msk.f32.gmra.mrb[76].mxu1 %vm16046_vm14, %v23025_v25  ;;  %24271 = vmatprep.mubr.msk.f32.mxu0 %vm26919_vm3, %v26909_v0  ;;  %v22639_v25 = vld [vmem:[%s31954_s5 + $0x1d8] sm:$0xff]  ;;  %v23116_v58 = vld [vmem:[%s31954_s5 + $0x940] sm:$0xff] }
 0x948   : > { %24963 = vmatprep.mubr.msk.f32.mxu1 %vm26919_vm3, %v26909_v0 }
 0x94a   : > { %24272 = vmatmul.mubr.msk.f32.gmra.mrb[32].mxu0 %vm16046_vm14, %v22604_v50  ;;  %v23076_v50 = vld [vmem:[%s31954_s5 + $0x878] sm:$0xff] }
 0x94b   : > { %24964 = vmatmul.mubr.msk.f32.gmra.mrb[78].mxu1 %vm16046_vm14, %v23026_v55  ;;  %24274 = vmatprep.mubr.msk.f32.mxu0 %vm26919_vm3, %v26909_v0  ;;  %v22655_v55 = vld [vmem:[%s31954_s5 + $0x1e0] sm:$0xff] }
 0x94c   : > { %24966 = vmatprep.mubr.msk.f32.mxu1 %vm26919_vm3, %v26909_v0 }
 0x94e   : > { %24275 = vmatmul.mubr.msk.f32.gmra.mrb[34].mxu0 %vm16046_vm14, %v22605_v20  ;;  %v23077_v20 = vld [vmem:[%s31954_s5 + $0x880] sm:$0xff] }
 0x94f   : > { %24967 = vmatmul.mubr.msk.f32.gmra.mrb[80].mxu1 %vm16046_vm14, %v23027_v3  ;;  %24277 = vmatprep.mubr.msk.f32.mxu0 %vm26919_vm3, %v26909_v0  ;;  %v22656_v3 = vld [vmem:[%s31954_s5 + $0x1e8] sm:$0xff] }
 0x950   : > { %24969 = vmatprep.mubr.msk.f32.mxu1 %vm26919_vm3, %v26909_v0 }
 0x952   : > { %24278 = vmatmul.mubr.msk.f32.gmra.mrb[36].mxu0 %vm16046_vm14, %v22606_v31  ;;  %v23078_v31 = vld [vmem:[%s31954_s5 + $0x888] sm:$0xff] }
 0x953   : > { %24970 = vmatmul.mubr.msk.f32.gmra.mrb[82].mxu1 %vm16046_vm14, %v23028_v60  ;;  %24280 = vmatprep.mubr.msk.f32.mxu0 %vm26919_vm3, %v26909_v0  ;;  %v23080_v60 = vld [vmem:[%s31954_s5 + $0x898] sm:$0xff] }
 0x954   : > { %24972 = vmatprep.mubr.msk.f32.mxu1 %vm26919_vm3, %v26909_v0 }
 0x956   : > { %24281 = vmatmul.mubr.msk.f32.gmra.mrb[38].mxu0 %vm16046_vm14, %v22607_v10  ;;  %v23081_v10 = vld [vmem:[%s31954_s5 + $0x8a0] sm:$0xff] }
 0x957   : > { %24973 = vmatmul.mubr.msk.f32.gmra.mrb[84].mxu1 %vm16046_vm14, %v23029_v27  ;;  %24283 = vmatprep.mubr.msk.f32.mxu0 %vm26919_vm3, %v26909_v0  ;;  %v22660_v27 = vld [vmem:[%s31954_s5 + $0x208] sm:$0xff] }
 0x958   : > { %24979 = vmatprep.mubr.msk.f32.mxu1 %vm26919_vm3, %v26909_v0 }
 0x95a   : > { %24284 = vmatmul.mubr.msk.f32.gmra.mrb[40].mxu0 %vm16046_vm14, %v22608_v29  ;;  %v23083_v29 = vld [vmem:[%s31954_s5 + $0x8b0] sm:$0xff] }
 0x95b   : > { %24980 = vmatmul.mubr.msk.f32.vlgmr.msra.gmra.mrb[56].mxu1 %vm16046_vm14, %v23045_v34  ;;  %24286 = vmatprep.mubr.msk.f32.mxu0 %vm26919_vm3, %v26909_v0  ;;  %v22662_v34 = vld [vmem:[%s31954_s5 + $0x218] sm:$0xff] }
 0x95c   : > { %25511 = vmatpush3.bf16.msra.mxu1 %v25510_v6  ;;  %24982 = vmatprep.mubr.msk.f32.mxu1 %vm26919_vm3, %v26909_v0  ;;  %v22663_v6 = vld [vmem:[%s31954_s5 + $0x220] sm:$0xff] }
 0x95d   : > { %25512 = vmatprep.subr.bf16.mxu1 %v26935_v56 }
 0x95e   : > { %24287 = vmatmul.mubr.msk.f32.gmra.mrb[42].mxu0 %vm16046_vm14, %v22609_v33  ;;  %v23085_v33 = vld [vmem:[%s31954_s5 + $0x8c0] sm:$0xff] }
 0x95f   : > { %24983 = vmatmul.mubr.msk.f32.gmra.mrb[58].mxu1 %vm16046_vm14, %v23046_v51  ;;  %24293 = vmatprep.mubr.msk.f32.mxu0 %vm26919_vm3, %v26909_v0  ;;  %v22664_v51 = vld [vmem:[%s31954_s5 + $0x228] sm:$0xff] }
 0x960   : > { %24985 = vmatprep.mubr.msk.f32.mxu1 %vm26919_vm3, %v26909_v0 }
 0x962   : > { %24294 = vmatmul.mubr.msk.f32.vlgmr.msra.gmra.mrb[14].mxu0 %vm16046_vm14, %v22625_v9  ;;  %v23087_v9 = vld [vmem:[%s31954_s5 + $0x8d0] sm:$0xff] }
 0x963   : > { %24986 = vmatmul.mubr.msk.f32.gmra.mrb[60].mxu1 %vm16046_vm14, %v23047_v16  ;;  %25469 = vmatpush3.bf16.msra.mxu0 %v25468_v39  ;;  %v22666_v16 = vld [vmem:[%s31954_s5 + $0x238] sm:$0xff] }
 0x964   : > { %24988 = vmatprep.mubr.msk.f32.mxu1 %vm26919_vm3, %v26909_v0  ;;  %24296 = vmatprep.mubr.msk.f32.mxu0 %vm26919_vm3, %v26909_v0  ;;  %v23088_v39 = vld [vmem:[%s31954_s5 + $0x8d8] sm:$0xff] }
 0x965   : > { %25470 = vmatprep.subr.bf16.mxu0 %v26935_v56 }
 0x966   : > { %24297 = vmatmul.mubr.msk.f32.gmra.mrb[16].mxu0 %vm16046_vm14, %v22626_v24  ;;  %v22667_v24 = vld [vmem:[%s31954_s5 + $0x240] sm:$0xff] }
 0x967   : > { %24989 = vmatmul.mubr.msk.f32.gmra.mrb[62].mxu1 %vm16046_vm14, %v23048_v36  ;;  %24299 = vmatprep.mubr.msk.f32.mxu0 %vm26919_vm3, %v26909_v0  ;;  %v23089_v36 = vld [vmem:[%s31954_s5 + $0x8e0] sm:$0xff] }
 0x968   : > { %24991 = vmatprep.mubr.msk.f32.mxu1 %vm26919_vm3, %v26909_v0 }
 0x96a   : > { %24300 = vmatmul.mubr.msk.f32.gmra.mrb[18].mxu0 %vm16046_vm14, %v22627_v57  ;;  %v22668_v57 = vld [vmem:[%s31954_s5 + $0x248] sm:$0xff] }
 0x96b   : > { %24992 = vmatmul.mubr.msk.f32.gmra.mrb[64].mxu1 %vm16046_vm14, %v23049_v2  ;;  %24302 = vmatprep.mubr.msk.f32.mxu0 %vm26919_vm3, %v26909_v0  ;;  %v23105_v2 = vld [vmem:[%s31954_s5 + $0x8e8] sm:$0xff] }
 0x96c   : > { %24994 = vmatprep.mubr.msk.f32.mxu1 %vm26919_vm3, %v26909_v0 }
 0x96e   : > { %24303 = vmatmul.mubr.msk.f32.gmra.mrb[20].mxu0 %vm16046_vm14, %v22628_v59  ;;  %v26776_v59 = vpop.permute.xlu0 %26775 }
 0x96f   : > { %24995 = vmatmul.mubr.msk.f32.gmra.mrb[66].mxu1 %vm16046_vm14, %v23050_v18  ;;  %24305 = vmatprep.mubr.msk.f32.mxu0 %vm26919_vm3, %v26909_v0  ;;  %v22669_v18 = vld [vmem:[%s31954_s5 + $0x250] sm:$0xff] }
 0x970   : > { %24997 = vmatprep.mubr.msk.f32.mxu1 %vm26919_vm3, %v26909_v0 }
 0x972   : > { %24306 = vmatmul.mubr.msk.f32.gmra.mrb[22].mxu0 %vm16046_vm14, %v22629_v15  ;;  %v23106_v15 = vld [vmem:[%s31954_s5 + $0x8f0] sm:$0xff] }
 0x973   : > { %24998 = vmatmul.mubr.msk.f32.gmra.mrb[68].mxu1 %vm16046_vm14, %v23051_v7  ;;  %24308 = vmatprep.mubr.msk.f32.mxu0 %vm26919_vm3, %v26909_v0  ;;  %v26778_v7 = vunpack.i.h.bf16 %v26776_v59 }
 0x974   : > { %25000 = vmatprep.mubr.msk.f32.mxu1 %vm26919_vm3, %v26909_v0 }
 0x976   : > { %24309 = vmatmul.mubr.msk.f32.gmra.mrb[24].mxu0 %vm16046_vm14, %v22630_v32  ;;  %v26777_v32 = vunpack.i.l.bf16 %v26776_v59  ;;  %v23144_v59 = vld [vmem:[%s31954_s5 + $0x9a8] sm:$0xff] }
 0x977   : > { %25001 = vmatmul.mubr.msk.f32.gmra.mrb[70].mxu1 %vm16046_vm14, %v23052_v53  ;;  %24311 = vmatprep.mubr.msk.f32.mxu0 %vm26919_vm3, %v26909_v0  ;;  %v22686_v53 = vld [vmem:[%s31954_s5 + $0x260] sm:$0xff] }
 0x978   : > { %25003 = vmatprep.mubr.msk.f32.mxu1 %vm26919_vm3, %v26909_v0 }
 0x97a   : > { %24312 = vmatmul.mubr.msk.f32.gmra.mrb[26].mxu0 %vm16046_vm14, %v22631_v63  ;;  %v23108_v63 = vld [vmem:[%s31954_s5 + $0x900] sm:$0xff] }
 0x97b   : > { %25004 = vmatmul.mubr.msk.f32.gmra.mrb[72].mxu1 %vm16046_vm14, %v23053_v37  ;;  %24314 = vmatprep.mubr.msk.f32.mxu0 %vm26919_vm3, %v26909_v0  ;;  %v22687_v37 = vld [vmem:[%s31954_s5 + $0x268] sm:$0xff] }
 0x97c   : > { %25006 = vmatprep.mubr.msk.f32.mxu1 %vm26919_vm3, %v26909_v0 }
 0x97e   : > { %24315 = vmatmul.mubr.msk.f32.gmra.mrb[28].mxu0 %vm16046_vm14, %v22632_v21  ;;  %v23109_v21 = vld [vmem:[%s31954_s5 + $0x908] sm:$0xff] }
 0x97f   : > { %25007 = vmatmul.mubr.msk.f32.gmra.mrb[74].mxu1 %vm16046_vm14, %v23054_v38  ;;  %24317 = vmatprep.mubr.msk.f32.mxu0 %vm26919_vm3, %v26909_v0  ;;  %v22688_v38 = vld [vmem:[%s31954_s5 + $0x270] sm:$0xff] }
 0x980   : > { %25009 = vmatprep.mubr.msk.f32.mxu1 %vm26919_vm3, %v26909_v0 }
 0x982   : > { %24318 = vmatmul.mubr.msk.f32.gmra.mrb[30].mxu0 %vm16046_vm14, %v22633_v46  ;;  %v23110_v46 = vld [vmem:[%s31954_s5 + $0x910] sm:$0xff] }
 0x983   : > { %25010 = vmatmul.mubr.msk.f32.gmra.mrb[76].mxu1 %vm16046_vm14, %v23055_v22  ;;  %24320 = vmatprep.mubr.msk.f32.mxu0 %vm26919_vm3, %v26909_v0  ;;  %v22689_v22 = vld [vmem:[%s31954_s5 + $0x278] sm:$0xff] }
 0x984   : > { %25012 = vmatprep.mubr.msk.f32.mxu1 %vm26919_vm3, %v26909_v0 }
 0x986   : > { %24321 = vmatmul.mubr.msk.f32.gmra.mrb[32].mxu0 %vm16046_vm14, %v22634_v19  ;;  %v23111_v19 = vld [vmem:[%s31954_s5 + $0x918] sm:$0xff] }
 0x987   : > { %25013 = vmatmul.mubr.msk.f32.gmra.mrb[78].mxu1 %vm16046_vm14, %v23056_v43  ;;  %24323 = vmatprep.mubr.msk.f32.mxu0 %vm26919_vm3, %v26909_v0  ;;  %v22690_v43 = vld [vmem:[%s31954_s5 + $0x280] sm:$0xff] }
 0x988   : > { %25015 = vmatprep.mubr.msk.f32.mxu1 %vm26919_vm3, %v26909_v0 }
 0x98a   : > { %24324 = vmatmul.mubr.msk.f32.gmra.mrb[34].mxu0 %vm16046_vm14, %v22635_v52  ;;  %v23112_v52 = vld [vmem:[%s31954_s5 + $0x920] sm:$0xff] }
 0x98b   : > { %25016 = vmatmul.mubr.msk.f32.gmra.mrb[80].mxu1 %vm16046_vm14, %v23057_v47  ;;  %24326 = vmatprep.mubr.msk.f32.mxu0 %vm26919_vm3, %v26909_v0  ;;  %v22691_v47 = vld [vmem:[%s31954_s5 + $0x288] sm:$0xff] }
 0x98c   : > { %25018 = vmatprep.mubr.msk.f32.mxu1 %vm26919_vm3, %v26909_v0 }
 0x98e   : > { %24327 = vmatmul.mubr.msk.f32.gmra.mrb[36].mxu0 %vm16046_vm14, %v22636_v44  ;;  %v23113_v44 = vld [vmem:[%s31954_s5 + $0x928] sm:$0xff] }
 0x98f   : > { %25019 = vmatmul.mubr.msk.f32.gmra.mrb[82].mxu1 %vm16046_vm14, %v23058_v40  ;;  %24329 = vmatprep.mubr.msk.f32.mxu0 %vm26919_vm3, %v26909_v0  ;;  %v22692_v40 = vld [vmem:[%s31954_s5 + $0x290] sm:$0xff] }
 0x990   : > { %25021 = vmatprep.mubr.msk.f32.mxu1 %vm26919_vm3, %v26909_v0 }
 0x992   : > { %24330 = vmatmul.mubr.msk.f32.gmra.mrb[38].mxu0 %vm16046_vm14, %v22637_v23  ;;  %v22693_v23 = vld [vmem:[%s31954_s5 + $0x298] sm:$0xff] }
 0x993   : > { %25022 = vmatmul.mubr.msk.f32.gmra.mrb[84].mxu1 %vm16046_vm14, %v23059_v28  ;;  %24332 = vmatprep.mubr.msk.f32.mxu0 %vm26919_vm3, %v26909_v0  ;;  %v23115_v28 = vld [vmem:[%s31954_s5 + $0x938] sm:$0xff] }
 0x994   : > { %25028 = vmatprep.mubr.msk.f32.mxu1 %vm26919_vm3, %v26909_v0 }
 0x996   : > { %24333 = vmatmul.mubr.msk.f32.gmra.mrb[40].mxu0 %vm16046_vm14, %v22638_v8  ;;  %v22695_v8 = vld [vmem:[%s31954_s5 + $0x2a8] sm:$0xff] }
 0x997   : > { %25029 = vmatmul.mubr.msk.f32.vlgmr.msra.gmra.mrb[56].mxu1 %vm16046_vm14, %v23075_v35  ;;  %24335 = vmatprep.mubr.msk.f32.mxu0 %vm26919_vm3, %v26909_v0  ;;  %v23117_v35 = vld [vmem:[%s31954_s5 + $0x948] sm:$0xff] }
 0x998   : > { %25514 = vmatpush3.bf16.msra.mxu1 %v25513_v41  ;;  %25031 = vmatprep.mubr.msk.f32.mxu1 %vm26919_vm3, %v26909_v0  ;;  %v22696_v41 = vld [vmem:[%s31954_s5 + $0x2b0] sm:$0xff] }
 0x999   : > { %25515 = vmatprep.subr.bf16.mxu1 %v26935_v56 }
 0x99a   : > { %24336 = vmatmul.mubr.msk.f32.gmra.mrb[42].mxu0 %vm16046_vm14, %v22639_v25  ;;  %v23118_v25 = vld [vmem:[%s31954_s5 + $0x950] sm:$0xff] }
 0x99b   : > { %25032 = vmatmul.mubr.msk.f32.gmra.mrb[58].mxu1 %vm16046_vm14, %v23076_v50  ;;  %24342 = vmatprep.mubr.msk.f32.mxu0 %vm26919_vm3, %v26909_v0  ;;  %v26786_v50 = vpop.permute.xlu0 %26785 }
 0x99c   : > { %25034 = vmatprep.mubr.msk.f32.mxu1 %vm26919_vm3, %v26909_v0 }
 0x99e   : > { %24343 = vmatmul.mubr.msk.f32.vlgmr.msra.gmra.mrb[14].mxu0 %vm16046_vm14, %v22655_v55  ;;  %v22697_v55 = vld [vmem:[%s31954_s5 + $0x2b8] sm:$0xff] }
 0x99f   : > { %25035 = vmatmul.mubr.msk.f32.gmra.mrb[60].mxu1 %vm16046_vm14, %v23077_v20  ;;  %25472 = vmatpush3.bf16.msra.mxu0 %v25471_v54  ;;  %v22658_v54 = vld [vmem:[%s31954_s5 + $0x1f8] sm:$0xff] }
 0x9a0   : > { %25037 = vmatprep.mubr.msk.f32.mxu1 %vm26919_vm3, %v26909_v0  ;;  %24345 = vmatprep.mubr.msk.f32.mxu0 %vm26919_vm3, %v26909_v0  ;;  %v23119_v20 = vld [vmem:[%s31954_s5 + $0x958] sm:$0xff] }
 0x9a1   : > { %25473 = vmatprep.subr.bf16.mxu0 %v26935_v56 }
 0x9a2   : > { %24346 = vmatmul.mubr.msk.f32.gmra.mrb[16].mxu0 %vm16046_vm14, %v22656_v3  ;;  %v26788_v3 = vunpack.i.h.bf16 %v26786_v50 }
 0x9a3   : > { %25038 = vmatmul.mubr.msk.f32.gmra.mrb[62].mxu1 %vm16046_vm14, %v23078_v31  ;;  %24348 = vmatprep.mubr.msk.f32.mxu0 %vm26919_vm3, %v26909_v0  ;;  %v26787_v31 = vunpack.i.l.bf16 %v26786_v50  ;;  %v23170_v50 = vld [vmem:[%s31954_s5 + $0xa00] sm:$0xff] }
 0x9a4   : > { %25040 = vmatprep.mubr.msk.f32.mxu1 %vm26919_vm3, %v26909_v0 }
 0x9a6   : > { %24349 = vmatmul.mubr.msk.f32.gmra.mrb[18].mxu0 %vm16046_vm14, %v22657_v45  ;;  %v22698_v45 = vld [vmem:[%s31954_s5 + $0x2c0] sm:$0xff] }
 0x9a7   : > { %25041 = vmatmul.mubr.msk.f32.gmra.mrb[64].mxu1 %vm16046_vm14, %v23079_v42  ;;  %24351 = vmatprep.mubr.msk.f32.mxu0 %vm26919_vm3, %v26909_v0  ;;  %v23135_v42 = vld [vmem:[%s31954_s5 + $0x960] sm:$0xff] }
 0x9a8   : > { %25043 = vmatprep.mubr.msk.f32.mxu1 %vm26919_vm3, %v26909_v0 }
 0x9aa   : > { %24352 = vmatmul.mubr.msk.f32.gmra.mrb[20].mxu0 %vm16046_vm14, %v22658_v54  ;;  %v26781_v54 = vpop.permute.xlu1 %26780 }
 0x9ab   : > { %25044 = vmatmul.mubr.msk.f32.gmra.mrb[66].mxu1 %vm16046_vm14, %v23080_v60  ;;  %24354 = vmatprep.mubr.msk.f32.mxu0 %vm26919_vm3, %v26909_v0  ;;  %v25519_v60 = vpack.c.bf16 %v26788_v3, %v26787_v31  ;;  %v22750_v3 = vld [vmem:[%s31954_s5 + $0x370] sm:$0xff] }
 0x9ac   : > { %25046 = vmatprep.mubr.msk.f32.mxu1 %vm26919_vm3, %v26909_v0  ;;  %v23172_v31 = vld [vmem:[%s31954_s5 + $0xa10] sm:$0xff] }
 0x9ae   : > { %24355 = vmatmul.mubr.msk.f32.gmra.mrb[22].mxu0 %vm16046_vm14, %v22659_v62  ;;  %v22699_v62 = vld [vmem:[%s31954_s5 + $0x2c8] sm:$0xff] }
 0x9af   : > { %25047 = vmatmul.mubr.msk.f32.gmra.mrb[68].mxu1 %vm16046_vm14, %v23081_v10  ;;  %24357 = vmatprep.mubr.msk.f32.mxu0 %vm26919_vm3, %v26909_v0  ;;  %v23136_v10 = vld [vmem:[%s31954_s5 + $0x968] sm:$0xff] }
 0x9b0   : > { %25049 = vmatprep.mubr.msk.f32.mxu1 %vm26919_vm3, %v26909_v0 }
 0x9b2   : > { %24358 = vmatmul.mubr.msk.f32.gmra.mrb[24].mxu0 %vm16046_vm14, %v22660_v27  ;;  %v26783_v27 = vunpack.i.h.bf16 %v26781_v54 }
 0x9b3   : > { %25050 = vmatmul.mubr.msk.f32.gmra.mrb[70].mxu1 %vm16046_vm14, %v23082_v12  ;;  %24360 = vmatprep.mubr.msk.f32.mxu0 %vm26919_vm3, %v26909_v0  ;;  %v26782_v12 = vunpack.i.l.bf16 %v26781_v54  ;;  %v22752_v54 = vld [vmem:[%s31954_s5 + $0x380] sm:$0xff] }
 0x9b4   : > { %25052 = vmatprep.mubr.msk.f32.mxu1 %vm26919_vm3, %v26909_v0 }
 0x9b6   : > { %24361 = vmatmul.mubr.msk.f32.gmra.mrb[26].mxu0 %vm16046_vm14, %v22661_v13  ;;  %v22715_v13 = vld [vmem:[%s31954_s5 + $0x2d0] sm:$0xff] }
 0x9b7   : > { %25053 = vmatmul.mubr.msk.f32.gmra.mrb[72].mxu1 %vm16046_vm14, %v23083_v29  ;;  %24363 = vmatprep.mubr.msk.f32.mxu0 %vm26919_vm3, %v26909_v0  ;;  %v23137_v29 = vld [vmem:[%s31954_s5 + $0x970] sm:$0xff] }
 0x9b8   : > { %25055 = vmatprep.mubr.msk.f32.mxu1 %vm26919_vm3, %v26909_v0 }
 0x9ba   : > { %24364 = vmatmul.mubr.msk.f32.gmra.mrb[28].mxu0 %vm16046_vm14, %v22662_v34  ;;  %v25477_v34 = vpack.c.bf16 %v26783_v27, %v26782_v12  ;;  %v22754_v27 = vld [vmem:[%s31954_s5 + $0x390] sm:$0xff] }
 0x9bb   : > { %25056 = vmatmul.mubr.msk.f32.gmra.mrb[74].mxu1 %vm16046_vm14, %v23084_v1  ;;  %24366 = vmatprep.mubr.msk.f32.mxu0 %vm26919_vm3, %v26909_v0  ;;  %v22716_v1 = vld [vmem:[%s31954_s5 + $0x2d8] sm:$0xff]  ;;  %v23176_v12 = vld [vmem:[%s31954_s5 + $0xa30] sm:$0xff] }
 0x9bc   : > { %25058 = vmatprep.mubr.msk.f32.mxu1 %vm26919_vm3, %v26909_v0 }
 0x9be   : > { %24367 = vmatmul.mubr.msk.f32.gmra.mrb[30].mxu0 %vm16046_vm14, %v22663_v6  ;;  %v23138_v6 = vld [vmem:[%s31954_s5 + $0x978] sm:$0xff] }
 0x9bf   : > { %25059 = vmatmul.mubr.msk.f32.gmra.mrb[76].mxu1 %vm16046_vm14, %v23085_v33  ;;  %24369 = vmatprep.mubr.msk.f32.mxu0 %vm26919_vm3, %v26909_v0  ;;  %v22717_v33 = vld [vmem:[%s31954_s5 + $0x2e0] sm:$0xff] }
 0x9c0   : > { %25061 = vmatprep.mubr.msk.f32.mxu1 %vm26919_vm3, %v26909_v0 }
 0x9c2   : > { %24370 = vmatmul.mubr.msk.f32.gmra.mrb[32].mxu0 %vm16046_vm14, %v22664_v51  ;;  %v23139_v51 = vld [vmem:[%s31954_s5 + $0x980] sm:$0xff] }
 0x9c3   : > { %25062 = vmatmul.mubr.msk.f32.gmra.mrb[78].mxu1 %vm16046_vm14, %v23086_v49  ;;  %24372 = vmatprep.mubr.msk.f32.mxu0 %vm26919_vm3, %v26909_v0  ;;  %v22718_v49 = vld [vmem:[%s31954_s5 + $0x2e8] sm:$0xff] }
 0x9c4   : > { %25064 = vmatprep.mubr.msk.f32.mxu1 %vm26919_vm3, %v26909_v0 }
 0x9c6   : > { %24373 = vmatmul.mubr.msk.f32.gmra.mrb[34].mxu0 %vm16046_vm14, %v22665_v17  ;;  %v23140_v17 = vld [vmem:[%s31954_s5 + $0x988] sm:$0xff] }
 0x9c7   : > { %25065 = vmatmul.mubr.msk.f32.gmra.mrb[80].mxu1 %vm16046_vm14, %v23087_v9  ;;  %24375 = vmatprep.mubr.msk.f32.mxu0 %vm26919_vm3, %v26909_v0  ;;  %v22719_v9 = vld [vmem:[%s31954_s5 + $0x2f0] sm:$0xff] }
 0x9c8   : > { %25067 = vmatprep.mubr.msk.f32.mxu1 %vm26919_vm3, %v26909_v0 }
 0x9ca   : > { %24376 = vmatmul.mubr.msk.f32.gmra.mrb[36].mxu0 %vm16046_vm14, %v22666_v16  ;;  %v23141_v16 = vld [vmem:[%s31954_s5 + $0x990] sm:$0xff] }
 0x9cb   : > { %25068 = vmatmul.mubr.msk.f32.gmra.mrb[82].mxu1 %vm16046_vm14, %v23088_v39  ;;  %24378 = vmatprep.mubr.msk.f32.mxu0 %vm26919_vm3, %v26909_v0  ;;  %v22720_v39 = vld [vmem:[%s31954_s5 + $0x2f8] sm:$0xff] }
 0x9cc   : > { %25070 = vmatprep.mubr.msk.f32.mxu1 %vm26919_vm3, %v26909_v0 }
 0x9ce   : > { %24379 = vmatmul.mubr.msk.f32.gmra.mrb[38].mxu0 %vm16046_vm14, %v22667_v24  ;;  %v23142_v24 = vld [vmem:[%s31954_s5 + $0x998] sm:$0xff] }
 0x9cf   : > { %25071 = vmatmul.mubr.msk.f32.gmra.mrb[84].mxu1 %vm16046_vm14, %v23089_v36  ;;  %24381 = vmatprep.mubr.msk.f32.mxu0 %vm26919_vm3, %v26909_v0  ;;  %v22721_v36 = vld [vmem:[%s31954_s5 + $0x300] sm:$0xff] }
 0x9d0   : > { %25077 = vmatprep.mubr.msk.f32.mxu1 %vm26919_vm3, %v26909_v0 }
 0x9d2   : > { %24382 = vmatmul.mubr.msk.f32.gmra.mrb[40].mxu0 %vm16046_vm14, %v22668_v57  ;;  %v23143_v57 = vld [vmem:[%s31954_s5 + $0x9a0] sm:$0xff] }
 0x9d3   : > { %25078 = vmatmul.mubr.msk.f32.vlgmr.msra.gmra.mrb[56].mxu1 %vm16046_vm14, %v23105_v2  ;;  %24384 = vmatprep.mubr.msk.f32.mxu0 %vm26919_vm3, %v26909_v0  ;;  %v22722_v2 = vld [vmem:[%s31954_s5 + $0x308] sm:$0xff] }
 0x9d4   : > { %25517 = vmatpush3.bf16.msra.mxu1 %v25516_v11  ;;  %25080 = vmatprep.mubr.msk.f32.mxu1 %vm26919_vm3, %v26909_v0  ;;  %v25474_v11 = vpack.c.bf16 %v26778_v7, %v26777_v32  ;;  %v22724_v7 = vld [vmem:[%s31954_s5 + $0x318] sm:$0xff] }
 0x9d5   : > { %25518 = vmatprep.subr.bf16.mxu1 %v26935_v56  ;;  %v23146_v32 = vld [vmem:[%s31954_s5 + $0x9b8] sm:$0xff] }
 0x9d6   : > { %24385 = vmatmul.mubr.msk.f32.gmra.mrb[42].mxu0 %vm16046_vm14, %v22669_v18  ;;  %v22723_v18 = vld [vmem:[%s31954_s5 + $0x310] sm:$0xff] }
 0x9d7   : > { %25081 = vmatmul.mubr.msk.f32.gmra.mrb[58].mxu1 %vm16046_vm14, %v23106_v15  ;;  %24391 = vmatprep.mubr.msk.f32.mxu0 %vm26919_vm3, %v26909_v0  ;;  %v23145_v15 = vld [vmem:[%s31954_s5 + $0x9b0] sm:$0xff] }
 0x9d8   : > { %25083 = vmatprep.mubr.msk.f32.mxu1 %vm26919_vm3, %v26909_v0 }
 0x9da   : > { %24392 = vmatmul.mubr.msk.f32.vlgmr.msra.gmra.mrb[14].mxu0 %vm16046_vm14, %v22685_v48  ;;  %v22725_v48 = vld [vmem:[%s31954_s5 + $0x320] sm:$0xff] }
 0x9db   : > { %25084 = vmatmul.mubr.msk.f32.gmra.mrb[60].mxu1 %vm16046_vm14, %v23107_v61  ;;  %25475 = vmatpush3.bf16.msra.mxu0 %v25474_v11  ;;  %v23147_v61 = vld [vmem:[%s31954_s5 + $0x9c0] sm:$0xff]  ;;  %v22726_v11 = vld [vmem:[%s31954_s5 + $0x328] sm:$0xff] }
 0x9dc   : > { %25086 = vmatprep.mubr.msk.f32.mxu1 %vm26919_vm3, %v26909_v0  ;;  %24394 = vmatprep.mubr.msk.f32.mxu0 %vm26919_vm3, %v26909_v0 }
 0x9dd   : > { %25476 = vmatprep.subr.bf16.mxu0 %v26935_v56 }
 0x9de   : > { %24395 = vmatmul.mubr.msk.f32.gmra.mrb[16].mxu0 %vm16046_vm14, %v22686_v53  ;;  %v23148_v53 = vld [vmem:[%s31954_s5 + $0x9c8] sm:$0xff] }
 0x9df   : > { %25087 = vmatmul.mubr.msk.f32.gmra.mrb[62].mxu1 %vm16046_vm14, %v23108_v63  ;;  %24397 = vmatprep.mubr.msk.f32.mxu0 %vm26919_vm3, %v26909_v0  ;;  %v26796_v63 = vpop.permute.xlu0 %26795 }
 0x9e0   : > { %25089 = vmatprep.mubr.msk.f32.mxu1 %vm26919_vm3, %v26909_v0 }
 0x9e2   : > { %24398 = vmatmul.mubr.msk.f32.gmra.mrb[18].mxu0 %vm16046_vm14, %v22687_v37  ;;  %v22727_v37 = vld [vmem:[%s31954_s5 + $0x330] sm:$0xff] }
 0x9e3   : > { %25090 = vmatmul.mubr.msk.f32.gmra.mrb[64].mxu1 %vm16046_vm14, %v23109_v21  ;;  %24400 = vmatprep.mubr.msk.f32.mxu0 %vm26919_vm3, %v26909_v0  ;;  %v23149_v21 = vld [vmem:[%s31954_s5 + $0x9d0] sm:$0xff] }
 0x9e4   : > { %25092 = vmatprep.mubr.msk.f32.mxu1 %vm26919_vm3, %v26909_v0 }
 0x9e6   : > { %24401 = vmatmul.mubr.msk.f32.gmra.mrb[20].mxu0 %vm16046_vm14, %v22688_v38  ;;  %v26798_v38 = vunpack.i.h.bf16 %v26796_v63 }
 0x9e7   : > { %25093 = vmatmul.mubr.msk.f32.gmra.mrb[66].mxu1 %vm16046_vm14, %v23110_v46  ;;  %24403 = vmatprep.mubr.msk.f32.mxu0 %vm26919_vm3, %v26909_v0  ;;  %v26797_v46 = vunpack.i.l.bf16 %v26796_v63  ;;  %v23200_v63 = vld [vmem:[%s31954_s5 + $0xa78] sm:$0xff] }
 0x9e8   : > { %25095 = vmatprep.mubr.msk.f32.mxu1 %vm26919_vm3, %v26909_v0 }
 0x9ea   : > { %24404 = vmatmul.mubr.msk.f32.gmra.mrb[22].mxu0 %vm16046_vm14, %v22689_v22  ;;  %v22728_v22 = vld [vmem:[%s31954_s5 + $0x338] sm:$0xff] }
 0x9eb   : > { %25096 = vmatmul.mubr.msk.f32.gmra.mrb[68].mxu1 %vm16046_vm14, %v23111_v19  ;;  %24406 = vmatprep.mubr.msk.f32.mxu0 %vm26919_vm3, %v26909_v0  ;;  %v23165_v19 = vld [vmem:[%s31954_s5 + $0x9d8] sm:$0xff] }
 0x9ec   : > { %25098 = vmatprep.mubr.msk.f32.mxu1 %vm26919_vm3, %v26909_v0 }
 0x9ee   : > { %24407 = vmatmul.mubr.msk.f32.gmra.mrb[24].mxu0 %vm16046_vm14, %v22690_v43  ;;  %v26791_v43 = vpop.permute.xlu1 %26790 }
 0x9ef   : > { %25099 = vmatmul.mubr.msk.f32.gmra.mrb[70].mxu1 %vm16046_vm14, %v23112_v52  ;;  %24409 = vmatprep.mubr.msk.f32.mxu0 %vm26919_vm3, %v26909_v0  ;;  %v25522_v52 = vpack.c.bf16 %v26798_v38, %v26797_v46  ;;  %v22780_v38 = vld [vmem:[%s31954_s5 + $0x3e8] sm:$0xff] }
 0x9f0   : > { %25101 = vmatprep.mubr.msk.f32.mxu1 %vm26919_vm3, %v26909_v0  ;;  %v23202_v46 = vld [vmem:[%s31954_s5 + $0xa88] sm:$0xff] }
 0x9f2   : > { %24410 = vmatmul.mubr.msk.f32.gmra.mrb[26].mxu0 %vm16046_vm14, %v22691_v47  ;;  %v22729_v47 = vld [vmem:[%s31954_s5 + $0x340] sm:$0xff] }
 0x9f3   : > { %25102 = vmatmul.mubr.msk.f32.gmra.mrb[72].mxu1 %vm16046_vm14, %v23113_v44  ;;  %24412 = vmatprep.mubr.msk.f32.mxu0 %vm26919_vm3, %v26909_v0  ;;  %v23166_v44 = vld [vmem:[%s31954_s5 + $0x9e0] sm:$0xff] }
 0x9f4   : > { %25104 = vmatprep.mubr.msk.f32.mxu1 %vm26919_vm3, %v26909_v0 }
 0x9f6   : > { %24413 = vmatmul.mubr.msk.f32.gmra.mrb[28].mxu0 %vm16046_vm14, %v22692_v40  ;;  %v26793_v40 = vunpack.i.h.bf16 %v26791_v43 }
 0x9f7   : > { %25105 = vmatmul.mubr.msk.f32.gmra.mrb[74].mxu1 %vm16046_vm14, %v23114_v14  ;;  %24415 = vmatprep.mubr.msk.f32.mxu0 %vm26919_vm3, %v26909_v0  ;;  %v26792_v14 = vunpack.i.l.bf16 %v26791_v43  ;;  %v22782_v43 = vld [vmem:[%s31954_s5 + $0x3f8] sm:$0xff] }
 0x9f8   : > { %25107 = vmatprep.mubr.msk.f32.mxu1 %vm26919_vm3, %v26909_v0 }
 0x9fa   : > { %24416 = vmatmul.mubr.msk.f32.gmra.mrb[30].mxu0 %vm16046_vm14, %v22693_v23  ;;  %v22745_v23 = vld [vmem:[%s31954_s5 + $0x348] sm:$0xff] }
 0x9fb   : > { %25108 = vmatmul.mubr.msk.f32.gmra.mrb[76].mxu1 %vm16046_vm14, %v23115_v28  ;;  %24418 = vmatprep.mubr.msk.f32.mxu0 %vm26919_vm3, %v26909_v0  ;;  %v23167_v28 = vld [vmem:[%s31954_s5 + $0x9e8] sm:$0xff] }
 0x9fc   : > { %25110 = vmatprep.mubr.msk.f32.mxu1 %vm26919_vm3, %v26909_v0 }
 0x9fe   : > { %24419 = vmatmul.mubr.msk.f32.gmra.mrb[32].mxu0 %vm16046_vm14, %v22694_v4  ;;  %v25480_v4 = vpack.c.bf16 %v26793_v40, %v26792_v14  ;;  %v22784_v40 = vld [vmem:[%s31954_s5 + $0x408] sm:$0xff] }
 0x9ff   : > { %25111 = vmatmul.mubr.msk.f32.gmra.mrb[78].mxu1 %vm16046_vm14, %v23116_v58  ;;  %24421 = vmatprep.mubr.msk.f32.mxu0 %vm26919_vm3, %v26909_v0  ;;  %v22746_v58 = vld [vmem:[%s31954_s5 + $0x350] sm:$0xff]  ;;  %v23206_v14 = vld [vmem:[%s31954_s5 + $0xaa8] sm:$0xff] }
 0xa00   : > { %25113 = vmatprep.mubr.msk.f32.mxu1 %vm26919_vm3, %v26909_v0 }
 0xa02   : > { %24422 = vmatmul.mubr.msk.f32.gmra.mrb[34].mxu0 %vm16046_vm14, %v22695_v8  ;;  %v23168_v8 = vld [vmem:[%s31954_s5 + $0x9f0] sm:$0xff] }
 0xa03   : > { %25114 = vmatmul.mubr.msk.f32.gmra.mrb[80].mxu1 %vm16046_vm14, %v23117_v35  ;;  %24424 = vmatprep.mubr.msk.f32.mxu0 %vm26919_vm3, %v26909_v0  ;;  %v22747_v35 = vld [vmem:[%s31954_s5 + $0x358] sm:$0xff] }
 0xa04   : > { %25116 = vmatprep.mubr.msk.f32.mxu1 %vm26919_vm3, %v26909_v0 }
 0xa06   : > { %24425 = vmatmul.mubr.msk.f32.gmra.mrb[36].mxu0 %vm16046_vm14, %v22696_v41  ;;  %v23169_v41 = vld [vmem:[%s31954_s5 + $0x9f8] sm:$0xff] }
 0xa07   : > { %25117 = vmatmul.mubr.msk.f32.gmra.mrb[82].mxu1 %vm16046_vm14, %v23118_v25  ;;  %24427 = vmatprep.mubr.msk.f32.mxu0 %vm26919_vm3, %v26909_v0  ;;  %v22748_v25 = vld [vmem:[%s31954_s5 + $0x360] sm:$0xff] }
 0xa08   : > { %25119 = vmatprep.mubr.msk.f32.mxu1 %vm26919_vm3, %v26909_v0 }
 0xa0a   : > { %24428 = vmatmul.mubr.msk.f32.gmra.mrb[38].mxu0 %vm16046_vm14, %v22697_v55  ;;  %v22749_v55 = vld [vmem:[%s31954_s5 + $0x368] sm:$0xff] }
 0xa0b   : > { %25120 = vmatmul.mubr.msk.f32.gmra.mrb[84].mxu1 %vm16046_vm14, %v23119_v20  ;;  %24430 = vmatprep.mubr.msk.f32.mxu0 %vm26919_vm3, %v26909_v0  ;;  %v23171_v20 = vld [vmem:[%s31954_s5 + $0xa08] sm:$0xff] }
 0xa0c   : > { %25126 = vmatprep.mubr.msk.f32.mxu1 %vm26919_vm3, %v26909_v0 }
 0xa0e   : > { %24431 = vmatmul.mubr.msk.f32.gmra.mrb[40].mxu0 %vm16046_vm14, %v22698_v45  ;;  %v22751_v45 = vld [vmem:[%s31954_s5 + $0x378] sm:$0xff] }
 0xa0f   : > { %25127 = vmatmul.mubr.msk.f32.vlgmr.msra.gmra.mrb[56].mxu1 %vm16046_vm14, %v23135_v42  ;;  %24433 = vmatprep.mubr.msk.f32.mxu0 %vm26919_vm3, %v26909_v0  ;;  %v23173_v42 = vld [vmem:[%s31954_s5 + $0xa18] sm:$0xff] }
 0xa10   : > { %25520 = vmatpush3.bf16.msra.mxu1 %v25519_v60  ;;  %25129 = vmatprep.mubr.msk.f32.mxu1 %vm26919_vm3, %v26909_v0  ;;  %v23174_v60 = vld [vmem:[%s31954_s5 + $0xa20] sm:$0xff] }
 0xa11   : > { %25521 = vmatprep.subr.bf16.mxu1 %v26935_v56 }
 0xa12   : > { %24434 = vmatmul.mubr.msk.f32.gmra.mrb[42].mxu0 %vm16046_vm14, %v22699_v62  ;;  %v22753_v62 = vld [vmem:[%s31954_s5 + $0x388] sm:$0xff] }
 0xa13   : > { %25130 = vmatmul.mubr.msk.f32.gmra.mrb[58].mxu1 %vm16046_vm14, %v23136_v10  ;;  %24440 = vmatprep.mubr.msk.f32.mxu0 %vm26919_vm3, %v26909_v0  ;;  %v23175_v10 = vld [vmem:[%s31954_s5 + $0xa28] sm:$0xff] }
 0xa14   : > { %25132 = vmatprep.mubr.msk.f32.mxu1 %vm26919_vm3, %v26909_v0 }
 0xa16   : > { %24441 = vmatmul.mubr.msk.f32.vlgmr.msra.gmra.mrb[14].mxu0 %vm16046_vm14, %v22715_v13  ;;  %v22755_v13 = vld [vmem:[%s31954_s5 + $0x398] sm:$0xff] }
 0xa17   : > { %25133 = vmatmul.mubr.msk.f32.gmra.mrb[60].mxu1 %vm16046_vm14, %v23137_v29  ;;  %25478 = vmatpush3.bf16.msra.mxu0 %v25477_v34  ;;  %v23177_v29 = vld [vmem:[%s31954_s5 + $0xa38] sm:$0xff]  ;;  %v22756_v34 = vld [vmem:[%s31954_s5 + $0x3a0] sm:$0xff] }
 0xa18   : > { %25135 = vmatprep.mubr.msk.f32.mxu1 %vm26919_vm3, %v26909_v0  ;;  %24443 = vmatprep.mubr.msk.f32.mxu0 %vm26919_vm3, %v26909_v0 }
 0xa19   : > { %25479 = vmatprep.subr.bf16.mxu0 %v26935_v56 }
 0xa1a   : > { %24444 = vmatmul.mubr.msk.f32.gmra.mrb[16].mxu0 %vm16046_vm14, %v22716_v1  ;;  %v23178_v1 = vld [vmem:[%s31954_s5 + $0xa40] sm:$0xff] }
 0xa1b   : > { %25136 = vmatmul.mubr.msk.f32.gmra.mrb[62].mxu1 %vm16046_vm14, %v23138_v6  ;;  %24446 = vmatprep.mubr.msk.f32.mxu0 %vm26919_vm3, %v26909_v0  ;;  %v26806_v6 = vpop.permute.xlu0 %26805 }
 0xa1c   : > { %25138 = vmatprep.mubr.msk.f32.mxu1 %vm26919_vm3, %v26909_v0 }
 0xa1e   : > { %24447 = vmatmul.mubr.msk.f32.gmra.mrb[18].mxu0 %vm16046_vm14, %v22717_v33  ;;  %v22757_v33 = vld [vmem:[%s31954_s5 + $0x3a8] sm:$0xff] }
 0xa1f   : > { %25139 = vmatmul.mubr.msk.f32.gmra.mrb[64].mxu1 %vm16046_vm14, %v23139_v51  ;;  %24449 = vmatprep.mubr.msk.f32.mxu0 %vm26919_vm3, %v26909_v0  ;;  %v23179_v51 = vld [vmem:[%s31954_s5 + $0xa48] sm:$0xff] }
 0xa20   : > { %25141 = vmatprep.mubr.msk.f32.mxu1 %vm26919_vm3, %v26909_v0 }
 0xa22   : > { %24450 = vmatmul.mubr.msk.f32.gmra.mrb[20].mxu0 %vm16046_vm14, %v22718_v49  ;;  %v26808_v49 = vunpack.i.h.bf16 %v26806_v6 }
 0xa23   : > { %25142 = vmatmul.mubr.msk.f32.gmra.mrb[66].mxu1 %vm16046_vm14, %v23140_v17  ;;  %24452 = vmatprep.mubr.msk.f32.mxu0 %vm26919_vm3, %v26909_v0  ;;  %v26807_v17 = vunpack.i.l.bf16 %v26806_v6  ;;  %v22812_v6 = vld [vmem:[%s31954_s5 + $0x470] sm:$0xff] }
 0xa24   : > { %25144 = vmatprep.mubr.msk.f32.mxu1 %vm26919_vm3, %v26909_v0 }
 0xa26   : > { %24453 = vmatmul.mubr.msk.f32.gmra.mrb[22].mxu0 %vm16046_vm14, %v22719_v9  ;;  %v22758_v9 = vld [vmem:[%s31954_s5 + $0x3b0] sm:$0xff] }
 0xa27   : > { %25145 = vmatmul.mubr.msk.f32.gmra.mrb[68].mxu1 %vm16046_vm14, %v23141_v16  ;;  %24455 = vmatprep.mubr.msk.f32.mxu0 %vm26919_vm3, %v26909_v0  ;;  %v23195_v16 = vld [vmem:[%s31954_s5 + $0xa50] sm:$0xff] }
 0xa28   : > { %25147 = vmatprep.mubr.msk.f32.mxu1 %vm26919_vm3, %v26909_v0 }
 0xa2a   : > { %24456 = vmatmul.mubr.msk.f32.gmra.mrb[24].mxu0 %vm16046_vm14, %v22720_v39  ;;  %v26801_v39 = vpop.permute.xlu1 %26800 }
 0xa2b   : > { %25148 = vmatmul.mubr.msk.f32.gmra.mrb[70].mxu1 %vm16046_vm14, %v23142_v24  ;;  %24458 = vmatprep.mubr.msk.f32.mxu0 %vm26919_vm3, %v26909_v0  ;;  %v25525_v24 = vpack.c.bf16 %v26808_v49, %v26807_v17  ;;  %v23235_v49 = vld [vmem:[%s31954_s5 + $0xb18] sm:$0xff]  ;;  %v22814_v17 = vld [vmem:[%s31954_s5 + $0x480] sm:$0xff] }
 0xa2c   : > { %25150 = vmatprep.mubr.msk.f32.mxu1 %vm26919_vm3, %v26909_v0 }
 0xa2e   : > { %24459 = vmatmul.mubr.msk.f32.gmra.mrb[26].mxu0 %vm16046_vm14, %v22721_v36  ;;  %v22759_v36 = vld [vmem:[%s31954_s5 + $0x3b8] sm:$0xff] }
 0xa2f   : > { %25151 = vmatmul.mubr.msk.f32.gmra.mrb[72].mxu1 %vm16046_vm14, %v23143_v57  ;;  %24461 = vmatprep.mubr.msk.f32.mxu0 %vm26919_vm3, %v26909_v0  ;;  %v23196_v57 = vld [vmem:[%s31954_s5 + $0xa58] sm:$0xff] }
 0xa30   : > { %25153 = vmatprep.mubr.msk.f32.mxu1 %vm26919_vm3, %v26909_v0 }
 0xa32   : > { %24462 = vmatmul.mubr.msk.f32.gmra.mrb[28].mxu0 %vm16046_vm14, %v22722_v2  ;;  %v26803_v2 = vunpack.i.h.bf16 %v26801_v39 }
 0xa33   : > { %25154 = vmatmul.mubr.msk.f32.gmra.mrb[74].mxu1 %vm16046_vm14, %v23144_v59  ;;  %24464 = vmatprep.mubr.msk.f32.mxu0 %vm26919_vm3, %v26909_v0  ;;  %v26802_v59 = vunpack.i.l.bf16 %v26801_v39  ;;  %v23237_v39 = vld [vmem:[%s31954_s5 + $0xb28] sm:$0xff] }
 0xa34   : > { %25156 = vmatprep.mubr.msk.f32.mxu1 %vm26919_vm3, %v26909_v0 }
 0xa36   : > { %24465 = vmatmul.mubr.msk.f32.gmra.mrb[30].mxu0 %vm16046_vm14, %v22723_v18  ;;  %v22775_v18 = vld [vmem:[%s31954_s5 + $0x3c0] sm:$0xff] }
 0xa37   : > { %25157 = vmatmul.mubr.msk.f32.gmra.mrb[76].mxu1 %vm16046_vm14, %v23145_v15  ;;  %24467 = vmatprep.mubr.msk.f32.mxu0 %vm26919_vm3, %v26909_v0  ;;  %v23197_v15 = vld [vmem:[%s31954_s5 + $0xa60] sm:$0xff] }
 0xa38   : > { %25159 = vmatprep.mubr.msk.f32.mxu1 %vm26919_vm3, %v26909_v0 }
 0xa3a   : > { %24468 = vmatmul.mubr.msk.f32.gmra.mrb[32].mxu0 %vm16046_vm14, %v22724_v7  ;;  %v25483_v7 = vpack.c.bf16 %v26803_v2, %v26802_v59  ;;  %v23239_v2 = vld [vmem:[%s31954_s5 + $0xb38] sm:$0xff]  ;;  %v22818_v59 = vld [vmem:[%s31954_s5 + $0x4a0] sm:$0xff] }
 0xa3b   : > { %25160 = vmatmul.mubr.msk.f32.gmra.mrb[78].mxu1 %vm16046_vm14, %v23146_v32  ;;  %24470 = vmatprep.mubr.msk.f32.mxu0 %vm26919_vm3, %v26909_v0  ;;  %v22776_v32 = vld [vmem:[%s31954_s5 + $0x3c8] sm:$0xff] }
 0xa3c   : > { %25162 = vmatprep.mubr.msk.f32.mxu1 %vm26919_vm3, %v26909_v0 }
 0xa3e   : > { %24471 = vmatmul.mubr.msk.f32.gmra.mrb[34].mxu0 %vm16046_vm14, %v22725_v48  ;;  %v23198_v48 = vld [vmem:[%s31954_s5 + $0xa68] sm:$0xff] }
 0xa3f   : > { %25163 = vmatmul.mubr.msk.f32.gmra.mrb[80].mxu1 %vm16046_vm14, %v23147_v61  ;;  %24473 = vmatprep.mubr.msk.f32.mxu0 %vm26919_vm3, %v26909_v0  ;;  %v22777_v61 = vld [vmem:[%s31954_s5 + $0x3d0] sm:$0xff] }
 0xa40   : > { %25165 = vmatprep.mubr.msk.f32.mxu1 %vm26919_vm3, %v26909_v0 }
 0xa42   : > { %24474 = vmatmul.mubr.msk.f32.gmra.mrb[36].mxu0 %vm16046_vm14, %v22726_v11  ;;  %v23199_v11 = vld [vmem:[%s31954_s5 + $0xa70] sm:$0xff] }
 0xa43   : > { %25166 = vmatmul.mubr.msk.f32.gmra.mrb[82].mxu1 %vm16046_vm14, %v23148_v53  ;;  %24476 = vmatprep.mubr.msk.f32.mxu0 %vm26919_vm3, %v26909_v0  ;;  %v22778_v53 = vld [vmem:[%s31954_s5 + $0x3d8] sm:$0xff] }
 0xa44   : > { %25168 = vmatprep.mubr.msk.f32.mxu1 %vm26919_vm3, %v26909_v0 }
 0xa46   : > { %24477 = vmatmul.mubr.msk.f32.gmra.mrb[38].mxu0 %vm16046_vm14, %v22727_v37  ;;  %v22779_v37 = vld [vmem:[%s31954_s5 + $0x3e0] sm:$0xff] }
 0xa47   : > { %25169 = vmatmul.mubr.msk.f32.gmra.mrb[84].mxu1 %vm16046_vm14, %v23149_v21  ;;  %24479 = vmatprep.mubr.msk.f32.mxu0 %vm26919_vm3, %v26909_v0  ;;  %v23201_v21 = vld [vmem:[%s31954_s5 + $0xa80] sm:$0xff] }
 0xa48   : > { %25175 = vmatprep.mubr.msk.f32.mxu1 %vm26919_vm3, %v26909_v0 }
 0xa4a   : > { %24480 = vmatmul.mubr.msk.f32.gmra.mrb[40].mxu0 %vm16046_vm14, %v22728_v22  ;;  %v22781_v22 = vld [vmem:[%s31954_s5 + $0x3f0] sm:$0xff] }
 0xa4b   : > { %25176 = vmatmul.mubr.msk.f32.vlgmr.msra.gmra.mrb[56].mxu1 %vm16046_vm14, %v23165_v19  ;;  %24482 = vmatprep.mubr.msk.f32.mxu0 %vm26919_vm3, %v26909_v0  ;;  %v23203_v19 = vld [vmem:[%s31954_s5 + $0xa90] sm:$0xff] }
 0xa4c   : > { %25523 = vmatpush3.bf16.msra.mxu1 %v25522_v52  ;;  %25178 = vmatprep.mubr.msk.f32.mxu1 %vm26919_vm3, %v26909_v0  ;;  %v23204_v52 = vld [vmem:[%s31954_s5 + $0xa98] sm:$0xff] }
 0xa4d   : > { %25524 = vmatprep.subr.bf16.mxu1 %v26935_v56 }
 0xa4e   : > { %24483 = vmatmul.mubr.msk.f32.gmra.mrb[42].mxu0 %vm16046_vm14, %v22729_v47  ;;  %v22783_v47 = vld [vmem:[%s31954_s5 + $0x400] sm:$0xff] }
 0xa4f   : > { %25179 = vmatmul.mubr.msk.f32.gmra.mrb[58].mxu1 %vm16046_vm14, %v23166_v44  ;;  %24489 = vmatprep.mubr.msk.f32.mxu0 %vm26919_vm3, %v26909_v0  ;;  %v23205_v44 = vld [vmem:[%s31954_s5 + $0xaa0] sm:$0xff] }
 0xa50   : > { %25181 = vmatprep.mubr.msk.f32.mxu1 %vm26919_vm3, %v26909_v0 }
 0xa52   : > { %24490 = vmatmul.mubr.msk.f32.vlgmr.msra.gmra.mrb[14].mxu0 %vm16046_vm14, %v22745_v23  ;;  %v22785_v23 = vld [vmem:[%s31954_s5 + $0x410] sm:$0xff] }
 0xa53   : > { %25182 = vmatmul.mubr.msk.f32.gmra.mrb[60].mxu1 %vm16046_vm14, %v23167_v28  ;;  %25481 = vmatpush3.bf16.msra.mxu0 %v25480_v4  ;;  %v23207_v28 = vld [vmem:[%s31954_s5 + $0xab0] sm:$0xff]  ;;  %v22786_v4 = vld [vmem:[%s31954_s5 + $0x418] sm:$0xff] }
 0xa54   : > { %25184 = vmatprep.mubr.msk.f32.mxu1 %vm26919_vm3, %v26909_v0  ;;  %24492 = vmatprep.mubr.msk.f32.mxu0 %vm26919_vm3, %v26909_v0 }
 0xa55   : > { %25482 = vmatprep.subr.bf16.mxu0 %v26935_v56 }
 0xa56   : > { %24493 = vmatmul.mubr.msk.f32.gmra.mrb[16].mxu0 %vm16046_vm14, %v22746_v58  ;;  %v23208_v58 = vld [vmem:[%s31954_s5 + $0xab8] sm:$0xff] }
 0xa57   : > { %25185 = vmatmul.mubr.msk.f32.gmra.mrb[62].mxu1 %vm16046_vm14, %v23168_v8  ;;  %24495 = vmatprep.mubr.msk.f32.mxu0 %vm26919_vm3, %v26909_v0  ;;  %v26811_v8 = vpop.permute.xlu1 %26810 }
 0xa58   : > { %25187 = vmatprep.mubr.msk.f32.mxu1 %vm26919_vm3, %v26909_v0 }
 0xa5a   : > { %24496 = vmatmul.mubr.msk.f32.gmra.mrb[18].mxu0 %vm16046_vm14, %v22747_v35  ;;  %v22787_v35 = vld [vmem:[%s31954_s5 + $0x420] sm:$0xff] }
 0xa5b   : > { %25188 = vmatmul.mubr.msk.f32.gmra.mrb[64].mxu1 %vm16046_vm14, %v23169_v41  ;;  %24498 = vmatprep.mubr.msk.f32.mxu0 %vm26919_vm3, %v26909_v0  ;;  %v23209_v41 = vld [vmem:[%s31954_s5 + $0xac0] sm:$0xff] }
 0xa5c   : > { %25190 = vmatprep.mubr.msk.f32.mxu1 %vm26919_vm3, %v26909_v0 }
 0xa5e   : > { %24499 = vmatmul.mubr.msk.f32.gmra.mrb[20].mxu0 %vm16046_vm14, %v22748_v25  ;;  %v26813_v25 = vunpack.i.h.bf16 %v26811_v8 }
 0xa5f   : > { %25191 = vmatmul.mubr.msk.f32.gmra.mrb[66].mxu1 %vm16046_vm14, %v23170_v50  ;;  %24501 = vmatprep.mubr.msk.f32.mxu0 %vm26919_vm3, %v26909_v0  ;;  %v26812_v50 = vunpack.i.l.bf16 %v26811_v8  ;;  %v22846_v8 = vld [vmem:[%s31954_s5 + $0x508] sm:$0xff] }
 0xa60   : > { %25193 = vmatprep.mubr.msk.f32.mxu1 %vm26919_vm3, %v26909_v0 }
 0xa62   : > { %24502 = vmatmul.mubr.msk.f32.gmra.mrb[22].mxu0 %vm16046_vm14, %v22749_v55  ;;  %v22788_v55 = vld [vmem:[%s31954_s5 + $0x428] sm:$0xff] }
 0xa63   : > { %25194 = vmatmul.mubr.msk.f32.gmra.mrb[68].mxu1 %vm16046_vm14, %v23171_v20  ;;  %24504 = vmatprep.mubr.msk.f32.mxu0 %vm26919_vm3, %v26909_v0  ;;  %v23225_v20 = vld [vmem:[%s31954_s5 + $0xac8] sm:$0xff] }
 0xa64   : > { %25196 = vmatprep.mubr.msk.f32.mxu1 %vm26919_vm3, %v26909_v0 }
 0xa66   : > { %24505 = vmatmul.mubr.msk.f32.gmra.mrb[24].mxu0 %vm16046_vm14, %v22750_v3  ;;  %v25528_v3 = vpack.c.bf16 %v26813_v25, %v26812_v50  ;;  %v23269_v25 = vld [vmem:[%s31954_s5 + $0xbb0] sm:$0xff]  ;;  %v22848_v50 = vld [vmem:[%s31954_s5 + $0x518] sm:$0xff] }
 0xa67   : > { %25197 = vmatmul.mubr.msk.f32.gmra.mrb[70].mxu1 %vm16046_vm14, %v23172_v31  ;;  %24507 = vmatprep.mubr.msk.f32.mxu0 %vm26919_vm3, %v26909_v0  ;;  %v22789_v31 = vld [vmem:[%s31954_s5 + $0x430] sm:$0xff] }
 0xa68   : > { %25199 = vmatprep.mubr.msk.f32.mxu1 %vm26919_vm3, %v26909_v0 }
 0xa6a   : > { %24508 = vmatmul.mubr.msk.f32.gmra.mrb[26].mxu0 %vm16046_vm14, %v22751_v45  ;;  %v23226_v45 = vld [vmem:[%s31954_s5 + $0xad0] sm:$0xff] }
 0xa6b   : > { %25200 = vmatmul.mubr.msk.f32.gmra.mrb[72].mxu1 %vm16046_vm14, %v23173_v42  ;;  %24510 = vmatprep.mubr.msk.f32.mxu0 %vm26919_vm3, %v26909_v0  ;;  %v22805_v42 = vld [vmem:[%s31954_s5 + $0x438] sm:$0xff] }
 0xa6c   : > { %25202 = vmatprep.mubr.msk.f32.mxu1 %vm26919_vm3, %v26909_v0 }
 0xa6e   : > { %24511 = vmatmul.mubr.msk.f32.gmra.mrb[28].mxu0 %vm16046_vm14, %v22752_v54  ;;  %v23227_v54 = vld [vmem:[%s31954_s5 + $0xad8] sm:$0xff] }
 0xa6f   : > { %25203 = vmatmul.mubr.msk.f32.gmra.mrb[74].mxu1 %vm16046_vm14, %v23174_v60  ;;  %24513 = vmatprep.mubr.msk.f32.mxu0 %vm26919_vm3, %v26909_v0  ;;  %v22806_v60 = vld [vmem:[%s31954_s5 + $0x440] sm:$0xff] }
 0xa70   : > { %25205 = vmatprep.mubr.msk.f32.mxu1 %vm26919_vm3, %v26909_v0 }
 0xa72   : > { %24514 = vmatmul.mubr.msk.f32.gmra.mrb[30].mxu0 %vm16046_vm14, %v22753_v62  ;;  %v23228_v62 = vld [vmem:[%s31954_s5 + $0xae0] sm:$0xff] }
 0xa73   : > { %25206 = vmatmul.mubr.msk.f32.gmra.mrb[76].mxu1 %vm16046_vm14, %v23175_v10  ;;  %24516 = vmatprep.mubr.msk.f32.mxu0 %vm26919_vm3, %v26909_v0  ;;  %v23230_v10 = vld [vmem:[%s31954_s5 + $0xaf0] sm:$0xff] }
 0xa74   : > { %25208 = vmatprep.mubr.msk.f32.mxu1 %vm26919_vm3, %v26909_v0 }
 0xa76   : > { %24517 = vmatmul.mubr.msk.f32.gmra.mrb[32].mxu0 %vm16046_vm14, %v22754_v27  ;;  %v22809_v27 = vld [vmem:[%s31954_s5 + $0x458] sm:$0xff] }
 0xa77   : > { %25209 = vmatmul.mubr.msk.f32.gmra.mrb[78].mxu1 %vm16046_vm14, %v23176_v12  ;;  %24519 = vmatprep.mubr.msk.f32.mxu0 %vm26919_vm3, %v26909_v0  ;;  %v23231_v12 = vld [vmem:[%s31954_s5 + $0xaf8] sm:$0xff] }
 0xa78   : > { %25211 = vmatprep.mubr.msk.f32.mxu1 %vm26919_vm3, %v26909_v0 }
 0xa7a   : > { %24520 = vmatmul.mubr.msk.f32.gmra.mrb[34].mxu0 %vm16046_vm14, %v22755_v13  ;;  %v22810_v13 = vld [vmem:[%s31954_s5 + $0x460] sm:$0xff] }
 0xa7b   : > { %25212 = vmatmul.mubr.msk.f32.gmra.mrb[80].mxu1 %vm16046_vm14, %v23177_v29  ;;  %24522 = vmatprep.mubr.msk.f32.mxu0 %vm26919_vm3, %v26909_v0  ;;  %v23232_v29 = vld [vmem:[%s31954_s5 + $0xb00] sm:$0xff] }
 0xa7c   : > { %25214 = vmatprep.mubr.msk.f32.mxu1 %vm26919_vm3, %v26909_v0 }
 0xa7e   : > { %24523 = vmatmul.mubr.msk.f32.gmra.mrb[36].mxu0 %vm16046_vm14, %v22756_v34  ;;  %v22811_v34 = vld [vmem:[%s31954_s5 + $0x468] sm:$0xff] }
 0xa7f   : > { %25215 = vmatmul.mubr.msk.f32.gmra.mrb[82].mxu1 %vm16046_vm14, %v23178_v1  ;;  %24525 = vmatprep.mubr.msk.f32.mxu0 %vm26919_vm3, %v26909_v0  ;;  %v23233_v1 = vld [vmem:[%s31954_s5 + $0xb08] sm:$0xff] }
 0xa80   : > { %25217 = vmatprep.mubr.msk.f32.mxu1 %vm26919_vm3, %v26909_v0 }
 0xa82   : > { %24526 = vmatmul.mubr.msk.f32.gmra.mrb[38].mxu0 %vm16046_vm14, %v22757_v33  ;;  %v23234_v33 = vld [vmem:[%s31954_s5 + $0xb10] sm:$0xff] }
 0xa83   : > { %25218 = vmatmul.mubr.msk.f32.gmra.mrb[84].mxu1 %vm16046_vm14, %v23179_v51  ;;  %24528 = vmatprep.mubr.msk.f32.mxu0 %vm26919_vm3, %v26909_v0  ;;  %v22813_v51 = vld [vmem:[%s31954_s5 + $0x478] sm:$0xff] }
 0xa84   : > { %25224 = vmatprep.mubr.msk.f32.mxu1 %vm26919_vm3, %v26909_v0 }
 0xa86   : > { %24529 = vmatmul.mubr.msk.f32.gmra.mrb[40].mxu0 %vm16046_vm14, %v22758_v9  ;;  %v23236_v9 = vld [vmem:[%s31954_s5 + $0xb20] sm:$0xff] }
 0xa87   : > { %25225 = vmatmul.mubr.msk.f32.vlgmr.msra.gmra.mrb[56].mxu1 %vm16046_vm14, %v23195_v16  ;;  %24531 = vmatprep.mubr.msk.f32.mxu0 %vm26919_vm3, %v26909_v0  ;;  %v22815_v16 = vld [vmem:[%s31954_s5 + $0x488] sm:$0xff] }
 0xa88   : > { %25526 = vmatpush3.bf16.msra.mxu1 %v25525_v24  ;;  %25227 = vmatprep.mubr.msk.f32.mxu1 %vm26919_vm3, %v26909_v0  ;;  %v22816_v24 = vld [vmem:[%s31954_s5 + $0x490] sm:$0xff] }
 0xa89   : > { %25527 = vmatprep.subr.bf16.mxu1 %v26935_v56 }
 0xa8a   : > { %24532 = vmatmul.mubr.msk.f32.gmra.mrb[42].mxu0 %vm16046_vm14, %v22759_v36  ;;  %v23238_v36 = vld [vmem:[%s31954_s5 + $0xb30] sm:$0xff] }
 0xa8b   : > { %25228 = vmatmul.mubr.msk.f32.gmra.mrb[58].mxu1 %vm16046_vm14, %v23196_v57  ;;  %24538 = vmatprep.mubr.msk.f32.mxu0 %vm26919_vm3, %v26909_v0  ;;  %v22817_v57 = vld [vmem:[%s31954_s5 + $0x498] sm:$0xff] }
 0xa8c   : > { %25230 = vmatprep.mubr.msk.f32.mxu1 %vm26919_vm3, %v26909_v0 }
 0xa8e   : > { %24539 = vmatmul.mubr.msk.f32.vlgmr.msra.gmra.mrb[14].mxu0 %vm16046_vm14, %v22775_v18  ;;  %v23255_v18 = vld [vmem:[%s31954_s5 + $0xb40] sm:$0xff] }
 0xa8f   : > { %25231 = vmatmul.mubr.msk.f32.gmra.mrb[60].mxu1 %vm16046_vm14, %v23197_v15  ;;  %25484 = vmatpush3.bf16.msra.mxu0 %v25483_v7  ;;  %v22819_v15 = vld [vmem:[%s31954_s5 + $0x4a8] sm:$0xff] }
 0xa90   : > { %25233 = vmatprep.mubr.msk.f32.mxu1 %vm26919_vm3, %v26909_v0  ;;  %24541 = vmatprep.mubr.msk.f32.mxu0 %vm26919_vm3, %v26909_v0  ;;  %v23256_v7 = vld [vmem:[%s31954_s5 + $0xb48] sm:$0xff] }
 0xa91   : > { %25485 = vmatprep.subr.bf16.mxu0 %v26935_v56 }
 0xa92   : > { %24542 = vmatmul.mubr.msk.f32.gmra.mrb[16].mxu0 %vm16046_vm14, %v22776_v32  ;;  %v22835_v32 = vld [vmem:[%s31954_s5 + $0x4b0] sm:$0xff] }
 0xa93   : > { %25234 = vmatmul.mubr.msk.f32.gmra.mrb[62].mxu1 %vm16046_vm14, %v23198_v48  ;;  %24544 = vmatprep.mubr.msk.f32.mxu0 %vm26919_vm3, %v26909_v0  ;;  %v23257_v48 = vld [vmem:[%s31954_s5 + $0xb50] sm:$0xff] }
 0xa94   : > { %25236 = vmatprep.mubr.msk.f32.mxu1 %vm26919_vm3, %v26909_v0 }
 0xa96   : > { %24545 = vmatmul.mubr.msk.f32.gmra.mrb[18].mxu0 %vm16046_vm14, %v22777_v61  ;;  %v22836_v61 = vld [vmem:[%s31954_s5 + $0x4b8] sm:$0xff] }
 0xa97   : > { %25237 = vmatmul.mubr.msk.f32.gmra.mrb[64].mxu1 %vm16046_vm14, %v23199_v11  ;;  %24547 = vmatprep.mubr.msk.f32.mxu0 %vm26919_vm3, %v26909_v0  ;;  %v23258_v11 = vld [vmem:[%s31954_s5 + $0xb58] sm:$0xff] }
 0xa98   : > { %25239 = vmatprep.mubr.msk.f32.mxu1 %vm26919_vm3, %v26909_v0 }
 0xa9a   : > { %24548 = vmatmul.mubr.msk.f32.gmra.mrb[20].mxu0 %vm16046_vm14, %v22778_v53  ;;  %v22837_v53 = vld [vmem:[%s31954_s5 + $0x4c0] sm:$0xff] }
 0xa9b   : > { %25240 = vmatmul.mubr.msk.f32.gmra.mrb[66].mxu1 %vm16046_vm14, %v23200_v63  ;;  %24550 = vmatprep.mubr.msk.f32.mxu0 %vm26919_vm3, %v26909_v0  ;;  %v23259_v63 = vld [vmem:[%s31954_s5 + $0xb60] sm:$0xff] }
 0xa9c   : > { %25242 = vmatprep.mubr.msk.f32.mxu1 %vm26919_vm3, %v26909_v0 }
 0xa9e   : > { %24551 = vmatmul.mubr.msk.f32.gmra.mrb[22].mxu0 %vm16046_vm14, %v22779_v37  ;;  %v22838_v37 = vld [vmem:[%s31954_s5 + $0x4c8] sm:$0xff] }
 0xa9f   : > { %25243 = vmatmul.mubr.msk.f32.gmra.mrb[68].mxu1 %vm16046_vm14, %v23201_v21  ;;  %24553 = vmatprep.mubr.msk.f32.mxu0 %vm26919_vm3, %v26909_v0  ;;  %v23260_v21 = vld [vmem:[%s31954_s5 + $0xb68] sm:$0xff] }
 0xaa0   : > { %25245 = vmatprep.mubr.msk.f32.mxu1 %vm26919_vm3, %v26909_v0 }
 0xaa2   : > { %24554 = vmatmul.mubr.msk.f32.gmra.mrb[24].mxu0 %vm16046_vm14, %v22780_v38  ;;  %v22839_v38 = vld [vmem:[%s31954_s5 + $0x4d0] sm:$0xff] }
 0xaa3   : > { %25246 = vmatmul.mubr.msk.f32.gmra.mrb[70].mxu1 %vm16046_vm14, %v23202_v46  ;;  %24556 = vmatprep.mubr.msk.f32.mxu0 %vm26919_vm3, %v26909_v0  ;;  %v23261_v46 = vld [vmem:[%s31954_s5 + $0xb70] sm:$0xff] }
 0xaa4   : > { %25248 = vmatprep.mubr.msk.f32.mxu1 %vm26919_vm3, %v26909_v0 }
 0xaa6   : > { %24557 = vmatmul.mubr.msk.f32.gmra.mrb[26].mxu0 %vm16046_vm14, %v22781_v22  ;;  %v22840_v22 = vld [vmem:[%s31954_s5 + $0x4d8] sm:$0xff] }
 0xaa7   : > { %25249 = vmatmul.mubr.msk.f32.gmra.mrb[72].mxu1 %vm16046_vm14, %v23203_v19  ;;  %24559 = vmatprep.mubr.msk.f32.mxu0 %vm26919_vm3, %v26909_v0  ;;  %v23262_v19 = vld [vmem:[%s31954_s5 + $0xb78] sm:$0xff] }
 0xaa8   : > { %25251 = vmatprep.mubr.msk.f32.mxu1 %vm26919_vm3, %v26909_v0 }
 0xaaa   : > { %24560 = vmatmul.mubr.msk.f32.gmra.mrb[28].mxu0 %vm16046_vm14, %v22782_v43  ;;  %v22841_v43 = vld [vmem:[%s31954_s5 + $0x4e0] sm:$0xff] }
 0xaab   : > { %25252 = vmatmul.mubr.msk.f32.gmra.mrb[74].mxu1 %vm16046_vm14, %v23204_v52  ;;  %24562 = vmatprep.mubr.msk.f32.mxu0 %vm26919_vm3, %v26909_v0  ;;  %v23263_v52 = vld [vmem:[%s31954_s5 + $0xb80] sm:$0xff] }
 0xaac   : > { %25254 = vmatprep.mubr.msk.f32.mxu1 %vm26919_vm3, %v26909_v0 }
 0xaae   : > { %24563 = vmatmul.mubr.msk.f32.gmra.mrb[30].mxu0 %vm16046_vm14, %v22783_v47  ;;  %v22842_v47 = vld [vmem:[%s31954_s5 + $0x4e8] sm:$0xff] }
 0xaaf   : > { %25255 = vmatmul.mubr.msk.f32.gmra.mrb[76].mxu1 %vm16046_vm14, %v23205_v44  ;;  %24565 = vmatprep.mubr.msk.f32.mxu0 %vm26919_vm3, %v26909_v0  ;;  %v23264_v44 = vld [vmem:[%s31954_s5 + $0xb88] sm:$0xff] }
 0xab0   : > { %25257 = vmatprep.mubr.msk.f32.mxu1 %vm26919_vm3, %v26909_v0 }
 0xab2   : > { %24566 = vmatmul.mubr.msk.f32.gmra.mrb[32].mxu0 %vm16046_vm14, %v22784_v40  ;;  %v22843_v40 = vld [vmem:[%s31954_s5 + $0x4f0] sm:$0xff] }
 0xab3   : > { %25258 = vmatmul.mubr.msk.f32.gmra.mrb[78].mxu1 %vm16046_vm14, %v23206_v14  ;;  %24568 = vmatprep.mubr.msk.f32.mxu0 %vm26919_vm3, %v26909_v0  ;;  %v23265_v14 = vld [vmem:[%s31954_s5 + $0xb90] sm:$0xff] }
 0xab4   : > { %25260 = vmatprep.mubr.msk.f32.mxu1 %vm26919_vm3, %v26909_v0 }
 0xab6   : > { %24569 = vmatmul.mubr.msk.f32.gmra.mrb[34].mxu0 %vm16046_vm14, %v22785_v23  ;;  %v22844_v23 = vld [vmem:[%s31954_s5 + $0x4f8] sm:$0xff] }
 0xab7   : > { %25261 = vmatmul.mubr.msk.f32.gmra.mrb[80].mxu1 %vm16046_vm14, %v23207_v28  ;;  %24571 = vmatprep.mubr.msk.f32.mxu0 %vm26919_vm3, %v26909_v0  ;;  %v23266_v28 = vld [vmem:[%s31954_s5 + $0xb98] sm:$0xff] }
 0xab8   : > { %25263 = vmatprep.mubr.msk.f32.mxu1 %vm26919_vm3, %v26909_v0 }
 0xaba   : > { %24572 = vmatmul.mubr.msk.f32.gmra.mrb[36].mxu0 %vm16046_vm14, %v22786_v4  ;;  %v22845_v4 = vld [vmem:[%s31954_s5 + $0x500] sm:$0xff] }
 0xabb   : > { %25264 = vmatmul.mubr.msk.f32.gmra.mrb[82].mxu1 %vm16046_vm14, %v23208_v58  ;;  %24574 = vmatprep.mubr.msk.f32.mxu0 %vm26919_vm3, %v26909_v0  ;;  %v23267_v58 = vld [vmem:[%s31954_s5 + $0xba0] sm:$0xff] }
 0xabc   : > { %25266 = vmatprep.mubr.msk.f32.mxu1 %vm26919_vm3, %v26909_v0 }
 0xabe   : > { %24575 = vmatmul.mubr.msk.f32.gmra.mrb[38].mxu0 %vm16046_vm14, %v22787_v35  ;;  %v23268_v35 = vld [vmem:[%s31954_s5 + $0xba8] sm:$0xff] }
 0xabf   : > { %25267 = vmatmul.mubr.msk.f32.gmra.mrb[84].mxu1 %vm16046_vm14, %v23209_v41  ;;  %24577 = vmatprep.mubr.msk.f32.mxu0 %vm26919_vm3, %v26909_v0  ;;  %v22847_v41 = vld [vmem:[%s31954_s5 + $0x510] sm:$0xff] }
 0xac0   : > { %25273 = vmatprep.mubr.msk.f32.mxu1 %vm26919_vm3, %v26909_v0 }
 0xac2   : > { %24578 = vmatmul.mubr.msk.f32.gmra.mrb[40].mxu0 %vm16046_vm14, %v22788_v55  ;;  %v22849_v55 = vld [vmem:[%s31954_s5 + $0x520] sm:$0xff] }
 0xac3   : > { %25274 = vmatmul.mubr.msk.f32.vlgmr.msra.gmra.mrb[56].mxu1 %vm16046_vm14, %v23225_v20  ;;  %24580 = vmatprep.mubr.msk.f32.mxu0 %vm26919_vm3, %v26909_v0 }
 0xac4   : > { %25529 = vmatpush3.bf16.msra.mxu1 %v25528_v3  ;;  %25276 = vmatprep.mubr.msk.f32.mxu1 %vm26919_vm3, %v26909_v0 }
 0xac6   : > { %24581 = vmatmul.mubr.msk.f32.gmra.mrb[42].mxu0 %vm16046_vm14, %v22789_v31 }
 0xac7   : > { %25277 = vmatmul.mubr.msk.f32.gmra.mrb[58].mxu1 %vm16046_vm14, %v23226_v45  ;;  %24587 = vmatprep.mubr.msk.f32.mxu0 %vm26919_vm3, %v26909_v0 }
 0xac8   : > { %25279 = vmatprep.mubr.msk.f32.mxu1 %vm26919_vm3, %v26909_v0 }
 0xaca   : > { %24588 = vmatmul.mubr.msk.f32.vlgmr.msra.gmra.mrb[14].mxu0 %vm16046_vm14, %v22805_v42  ;;  %v16014_v42 = vld [vmem:[%s31955_s6] sm:$0xff] }
 0xacb   : > { %25280 = vmatmul.mubr.msk.f32.gmra.mrb[60].mxu1 %vm16046_vm14, %v23227_v54  ;;  %25487 = vmatpush3.bf16.msra.mxu0 %v25486_v26  ;;  %v22808_v26 = vld [vmem:[%s31954_s5 + $0x450] sm:$0xff] }
 0xacc   : > { %25282 = vmatprep.mubr.msk.f32.mxu1 %vm26919_vm3, %v26909_v0  ;;  %24590 = vmatprep.mubr.msk.f32.mxu0 %vm26919_vm3, %v26909_v0 }
 0xacd   : > { %25530 = vmatprep.subr.bf16.mxu0 %v26935_v56 }
 0xace   : > { %24591 = vmatmul.mubr.msk.f32.gmra.mrb[16].mxu0 %vm16046_vm14, %v22806_v60 }
 0xacf   : > { %25283 = vmatmul.mubr.msk.f32.gmra.mrb[62].mxu1 %vm16046_vm14, %v23228_v62  ;;  %24593 = vmatprep.mubr.msk.f32.mxu0 %vm26919_vm3, %v26909_v0 }
 0xad0   : > { %25285 = vmatprep.mubr.msk.f32.mxu1 %vm26919_vm3, %v26909_v0 }
 0xad2   : > { %24594 = vmatmul.mubr.msk.f32.gmra.mrb[18].mxu0 %vm16046_vm14, %v22807_v30 }
 0xad3   : > { %25286 = vmatmul.mubr.msk.f32.gmra.mrb[64].mxu1 %vm16046_vm14, %v23229_v5  ;;  %24596 = vmatprep.mubr.msk.f32.mxu0 %vm26919_vm3, %v26909_v0 }
 0xad4   : > { %25288 = vmatprep.mubr.msk.f32.mxu1 %vm26919_vm3, %v26909_v0 }
 0xad6   : > { %24597 = vmatmul.mubr.msk.f32.gmra.mrb[20].mxu0 %vm16046_vm14, %v22808_v26  ;;  %v16015_v26 = vld [vmem:[%s31955_s6 + $0x8] sm:$0xff] }
 0xad7   : > { %25289 = vmatmul.mubr.msk.f32.gmra.mrb[66].mxu1 %vm16046_vm14, %v23230_v10  ;;  %24599 = vmatprep.mubr.msk.f32.mxu0 %vm26919_vm3, %v26909_v0 }
 0xad8   : > { %25291 = vmatprep.mubr.msk.f32.mxu1 %vm26919_vm3, %v26909_v0 }
 0xada   : > { %24600 = vmatmul.mubr.msk.f32.gmra.mrb[22].mxu0 %vm16046_vm14, %v22809_v27 }
 0xadb   : > { %25292 = vmatmul.mubr.msk.f32.gmra.mrb[68].mxu1 %vm16046_vm14, %v23231_v12  ;;  %24602 = vmatprep.mubr.msk.f32.mxu0 %vm26919_vm3, %v26909_v0 }
 0xadc   : > { %25294 = vmatprep.mubr.msk.f32.mxu1 %vm26919_vm3, %v26909_v0 }
 0xade   : > { %24603 = vmatmul.mubr.msk.f32.gmra.mrb[24].mxu0 %vm16046_vm14, %v22810_v13 }
 0xadf   : > { %25295 = vmatmul.mubr.msk.f32.gmra.mrb[70].mxu1 %vm16046_vm14, %v23232_v29  ;;  %24605 = vmatprep.mubr.msk.f32.mxu0 %vm26919_vm3, %v26909_v0 }
 0xae0   : > { %25297 = vmatprep.mubr.msk.f32.mxu1 %vm26919_vm3, %v26909_v0 }
 0xae2   : > { %24606 = vmatmul.mubr.msk.f32.gmra.mrb[26].mxu0 %vm16046_vm14, %v22811_v34 }
 0xae3   : > { %25298 = vmatmul.mubr.msk.f32.gmra.mrb[72].mxu1 %vm16046_vm14, %v23233_v1  ;;  %24608 = vmatprep.mubr.msk.f32.mxu0 %vm26919_vm3, %v26909_v0  ;;  %v16016_v1 = vld [vmem:[%s31955_s6 + $0x10] sm:$0xff] }
 0xae4   : > { %25300 = vmatprep.mubr.msk.f32.mxu1 %vm26919_vm3, %v26909_v0 }
 0xae6   : > { %24609 = vmatmul.mubr.msk.f32.gmra.mrb[28].mxu0 %vm16046_vm14, %v22812_v6 }
 0xae7   : > { %25301 = vmatmul.mubr.msk.f32.gmra.mrb[74].mxu1 %vm16046_vm14, %v23234_v33  ;;  %24611 = vmatprep.mubr.msk.f32.mxu0 %vm26919_vm3, %v26909_v0 }
 0xae8   : > { %25303 = vmatprep.mubr.msk.f32.mxu1 %vm26919_vm3, %v26909_v0 }
 0xaea   : > { %24612 = vmatmul.mubr.msk.f32.gmra.mrb[30].mxu0 %vm16046_vm14, %v22813_v51 }
 0xaeb   : > { %25304 = vmatmul.mubr.msk.f32.gmra.mrb[76].mxu1 %vm16046_vm14, %v23235_v49  ;;  %24614 = vmatprep.mubr.msk.f32.mxu0 %vm26919_vm3, %v26909_v0 }
 0xaec   : > { %25306 = vmatprep.mubr.msk.f32.mxu1 %vm26919_vm3, %v26909_v0 }
 0xaee   : > { %24615 = vmatmul.mubr.msk.f32.gmra.mrb[32].mxu0 %vm16046_vm14, %v22814_v17 }
 0xaef   : > { %25307 = vmatmul.mubr.msk.f32.gmra.mrb[78].mxu1 %vm16046_vm14, %v23236_v9  ;;  %24617 = vmatprep.mubr.msk.f32.mxu0 %vm26919_vm3, %v26909_v0 }
 0xaf0   : > { %25309 = vmatprep.mubr.msk.f32.mxu1 %vm26919_vm3, %v26909_v0 }
 0xaf2   : > { %24618 = vmatmul.mubr.msk.f32.gmra.mrb[34].mxu0 %vm16046_vm14, %v22815_v16 }
 0xaf3   : > { %25310 = vmatmul.mubr.msk.f32.gmra.mrb[80].mxu1 %vm16046_vm14, %v23237_v39  ;;  %24620 = vmatprep.mubr.msk.f32.mxu0 %vm26919_vm3, %v26909_v0 }
 0xaf4   : > { %25312 = vmatprep.mubr.msk.f32.mxu1 %vm26919_vm3, %v26909_v0 }
 0xaf6   : > { %24621 = vmatmul.mubr.msk.f32.gmra.mrb[36].mxu0 %vm16046_vm14, %v22816_v24  ;;  %v16017_v24 = vld [vmem:[%s31955_s6 + $0x18] sm:$0xff] }
 0xaf7   : > { %25313 = vmatmul.mubr.msk.f32.gmra.mrb[82].mxu1 %vm16046_vm14, %v23238_v36  ;;  %24623 = vmatprep.mubr.msk.f32.mxu0 %vm26919_vm3, %v26909_v0 }
 0xaf8   : > { %25315 = vmatprep.mubr.msk.f32.mxu1 %vm26919_vm3, %v26909_v0 }
 0xafa   : > { %24624 = vmatmul.mubr.msk.f32.gmra.mrb[38].mxu0 %vm16046_vm14, %v22817_v57 }
 0xafb   : > { %25316 = vmatmul.mubr.msk.f32.gmra.mrb[84].mxu1 %vm16046_vm14, %v23239_v2  ;;  %24626 = vmatprep.mubr.msk.f32.mxu0 %vm26919_vm3, %v26909_v0 }
 0xafc   : > { %25322 = vmatprep.mubr.msk.f32.mxu1 %vm26919_vm3, %v26909_v0 }
 0xafe   : > { %24627 = vmatmul.mubr.msk.f32.gmra.mrb[40].mxu0 %vm16046_vm14, %v22818_v59 }
 0xaff   : > { %25323 = vmatmul.mubr.msk.f32.vlgmr.msra.gmra.mrb[56].mxu1 %vm16046_vm14, %v23255_v18  ;;  %24629 = vmatprep.mubr.msk.f32.mxu0 %vm26919_vm3, %v26909_v0 }
 0xb00   : > { %25325 = vmatprep.mubr.msk.f32.mxu1 %vm26919_vm3, %v26909_v0 }
 0xb02   : > { %24630 = vmatmul.mubr.msk.f32.gmra.mrb[42].mxu0 %vm16046_vm14, %v22819_v15 }
 0xb03   : > { %25326 = vmatmul.mubr.msk.f32.gmra.mrb[58].mxu1 %vm16046_vm14, %v23256_v7  ;;  %24636 = vmatprep.mubr.msk.f32.mxu0 %vm26919_vm3, %v26909_v0 }
 0xb04   : > { %25328 = vmatprep.mubr.msk.f32.mxu1 %vm26919_vm3, %v26909_v0 }
 0xb06   : > { %24637 = vmatmul.mubr.msk.f32.vlgmr.msra.gmra.mrb[14].mxu0 %vm16046_vm14, %v22835_v32  ;;  %v16018_v32 = vld [vmem:[%s31955_s6 + $0x20] sm:$0xff] }
 0xb07   : > { %25329 = vmatmul.mubr.msk.f32.gmra.mrb[60].mxu1 %vm16046_vm14, %v23257_v48  ;;  %24639 = vmatprep.mubr.msk.f32.mxu0 %vm26919_vm3, %v26909_v0 }
 0xb08   : > { %25331 = vmatprep.mubr.msk.f32.mxu1 %vm26919_vm3, %v26909_v0 }
 0xb0a   : > { %24640 = vmatmul.mubr.msk.f32.gmra.mrb[16].mxu0 %vm16046_vm14, %v22836_v61 }
 0xb0b   : > { %25332 = vmatmul.mubr.msk.f32.gmra.mrb[62].mxu1 %vm16046_vm14, %v23258_v11  ;;  %24642 = vmatprep.mubr.msk.f32.mxu0 %vm26919_vm3, %v26909_v0 }
 0xb0c   : > { %25334 = vmatprep.mubr.msk.f32.mxu1 %vm26919_vm3, %v26909_v0 }
 0xb0e   : > { %24643 = vmatmul.mubr.msk.f32.gmra.mrb[18].mxu0 %vm16046_vm14, %v22837_v53 }
 0xb0f   : > { %25335 = vmatmul.mubr.msk.f32.gmra.mrb[64].mxu1 %vm16046_vm14, %v23259_v63  ;;  %24645 = vmatprep.mubr.msk.f32.mxu0 %vm26919_vm3, %v26909_v0 }
 0xb10   : > { %25337 = vmatprep.mubr.msk.f32.mxu1 %vm26919_vm3, %v26909_v0 }
 0xb12   : > { %24646 = vmatmul.mubr.msk.f32.gmra.mrb[20].mxu0 %vm16046_vm14, %v22838_v37 }
 0xb13   : > { %25338 = vmatmul.mubr.msk.f32.gmra.mrb[66].mxu1 %vm16046_vm14, %v23260_v21  ;;  %24648 = vmatprep.mubr.msk.f32.mxu0 %vm26919_vm3, %v26909_v0 }
 0xb14   : > { %25340 = vmatprep.mubr.msk.f32.mxu1 %vm26919_vm3, %v26909_v0 }
 0xb16   : > { %24649 = vmatmul.mubr.msk.f32.gmra.mrb[22].mxu0 %vm16046_vm14, %v22839_v38 }
 0xb17   : > { %25341 = vmatmul.mubr.msk.f32.gmra.mrb[68].mxu1 %vm16046_vm14, %v23261_v46  ;;  %24651 = vmatprep.mubr.msk.f32.mxu0 %vm26919_vm3, %v26909_v0  ;;  %v16019_v46 = vld [vmem:[%s31955_s6 + $0x28] sm:$0xff] }
 0xb18   : > { %25343 = vmatprep.mubr.msk.f32.mxu1 %vm26919_vm3, %v26909_v0 }
 0xb1a   : > { %24652 = vmatmul.mubr.msk.f32.gmra.mrb[24].mxu0 %vm16046_vm14, %v22840_v22 }
 0xb1b   : > { %25344 = vmatmul.mubr.msk.f32.gmra.mrb[70].mxu1 %vm16046_vm14, %v23262_v19  ;;  %24654 = vmatprep.mubr.msk.f32.mxu0 %vm26919_vm3, %v26909_v0 }
 0xb1c   : > { %25346 = vmatprep.mubr.msk.f32.mxu1 %vm26919_vm3, %v26909_v0 }
 0xb1e   : > { %24655 = vmatmul.mubr.msk.f32.gmra.mrb[26].mxu0 %vm16046_vm14, %v22841_v43 }
 0xb1f   : > { %25347 = vmatmul.mubr.msk.f32.gmra.mrb[72].mxu1 %vm16046_vm14, %v23263_v52  ;;  %24657 = vmatprep.mubr.msk.f32.mxu0 %vm26919_vm3, %v26909_v0 }
 0xb20   : > { %25349 = vmatprep.mubr.msk.f32.mxu1 %vm26919_vm3, %v26909_v0 }
 0xb22   : > { %24658 = vmatmul.mubr.msk.f32.gmra.mrb[28].mxu0 %vm16046_vm14, %v22842_v47 }
 0xb23   : > { %25350 = vmatmul.mubr.msk.f32.gmra.mrb[74].mxu1 %vm16046_vm14, %v23264_v44  ;;  %24660 = vmatprep.mubr.msk.f32.mxu0 %vm26919_vm3, %v26909_v0 }
 0xb24   : > { %25352 = vmatprep.mubr.msk.f32.mxu1 %vm26919_vm3, %v26909_v0 }
 0xb26   : > { %24661 = vmatmul.mubr.msk.f32.gmra.mrb[30].mxu0 %vm16046_vm14, %v22843_v40 }
 0xb27   : > { %25353 = vmatmul.mubr.msk.f32.gmra.mrb[76].mxu1 %vm16046_vm14, %v23265_v14  ;;  %24663 = vmatprep.mubr.msk.f32.mxu0 %vm26919_vm3, %v26909_v0  ;;  %v16020_v14 = vld [vmem:[%s31955_s6 + $0x30] sm:$0xff] }
 0xb28   : > { %25355 = vmatprep.mubr.msk.f32.mxu1 %vm26919_vm3, %v26909_v0 }
 0xb2a   : > { %24664 = vmatmul.mubr.msk.f32.gmra.mrb[32].mxu0 %vm16046_vm14, %v22844_v23 }
 0xb2b   : > { %25356 = vmatmul.mubr.msk.f32.gmra.mrb[78].mxu1 %vm16046_vm14, %v23266_v28  ;;  %24666 = vmatprep.mubr.msk.f32.mxu0 %vm26919_vm3, %v26909_v0 }
 0xb2c   : > { %25358 = vmatprep.mubr.msk.f32.mxu1 %vm26919_vm3, %v26909_v0 }
 0xb2e   : > { %24667 = vmatmul.mubr.msk.f32.gmra.mrb[34].mxu0 %vm16046_vm14, %v22845_v4 }
 0xb2f   : > { %25359 = vmatmul.mubr.msk.f32.gmra.mrb[80].mxu1 %vm16046_vm14, %v23267_v58  ;;  %24669 = vmatprep.mubr.msk.f32.mxu0 %vm26919_vm3, %v26909_v0 }
 0xb30   : > { %25361 = vmatprep.mubr.msk.f32.mxu1 %vm26919_vm3, %v26909_v0 }
 0xb32   : > { %24670 = vmatmul.mubr.msk.f32.gmra.mrb[36].mxu0 %vm16046_vm14, %v22846_v8 }
 0xb33   : > { %25362 = vmatmul.mubr.msk.f32.gmra.mrb[82].mxu1 %vm16046_vm14, %v23268_v35  ;;  %24672 = vmatprep.mubr.msk.f32.mxu0 %vm26919_vm3, %v26909_v0 }
 0xb34   : > { %25364 = vmatprep.mubr.msk.f32.mxu1 %vm26919_vm3, %v26909_v0 }
 0xb36   : > { %24673 = vmatmul.mubr.msk.f32.gmra.mrb[38].mxu0 %vm16046_vm14, %v22847_v41 }
 0xb37   : > { %25365 = vmatmul.mubr.msk.f32.gmra.mrb[84].mxu1 %vm16046_vm14, %v23269_v25  ;;  %24675 = vmatprep.mubr.msk.f32.mxu0 %vm26919_vm3, %v26909_v0 }
 0xb3a   : > { %24676 = vmatmul.mubr.msk.f32.gmra.mrb[40].mxu0 %vm16046_vm14, %v22848_v50  ;;  %v16021_v50 = vld [vmem:[%s31955_s6 + $0x38] sm:$0xff] }
 0xb3b   : > { %24678 = vmatprep.mubr.msk.f32.mxu0 %vm26919_vm3, %v26909_v0 }
 0xb3e   : > { %24679 = vmatmul.mubr.msk.f32.gmra.mrb[42].mxu0 %vm16046_vm14, %v22849_v55 }
 0xb3f   : > { %25397 = vmatprep.mubr.msk.f32.mxu0 %vm26919_vm3, %v26909_v0 }
 0xbd2   : > { %v21480_v20 = vpop.f32.mrb[56].mxu1 }
 0xbd3   : > { %v25324_v3 = vpop.f32.mrb[57].mxu1 }
 0xbd6   : > { %v21485_v31 = vpop.f32.mrb[58].mxu1 }
 0xbd7   : > { %v25327_v45 = vpop.f32.mrb[59].mxu1 }
 0xbd9   : > { %v18374_v54 = vpop.f32.mrb[14].mxu0 }
 0xbda   : > { %v21490_v60 = vpop.f32.mrb[60].mxu1  ;;  %v25575_v62 = vadd.f32 %v18374_v54, %v16014_v42  ;;  %v24638_v30 = vpop.f32.mrb[15].mxu0 }
 0xbdb   : > { %v25330_v5 = vpop.f32.mrb[61].mxu1 }
 0xbdc   : > { %v25576_v10 = vadd.f32 %v25575_v62, %v21480_v20 }
 0xbdd   : > { %v18379_v27 = vpop.f32.mrb[16].mxu0 }
 0xbde   : > { %v21495_v12 = vpop.f32.mrb[62].mxu1  ;;  %v25577_v13 = vadd.f32 %v18379_v27, %v16015_v26  ;;  %v24641_v29 = vpop.f32.mrb[17].mxu0  ;;  %v21569_v51 = vmax.f32 %v25576_v10, 0.0 }
 0xbdf   : > { %v25333_v34 = vpop.f32.mrb[63].mxu1  ;;  %v16023_v29 = vld [vmem:[%s31955_s6 + $0x48] sm:$0xff] }
 0xbe0   : > { %v25578_v6 = vadd.f32 %v25577_v13, %v21485_v31 }
 0xbe1   : > { %v18384_v33 = vpop.f32.mrb[18].mxu0 }
 0xbe2   : > { %v21500_v49 = vpop.f32.mrb[64].mxu1  ;;  %v21570_v17 = vmax.f32 %v25578_v6, 0.0  ;;  %v25579_v9 = vadd.f32 %v18384_v33, %v16016_v1  ;;  %v24644_v16 = vpop.f32.mrb[19].mxu0 }
 0xbe3   : > { %v25336_v39 = vpop.f32.mrb[65].mxu1 }
 0xbe4   : > { %v25531_v36 = vpack.c.bf16 %v21570_v17, %v21569_v51  ;;  %v25580_v57 = vadd.f32 %v25579_v9, %v21490_v60  ;;  %v16022_v60 = vld [vmem:[%s31955_s6 + $0x40] sm:$0xff]  ;;  %v16024_v9 = vld [vmem:[%s31955_s6 + $0x50] sm:$0xff] }
 0xbe5   : > { %v18389_v2 = vpop.f32.mrb[20].mxu0 }
 0xbe6   : > { %v21505_v59 = vpop.f32.mrb[66].mxu1  ;;  %v25581_v18 = vadd.f32 %v18389_v2, %v16017_v24  ;;  %v24647_v15 = vpop.f32.mrb[21].mxu0  ;;  %25532 = vmatpush3.bf16.msra.mxu0 %v25531_v36  ;;  %v21571_v11 = vmax.f32 %v25580_v57, 0.0 }
 0xbe7   : > { %v25339_v7 = vpop.f32.mrb[67].mxu1  ;;  %25533 = vmatprep.subr.bf16.mxu0 %v26935_v56  ;;  %v16025_v15 = vld [vmem:[%s31955_s6 + $0x58] sm:$0xff] }
 0xbe8   : > { %v25582_v48 = vadd.f32 %v25581_v18, %v21495_v12 }
 0xbe9   : > { %v18394_v61 = vpop.f32.mrb[22].mxu0 }
 0xbea   : > { %v21510_v53 = vpop.f32.mrb[68].mxu1  ;;  %v21572_v63 = vmax.f32 %v25582_v48, 0.0  ;;  %v25583_v37 = vadd.f32 %v18394_v61, %v16018_v32  ;;  %v24650_v21 = vpop.f32.mrb[23].mxu0 }
 0xbeb   : > { %v25342_v38 = vpop.f32.mrb[69].mxu1 }
 0xbec   : > { %v25534_v22 = vpack.c.bf16 %v21572_v63, %v21571_v11  ;;  %v25584_v19 = vadd.f32 %v25583_v37, %v21500_v49  ;;  %v16026_v37 = vld [vmem:[%s31955_s6 + $0x60] sm:$0xff] }
 0xbed   : > { %v18399_v43 = vpop.f32.mrb[24].mxu0 }
 0xbee   : > { %v21515_v52 = vpop.f32.mrb[70].mxu1  ;;  %v25585_v47 = vadd.f32 %v18399_v43, %v16019_v46  ;;  %v24653_v44 = vpop.f32.mrb[25].mxu0  ;;  %25535 = vmatpush3.bf16.msra.mxu0 %v25534_v22  ;;  %v21573_v4 = vmax.f32 %v25584_v19, 0.0 }
 0xbef   : > { %v25345_v40 = vpop.f32.mrb[71].mxu1  ;;  %25536 = vmatprep.subr.bf16.mxu0 %v26935_v56  ;;  %v16027_v44 = vld [vmem:[%s31955_s6 + $0x68] sm:$0xff] }
 0xbf0   : > { %v25586_v23 = vadd.f32 %v25585_v47, %v21505_v59 }
 0xbf1   : > { %v18404_v28 = vpop.f32.mrb[26].mxu0 }
 0xbf2   : > { %v21520_v58 = vpop.f32.mrb[72].mxu1  ;;  %v21574_v8 = vmax.f32 %v25586_v23, 0.0  ;;  %v25587_v35 = vadd.f32 %v18404_v28, %v16020_v14  ;;  %v24656_v41 = vpop.f32.mrb[27].mxu0 }
 0xbf3   : > { %v25348_v25 = vpop.f32.mrb[73].mxu1 }
 0xbf4   : > { %v25537_v55 = vpack.c.bf16 %v21574_v8, %v21573_v4  ;;  %v25588_v20 = vadd.f32 %v25587_v35, %v21510_v53 }
 0xbf5   : > { %v18409_v3 = vpop.f32.mrb[28].mxu0 }
 0xbf6   : > { %v21525_v31 = vpop.f32.mrb[74].mxu1  ;;  %v25589_v45 = vadd.f32 %v18409_v3, %v16021_v50  ;;  %v24659_v42 = vpop.f32.mrb[29].mxu0  ;;  %25538 = vmatpush3.bf16.msra.mxu0 %v25537_v55  ;;  %v21575_v5 = vmax.f32 %v25588_v20, 0.0 }
 0xbf7   : > { %v25351_v54 = vpop.f32.mrb[75].mxu1  ;;  %25539 = vmatprep.subr.bf16.mxu0 %v26935_v56  ;;  %v21586_v42 = vld [vmem:[%s31956_s7 + $0x10] sm:$0xff] }
 0xbf8   : > { %v25590_v62 = vadd.f32 %v25589_v45, %v21515_v52  ;;  %v21584_v45 = vld [vmem:[%s31956_s7] sm:$0xff]  ;;  %v21587_v54 = vld [vmem:[%s31956_s7 + $0x18] sm:$0xff] }
 0xbf9   : > { %v18414_v30 = vpop.f32.mrb[30].mxu0 }
 0xbfa   : > { %v21530_v26 = vpop.f32.mrb[76].mxu1  ;;  %v21576_v10 = vmax.f32 %v25590_v62, 0.0  ;;  %v25591_v27 = vadd.f32 %v18414_v30, %v16022_v60  ;;  %v24662_v12 = vpop.f32.mrb[31].mxu0  ;;  %v21588_v60 = vld [vmem:[%s31956_s7 + $0x20] sm:$0xff]  ;;  %v21589_v62 = vld [vmem:[%s31956_s7 + $0x28] sm:$0xff]  ;;  %v21590_v30 = vld [vmem:[%s31956_s7 + $0x30] sm:$0xff] }
 0xbfb   : > { %v25354_v13 = vpop.f32.mrb[77].mxu1  ;;  %v21770_v12 = vld [vmem:[%s31958_s9] sm:$0xff] }
 0xbfc   : > { %v25540_v34 = vpack.c.bf16 %v21576_v10, %v21575_v5  ;;  %v25592_v1 = vadd.f32 %v25591_v27, %v21520_v58  ;;  %v16028_v58 = vld [vmem:[%s31955_s6 + $0x70] sm:$0xff]  ;;  %v21591_v5 = vld [vmem:[%s31956_s7 + $0x38] sm:$0xff]  ;;  %v21593_v10 = vld [vmem:[%s31956_s7 + $0x48] sm:$0xff] }
 0xbfd   : > { %v18419_v6 = vpop.f32.mrb[32].mxu0  ;;  %v21594_v27 = vld [vmem:[%s31956_s7 + $0x50] sm:$0xf]  ;;  %v21595_v13 = vld [vmem:[%s31957_s8] sm:$0xff] }
 0xbfe   : > { %v21535_v33 = vpop.f32.mrb[78].mxu1  ;;  %v25593_v51 = vadd.f32 %v18419_v6, %v16023_v29  ;;  %v24665_v49 = vpop.f32.mrb[33].mxu0  ;;  %25541 = vmatpush3.bf16.msra.mxu0 %v25540_v34  ;;  %v21577_v24 = vmax.f32 %v25592_v1, 0.0 }
 0xbff   : > { %v25357_v17 = vpop.f32.mrb[79].mxu1  ;;  %25542 = vmatprep.subr.bf16.mxu0 %v26935_v56 }
 0xc00   : > { %v25594_v16 = vadd.f32 %v25593_v51, %v21525_v31 }
 0xc01   : > { %v18424_v39 = vpop.f32.mrb[34].mxu0 }
 0xc02   : > { %v21540_v36 = vpop.f32.mrb[80].mxu1  ;;  %v21578_v57 = vmax.f32 %v25594_v16, 0.0  ;;  %v25595_v2 = vadd.f32 %v18424_v39, %v16024_v9  ;;  %v24668_v59 = vpop.f32.mrb[35].mxu0  ;;  %v21597_v9 = vld [vmem:[%s31957_s8 + $0x10] sm:$0xff] }
 0xc03   : > { %v25360_v18 = vpop.f32.mrb[81].mxu1 }
 0xc04   : > { %v25543_v7 = vpack.c.bf16 %v21578_v57, %v21577_v24  ;;  %v25596_v32 = vadd.f32 %v25595_v2, %v21530_v26  ;;  %v21592_v26 = vld [vmem:[%s31956_s7 + $0x40] sm:$0xff] }
 0xc05   : > { %v18429_v48 = vpop.f32.mrb[36].mxu0 }
 0xc06   : > { %v21545_v61 = vpop.f32.mrb[82].mxu1  ;;  %v25597_v11 = vadd.f32 %v18429_v48, %v16025_v15  ;;  %v24671_v53 = vpop.f32.mrb[37].mxu0  ;;  %25544 = vmatpush3.bf16.msra.mxu0 %v25543_v7  ;;  %v21579_v46 = vmax.f32 %v25596_v32, 0.0  ;;  %v21599_v32 = vld [vmem:[%s31957_s8 + $0x20] sm:$0xff] }
 0xc07   : > { %v25363_v63 = vpop.f32.mrb[83].mxu1  ;;  %25545 = vmatprep.subr.bf16.mxu0 %v26935_v56  ;;  %v21600_v53 = vld [vmem:[%s31957_s8 + $0x28] sm:$0xff] }
 0xc08   : > { %v25598_v21 = vadd.f32 %v25597_v11, %v21535_v33 }
 0xc09   : > { %v18434_v38 = vpop.f32.mrb[38].mxu0 }
 0xc0a   : > { %v21550_v22 = vpop.f32.mrb[84].mxu1  ;;  %v21580_v19 = vmax.f32 %v25598_v21, 0.0  ;;  %v25599_v43 = vadd.f32 %v18434_v38, %v16026_v37  ;;  %v24674_v52 = vpop.f32.mrb[39].mxu0 }
 0xc0b   : > { %v25366_v47 = vpop.f32.mrb[85].mxu1 }
 0xc0c   : > { %v25546_v40 = vpack.c.bf16 %v21580_v19, %v21579_v46  ;;  %v25600_v14 = vadd.f32 %v25599_v43, %v21540_v36  ;;  %v21598_v36 = vld [vmem:[%s31957_s8 + $0x18] sm:$0xff]  ;;  %v21601_v19 = vld [vmem:[%s31957_s8 + $0x30] sm:$0xff] }
 0xc0d   : > { %v18439_v23 = vpop.f32.mrb[40].mxu0 }
 0xc0e   : > { %v25601_v28 = vadd.f32 %v18439_v23, %v16027_v44  ;;  %v24677_v4 = vpop.f32.mrb[41].mxu0  ;;  %25547 = vmatpush3.bf16.msra.mxu0 %v25546_v40  ;;  %v21581_v41 = vmax.f32 %v25600_v14, 0.0  ;;  %v21602_v44 = vld [vmem:[%s31957_s8 + $0x38] sm:$0xff] }
 0xc0f   : > { %25548 = vmatprep.subr.bf16.mxu0 %v26935_v56  ;;  %v21585_v56 = vld [vmem:[%s31956_s7 + $0x8] sm:$0xff] }
 0xc10   : > { %v25602_v8 = vadd.f32 %v25601_v28, %v21545_v61 }
 0xc11   : > { %v18444_v35 = vpop.f32.mrb[42].mxu0 }
 0xc12   : > { %v21582_v25 = vmax.f32 %v25602_v8, 0.0  ;;  %v25603_v50 = vadd.f32 %v18444_v35, %v16028_v58  ;;  %v24680_v55 = vpop.f32.mrb[43].mxu0  ;;  %v21603_v8 = vld [vmem:[%s31957_s8 + $0x40] sm:$0xff] }
 0xc14   : > { %v25549_v20 = vpack.c.bf16 %v21582_v25, %v21581_v41  ;;  %v25604_v3 = vadd.f32 %v25603_v50, %v21550_v22  ;;  %v21604_v50 = vld [vmem:[%s31957_s8 + $0x48] sm:$0xff] }
 0xc16   : > { %25550 = vmatpush3.bf16.msra.mxu0 %v25549_v20  ;;  %v21583_v31 = vmax.f32 %v25604_v3, 0.0 }
 0xc17   : > { %25395 = vmatprep.subr.mxu0 %v26909_v0 }
 0xc1a   : > { %25396 = vmatpush3.msra.mxu0 %v21583_v31 }
 0xc1b   : > { %25398 = vmatmul.mubr.msk.f32.vlgmr.msra.gmra.mrb[44].mxu0 %vm10106_vm9, %v21584_v45  ;;  %v21605_v45 = vld [vmem:[%s31957_s8 + $0x50] sm:$0xf] }
 0xc1c   : > { %25400 = vmatprep.mubr.msk.f32.mxu0 %vm26919_vm3, %v26909_v0 }
 0xc1f   : > { %25401 = vmatmul.mubr.msk.f32.gmra.mrb[46].mxu0 %vm10106_vm9, %v21585_v56 }
 0xc20   : > { %25403 = vmatprep.mubr.msk.f32.mxu0 %vm26919_vm3, %v26909_v0 }
 0xc23   : > { %25404 = vmatmul.mubr.msk.f32.gmra.mrb[48].mxu0 %vm10106_vm9, %v21586_v42 }
 0xc24   : > { %25406 = vmatprep.mubr.msk.f32.mxu0 %vm26919_vm3, %v26909_v0 }
 0xc27   : > { %25407 = vmatmul.mubr.msk.f32.gmra.mrb[50].mxu0 %vm10106_vm9, %v21587_v54 }
 0xc28   : > { %25409 = vmatprep.mubr.msk.f32.mxu0 %vm26919_vm3, %v26909_v0 }
 0xc2b   : > { %25410 = vmatmul.mubr.msk.f32.gmra.mrb[52].mxu0 %vm10106_vm9, %v21588_v60 }
 0xc2c   : > { %25412 = vmatprep.mubr.msk.f32.mxu0 %vm26919_vm3, %v26909_v0 }
 0xc2f   : > { %25413 = vmatmul.mubr.msk.f32.gmra.mrb[54].mxu0 %vm10106_vm9, %v21589_v62 }
 0xc30   : > { %25415 = vmatprep.mubr.msk.f32.mxu0 %vm26919_vm3, %v26909_v0 }
 0xc33   : > { %25416 = vmatmul.mubr.msk.f32.gmra.mrb[56].mxu0 %vm10106_vm9, %v21590_v30 }
 0xc34   : > { %25418 = vmatprep.mubr.msk.f32.mxu0 %vm26919_vm3, %v26909_v0 }
 0xc37   : > { %25419 = vmatmul.mubr.msk.f32.gmra.mrb[58].mxu0 %vm10106_vm9, %v21591_v5 }
 0xc38   : > { %25421 = vmatprep.mubr.msk.f32.mxu0 %vm26919_vm3, %v26909_v0 }
 0xc3b   : > { %25422 = vmatmul.mubr.msk.f32.gmra.mrb[60].mxu0 %vm10106_vm9, %v21592_v26  ;;  %v21771_v26 = vld [vmem:[%s31958_s9 + $0x8] sm:$0x3] }
 0xc3c   : > { %25424 = vmatprep.mubr.msk.f32.mxu0 %vm26919_vm3, %v26909_v0 }
 0xc3f   : > { %25425 = vmatmul.mubr.msk.f32.gmra.mrb[62].mxu0 %vm10106_vm9, %v21593_v10  ;;  %v21773_v10 = vld [vmem:[%s31959_s10 + $0x8] sm:$0x3] }
 0xc40   : > { %25427 = vmatprep.mubr.msk.f32.mxu0 %vm26919_vm3, %v26909_v0  ;;  %v21596_v0 = vld [vmem:[%s31957_s8 + $0x8] sm:$0xff]  ;;  %vm21781_vm3 = vcmask 1043456  }
 0xc43   : > { %25428 = vmatmul.mubr.msk.f32.gmra.mrb[64].mxu0 %vm10106_vm9, %v21594_v27  ;;  %v21772_v27 = vld [vmem:[%s31959_s10] sm:$0xff] }
 0xc44   : > { %25452 = vmatprep.mubr.msk.f32.mxu0 %vm21774_vm12, %v21770_v12 }
 0xcee   : > { %v21705_v29 = vpop.f32.mrb[44].mxu0 }
 0xcef   : > { %v25399_v34 = vpop.f32.mrb[45].mxu0  ;;  %v21706_v1 = vadd.f32 %v21705_v29, %v21595_v13 }
 0xcf1   : > { %v21759_v49 = vmax.f32 %v21706_v1, 0.0 }
 0xcf2   : > { %v21710_v6 = vpop.f32.mrb[46].mxu0 }
 0xcf3   : > { %v21711_v33 = vadd.f32 %v21710_v6, %v21596_v0  ;;  %v25402_v51 = vpop.f32.mrb[47].mxu0 }
 0xcf5   : > { %v21760_v17 = vmax.f32 %v21711_v33, 0.0 }
 0xcf6   : > { %v21715_v16 = vpop.f32.mrb[48].mxu0 }
 0xcf7   : > { %v25551_v39 = vpack.c.bf16 %v21760_v17, %v21759_v49  ;;  %v25405_v24 = vpop.f32.mrb[49].mxu0  ;;  %v21716_v57 = vadd.f32 %v21715_v16, %v21597_v9 }
 0xcf9   : > { %25552 = vmatprep.subr.bf16.mxu0 %v25551_v39  ;;  %v21761_v15 = vmax.f32 %v21716_v57, 0.0 }
 0xcfa   : > { %v21720_v2 = vpop.f32.mrb[50].mxu0  ;;  %25554 = vmatpush3.bf16.msra.mxu0 %v25551_v39 }
 0xcfb   : > { %v21721_v59 = vadd.f32 %v21720_v2, %v21598_v36  ;;  %v25408_v18 = vpop.f32.mrb[51].mxu0 }
 0xcfd   : > { %v21762_v7 = vmax.f32 %v21721_v59, 0.0 }
 0xcfe   : > { %v21725_v48 = vpop.f32.mrb[52].mxu0 }
 0xcff   : > { %v25555_v61 = vpack.c.bf16 %v21762_v7, %v21761_v15  ;;  %v25411_v11 = vpop.f32.mrb[53].mxu0  ;;  %v21726_v63 = vadd.f32 %v21725_v48, %v21599_v32 }
 0xd01   : > { %25556 = vmatprep.subr.bf16.mxu0 %v25555_v61  ;;  %v21763_v46 = vmax.f32 %v21726_v63, 0.0 }
 0xd02   : > { %v21730_v37 = vpop.f32.mrb[54].mxu0  ;;  %25558 = vmatpush3.bf16.msra.mxu0 %v25555_v61 }
 0xd03   : > { %v21731_v21 = vadd.f32 %v21730_v37, %v21600_v53  ;;  %v25414_v38 = vpop.f32.mrb[55].mxu0 }
 0xd05   : > { %v21764_v22 = vmax.f32 %v21731_v21, 0.0 }
 0xd06   : > { %v21735_v43 = vpop.f32.mrb[56].mxu0 }
 0xd07   : > { %v25559_v52 = vpack.c.bf16 %v21764_v22, %v21763_v46  ;;  %v25417_v47 = vpop.f32.mrb[57].mxu0  ;;  %v21736_v40 = vadd.f32 %v21735_v43, %v21601_v19 }
 0xd09   : > { %25560 = vmatprep.subr.bf16.mxu0 %v25559_v52  ;;  %v21765_v4 = vmax.f32 %v21736_v40, 0.0 }
 0xd0a   : > { %v21740_v14 = vpop.f32.mrb[58].mxu0  ;;  %25562 = vmatpush3.bf16.msra.mxu0 %v25559_v52 }
 0xd0b   : > { %v21741_v23 = vadd.f32 %v21740_v14, %v21602_v44  ;;  %v25420_v28 = vpop.f32.mrb[59].mxu0 }
 0xd0d   : > { %v21766_v58 = vmax.f32 %v21741_v23, 0.0 }
 0xd0e   : > { %v21745_v35 = vpop.f32.mrb[60].mxu0 }
 0xd0f   : > { %v25563_v41 = vpack.c.bf16 %v21766_v58, %v21765_v4  ;;  %v25423_v25 = vpop.f32.mrb[61].mxu0  ;;  %v21746_v55 = vadd.f32 %v21745_v35, %v21603_v8 }
 0xd11   : > { %25564 = vmatprep.subr.bf16.mxu0 %v25563_v41  ;;  %v21767_v56 = vmax.f32 %v21746_v55, 0.0 }
 0xd12   : > { %v21750_v20 = vpop.f32.mrb[62].mxu0  ;;  %25566 = vmatpush3.bf16.msra.mxu0 %v25563_v41 }
 0xd13   : > { %v21751_v3 = vadd.f32 %v21750_v20, %v21604_v50  ;;  %v25426_v31 = vpop.f32.mrb[63].mxu0 }
 0xd15   : > { %v21768_v42 = vmax.f32 %v21751_v3, 0.0 }
 0xd16   : > { %v21755_v54 = vpop.f32.mrb[64].mxu0 }
 0xd17   : > { %v25567_v60 = vpack.c.bf16 %v21768_v42, %v21767_v56  ;;  %v21756_v62 = vadd.f32 %v21755_v54, %v21605_v45  ;;  %v25429_v30 = vpop.f32.mrb[65].mxu0 }
 0xd19   : > { %25568 = vmatprep.subr.bf16.mxu0 %v25567_v60  ;;  %v21769_v5 = vmax.f32 %v21756_v62, 0.0 }
 0xd1a   : > { %25570 = vmatpush3.bf16.msra.mxu0 %v25567_v60 }
 0xd1b   : > { %25450 = vmatprep.subr.msk.mxu0 %vm21781_vm3, %v21769_v5 }
 0xd1e   : > { %25451 = vmatpush3.msk.msra.mxu0 %vm21781_vm3, %v21769_v5 }
 0xd1f   : > { %25453 = vmatmul.mubr.msk.f32.vlgmr.msra.gmra.mrb[66].mxu0 %vm21774_vm12, %v21771_v26 }
 0xdf2   : > { %v25454_v12 = vpop.f32.mrb[66].mxu0 }
 0xdf3   : > { %v21857_v13 = vadd.f32 %v25454_v12, %v21773_v10  ;;  %v21851_v29 = vpop.f32.mrb[67].mxu0 }
 0xdf4   : > { %v21852_v34 = vadd.f32 %v21851_v29, %v21772_v27 }
 0xdf5   : > { %21863 = vst.msk [vmem:[%s386_s30 + $0x8] sm:$0x3] %vm21862_vm8, %v21857_v13 }
 0xdf6   : > { %21861 = vst.msk [vmem:[%s386_s30] sm:$0xff] %vm21860_vm13, %v21852_v34 }
 0xdf7 PF: > { %s21_s17 = sadd.s32 1, %s26907_s17  }
 0xdf8   : > { %p18_p4 = scmp.ge.s32.totalorder %s21_s17, 4  }
 0xdfa   :  { %20 = sbr.rel (!%p18_p4) target bundleno = 1 (0x1), region = 166 }

</bundles_post_ra>
